<compile_context>
chip_gen: v7x
topology: tpu7x:2x2x1
jax: 0.10.0
libtpu: 0.0.40
codegen_flags: <defaults>
</compile_context>

<pallas_src>
import functools

import jax
import jax.numpy as jnp
from jax.experimental import pallas as pl
from jax.experimental.pallas import tpu as pltpu

# ---- small synthetic config (structure mirrors diffusers DiTTransformer2DModel)
B = 2              # batch
IN_CH = 4          # latent channels
IMG = 16           # latent spatial size
PATCH = 2          # patch size
GRID = IMG // PATCH
N_TOK = GRID * GRID            # 64 tokens
D = 128                        # inner_dim = heads * head_dim (lane-dense)
HEADS = 4
HD = D // HEADS                # 32
L = 2                          # num_layers
FF = 4 * D                     # feed-forward inner dim
OUT_CH = 2 * IN_CH             # learned-sigma output channels
PPC = PATCH * PATCH * IN_CH    # 16  (patchified input token dim)
PPOUT = PATCH * PATCH * OUT_CH # 32  (output token dim)
T_FREQ = 256                   # Timesteps num_channels
NUM_CLASSES = 10
SCALE = 1.0 / (HD ** 0.5)

EPS_ADA = 1e-6     # AdaLayerNormZero internal LN / norm_out
EPS_LN2 = 1e-5     # BasicTransformerBlock norm2 (norm_eps)


# --------------------------------------------------------------------------
# The single fused DiT kernel (one grid step == one batch element)
# --------------------------------------------------------------------------
def _dit_kernel(x_ref, tproj_ref, cls_ref, pos_ref,
                wp_ref, bp_ref,
                wt1_ref, bt1_ref, wt2_ref, bt2_ref,
                wada_ref, bada_ref,
                wqkv_ref, bqkv_ref, wo_ref, bo_ref,
                wf1_ref, bf1_ref, wf2_ref, bf2_ref,
                wp1_ref, bp1_ref, wp2_ref, bp2_ref,
                o_ref):
    f32 = jnp.float32
    bf16 = jnp.bfloat16

    def mm(a, w, b):
        # bf16 MXU operands, f32 accumulation, f32 bias epilogue.
        return jnp.dot(a.astype(bf16), w, preferred_element_type=f32) + b

    def silu(x):
        return x * jax.nn.sigmoid(x)

    def layer_norm(x, eps):
        # no affine (elementwise_affine=False); centered variance (no cancellation).
        mu = jnp.mean(x, axis=-1, keepdims=True)
        xc = x - mu
        var = jnp.mean(xc * xc, axis=-1, keepdims=True)
        return xc * jax.lax.rsqrt(var + eps)

    tproj = tproj_ref[0].astype(f32)       # (1, 256) sinusoidal timestep features
    cls_all = cls_ref[0].astype(f32)       # (L, D)   per-layer class embeddings

    # ---- PatchEmbed: patchify-matmul + bias + fixed sincos pos embed
    h = mm(x_ref[0], wp_ref[...], bp_ref[...]) + pos_ref[...].astype(f32)   # (N, D)

    cond0_act = None
    for l in range(L):
        # -- per-block CombinedTimestepLabelEmbeddings (own MLP + class table)
        temb = mm(tproj, wt1_ref[l], bt1_ref[l])          # linear_1
        temb = mm(silu(temb), wt2_ref[l], bt2_ref[l])     # SiLU -> linear_2
        cond = temb + cls_all[l:l + 1]                    # (1, D)
        cond_act = silu(cond)
        if l == 0:
            cond0_act = cond_act                          # reused by output head

        # -- AdaLayerNormZero: linear(silu(cond)) -> 6 chunks
        ada = mm(cond_act, wada_ref[l], bada_ref[l])      # (1, 6D)
        shift_msa = ada[:, 0 * D:1 * D]
        scale_msa = ada[:, 1 * D:2 * D]
        gate_msa = ada[:, 2 * D:3 * D]
        shift_mlp = ada[:, 3 * D:4 * D]
        scale_mlp = ada[:, 4 * D:5 * D]
        gate_mlp = ada[:, 5 * D:6 * D]

        # -- self-attention (fused QKV matmul, per-head softmax)
        hn = layer_norm(h, EPS_ADA) * (1.0 + scale_msa) + shift_msa
        qkv = mm(hn, wqkv_ref[l], bqkv_ref[l])            # (N, 3D)
        heads = []
        for hh in range(HEADS):
            q = qkv[:, hh * HD:(hh + 1) * HD]
            k = qkv[:, D + hh * HD:D + (hh + 1) * HD]
            v = qkv[:, 2 * D + hh * HD:2 * D + (hh + 1) * HD]
            logits = jax.lax.dot_general(
                q.astype(bf16), k.astype(bf16),
                (((1,), (1,)), ((), ())),
                preferred_element_type=f32) * SCALE       # (N, N)
            logits = logits - jnp.max(logits, axis=-1, keepdims=True)
            p = jnp.exp(logits)
            p = p * pl.reciprocal(jnp.sum(p, axis=-1, keepdims=True), approx=True)
            heads.append(jnp.dot(p.astype(bf16), v.astype(bf16),
                                 preferred_element_type=f32))
        attn_out = jnp.concatenate(heads, axis=-1)        # (N, D)
        attn_out = mm(attn_out, wo_ref[l], bo_ref[l])
        h = h + gate_msa * attn_out                       # gated residual

        # -- feed-forward (gelu-approximate)
        hn2 = layer_norm(h, EPS_LN2) * (1.0 + scale_mlp) + shift_mlp
        ff = mm(hn2, wf1_ref[l], bf1_ref[l])              # (N, 4D)
        ff = jax.nn.gelu(ff, approximate=True)
        ff = mm(ff, wf2_ref[l], bf2_ref[l])               # (N, D)
        h = h + gate_mlp * ff                             # gated residual

    # ---- output head: LN modulated by block-0 conditioning, then projection
    ada_out = mm(cond0_act, wp1_ref[...], bp1_ref[...])   # (1, 2D)
    shift = ada_out[:, :D]
    scale = ada_out[:, D:]
    hn = layer_norm(h, EPS_ADA) * (1.0 + scale) + shift
    out = mm(hn, wp2_ref[...], bp2_ref[...])              # (N, PPOUT)
    o_ref[0] = out.astype(o_ref.dtype)


def _const_spec(shape):
    nd = len(shape)
    return pl.BlockSpec(shape, lambda i, nd=nd: (0,) * nd)


def _batch_spec(*tail):
    nd = len(tail)
    return pl.BlockSpec((1,) + tail, lambda i, nd=nd: (i,) + (0,) * nd)


# --------------------------------------------------------------------------
# JAX wrapper: layout plumbing + single fused pallas_call
# --------------------------------------------------------------------------
def pretrained_dit_forward(x_nchw, timestep, class_labels, params):
    b = x_nchw.shape[0]

    # PatchEmbed's strided conv == reshape to (B, N, p*p*C) followed by a matmul
    # (done inside the kernel); here only the layout reshuffle.
    xp = x_nchw.reshape(b, IN_CH, GRID, PATCH, GRID, PATCH)
    xp = jnp.transpose(xp, (0, 2, 4, 3, 5, 1)).reshape(b, N_TOK, PPC)

    # Timesteps module (num_channels=256, flip_sin_to_cos=True,
    # downscale_freq_shift=0 as set by PretrainedDiT).
    half = T_FREQ // 2
    freqs = jnp.exp(-jnp.log(10000.0) * jnp.arange(half, dtype=jnp.float32) / half)
    ang = timestep.astype(jnp.float32)[:, None] * freqs[None, :]
    tproj = jnp.concatenate([jnp.cos(ang), jnp.sin(ang)], axis=-1)   # (B, 256)
    tproj = tproj.reshape(b, 1, T_FREQ)

    # Per-layer LabelEmbedding lookup (row gather).
    cls_emb = params['cls_table'][:, class_labels]        # (L, B, D)
    cls_emb = jnp.transpose(cls_emb, (1, 0, 2))           # (B, L, D)

    out_tok = pl.pallas_call(
        _dit_kernel,
        out_shape=jax.ShapeDtypeStruct((b, N_TOK, PPOUT), jnp.float32),
        grid=(b,),
        in_specs=[
            _batch_spec(N_TOK, PPC),            # patchified input
            _batch_spec(1, T_FREQ),             # timestep sinusoid
            _batch_spec(L, D),                  # class embeddings
            _const_spec((N_TOK, D)),            # pos embed
            _const_spec((PPC, D)), _const_spec((1, D)),          # patch proj
            _const_spec((L, T_FREQ, D)), _const_spec((L, 1, D)),  # t-emb linear_1
            _const_spec((L, D, D)), _const_spec((L, 1, D)),       # t-emb linear_2
            _const_spec((L, D, 6 * D)), _const_spec((L, 1, 6 * D)),  # adaLN linear
            _const_spec((L, D, 3 * D)), _const_spec((L, 1, 3 * D)),  # fused QKV
            _const_spec((L, D, D)), _const_spec((L, 1, D)),          # attn out proj
            _const_spec((L, D, FF)), _const_spec((L, 1, FF)),        # ff linear 1
            _const_spec((L, FF, D)), _const_spec((L, 1, D)),         # ff linear 2
            _const_spec((D, 2 * D)), _const_spec((1, 2 * D)),        # proj_out_1
            _const_spec((D, PPOUT)), _const_spec((1, PPOUT)),        # proj_out_2
        ],
        out_specs=pl.BlockSpec((1, N_TOK, PPOUT), lambda i: (i, 0, 0)),
        compiler_params=pltpu.CompilerParams(
            dimension_semantics=("parallel",)),   # batch across TCs on v7x
    )(xp, tproj, cls_emb, params['pos_embed'],
      params['w_patch'], params['b_patch'],
      params['wt1'], params['bt1'], params['wt2'], params['bt2'],
      params['wada'], params['bada'],
      params['wqkv'], params['bqkv'], params['wo'], params['bo'],
      params['wf1'], params['bf1'], params['wf2'], params['bf2'],
      params['wp1'], params['bp1'], params['wp2'], params['bp2'])

    # unpatchify: (B, N, p*p*C_out) -> "nhwpqc->nchpwq" -> (B, C_out, H, W)
    y = out_tok.reshape(b, GRID, GRID, PATCH, PATCH, OUT_CH)
    y = jnp.transpose(y, (0, 5, 1, 3, 2, 4)).reshape(b, OUT_CH, IMG, IMG)
    return y


# --------------------------------------------------------------------------
# Deterministic synthetic parameters (from_pretrained has no Pallas analogue)
# --------------------------------------------------------------------------
def _sincos_1d(dim, pos):
    omega = jnp.arange(dim // 2, dtype=jnp.float32) / (dim / 2.0)
    omega = 1.0 / (10000.0 ** omega)
    out = pos[:, None] * omega[None, :]
    return jnp.concatenate([jnp.sin(out), jnp.cos(out)], axis=1)


def _pos_embed_2d(dim, grid_size):
    ys, xs = jnp.meshgrid(jnp.arange(grid_size, dtype=jnp.float32),
                          jnp.arange(grid_size, dtype=jnp.float32), indexing='ij')
    emb_h = _sincos_1d(dim // 2, ys.reshape(-1))
    emb_w = _sincos_1d(dim // 2, xs.reshape(-1))
    return jnp.concatenate([emb_h, emb_w], axis=1)        # (grid*grid, dim)


def init_params(key):
    keys = iter(jax.random.split(key, 64))
    nk = lambda: next(keys)

    def w(shape, scale=0.02):
        # MXU-facing weights stored in bf16 (halves DMA, native MXU path).
        return (jax.random.normal(nk(), shape, jnp.float32) * scale).astype(jnp.bfloat16)

    def z(shape):
        return jnp.zeros(shape, jnp.float32)

    return dict(
        w_patch=w((PPC, D)), b_patch=z((1, D)),
        wt1=w((L, T_FREQ, D)), bt1=z((L, 1, D)),
        wt2=w((L, D, D)), bt2=z((L, 1, D)),
        cls_table=jax.random.normal(nk(), (L, NUM_CLASSES + 1, D), jnp.float32) * 0.02,
        wada=w((L, D, 6 * D)), bada=z((L, 1, 6 * D)),
        wqkv=w((L, D, 3 * D)), bqkv=z((L, 1, 3 * D)),
        wo=w((L, D, D)), bo=z((L, 1, D)),
        wf1=w((L, D, FF)), bf1=z((L, 1, FF)),
        wf2=w((L, FF, D)), bf2=z((L, 1, D)),
        wp1=w((D, 2 * D)), bp1=z((1, 2 * D)),
        wp2=w((D, PPOUT)), bp2=z((1, PPOUT)),
        pos_embed=_pos_embed_2d(D, GRID),
    )


if __name__ == "__main__":
    key = jax.random.PRNGKey(0)
    pkey, xkey, tkey, ckey = jax.random.split(key, 4)
    params = init_params(pkey)
    x = jax.random.normal(xkey, (B, IN_CH, IMG, IMG), jnp.float32)       # NCHW latent
    timestep = jax.random.randint(tkey, (B,), 0, 1000, jnp.int32)
    class_labels = jax.random.randint(ckey, (B,), 0, NUM_CLASSES, jnp.int32)

    out = jax.jit(pretrained_dit_forward)(x, timestep, class_labels, params)
    out = jax.block_until_ready(out)

    assert out.shape == (B, OUT_CH, IMG, IMG) and out.dtype == jnp.float32
    assert bool(jnp.all(jnp.isfinite(out)))
    print("KERNEL_OK")
</pallas_src>

<mosaic_0001>
module attributes {stable_mosaic.version = 11 : i64} {
  func.func @_dit_kernel(%arg0: i32, %arg1: memref<1x64x16xf32, #tpu.memory_space<vmem>>, %arg2: memref<1x1x256xf32, #tpu.memory_space<vmem>>, %arg3: memref<1x2x128xf32, #tpu.memory_space<vmem>>, %arg4: memref<64x128xf32, #tpu.memory_space<vmem>>, %arg5: memref<16x128xbf16, #tpu.memory_space<vmem>>, %arg6: memref<1x128xf32, #tpu.memory_space<vmem>>, %arg7: memref<2x256x128xbf16, #tpu.memory_space<vmem>>, %arg8: memref<2x1x128xf32, #tpu.memory_space<vmem>>, %arg9: memref<2x128x128xbf16, #tpu.memory_space<vmem>>, %arg10: memref<2x1x128xf32, #tpu.memory_space<vmem>>, %arg11: memref<2x128x768xbf16, #tpu.memory_space<vmem>>, %arg12: memref<2x1x768xf32, #tpu.memory_space<vmem>>, %arg13: memref<2x128x384xbf16, #tpu.memory_space<vmem>>, %arg14: memref<2x1x384xf32, #tpu.memory_space<vmem>>, %arg15: memref<2x128x128xbf16, #tpu.memory_space<vmem>>, %arg16: memref<2x1x128xf32, #tpu.memory_space<vmem>>, %arg17: memref<2x128x512xbf16, #tpu.memory_space<vmem>>, %arg18: memref<2x1x512xf32, #tpu.memory_space<vmem>>, %arg19: memref<2x512x128xbf16, #tpu.memory_space<vmem>>, %arg20: memref<2x1x128xf32, #tpu.memory_space<vmem>>, %arg21: memref<128x256xbf16, #tpu.memory_space<vmem>>, %arg22: memref<1x256xf32, #tpu.memory_space<vmem>>, %arg23: memref<128x32xbf16, #tpu.memory_space<vmem>>, %arg24: memref<1x32xf32, #tpu.memory_space<vmem>>, %arg25: memref<1x64x32xf32, #tpu.memory_space<vmem>>) attributes {dimension_semantics = [#tpu.dimension_semantics<parallel>], iteration_bounds = array<i64: 2>, scalar_prefetch = 0 : i64, scratch_operands = 0 : i64, tpu.core_type = #tpu.core_type<tc>, window_params = [{transform_indices = @transform_0, window_bounds = array<i64: 1, 64, 16>}, {transform_indices = @transform_1, window_bounds = array<i64: 1, 1, 256>}, {transform_indices = @transform_2, window_bounds = array<i64: 1, 2, 128>}, {pipeline_mode = #tpu.pipeline_mode<synchronous>, transform_indices = @transform_3, window_bounds = array<i64: 64, 128>}, {pipeline_mode = #tpu.pipeline_mode<synchronous>, transform_indices = @transform_4, window_bounds = array<i64: 16, 128>}, {pipeline_mode = #tpu.pipeline_mode<synchronous>, transform_indices = @transform_5, window_bounds = array<i64: 1, 128>}, {pipeline_mode = #tpu.pipeline_mode<synchronous>, transform_indices = @transform_6, window_bounds = array<i64: 2, 256, 128>}, {pipeline_mode = #tpu.pipeline_mode<synchronous>, transform_indices = @transform_7, window_bounds = array<i64: 2, 1, 128>}, {pipeline_mode = #tpu.pipeline_mode<synchronous>, transform_indices = @transform_8, window_bounds = array<i64: 2, 128, 128>}, {pipeline_mode = #tpu.pipeline_mode<synchronous>, transform_indices = @transform_9, window_bounds = array<i64: 2, 1, 128>}, {pipeline_mode = #tpu.pipeline_mode<synchronous>, transform_indices = @transform_10, window_bounds = array<i64: 2, 128, 768>}, {pipeline_mode = #tpu.pipeline_mode<synchronous>, transform_indices = @transform_11, window_bounds = array<i64: 2, 1, 768>}, {pipeline_mode = #tpu.pipeline_mode<synchronous>, transform_indices = @transform_12, window_bounds = array<i64: 2, 128, 384>}, {pipeline_mode = #tpu.pipeline_mode<synchronous>, transform_indices = @transform_13, window_bounds = array<i64: 2, 1, 384>}, {pipeline_mode = #tpu.pipeline_mode<synchronous>, transform_indices = @transform_14, window_bounds = array<i64: 2, 128, 128>}, {pipeline_mode = #tpu.pipeline_mode<synchronous>, transform_indices = @transform_15, window_bounds = array<i64: 2, 1, 128>}, {pipeline_mode = #tpu.pipeline_mode<synchronous>, transform_indices = @transform_16, window_bounds = array<i64: 2, 128, 512>}, {pipeline_mode = #tpu.pipeline_mode<synchronous>, transform_indices = @transform_17, window_bounds = array<i64: 2, 1, 512>}, {pipeline_mode = #tpu.pipeline_mode<synchronous>, transform_indices = @transform_18, window_bounds = array<i64: 2, 512, 128>}, {pipeline_mode = #tpu.pipeline_mode<synchronous>, transform_indices = @transform_19, window_bounds = array<i64: 2, 1, 128>}, {pipeline_mode = #tpu.pipeline_mode<synchronous>, transform_indices = @transform_20, window_bounds = array<i64: 128, 256>}, {pipeline_mode = #tpu.pipeline_mode<synchronous>, transform_indices = @transform_21, window_bounds = array<i64: 1, 256>}, {pipeline_mode = #tpu.pipeline_mode<synchronous>, transform_indices = @transform_22, window_bounds = array<i64: 128, 32>}, {pipeline_mode = #tpu.pipeline_mode<synchronous>, transform_indices = @transform_23, window_bounds = array<i64: 1, 32>}, {transform_indices = @transform_24, window_bounds = array<i64: 1, 64, 32>}]} {
    %c0 = arith.constant 0 : index
    %c0_0 = arith.constant 0 : index
    %c0_1 = arith.constant 0 : index
    %0 = vector.load %arg2[%c0, %c0_0, %c0_1] : memref<1x1x256xf32, #tpu.memory_space<vmem>>, vector<1x1x256xf32>
    %1 = vector.shape_cast %0 : vector<1x1x256xf32> to vector<1x256xf32>
    %c0_2 = arith.constant 0 : index
    %c0_3 = arith.constant 0 : index
    %c0_4 = arith.constant 0 : index
    %2 = vector.load %arg3[%c0_2, %c0_3, %c0_4] : memref<1x2x128xf32, #tpu.memory_space<vmem>>, vector<1x2x128xf32>
    %3 = vector.shape_cast %2 : vector<1x2x128xf32> to vector<2x128xf32>
    %c0_5 = arith.constant 0 : index
    %c0_6 = arith.constant 0 : index
    %c0_7 = arith.constant 0 : index
    %4 = vector.load %arg1[%c0_5, %c0_6, %c0_7] : memref<1x64x16xf32, #tpu.memory_space<vmem>>, vector<1x64x16xf32>
    %5 = vector.shape_cast %4 : vector<1x64x16xf32> to vector<64x16xf32>
    %c0_8 = arith.constant 0 : index
    %c0_9 = arith.constant 0 : index
    %6 = vector.load %arg5[%c0_8, %c0_9] : memref<16x128xbf16, #tpu.memory_space<vmem>>, vector<16x128xbf16>
    %c0_10 = arith.constant 0 : index
    %c0_11 = arith.constant 0 : index
    %7 = vector.load %arg6[%c0_10, %c0_11] : memref<1x128xf32, #tpu.memory_space<vmem>>, vector<1x128xf32>
    %8 = arith.truncf %5 : vector<64x16xf32> to vector<64x16xbf16>
    %cst = arith.constant dense<0.000000e+00> : vector<64x128xf32>
    %9 = tpu.matmul %8, %6, %cst {dimension_numbers = #tpu.dot_dimension_numbers<[1], [0], [0], [1], [0, 0, 1, 1], [], []>} : vector<64x16xbf16>, vector<16x128xbf16>, vector<64x128xf32> -> vector<64x128xf32>
    %10 = vector.broadcast %7 : vector<1x128xf32> to vector<64x128xf32>
    %11 = arith.addf %9, %10 : vector<64x128xf32>
    %c0_12 = arith.constant 0 : index
    %c0_13 = arith.constant 0 : index
    %12 = vector.load %arg4[%c0_12, %c0_13] : memref<64x128xf32, #tpu.memory_space<vmem>>, vector<64x128xf32>
    %13 = arith.addf %11, %12 : vector<64x128xf32>
    %c0_14 = arith.constant 0 : index
    %c0_15 = arith.constant 0 : index
    %c0_16 = arith.constant 0 : index
    %14 = vector.load %arg7[%c0_14, %c0_15, %c0_16] : memref<2x256x128xbf16, #tpu.memory_space<vmem>>, vector<1x256x128xbf16>
    %15 = vector.shape_cast %14 : vector<1x256x128xbf16> to vector<256x128xbf16>
    %c0_17 = arith.constant 0 : index
    %c0_18 = arith.constant 0 : index
    %c0_19 = arith.constant 0 : index
    %16 = vector.load %arg8[%c0_17, %c0_18, %c0_19] : memref<2x1x128xf32, #tpu.memory_space<vmem>>, vector<1x1x128xf32>
    %17 = vector.shape_cast %16 : vector<1x1x128xf32> to vector<1x128xf32>
    %18 = arith.truncf %1 : vector<1x256xf32> to vector<1x256xbf16>
    %cst_20 = arith.constant dense<0.000000e+00> : vector<1x128xf32>
    %19 = tpu.matmul %18, %15, %cst_20 {dimension_numbers = #tpu.dot_dimension_numbers<[1], [0], [0], [1], [0, 0, 1, 1], [], []>} : vector<1x256xbf16>, vector<256x128xbf16>, vector<1x128xf32> -> vector<1x128xf32>
    %20 = arith.addf %19, %17 : vector<1x128xf32>
    %21 = arith.negf %20 : vector<1x128xf32>
    %22 = math.exp %21 : vector<1x128xf32>
    %cst_21 = arith.constant 1.000000e+00 : f32
    %23 = vector.broadcast %cst_21 : f32 to vector<1x128xf32>
    %24 = arith.addf %23, %22 : vector<1x128xf32>
    %25 = arith.divf %23, %24 : vector<1x128xf32>
    %26 = arith.mulf %20, %25 : vector<1x128xf32>
    %c0_22 = arith.constant 0 : index
    %c0_23 = arith.constant 0 : index
    %c0_24 = arith.constant 0 : index
    %27 = vector.load %arg9[%c0_22, %c0_23, %c0_24] : memref<2x128x128xbf16, #tpu.memory_space<vmem>>, vector<1x128x128xbf16>
    %28 = vector.shape_cast %27 : vector<1x128x128xbf16> to vector<128x128xbf16>
    %c0_25 = arith.constant 0 : index
    %c0_26 = arith.constant 0 : index
    %c0_27 = arith.constant 0 : index
    %29 = vector.load %arg10[%c0_25, %c0_26, %c0_27] : memref<2x1x128xf32, #tpu.memory_space<vmem>>, vector<1x1x128xf32>
    %30 = vector.shape_cast %29 : vector<1x1x128xf32> to vector<1x128xf32>
    %31 = arith.truncf %26 : vector<1x128xf32> to vector<1x128xbf16>
    %cst_28 = arith.constant dense<0.000000e+00> : vector<1x128xf32>
    %32 = tpu.matmul %31, %28, %cst_28 {dimension_numbers = #tpu.dot_dimension_numbers<[1], [0], [0], [1], [0, 0, 1, 1], [], []>} : vector<1x128xbf16>, vector<128x128xbf16>, vector<1x128xf32> -> vector<1x128xf32>
    %33 = arith.addf %32, %30 : vector<1x128xf32>
    %34 = vector.extract_strided_slice %3 {offsets = [0, 0], sizes = [1, 128], strides = [1, 1]} : vector<2x128xf32> to vector<1x128xf32>
    %35 = arith.addf %33, %34 : vector<1x128xf32>
    %36 = arith.negf %35 : vector<1x128xf32>
    %37 = math.exp %36 : vector<1x128xf32>
    %cst_29 = arith.constant 1.000000e+00 : f32
    %38 = vector.broadcast %cst_29 : f32 to vector<1x128xf32>
    %39 = arith.addf %38, %37 : vector<1x128xf32>
    %40 = arith.divf %38, %39 : vector<1x128xf32>
    %41 = arith.mulf %35, %40 : vector<1x128xf32>
    %c0_30 = arith.constant 0 : index
    %c0_31 = arith.constant 0 : index
    %c0_32 = arith.constant 0 : index
    %42 = vector.load %arg11[%c0_30, %c0_31, %c0_32] : memref<2x128x768xbf16, #tpu.memory_space<vmem>>, vector<1x128x768xbf16>
    %43 = vector.shape_cast %42 : vector<1x128x768xbf16> to vector<128x768xbf16>
    %c0_33 = arith.constant 0 : index
    %c0_34 = arith.constant 0 : index
    %c0_35 = arith.constant 0 : index
    %44 = vector.load %arg12[%c0_33, %c0_34, %c0_35] : memref<2x1x768xf32, #tpu.memory_space<vmem>>, vector<1x1x768xf32>
    %45 = vector.shape_cast %44 : vector<1x1x768xf32> to vector<1x768xf32>
    %46 = arith.truncf %41 : vector<1x128xf32> to vector<1x128xbf16>
    %cst_36 = arith.constant dense<0.000000e+00> : vector<1x768xf32>
    %47 = tpu.matmul %46, %43, %cst_36 {dimension_numbers = #tpu.dot_dimension_numbers<[1], [0], [0], [1], [0, 0, 1, 1], [], []>} : vector<1x128xbf16>, vector<128x768xbf16>, vector<1x768xf32> -> vector<1x768xf32>
    %48 = arith.addf %47, %45 : vector<1x768xf32>
    %49 = vector.extract_strided_slice %48 {offsets = [0, 0], sizes = [1, 128], strides = [1, 1]} : vector<1x768xf32> to vector<1x128xf32>
    %50 = vector.extract_strided_slice %48 {offsets = [0, 128], sizes = [1, 128], strides = [1, 1]} : vector<1x768xf32> to vector<1x128xf32>
    %51 = vector.extract_strided_slice %48 {offsets = [0, 256], sizes = [1, 128], strides = [1, 1]} : vector<1x768xf32> to vector<1x128xf32>
    %52 = vector.extract_strided_slice %48 {offsets = [0, 384], sizes = [1, 128], strides = [1, 1]} : vector<1x768xf32> to vector<1x128xf32>
    %53 = vector.extract_strided_slice %48 {offsets = [0, 512], sizes = [1, 128], strides = [1, 1]} : vector<1x768xf32> to vector<1x128xf32>
    %54 = vector.extract_strided_slice %48 {offsets = [0, 640], sizes = [1, 128], strides = [1, 1]} : vector<1x768xf32> to vector<1x128xf32>
    %cst_37 = arith.constant dense<0.000000e+00> : vector<64xf32>
    %55 = vector.multi_reduction <add>, %13, %cst_37 [1] : vector<64x128xf32> to vector<64xf32>
    %56 = vector.shape_cast %55 : vector<64xf32> to vector<64x1xf32>
    %cst_38 = arith.constant 1.280000e+02 : f32
    %57 = vector.broadcast %cst_38 : f32 to vector<64x1xf32>
    %58 = arith.divf %56, %57 : vector<64x1xf32>
    %59 = vector.broadcast %58 : vector<64x1xf32> to vector<64x128xf32>
    %60 = arith.subf %13, %59 : vector<64x128xf32>
    %61 = arith.mulf %60, %60 : vector<64x128xf32>
    %cst_39 = arith.constant dense<0.000000e+00> : vector<64xf32>
    %62 = vector.multi_reduction <add>, %61, %cst_39 [1] : vector<64x128xf32> to vector<64xf32>
    %63 = vector.shape_cast %62 : vector<64xf32> to vector<64x1xf32>
    %cst_40 = arith.constant 1.280000e+02 : f32
    %64 = vector.broadcast %cst_40 : f32 to vector<64x1xf32>
    %65 = arith.divf %63, %64 : vector<64x1xf32>
    %cst_41 = arith.constant 9.99999997E-7 : f32
    %66 = vector.broadcast %cst_41 : f32 to vector<64x1xf32>
    %67 = arith.addf %65, %66 : vector<64x1xf32>
    %68 = math.rsqrt %67 : vector<64x1xf32>
    %69 = vector.broadcast %68 : vector<64x1xf32> to vector<64x128xf32>
    %70 = arith.mulf %60, %69 : vector<64x128xf32>
    %cst_42 = arith.constant 1.000000e+00 : f32
    %71 = vector.broadcast %cst_42 : f32 to vector<1x128xf32>
    %72 = arith.addf %71, %50 : vector<1x128xf32>
    %73 = vector.broadcast %72 : vector<1x128xf32> to vector<64x128xf32>
    %74 = arith.mulf %70, %73 : vector<64x128xf32>
    %75 = vector.broadcast %49 : vector<1x128xf32> to vector<64x128xf32>
    %76 = arith.addf %74, %75 : vector<64x128xf32>
    %c0_43 = arith.constant 0 : index
    %c0_44 = arith.constant 0 : index
    %c0_45 = arith.constant 0 : index
    %77 = vector.load %arg13[%c0_43, %c0_44, %c0_45] : memref<2x128x384xbf16, #tpu.memory_space<vmem>>, vector<1x128x384xbf16>
    %78 = vector.shape_cast %77 : vector<1x128x384xbf16> to vector<128x384xbf16>
    %c0_46 = arith.constant 0 : index
    %c0_47 = arith.constant 0 : index
    %c0_48 = arith.constant 0 : index
    %79 = vector.load %arg14[%c0_46, %c0_47, %c0_48] : memref<2x1x384xf32, #tpu.memory_space<vmem>>, vector<1x1x384xf32>
    %80 = vector.shape_cast %79 : vector<1x1x384xf32> to vector<1x384xf32>
    %81 = arith.truncf %76 : vector<64x128xf32> to vector<64x128xbf16>
    %cst_49 = arith.constant dense<0.000000e+00> : vector<64x384xf32>
    %82 = tpu.matmul %81, %78, %cst_49 {dimension_numbers = #tpu.dot_dimension_numbers<[1], [0], [0], [1], [0, 0, 1, 1], [], []>} : vector<64x128xbf16>, vector<128x384xbf16>, vector<64x384xf32> -> vector<64x384xf32>
    %83 = vector.broadcast %80 : vector<1x384xf32> to vector<64x384xf32>
    %84 = arith.addf %82, %83 : vector<64x384xf32>
    %85 = vector.extract_strided_slice %84 {offsets = [0, 0], sizes = [64, 32], strides = [1, 1]} : vector<64x384xf32> to vector<64x32xf32>
    %86 = vector.extract_strided_slice %84 {offsets = [0, 128], sizes = [64, 32], strides = [1, 1]} : vector<64x384xf32> to vector<64x32xf32>
    %87 = vector.extract_strided_slice %84 {offsets = [0, 256], sizes = [64, 32], strides = [1, 1]} : vector<64x384xf32> to vector<64x32xf32>
    %88 = arith.truncf %85 : vector<64x32xf32> to vector<64x32xbf16>
    %89 = arith.truncf %86 : vector<64x32xf32> to vector<64x32xbf16>
    %cst_50 = arith.constant dense<0.000000e+00> : vector<64x64xf32>
    %90 = tpu.matmul %88, %89, %cst_50 {dimension_numbers = #tpu.dot_dimension_numbers<[1], [1], [0], [0], [0, 0, 1, 0], [], []>} : vector<64x32xbf16>, vector<64x32xbf16>, vector<64x64xf32> -> vector<64x64xf32>
    %cst_51 = arith.constant 0.176776692 : f32
    %91 = vector.broadcast %cst_51 : f32 to vector<64x64xf32>
    %92 = arith.mulf %90, %91 : vector<64x64xf32>
    %cst_52 = arith.constant dense<0xFF800000> : vector<64xf32>
    %93 = vector.multi_reduction <maximumf>, %92, %cst_52 [1] : vector<64x64xf32> to vector<64xf32>
    %94 = vector.shape_cast %93 : vector<64xf32> to vector<64x1xf32>
    %95 = vector.broadcast %94 : vector<64x1xf32> to vector<64x64xf32>
    %96 = arith.subf %92, %95 : vector<64x64xf32>
    %97 = math.exp %96 : vector<64x64xf32>
    %cst_53 = arith.constant dense<0.000000e+00> : vector<64xf32>
    %98 = vector.multi_reduction <add>, %97, %cst_53 [1] : vector<64x64xf32> to vector<64xf32>
    %99 = vector.shape_cast %98 : vector<64xf32> to vector<64x1xf32>
    %100 = tpu.reciprocal %99 {approx = true} : vector<64x1xf32> -> vector<64x1xf32>
    %101 = vector.broadcast %100 : vector<64x1xf32> to vector<64x64xf32>
    %102 = arith.mulf %97, %101 : vector<64x64xf32>
    %103 = arith.truncf %102 : vector<64x64xf32> to vector<64x64xbf16>
    %104 = arith.truncf %87 : vector<64x32xf32> to vector<64x32xbf16>
    %cst_54 = arith.constant dense<0.000000e+00> : vector<64x32xf32>
    %105 = tpu.matmul %103, %104, %cst_54 {dimension_numbers = #tpu.dot_dimension_numbers<[1], [0], [0], [1], [0, 0, 1, 1], [], []>} : vector<64x64xbf16>, vector<64x32xbf16>, vector<64x32xf32> -> vector<64x32xf32>
    %106 = vector.extract_strided_slice %84 {offsets = [0, 32], sizes = [64, 32], strides = [1, 1]} : vector<64x384xf32> to vector<64x32xf32>
    %107 = vector.extract_strided_slice %84 {offsets = [0, 160], sizes = [64, 32], strides = [1, 1]} : vector<64x384xf32> to vector<64x32xf32>
    %108 = vector.extract_strided_slice %84 {offsets = [0, 288], sizes = [64, 32], strides = [1, 1]} : vector<64x384xf32> to vector<64x32xf32>
    %109 = arith.truncf %106 : vector<64x32xf32> to vector<64x32xbf16>
    %110 = arith.truncf %107 : vector<64x32xf32> to vector<64x32xbf16>
    %cst_55 = arith.constant dense<0.000000e+00> : vector<64x64xf32>
    %111 = tpu.matmul %109, %110, %cst_55 {dimension_numbers = #tpu.dot_dimension_numbers<[1], [1], [0], [0], [0, 0, 1, 0], [], []>} : vector<64x32xbf16>, vector<64x32xbf16>, vector<64x64xf32> -> vector<64x64xf32>
    %cst_56 = arith.constant 0.176776692 : f32
    %112 = vector.broadcast %cst_56 : f32 to vector<64x64xf32>
    %113 = arith.mulf %111, %112 : vector<64x64xf32>
    %cst_57 = arith.constant dense<0xFF800000> : vector<64xf32>
    %114 = vector.multi_reduction <maximumf>, %113, %cst_57 [1] : vector<64x64xf32> to vector<64xf32>
    %115 = vector.shape_cast %114 : vector<64xf32> to vector<64x1xf32>
    %116 = vector.broadcast %115 : vector<64x1xf32> to vector<64x64xf32>
    %117 = arith.subf %113, %116 : vector<64x64xf32>
    %118 = math.exp %117 : vector<64x64xf32>
    %cst_58 = arith.constant dense<0.000000e+00> : vector<64xf32>
    %119 = vector.multi_reduction <add>, %118, %cst_58 [1] : vector<64x64xf32> to vector<64xf32>
    %120 = vector.shape_cast %119 : vector<64xf32> to vector<64x1xf32>
    %121 = tpu.reciprocal %120 {approx = true} : vector<64x1xf32> -> vector<64x1xf32>
    %122 = vector.broadcast %121 : vector<64x1xf32> to vector<64x64xf32>
    %123 = arith.mulf %118, %122 : vector<64x64xf32>
    %124 = arith.truncf %123 : vector<64x64xf32> to vector<64x64xbf16>
    %125 = arith.truncf %108 : vector<64x32xf32> to vector<64x32xbf16>
    %cst_59 = arith.constant dense<0.000000e+00> : vector<64x32xf32>
    %126 = tpu.matmul %124, %125, %cst_59 {dimension_numbers = #tpu.dot_dimension_numbers<[1], [0], [0], [1], [0, 0, 1, 1], [], []>} : vector<64x64xbf16>, vector<64x32xbf16>, vector<64x32xf32> -> vector<64x32xf32>
    %127 = vector.extract_strided_slice %84 {offsets = [0, 64], sizes = [64, 32], strides = [1, 1]} : vector<64x384xf32> to vector<64x32xf32>
    %128 = vector.extract_strided_slice %84 {offsets = [0, 192], sizes = [64, 32], strides = [1, 1]} : vector<64x384xf32> to vector<64x32xf32>
    %129 = vector.extract_strided_slice %84 {offsets = [0, 320], sizes = [64, 32], strides = [1, 1]} : vector<64x384xf32> to vector<64x32xf32>
    %130 = arith.truncf %127 : vector<64x32xf32> to vector<64x32xbf16>
    %131 = arith.truncf %128 : vector<64x32xf32> to vector<64x32xbf16>
    %cst_60 = arith.constant dense<0.000000e+00> : vector<64x64xf32>
    %132 = tpu.matmul %130, %131, %cst_60 {dimension_numbers = #tpu.dot_dimension_numbers<[1], [1], [0], [0], [0, 0, 1, 0], [], []>} : vector<64x32xbf16>, vector<64x32xbf16>, vector<64x64xf32> -> vector<64x64xf32>
    %cst_61 = arith.constant 0.176776692 : f32
    %133 = vector.broadcast %cst_61 : f32 to vector<64x64xf32>
    %134 = arith.mulf %132, %133 : vector<64x64xf32>
    %cst_62 = arith.constant dense<0xFF800000> : vector<64xf32>
    %135 = vector.multi_reduction <maximumf>, %134, %cst_62 [1] : vector<64x64xf32> to vector<64xf32>
    %136 = vector.shape_cast %135 : vector<64xf32> to vector<64x1xf32>
    %137 = vector.broadcast %136 : vector<64x1xf32> to vector<64x64xf32>
    %138 = arith.subf %134, %137 : vector<64x64xf32>
    %139 = math.exp %138 : vector<64x64xf32>
    %cst_63 = arith.constant dense<0.000000e+00> : vector<64xf32>
    %140 = vector.multi_reduction <add>, %139, %cst_63 [1] : vector<64x64xf32> to vector<64xf32>
    %141 = vector.shape_cast %140 : vector<64xf32> to vector<64x1xf32>
    %142 = tpu.reciprocal %141 {approx = true} : vector<64x1xf32> -> vector<64x1xf32>
    %143 = vector.broadcast %142 : vector<64x1xf32> to vector<64x64xf32>
    %144 = arith.mulf %139, %143 : vector<64x64xf32>
    %145 = arith.truncf %144 : vector<64x64xf32> to vector<64x64xbf16>
    %146 = arith.truncf %129 : vector<64x32xf32> to vector<64x32xbf16>
    %cst_64 = arith.constant dense<0.000000e+00> : vector<64x32xf32>
    %147 = tpu.matmul %145, %146, %cst_64 {dimension_numbers = #tpu.dot_dimension_numbers<[1], [0], [0], [1], [0, 0, 1, 1], [], []>} : vector<64x64xbf16>, vector<64x32xbf16>, vector<64x32xf32> -> vector<64x32xf32>
    %148 = vector.extract_strided_slice %84 {offsets = [0, 96], sizes = [64, 32], strides = [1, 1]} : vector<64x384xf32> to vector<64x32xf32>
    %149 = vector.extract_strided_slice %84 {offsets = [0, 224], sizes = [64, 32], strides = [1, 1]} : vector<64x384xf32> to vector<64x32xf32>
    %150 = vector.extract_strided_slice %84 {offsets = [0, 352], sizes = [64, 32], strides = [1, 1]} : vector<64x384xf32> to vector<64x32xf32>
    %151 = arith.truncf %148 : vector<64x32xf32> to vector<64x32xbf16>
    %152 = arith.truncf %149 : vector<64x32xf32> to vector<64x32xbf16>
    %cst_65 = arith.constant dense<0.000000e+00> : vector<64x64xf32>
    %153 = tpu.matmul %151, %152, %cst_65 {dimension_numbers = #tpu.dot_dimension_numbers<[1], [1], [0], [0], [0, 0, 1, 0], [], []>} : vector<64x32xbf16>, vector<64x32xbf16>, vector<64x64xf32> -> vector<64x64xf32>
    %cst_66 = arith.constant 0.176776692 : f32
    %154 = vector.broadcast %cst_66 : f32 to vector<64x64xf32>
    %155 = arith.mulf %153, %154 : vector<64x64xf32>
    %cst_67 = arith.constant dense<0xFF800000> : vector<64xf32>
    %156 = vector.multi_reduction <maximumf>, %155, %cst_67 [1] : vector<64x64xf32> to vector<64xf32>
    %157 = vector.shape_cast %156 : vector<64xf32> to vector<64x1xf32>
    %158 = vector.broadcast %157 : vector<64x1xf32> to vector<64x64xf32>
    %159 = arith.subf %155, %158 : vector<64x64xf32>
    %160 = math.exp %159 : vector<64x64xf32>
    %cst_68 = arith.constant dense<0.000000e+00> : vector<64xf32>
    %161 = vector.multi_reduction <add>, %160, %cst_68 [1] : vector<64x64xf32> to vector<64xf32>
    %162 = vector.shape_cast %161 : vector<64xf32> to vector<64x1xf32>
    %163 = tpu.reciprocal %162 {approx = true} : vector<64x1xf32> -> vector<64x1xf32>
    %164 = vector.broadcast %163 : vector<64x1xf32> to vector<64x64xf32>
    %165 = arith.mulf %160, %164 : vector<64x64xf32>
    %166 = arith.truncf %165 : vector<64x64xf32> to vector<64x64xbf16>
    %167 = arith.truncf %150 : vector<64x32xf32> to vector<64x32xbf16>
    %cst_69 = arith.constant dense<0.000000e+00> : vector<64x32xf32>
    %168 = tpu.matmul %166, %167, %cst_69 {dimension_numbers = #tpu.dot_dimension_numbers<[1], [0], [0], [1], [0, 0, 1, 1], [], []>} : vector<64x64xbf16>, vector<64x32xbf16>, vector<64x32xf32> -> vector<64x32xf32>
    %169 = tpu.concatenate %105, %126, %147, %168 in 1 : vector<64x32xf32>, vector<64x32xf32>, vector<64x32xf32>, vector<64x32xf32> -> vector<64x128xf32>
    %c0_70 = arith.constant 0 : index
    %c0_71 = arith.constant 0 : index
    %c0_72 = arith.constant 0 : index
    %170 = vector.load %arg15[%c0_70, %c0_71, %c0_72] : memref<2x128x128xbf16, #tpu.memory_space<vmem>>, vector<1x128x128xbf16>
    %171 = vector.shape_cast %170 : vector<1x128x128xbf16> to vector<128x128xbf16>
    %c0_73 = arith.constant 0 : index
    %c0_74 = arith.constant 0 : index
    %c0_75 = arith.constant 0 : index
    %172 = vector.load %arg16[%c0_73, %c0_74, %c0_75] : memref<2x1x128xf32, #tpu.memory_space<vmem>>, vector<1x1x128xf32>
    %173 = vector.shape_cast %172 : vector<1x1x128xf32> to vector<1x128xf32>
    %174 = arith.truncf %169 : vector<64x128xf32> to vector<64x128xbf16>
    %cst_76 = arith.constant dense<0.000000e+00> : vector<64x128xf32>
    %175 = tpu.matmul %174, %171, %cst_76 {dimension_numbers = #tpu.dot_dimension_numbers<[1], [0], [0], [1], [0, 0, 1, 1], [], []>} : vector<64x128xbf16>, vector<128x128xbf16>, vector<64x128xf32> -> vector<64x128xf32>
    %176 = vector.broadcast %173 : vector<1x128xf32> to vector<64x128xf32>
    %177 = arith.addf %175, %176 : vector<64x128xf32>
    %178 = vector.broadcast %51 : vector<1x128xf32> to vector<64x128xf32>
    %179 = arith.mulf %178, %177 : vector<64x128xf32>
    %180 = arith.addf %13, %179 : vector<64x128xf32>
    %cst_77 = arith.constant dense<0.000000e+00> : vector<64xf32>
    %181 = vector.multi_reduction <add>, %180, %cst_77 [1] : vector<64x128xf32> to vector<64xf32>
    %182 = vector.shape_cast %181 : vector<64xf32> to vector<64x1xf32>
    %cst_78 = arith.constant 1.280000e+02 : f32
    %183 = vector.broadcast %cst_78 : f32 to vector<64x1xf32>
    %184 = arith.divf %182, %183 : vector<64x1xf32>
    %185 = vector.broadcast %184 : vector<64x1xf32> to vector<64x128xf32>
    %186 = arith.subf %180, %185 : vector<64x128xf32>
    %187 = arith.mulf %186, %186 : vector<64x128xf32>
    %cst_79 = arith.constant dense<0.000000e+00> : vector<64xf32>
    %188 = vector.multi_reduction <add>, %187, %cst_79 [1] : vector<64x128xf32> to vector<64xf32>
    %189 = vector.shape_cast %188 : vector<64xf32> to vector<64x1xf32>
    %cst_80 = arith.constant 1.280000e+02 : f32
    %190 = vector.broadcast %cst_80 : f32 to vector<64x1xf32>
    %191 = arith.divf %189, %190 : vector<64x1xf32>
    %cst_81 = arith.constant 9.99999974E-6 : f32
    %192 = vector.broadcast %cst_81 : f32 to vector<64x1xf32>
    %193 = arith.addf %191, %192 : vector<64x1xf32>
    %194 = math.rsqrt %193 : vector<64x1xf32>
    %195 = vector.broadcast %194 : vector<64x1xf32> to vector<64x128xf32>
    %196 = arith.mulf %186, %195 : vector<64x128xf32>
    %cst_82 = arith.constant 1.000000e+00 : f32
    %197 = vector.broadcast %cst_82 : f32 to vector<1x128xf32>
    %198 = arith.addf %197, %53 : vector<1x128xf32>
    %199 = vector.broadcast %198 : vector<1x128xf32> to vector<64x128xf32>
    %200 = arith.mulf %196, %199 : vector<64x128xf32>
    %201 = vector.broadcast %52 : vector<1x128xf32> to vector<64x128xf32>
    %202 = arith.addf %200, %201 : vector<64x128xf32>
    %c0_83 = arith.constant 0 : index
    %c0_84 = arith.constant 0 : index
    %c0_85 = arith.constant 0 : index
    %203 = vector.load %arg17[%c0_83, %c0_84, %c0_85] : memref<2x128x512xbf16, #tpu.memory_space<vmem>>, vector<1x128x512xbf16>
    %204 = vector.shape_cast %203 : vector<1x128x512xbf16> to vector<128x512xbf16>
    %c0_86 = arith.constant 0 : index
    %c0_87 = arith.constant 0 : index
    %c0_88 = arith.constant 0 : index
    %205 = vector.load %arg18[%c0_86, %c0_87, %c0_88] : memref<2x1x512xf32, #tpu.memory_space<vmem>>, vector<1x1x512xf32>
    %206 = vector.shape_cast %205 : vector<1x1x512xf32> to vector<1x512xf32>
    %207 = arith.truncf %202 : vector<64x128xf32> to vector<64x128xbf16>
    %cst_89 = arith.constant dense<0.000000e+00> : vector<64x512xf32>
    %208 = tpu.matmul %207, %204, %cst_89 {dimension_numbers = #tpu.dot_dimension_numbers<[1], [0], [0], [1], [0, 0, 1, 1], [], []>} : vector<64x128xbf16>, vector<128x512xbf16>, vector<64x512xf32> -> vector<64x512xf32>
    %209 = vector.broadcast %206 : vector<1x512xf32> to vector<64x512xf32>
    %210 = arith.addf %208, %209 : vector<64x512xf32>
    %211 = arith.mulf %210, %210 : vector<64x512xf32>
    %212 = arith.mulf %210, %211 : vector<64x512xf32>
    %cst_90 = arith.constant 4.471500e-02 : f32
    %213 = vector.broadcast %cst_90 : f32 to vector<64x512xf32>
    %214 = arith.mulf %213, %212 : vector<64x512xf32>
    %215 = arith.addf %210, %214 : vector<64x512xf32>
    %cst_91 = arith.constant 0.797884583 : f32
    %216 = vector.broadcast %cst_91 : f32 to vector<64x512xf32>
    %217 = arith.mulf %216, %215 : vector<64x512xf32>
    %218 = math.tanh %217 : vector<64x512xf32>
    %cst_92 = arith.constant 1.000000e+00 : f32
    %219 = vector.broadcast %cst_92 : f32 to vector<64x512xf32>
    %220 = arith.addf %219, %218 : vector<64x512xf32>
    %cst_93 = arith.constant 5.000000e-01 : f32
    %221 = vector.broadcast %cst_93 : f32 to vector<64x512xf32>
    %222 = arith.mulf %221, %220 : vector<64x512xf32>
    %223 = arith.mulf %210, %222 : vector<64x512xf32>
    %c0_94 = arith.constant 0 : index
    %c0_95 = arith.constant 0 : index
    %c0_96 = arith.constant 0 : index
    %224 = vector.load %arg19[%c0_94, %c0_95, %c0_96] : memref<2x512x128xbf16, #tpu.memory_space<vmem>>, vector<1x512x128xbf16>
    %225 = vector.shape_cast %224 : vector<1x512x128xbf16> to vector<512x128xbf16>
    %c0_97 = arith.constant 0 : index
    %c0_98 = arith.constant 0 : index
    %c0_99 = arith.constant 0 : index
    %226 = vector.load %arg20[%c0_97, %c0_98, %c0_99] : memref<2x1x128xf32, #tpu.memory_space<vmem>>, vector<1x1x128xf32>
    %227 = vector.shape_cast %226 : vector<1x1x128xf32> to vector<1x128xf32>
    %228 = arith.truncf %223 : vector<64x512xf32> to vector<64x512xbf16>
    %cst_100 = arith.constant dense<0.000000e+00> : vector<64x128xf32>
    %229 = tpu.matmul %228, %225, %cst_100 {dimension_numbers = #tpu.dot_dimension_numbers<[1], [0], [0], [1], [0, 0, 1, 1], [], []>} : vector<64x512xbf16>, vector<512x128xbf16>, vector<64x128xf32> -> vector<64x128xf32>
    %230 = vector.broadcast %227 : vector<1x128xf32> to vector<64x128xf32>
    %231 = arith.addf %229, %230 : vector<64x128xf32>
    %232 = vector.broadcast %54 : vector<1x128xf32> to vector<64x128xf32>
    %233 = arith.mulf %232, %231 : vector<64x128xf32>
    %234 = arith.addf %180, %233 : vector<64x128xf32>
    %c1 = arith.constant 1 : index
    %c0_101 = arith.constant 0 : index
    %c0_102 = arith.constant 0 : index
    %235 = vector.load %arg7[%c1, %c0_101, %c0_102] : memref<2x256x128xbf16, #tpu.memory_space<vmem>>, vector<1x256x128xbf16>
    %236 = vector.shape_cast %235 : vector<1x256x128xbf16> to vector<256x128xbf16>
    %c1_103 = arith.constant 1 : index
    %c0_104 = arith.constant 0 : index
    %c0_105 = arith.constant 0 : index
    %237 = vector.load %arg8[%c1_103, %c0_104, %c0_105] : memref<2x1x128xf32, #tpu.memory_space<vmem>>, vector<1x1x128xf32>
    %238 = vector.shape_cast %237 : vector<1x1x128xf32> to vector<1x128xf32>
    %239 = arith.truncf %1 : vector<1x256xf32> to vector<1x256xbf16>
    %cst_106 = arith.constant dense<0.000000e+00> : vector<1x128xf32>
    %240 = tpu.matmul %239, %236, %cst_106 {dimension_numbers = #tpu.dot_dimension_numbers<[1], [0], [0], [1], [0, 0, 1, 1], [], []>} : vector<1x256xbf16>, vector<256x128xbf16>, vector<1x128xf32> -> vector<1x128xf32>
    %241 = arith.addf %240, %238 : vector<1x128xf32>
    %242 = arith.negf %241 : vector<1x128xf32>
    %243 = math.exp %242 : vector<1x128xf32>
    %cst_107 = arith.constant 1.000000e+00 : f32
    %244 = vector.broadcast %cst_107 : f32 to vector<1x128xf32>
    %245 = arith.addf %244, %243 : vector<1x128xf32>
    %246 = arith.divf %244, %245 : vector<1x128xf32>
    %247 = arith.mulf %241, %246 : vector<1x128xf32>
    %c1_108 = arith.constant 1 : index
    %c0_109 = arith.constant 0 : index
    %c0_110 = arith.constant 0 : index
    %248 = vector.load %arg9[%c1_108, %c0_109, %c0_110] : memref<2x128x128xbf16, #tpu.memory_space<vmem>>, vector<1x128x128xbf16>
    %249 = vector.shape_cast %248 : vector<1x128x128xbf16> to vector<128x128xbf16>
    %c1_111 = arith.constant 1 : index
    %c0_112 = arith.constant 0 : index
    %c0_113 = arith.constant 0 : index
    %250 = vector.load %arg10[%c1_111, %c0_112, %c0_113] : memref<2x1x128xf32, #tpu.memory_space<vmem>>, vector<1x1x128xf32>
    %251 = vector.shape_cast %250 : vector<1x1x128xf32> to vector<1x128xf32>
    %252 = arith.truncf %247 : vector<1x128xf32> to vector<1x128xbf16>
    %cst_114 = arith.constant dense<0.000000e+00> : vector<1x128xf32>
    %253 = tpu.matmul %252, %249, %cst_114 {dimension_numbers = #tpu.dot_dimension_numbers<[1], [0], [0], [1], [0, 0, 1, 1], [], []>} : vector<1x128xbf16>, vector<128x128xbf16>, vector<1x128xf32> -> vector<1x128xf32>
    %254 = arith.addf %253, %251 : vector<1x128xf32>
    %255 = vector.extract_strided_slice %3 {offsets = [1, 0], sizes = [1, 128], strides = [1, 1]} : vector<2x128xf32> to vector<1x128xf32>
    %256 = arith.addf %254, %255 : vector<1x128xf32>
    %257 = arith.negf %256 : vector<1x128xf32>
    %258 = math.exp %257 : vector<1x128xf32>
    %cst_115 = arith.constant 1.000000e+00 : f32
    %259 = vector.broadcast %cst_115 : f32 to vector<1x128xf32>
    %260 = arith.addf %259, %258 : vector<1x128xf32>
    %261 = arith.divf %259, %260 : vector<1x128xf32>
    %262 = arith.mulf %256, %261 : vector<1x128xf32>
    %c1_116 = arith.constant 1 : index
    %c0_117 = arith.constant 0 : index
    %c0_118 = arith.constant 0 : index
    %263 = vector.load %arg11[%c1_116, %c0_117, %c0_118] : memref<2x128x768xbf16, #tpu.memory_space<vmem>>, vector<1x128x768xbf16>
    %264 = vector.shape_cast %263 : vector<1x128x768xbf16> to vector<128x768xbf16>
    %c1_119 = arith.constant 1 : index
    %c0_120 = arith.constant 0 : index
    %c0_121 = arith.constant 0 : index
    %265 = vector.load %arg12[%c1_119, %c0_120, %c0_121] : memref<2x1x768xf32, #tpu.memory_space<vmem>>, vector<1x1x768xf32>
    %266 = vector.shape_cast %265 : vector<1x1x768xf32> to vector<1x768xf32>
    %267 = arith.truncf %262 : vector<1x128xf32> to vector<1x128xbf16>
    %cst_122 = arith.constant dense<0.000000e+00> : vector<1x768xf32>
    %268 = tpu.matmul %267, %264, %cst_122 {dimension_numbers = #tpu.dot_dimension_numbers<[1], [0], [0], [1], [0, 0, 1, 1], [], []>} : vector<1x128xbf16>, vector<128x768xbf16>, vector<1x768xf32> -> vector<1x768xf32>
    %269 = arith.addf %268, %266 : vector<1x768xf32>
    %270 = vector.extract_strided_slice %269 {offsets = [0, 0], sizes = [1, 128], strides = [1, 1]} : vector<1x768xf32> to vector<1x128xf32>
    %271 = vector.extract_strided_slice %269 {offsets = [0, 128], sizes = [1, 128], strides = [1, 1]} : vector<1x768xf32> to vector<1x128xf32>
    %272 = vector.extract_strided_slice %269 {offsets = [0, 256], sizes = [1, 128], strides = [1, 1]} : vector<1x768xf32> to vector<1x128xf32>
    %273 = vector.extract_strided_slice %269 {offsets = [0, 384], sizes = [1, 128], strides = [1, 1]} : vector<1x768xf32> to vector<1x128xf32>
    %274 = vector.extract_strided_slice %269 {offsets = [0, 512], sizes = [1, 128], strides = [1, 1]} : vector<1x768xf32> to vector<1x128xf32>
    %275 = vector.extract_strided_slice %269 {offsets = [0, 640], sizes = [1, 128], strides = [1, 1]} : vector<1x768xf32> to vector<1x128xf32>
    %cst_123 = arith.constant dense<0.000000e+00> : vector<64xf32>
    %276 = vector.multi_reduction <add>, %234, %cst_123 [1] : vector<64x128xf32> to vector<64xf32>
    %277 = vector.shape_cast %276 : vector<64xf32> to vector<64x1xf32>
    %cst_124 = arith.constant 1.280000e+02 : f32
    %278 = vector.broadcast %cst_124 : f32 to vector<64x1xf32>
    %279 = arith.divf %277, %278 : vector<64x1xf32>
    %280 = vector.broadcast %279 : vector<64x1xf32> to vector<64x128xf32>
    %281 = arith.subf %234, %280 : vector<64x128xf32>
    %282 = arith.mulf %281, %281 : vector<64x128xf32>
    %cst_125 = arith.constant dense<0.000000e+00> : vector<64xf32>
    %283 = vector.multi_reduction <add>, %282, %cst_125 [1] : vector<64x128xf32> to vector<64xf32>
    %284 = vector.shape_cast %283 : vector<64xf32> to vector<64x1xf32>
    %cst_126 = arith.constant 1.280000e+02 : f32
    %285 = vector.broadcast %cst_126 : f32 to vector<64x1xf32>
    %286 = arith.divf %284, %285 : vector<64x1xf32>
    %cst_127 = arith.constant 9.99999997E-7 : f32
    %287 = vector.broadcast %cst_127 : f32 to vector<64x1xf32>
    %288 = arith.addf %286, %287 : vector<64x1xf32>
    %289 = math.rsqrt %288 : vector<64x1xf32>
    %290 = vector.broadcast %289 : vector<64x1xf32> to vector<64x128xf32>
    %291 = arith.mulf %281, %290 : vector<64x128xf32>
    %cst_128 = arith.constant 1.000000e+00 : f32
    %292 = vector.broadcast %cst_128 : f32 to vector<1x128xf32>
    %293 = arith.addf %292, %271 : vector<1x128xf32>
    %294 = vector.broadcast %293 : vector<1x128xf32> to vector<64x128xf32>
    %295 = arith.mulf %291, %294 : vector<64x128xf32>
    %296 = vector.broadcast %270 : vector<1x128xf32> to vector<64x128xf32>
    %297 = arith.addf %295, %296 : vector<64x128xf32>
    %c1_129 = arith.constant 1 : index
    %c0_130 = arith.constant 0 : index
    %c0_131 = arith.constant 0 : index
    %298 = vector.load %arg13[%c1_129, %c0_130, %c0_131] : memref<2x128x384xbf16, #tpu.memory_space<vmem>>, vector<1x128x384xbf16>
    %299 = vector.shape_cast %298 : vector<1x128x384xbf16> to vector<128x384xbf16>
    %c1_132 = arith.constant 1 : index
    %c0_133 = arith.constant 0 : index
    %c0_134 = arith.constant 0 : index
    %300 = vector.load %arg14[%c1_132, %c0_133, %c0_134] : memref<2x1x384xf32, #tpu.memory_space<vmem>>, vector<1x1x384xf32>
    %301 = vector.shape_cast %300 : vector<1x1x384xf32> to vector<1x384xf32>
    %302 = arith.truncf %297 : vector<64x128xf32> to vector<64x128xbf16>
    %cst_135 = arith.constant dense<0.000000e+00> : vector<64x384xf32>
    %303 = tpu.matmul %302, %299, %cst_135 {dimension_numbers = #tpu.dot_dimension_numbers<[1], [0], [0], [1], [0, 0, 1, 1], [], []>} : vector<64x128xbf16>, vector<128x384xbf16>, vector<64x384xf32> -> vector<64x384xf32>
    %304 = vector.broadcast %301 : vector<1x384xf32> to vector<64x384xf32>
    %305 = arith.addf %303, %304 : vector<64x384xf32>
    %306 = vector.extract_strided_slice %305 {offsets = [0, 0], sizes = [64, 32], strides = [1, 1]} : vector<64x384xf32> to vector<64x32xf32>
    %307 = vector.extract_strided_slice %305 {offsets = [0, 128], sizes = [64, 32], strides = [1, 1]} : vector<64x384xf32> to vector<64x32xf32>
    %308 = vector.extract_strided_slice %305 {offsets = [0, 256], sizes = [64, 32], strides = [1, 1]} : vector<64x384xf32> to vector<64x32xf32>
    %309 = arith.truncf %306 : vector<64x32xf32> to vector<64x32xbf16>
    %310 = arith.truncf %307 : vector<64x32xf32> to vector<64x32xbf16>
    %cst_136 = arith.constant dense<0.000000e+00> : vector<64x64xf32>
    %311 = tpu.matmul %309, %310, %cst_136 {dimension_numbers = #tpu.dot_dimension_numbers<[1], [1], [0], [0], [0, 0, 1, 0], [], []>} : vector<64x32xbf16>, vector<64x32xbf16>, vector<64x64xf32> -> vector<64x64xf32>
    %cst_137 = arith.constant 0.176776692 : f32
    %312 = vector.broadcast %cst_137 : f32 to vector<64x64xf32>
    %313 = arith.mulf %311, %312 : vector<64x64xf32>
    %cst_138 = arith.constant dense<0xFF800000> : vector<64xf32>
    %314 = vector.multi_reduction <maximumf>, %313, %cst_138 [1] : vector<64x64xf32> to vector<64xf32>
    %315 = vector.shape_cast %314 : vector<64xf32> to vector<64x1xf32>
    %316 = vector.broadcast %315 : vector<64x1xf32> to vector<64x64xf32>
    %317 = arith.subf %313, %316 : vector<64x64xf32>
    %318 = math.exp %317 : vector<64x64xf32>
    %cst_139 = arith.constant dense<0.000000e+00> : vector<64xf32>
    %319 = vector.multi_reduction <add>, %318, %cst_139 [1] : vector<64x64xf32> to vector<64xf32>
    %320 = vector.shape_cast %319 : vector<64xf32> to vector<64x1xf32>
    %321 = tpu.reciprocal %320 {approx = true} : vector<64x1xf32> -> vector<64x1xf32>
    %322 = vector.broadcast %321 : vector<64x1xf32> to vector<64x64xf32>
    %323 = arith.mulf %318, %322 : vector<64x64xf32>
    %324 = arith.truncf %323 : vector<64x64xf32> to vector<64x64xbf16>
    %325 = arith.truncf %308 : vector<64x32xf32> to vector<64x32xbf16>
    %cst_140 = arith.constant dense<0.000000e+00> : vector<64x32xf32>
    %326 = tpu.matmul %324, %325, %cst_140 {dimension_numbers = #tpu.dot_dimension_numbers<[1], [0], [0], [1], [0, 0, 1, 1], [], []>} : vector<64x64xbf16>, vector<64x32xbf16>, vector<64x32xf32> -> vector<64x32xf32>
    %327 = vector.extract_strided_slice %305 {offsets = [0, 32], sizes = [64, 32], strides = [1, 1]} : vector<64x384xf32> to vector<64x32xf32>
    %328 = vector.extract_strided_slice %305 {offsets = [0, 160], sizes = [64, 32], strides = [1, 1]} : vector<64x384xf32> to vector<64x32xf32>
    %329 = vector.extract_strided_slice %305 {offsets = [0, 288], sizes = [64, 32], strides = [1, 1]} : vector<64x384xf32> to vector<64x32xf32>
    %330 = arith.truncf %327 : vector<64x32xf32> to vector<64x32xbf16>
    %331 = arith.truncf %328 : vector<64x32xf32> to vector<64x32xbf16>
    %cst_141 = arith.constant dense<0.000000e+00> : vector<64x64xf32>
    %332 = tpu.matmul %330, %331, %cst_141 {dimension_numbers = #tpu.dot_dimension_numbers<[1], [1], [0], [0], [0, 0, 1, 0], [], []>} : vector<64x32xbf16>, vector<64x32xbf16>, vector<64x64xf32> -> vector<64x64xf32>
    %cst_142 = arith.constant 0.176776692 : f32
    %333 = vector.broadcast %cst_142 : f32 to vector<64x64xf32>
    %334 = arith.mulf %332, %333 : vector<64x64xf32>
    %cst_143 = arith.constant dense<0xFF800000> : vector<64xf32>
    %335 = vector.multi_reduction <maximumf>, %334, %cst_143 [1] : vector<64x64xf32> to vector<64xf32>
    %336 = vector.shape_cast %335 : vector<64xf32> to vector<64x1xf32>
    %337 = vector.broadcast %336 : vector<64x1xf32> to vector<64x64xf32>
    %338 = arith.subf %334, %337 : vector<64x64xf32>
    %339 = math.exp %338 : vector<64x64xf32>
    %cst_144 = arith.constant dense<0.000000e+00> : vector<64xf32>
    %340 = vector.multi_reduction <add>, %339, %cst_144 [1] : vector<64x64xf32> to vector<64xf32>
    %341 = vector.shape_cast %340 : vector<64xf32> to vector<64x1xf32>
    %342 = tpu.reciprocal %341 {approx = true} : vector<64x1xf32> -> vector<64x1xf32>
    %343 = vector.broadcast %342 : vector<64x1xf32> to vector<64x64xf32>
    %344 = arith.mulf %339, %343 : vector<64x64xf32>
    %345 = arith.truncf %344 : vector<64x64xf32> to vector<64x64xbf16>
    %346 = arith.truncf %329 : vector<64x32xf32> to vector<64x32xbf16>
    %cst_145 = arith.constant dense<0.000000e+00> : vector<64x32xf32>
    %347 = tpu.matmul %345, %346, %cst_145 {dimension_numbers = #tpu.dot_dimension_numbers<[1], [0], [0], [1], [0, 0, 1, 1], [], []>} : vector<64x64xbf16>, vector<64x32xbf16>, vector<64x32xf32> -> vector<64x32xf32>
    %348 = vector.extract_strided_slice %305 {offsets = [0, 64], sizes = [64, 32], strides = [1, 1]} : vector<64x384xf32> to vector<64x32xf32>
    %349 = vector.extract_strided_slice %305 {offsets = [0, 192], sizes = [64, 32], strides = [1, 1]} : vector<64x384xf32> to vector<64x32xf32>
    %350 = vector.extract_strided_slice %305 {offsets = [0, 320], sizes = [64, 32], strides = [1, 1]} : vector<64x384xf32> to vector<64x32xf32>
    %351 = arith.truncf %348 : vector<64x32xf32> to vector<64x32xbf16>
    %352 = arith.truncf %349 : vector<64x32xf32> to vector<64x32xbf16>
    %cst_146 = arith.constant dense<0.000000e+00> : vector<64x64xf32>
    %353 = tpu.matmul %351, %352, %cst_146 {dimension_numbers = #tpu.dot_dimension_numbers<[1], [1], [0], [0], [0, 0, 1, 0], [], []>} : vector<64x32xbf16>, vector<64x32xbf16>, vector<64x64xf32> -> vector<64x64xf32>
    %cst_147 = arith.constant 0.176776692 : f32
    %354 = vector.broadcast %cst_147 : f32 to vector<64x64xf32>
    %355 = arith.mulf %353, %354 : vector<64x64xf32>
    %cst_148 = arith.constant dense<0xFF800000> : vector<64xf32>
    %356 = vector.multi_reduction <maximumf>, %355, %cst_148 [1] : vector<64x64xf32> to vector<64xf32>
    %357 = vector.shape_cast %356 : vector<64xf32> to vector<64x1xf32>
    %358 = vector.broadcast %357 : vector<64x1xf32> to vector<64x64xf32>
    %359 = arith.subf %355, %358 : vector<64x64xf32>
    %360 = math.exp %359 : vector<64x64xf32>
    %cst_149 = arith.constant dense<0.000000e+00> : vector<64xf32>
    %361 = vector.multi_reduction <add>, %360, %cst_149 [1] : vector<64x64xf32> to vector<64xf32>
    %362 = vector.shape_cast %361 : vector<64xf32> to vector<64x1xf32>
    %363 = tpu.reciprocal %362 {approx = true} : vector<64x1xf32> -> vector<64x1xf32>
    %364 = vector.broadcast %363 : vector<64x1xf32> to vector<64x64xf32>
    %365 = arith.mulf %360, %364 : vector<64x64xf32>
    %366 = arith.truncf %365 : vector<64x64xf32> to vector<64x64xbf16>
    %367 = arith.truncf %350 : vector<64x32xf32> to vector<64x32xbf16>
    %cst_150 = arith.constant dense<0.000000e+00> : vector<64x32xf32>
    %368 = tpu.matmul %366, %367, %cst_150 {dimension_numbers = #tpu.dot_dimension_numbers<[1], [0], [0], [1], [0, 0, 1, 1], [], []>} : vector<64x64xbf16>, vector<64x32xbf16>, vector<64x32xf32> -> vector<64x32xf32>
    %369 = vector.extract_strided_slice %305 {offsets = [0, 96], sizes = [64, 32], strides = [1, 1]} : vector<64x384xf32> to vector<64x32xf32>
    %370 = vector.extract_strided_slice %305 {offsets = [0, 224], sizes = [64, 32], strides = [1, 1]} : vector<64x384xf32> to vector<64x32xf32>
    %371 = vector.extract_strided_slice %305 {offsets = [0, 352], sizes = [64, 32], strides = [1, 1]} : vector<64x384xf32> to vector<64x32xf32>
    %372 = arith.truncf %369 : vector<64x32xf32> to vector<64x32xbf16>
    %373 = arith.truncf %370 : vector<64x32xf32> to vector<64x32xbf16>
    %cst_151 = arith.constant dense<0.000000e+00> : vector<64x64xf32>
    %374 = tpu.matmul %372, %373, %cst_151 {dimension_numbers = #tpu.dot_dimension_numbers<[1], [1], [0], [0], [0, 0, 1, 0], [], []>} : vector<64x32xbf16>, vector<64x32xbf16>, vector<64x64xf32> -> vector<64x64xf32>
    %cst_152 = arith.constant 0.176776692 : f32
    %375 = vector.broadcast %cst_152 : f32 to vector<64x64xf32>
    %376 = arith.mulf %374, %375 : vector<64x64xf32>
    %cst_153 = arith.constant dense<0xFF800000> : vector<64xf32>
    %377 = vector.multi_reduction <maximumf>, %376, %cst_153 [1] : vector<64x64xf32> to vector<64xf32>
    %378 = vector.shape_cast %377 : vector<64xf32> to vector<64x1xf32>
    %379 = vector.broadcast %378 : vector<64x1xf32> to vector<64x64xf32>
    %380 = arith.subf %376, %379 : vector<64x64xf32>
    %381 = math.exp %380 : vector<64x64xf32>
    %cst_154 = arith.constant dense<0.000000e+00> : vector<64xf32>
    %382 = vector.multi_reduction <add>, %381, %cst_154 [1] : vector<64x64xf32> to vector<64xf32>
    %383 = vector.shape_cast %382 : vector<64xf32> to vector<64x1xf32>
    %384 = tpu.reciprocal %383 {approx = true} : vector<64x1xf32> -> vector<64x1xf32>
    %385 = vector.broadcast %384 : vector<64x1xf32> to vector<64x64xf32>
    %386 = arith.mulf %381, %385 : vector<64x64xf32>
    %387 = arith.truncf %386 : vector<64x64xf32> to vector<64x64xbf16>
    %388 = arith.truncf %371 : vector<64x32xf32> to vector<64x32xbf16>
    %cst_155 = arith.constant dense<0.000000e+00> : vector<64x32xf32>
    %389 = tpu.matmul %387, %388, %cst_155 {dimension_numbers = #tpu.dot_dimension_numbers<[1], [0], [0], [1], [0, 0, 1, 1], [], []>} : vector<64x64xbf16>, vector<64x32xbf16>, vector<64x32xf32> -> vector<64x32xf32>
    %390 = tpu.concatenate %326, %347, %368, %389 in 1 : vector<64x32xf32>, vector<64x32xf32>, vector<64x32xf32>, vector<64x32xf32> -> vector<64x128xf32>
    %c1_156 = arith.constant 1 : index
    %c0_157 = arith.constant 0 : index
    %c0_158 = arith.constant 0 : index
    %391 = vector.load %arg15[%c1_156, %c0_157, %c0_158] : memref<2x128x128xbf16, #tpu.memory_space<vmem>>, vector<1x128x128xbf16>
    %392 = vector.shape_cast %391 : vector<1x128x128xbf16> to vector<128x128xbf16>
    %c1_159 = arith.constant 1 : index
    %c0_160 = arith.constant 0 : index
    %c0_161 = arith.constant 0 : index
    %393 = vector.load %arg16[%c1_159, %c0_160, %c0_161] : memref<2x1x128xf32, #tpu.memory_space<vmem>>, vector<1x1x128xf32>
    %394 = vector.shape_cast %393 : vector<1x1x128xf32> to vector<1x128xf32>
    %395 = arith.truncf %390 : vector<64x128xf32> to vector<64x128xbf16>
    %cst_162 = arith.constant dense<0.000000e+00> : vector<64x128xf32>
    %396 = tpu.matmul %395, %392, %cst_162 {dimension_numbers = #tpu.dot_dimension_numbers<[1], [0], [0], [1], [0, 0, 1, 1], [], []>} : vector<64x128xbf16>, vector<128x128xbf16>, vector<64x128xf32> -> vector<64x128xf32>
    %397 = vector.broadcast %394 : vector<1x128xf32> to vector<64x128xf32>
    %398 = arith.addf %396, %397 : vector<64x128xf32>
    %399 = vector.broadcast %272 : vector<1x128xf32> to vector<64x128xf32>
    %400 = arith.mulf %399, %398 : vector<64x128xf32>
    %401 = arith.addf %234, %400 : vector<64x128xf32>
    %cst_163 = arith.constant dense<0.000000e+00> : vector<64xf32>
    %402 = vector.multi_reduction <add>, %401, %cst_163 [1] : vector<64x128xf32> to vector<64xf32>
    %403 = vector.shape_cast %402 : vector<64xf32> to vector<64x1xf32>
    %cst_164 = arith.constant 1.280000e+02 : f32
    %404 = vector.broadcast %cst_164 : f32 to vector<64x1xf32>
    %405 = arith.divf %403, %404 : vector<64x1xf32>
    %406 = vector.broadcast %405 : vector<64x1xf32> to vector<64x128xf32>
    %407 = arith.subf %401, %406 : vector<64x128xf32>
    %408 = arith.mulf %407, %407 : vector<64x128xf32>
    %cst_165 = arith.constant dense<0.000000e+00> : vector<64xf32>
    %409 = vector.multi_reduction <add>, %408, %cst_165 [1] : vector<64x128xf32> to vector<64xf32>
    %410 = vector.shape_cast %409 : vector<64xf32> to vector<64x1xf32>
    %cst_166 = arith.constant 1.280000e+02 : f32
    %411 = vector.broadcast %cst_166 : f32 to vector<64x1xf32>
    %412 = arith.divf %410, %411 : vector<64x1xf32>
    %cst_167 = arith.constant 9.99999974E-6 : f32
    %413 = vector.broadcast %cst_167 : f32 to vector<64x1xf32>
    %414 = arith.addf %412, %413 : vector<64x1xf32>
    %415 = math.rsqrt %414 : vector<64x1xf32>
    %416 = vector.broadcast %415 : vector<64x1xf32> to vector<64x128xf32>
    %417 = arith.mulf %407, %416 : vector<64x128xf32>
    %cst_168 = arith.constant 1.000000e+00 : f32
    %418 = vector.broadcast %cst_168 : f32 to vector<1x128xf32>
    %419 = arith.addf %418, %274 : vector<1x128xf32>
    %420 = vector.broadcast %419 : vector<1x128xf32> to vector<64x128xf32>
    %421 = arith.mulf %417, %420 : vector<64x128xf32>
    %422 = vector.broadcast %273 : vector<1x128xf32> to vector<64x128xf32>
    %423 = arith.addf %421, %422 : vector<64x128xf32>
    %c1_169 = arith.constant 1 : index
    %c0_170 = arith.constant 0 : index
    %c0_171 = arith.constant 0 : index
    %424 = vector.load %arg17[%c1_169, %c0_170, %c0_171] : memref<2x128x512xbf16, #tpu.memory_space<vmem>>, vector<1x128x512xbf16>
    %425 = vector.shape_cast %424 : vector<1x128x512xbf16> to vector<128x512xbf16>
    %c1_172 = arith.constant 1 : index
    %c0_173 = arith.constant 0 : index
    %c0_174 = arith.constant 0 : index
    %426 = vector.load %arg18[%c1_172, %c0_173, %c0_174] : memref<2x1x512xf32, #tpu.memory_space<vmem>>, vector<1x1x512xf32>
    %427 = vector.shape_cast %426 : vector<1x1x512xf32> to vector<1x512xf32>
    %428 = arith.truncf %423 : vector<64x128xf32> to vector<64x128xbf16>
    %cst_175 = arith.constant dense<0.000000e+00> : vector<64x512xf32>
    %429 = tpu.matmul %428, %425, %cst_175 {dimension_numbers = #tpu.dot_dimension_numbers<[1], [0], [0], [1], [0, 0, 1, 1], [], []>} : vector<64x128xbf16>, vector<128x512xbf16>, vector<64x512xf32> -> vector<64x512xf32>
    %430 = vector.broadcast %427 : vector<1x512xf32> to vector<64x512xf32>
    %431 = arith.addf %429, %430 : vector<64x512xf32>
    %432 = arith.mulf %431, %431 : vector<64x512xf32>
    %433 = arith.mulf %431, %432 : vector<64x512xf32>
    %cst_176 = arith.constant 4.471500e-02 : f32
    %434 = vector.broadcast %cst_176 : f32 to vector<64x512xf32>
    %435 = arith.mulf %434, %433 : vector<64x512xf32>
    %436 = arith.addf %431, %435 : vector<64x512xf32>
    %cst_177 = arith.constant 0.797884583 : f32
    %437 = vector.broadcast %cst_177 : f32 to vector<64x512xf32>
    %438 = arith.mulf %437, %436 : vector<64x512xf32>
    %439 = math.tanh %438 : vector<64x512xf32>
    %cst_178 = arith.constant 1.000000e+00 : f32
    %440 = vector.broadcast %cst_178 : f32 to vector<64x512xf32>
    %441 = arith.addf %440, %439 : vector<64x512xf32>
    %cst_179 = arith.constant 5.000000e-01 : f32
    %442 = vector.broadcast %cst_179 : f32 to vector<64x512xf32>
    %443 = arith.mulf %442, %441 : vector<64x512xf32>
    %444 = arith.mulf %431, %443 : vector<64x512xf32>
    %c1_180 = arith.constant 1 : index
    %c0_181 = arith.constant 0 : index
    %c0_182 = arith.constant 0 : index
    %445 = vector.load %arg19[%c1_180, %c0_181, %c0_182] : memref<2x512x128xbf16, #tpu.memory_space<vmem>>, vector<1x512x128xbf16>
    %446 = vector.shape_cast %445 : vector<1x512x128xbf16> to vector<512x128xbf16>
    %c1_183 = arith.constant 1 : index
    %c0_184 = arith.constant 0 : index
    %c0_185 = arith.constant 0 : index
    %447 = vector.load %arg20[%c1_183, %c0_184, %c0_185] : memref<2x1x128xf32, #tpu.memory_space<vmem>>, vector<1x1x128xf32>
    %448 = vector.shape_cast %447 : vector<1x1x128xf32> to vector<1x128xf32>
    %449 = arith.truncf %444 : vector<64x512xf32> to vector<64x512xbf16>
    %cst_186 = arith.constant dense<0.000000e+00> : vector<64x128xf32>
    %450 = tpu.matmul %449, %446, %cst_186 {dimension_numbers = #tpu.dot_dimension_numbers<[1], [0], [0], [1], [0, 0, 1, 1], [], []>} : vector<64x512xbf16>, vector<512x128xbf16>, vector<64x128xf32> -> vector<64x128xf32>
    %451 = vector.broadcast %448 : vector<1x128xf32> to vector<64x128xf32>
    %452 = arith.addf %450, %451 : vector<64x128xf32>
    %453 = vector.broadcast %275 : vector<1x128xf32> to vector<64x128xf32>
    %454 = arith.mulf %453, %452 : vector<64x128xf32>
    %455 = arith.addf %401, %454 : vector<64x128xf32>
    %c0_187 = arith.constant 0 : index
    %c0_188 = arith.constant 0 : index
    %456 = vector.load %arg21[%c0_187, %c0_188] : memref<128x256xbf16, #tpu.memory_space<vmem>>, vector<128x256xbf16>
    %c0_189 = arith.constant 0 : index
    %c0_190 = arith.constant 0 : index
    %457 = vector.load %arg22[%c0_189, %c0_190] : memref<1x256xf32, #tpu.memory_space<vmem>>, vector<1x256xf32>
    %458 = arith.truncf %41 : vector<1x128xf32> to vector<1x128xbf16>
    %cst_191 = arith.constant dense<0.000000e+00> : vector<1x256xf32>
    %459 = tpu.matmul %458, %456, %cst_191 {dimension_numbers = #tpu.dot_dimension_numbers<[1], [0], [0], [1], [0, 0, 1, 1], [], []>} : vector<1x128xbf16>, vector<128x256xbf16>, vector<1x256xf32> -> vector<1x256xf32>
    %460 = arith.addf %459, %457 : vector<1x256xf32>
    %461 = vector.extract_strided_slice %460 {offsets = [0, 0], sizes = [1, 128], strides = [1, 1]} : vector<1x256xf32> to vector<1x128xf32>
    %462 = vector.extract_strided_slice %460 {offsets = [0, 128], sizes = [1, 128], strides = [1, 1]} : vector<1x256xf32> to vector<1x128xf32>
    %cst_192 = arith.constant dense<0.000000e+00> : vector<64xf32>
    %463 = vector.multi_reduction <add>, %455, %cst_192 [1] : vector<64x128xf32> to vector<64xf32>
    %464 = vector.shape_cast %463 : vector<64xf32> to vector<64x1xf32>
    %cst_193 = arith.constant 1.280000e+02 : f32
    %465 = vector.broadcast %cst_193 : f32 to vector<64x1xf32>
    %466 = arith.divf %464, %465 : vector<64x1xf32>
    %467 = vector.broadcast %466 : vector<64x1xf32> to vector<64x128xf32>
    %468 = arith.subf %455, %467 : vector<64x128xf32>
    %469 = arith.mulf %468, %468 : vector<64x128xf32>
    %cst_194 = arith.constant dense<0.000000e+00> : vector<64xf32>
    %470 = vector.multi_reduction <add>, %469, %cst_194 [1] : vector<64x128xf32> to vector<64xf32>
    %471 = vector.shape_cast %470 : vector<64xf32> to vector<64x1xf32>
    %cst_195 = arith.constant 1.280000e+02 : f32
    %472 = vector.broadcast %cst_195 : f32 to vector<64x1xf32>
    %473 = arith.divf %471, %472 : vector<64x1xf32>
    %cst_196 = arith.constant 9.99999997E-7 : f32
    %474 = vector.broadcast %cst_196 : f32 to vector<64x1xf32>
    %475 = arith.addf %473, %474 : vector<64x1xf32>
    %476 = math.rsqrt %475 : vector<64x1xf32>
    %477 = vector.broadcast %476 : vector<64x1xf32> to vector<64x128xf32>
    %478 = arith.mulf %468, %477 : vector<64x128xf32>
    %cst_197 = arith.constant 1.000000e+00 : f32
    %479 = vector.broadcast %cst_197 : f32 to vector<1x128xf32>
    %480 = arith.addf %479, %462 : vector<1x128xf32>
    %481 = vector.broadcast %480 : vector<1x128xf32> to vector<64x128xf32>
    %482 = arith.mulf %478, %481 : vector<64x128xf32>
    %483 = vector.broadcast %461 : vector<1x128xf32> to vector<64x128xf32>
    %484 = arith.addf %482, %483 : vector<64x128xf32>
    %c0_198 = arith.constant 0 : index
    %c0_199 = arith.constant 0 : index
    %485 = vector.load %arg23[%c0_198, %c0_199] : memref<128x32xbf16, #tpu.memory_space<vmem>>, vector<128x32xbf16>
    %c0_200 = arith.constant 0 : index
    %c0_201 = arith.constant 0 : index
    %486 = vector.load %arg24[%c0_200, %c0_201] : memref<1x32xf32, #tpu.memory_space<vmem>>, vector<1x32xf32>
    %487 = arith.truncf %484 : vector<64x128xf32> to vector<64x128xbf16>
    %cst_202 = arith.constant dense<0.000000e+00> : vector<64x32xf32>
    %488 = tpu.matmul %487, %485, %cst_202 {dimension_numbers = #tpu.dot_dimension_numbers<[1], [0], [0], [1], [0, 0, 1, 1], [], []>} : vector<64x128xbf16>, vector<128x32xbf16>, vector<64x32xf32> -> vector<64x32xf32>
    %489 = vector.broadcast %486 : vector<1x32xf32> to vector<64x32xf32>
    %490 = arith.addf %488, %489 : vector<64x32xf32>
    %c0_203 = arith.constant 0 : index
    %c0_204 = arith.constant 0 : index
    %c0_205 = arith.constant 0 : index
    %491 = vector.load %arg25[%c0_203, %c0_204, %c0_205] : memref<1x64x32xf32, #tpu.memory_space<vmem>>, vector<1x64x32xf32>
    %492 = vector.shape_cast %491 : vector<1x64x32xf32> to vector<64x32xf32>
    %493 = vector.shape_cast %490 : vector<64x32xf32> to vector<1x64x32xf32>
    tpu.vector_store %arg25[%c0_203, %c0_204, %c0_205], %493 {strides = array<i32>} : memref<1x64x32xf32, #tpu.memory_space<vmem>>, vector<1x64x32xf32>,
    return
  }
  func.func @transform_0(%arg0: i32) -> (i32, i32, i32) {
    %c0_i32 = arith.constant 0 : i32
    %c0_i32_0 = arith.constant 0 : i32
    %c0_i32_1 = arith.constant 0 : i32
    return %arg0, %c0_i32, %c0_i32_0 : i32, i32, i32
  }
  func.func @transform_1(%arg0: i32) -> (i32, i32, i32) {
    %c0_i32 = arith.constant 0 : i32
    %c0_i32_0 = arith.constant 0 : i32
    %c0_i32_1 = arith.constant 0 : i32
    return %arg0, %c0_i32, %c0_i32_0 : i32, i32, i32
  }
  func.func @transform_2(%arg0: i32) -> (i32, i32, i32) {
    %c0_i32 = arith.constant 0 : i32
    %c0_i32_0 = arith.constant 0 : i32
    %c0_i32_1 = arith.constant 0 : i32
    return %arg0, %c0_i32, %c0_i32_0 : i32, i32, i32
  }
  func.func @transform_3(%arg0: i32) -> (i32, i32) {
    %c0_i32 = arith.constant 0 : i32
    %c0_i32_0 = arith.constant 0 : i32
    %c0_i32_1 = arith.constant 0 : i32
    return %c0_i32, %c0_i32_0 : i32, i32
  }
  func.func @transform_4(%arg0: i32) -> (i32, i32) {
    %c0_i32 = arith.constant 0 : i32
    %c0_i32_0 = arith.constant 0 : i32
    %c0_i32_1 = arith.constant 0 : i32
    return %c0_i32, %c0_i32_0 : i32, i32
  }
  func.func @transform_5(%arg0: i32) -> (i32, i32) {
    %c0_i32 = arith.constant 0 : i32
    %c0_i32_0 = arith.constant 0 : i32
    %c0_i32_1 = arith.constant 0 : i32
    return %c0_i32, %c0_i32_0 : i32, i32
  }
  func.func @transform_6(%arg0: i32) -> (i32, i32, i32) {
    %c0_i32 = arith.constant 0 : i32
    %c0_i32_0 = arith.constant 0 : i32
    %c0_i32_1 = arith.constant 0 : i32
    %c0_i32_2 = arith.constant 0 : i32
    return %c0_i32, %c0_i32_0, %c0_i32_1 : i32, i32, i32
  }
  func.func @transform_7(%arg0: i32) -> (i32, i32, i32) {
    %c0_i32 = arith.constant 0 : i32
    %c0_i32_0 = arith.constant 0 : i32
    %c0_i32_1 = arith.constant 0 : i32
    %c0_i32_2 = arith.constant 0 : i32
    return %c0_i32, %c0_i32_0, %c0_i32_1 : i32, i32, i32
  }
  func.func @transform_8(%arg0: i32) -> (i32, i32, i32) {
    %c0_i32 = arith.constant 0 : i32
    %c0_i32_0 = arith.constant 0 : i32
    %c0_i32_1 = arith.constant 0 : i32
    %c0_i32_2 = arith.constant 0 : i32
    return %c0_i32, %c0_i32_0, %c0_i32_1 : i32, i32, i32
  }
  func.func @transform_9(%arg0: i32) -> (i32, i32, i32) {
    %c0_i32 = arith.constant 0 : i32
    %c0_i32_0 = arith.constant 0 : i32
    %c0_i32_1 = arith.constant 0 : i32
    %c0_i32_2 = arith.constant 0 : i32
    return %c0_i32, %c0_i32_0, %c0_i32_1 : i32, i32, i32
  }
  func.func @transform_10(%arg0: i32) -> (i32, i32, i32) {
    %c0_i32 = arith.constant 0 : i32
    %c0_i32_0 = arith.constant 0 : i32
    %c0_i32_1 = arith.constant 0 : i32
    %c0_i32_2 = arith.constant 0 : i32
    return %c0_i32, %c0_i32_0, %c0_i32_1 : i32, i32, i32
  }
  func.func @transform_11(%arg0: i32) -> (i32, i32, i32) {
    %c0_i32 = arith.constant 0 : i32
    %c0_i32_0 = arith.constant 0 : i32
    %c0_i32_1 = arith.constant 0 : i32
    %c0_i32_2 = arith.constant 0 : i32
    return %c0_i32, %c0_i32_0, %c0_i32_1 : i32, i32, i32
  }
  func.func @transform_12(%arg0: i32) -> (i32, i32, i32) {
    %c0_i32 = arith.constant 0 : i32
    %c0_i32_0 = arith.constant 0 : i32
    %c0_i32_1 = arith.constant 0 : i32
    %c0_i32_2 = arith.constant 0 : i32
    return %c0_i32, %c0_i32_0, %c0_i32_1 : i32, i32, i32
  }
  func.func @transform_13(%arg0: i32) -> (i32, i32, i32) {
    %c0_i32 = arith.constant 0 : i32
    %c0_i32_0 = arith.constant 0 : i32
    %c0_i32_1 = arith.constant 0 : i32
    %c0_i32_2 = arith.constant 0 : i32
    return %c0_i32, %c0_i32_0, %c0_i32_1 : i32, i32, i32
  }
  func.func @transform_14(%arg0: i32) -> (i32, i32, i32) {
    %c0_i32 = arith.constant 0 : i32
    %c0_i32_0 = arith.constant 0 : i32
    %c0_i32_1 = arith.constant 0 : i32
    %c0_i32_2 = arith.constant 0 : i32
    return %c0_i32, %c0_i32_0, %c0_i32_1 : i32, i32, i32
  }
  func.func @transform_15(%arg0: i32) -> (i32, i32, i32) {
    %c0_i32 = arith.constant 0 : i32
    %c0_i32_0 = arith.constant 0 : i32
    %c0_i32_1 = arith.constant 0 : i32
    %c0_i32_2 = arith.constant 0 : i32
    return %c0_i32, %c0_i32_0, %c0_i32_1 : i32, i32, i32
  }
  func.func @transform_16(%arg0: i32) -> (i32, i32, i32) {
    %c0_i32 = arith.constant 0 : i32
    %c0_i32_0 = arith.constant 0 : i32
    %c0_i32_1 = arith.constant 0 : i32
    %c0_i32_2 = arith.constant 0 : i32
    return %c0_i32, %c0_i32_0, %c0_i32_1 : i32, i32, i32
  }
  func.func @transform_17(%arg0: i32) -> (i32, i32, i32) {
    %c0_i32 = arith.constant 0 : i32
    %c0_i32_0 = arith.constant 0 : i32
    %c0_i32_1 = arith.constant 0 : i32
    %c0_i32_2 = arith.constant 0 : i32
    return %c0_i32, %c0_i32_0, %c0_i32_1 : i32, i32, i32
  }
  func.func @transform_18(%arg0: i32) -> (i32, i32, i32) {
    %c0_i32 = arith.constant 0 : i32
    %c0_i32_0 = arith.constant 0 : i32
    %c0_i32_1 = arith.constant 0 : i32
    %c0_i32_2 = arith.constant 0 : i32
    return %c0_i32, %c0_i32_0, %c0_i32_1 : i32, i32, i32
  }
  func.func @transform_19(%arg0: i32) -> (i32, i32, i32) {
    %c0_i32 = arith.constant 0 : i32
    %c0_i32_0 = arith.constant 0 : i32
    %c0_i32_1 = arith.constant 0 : i32
    %c0_i32_2 = arith.constant 0 : i32
    return %c0_i32, %c0_i32_0, %c0_i32_1 : i32, i32, i32
  }
  func.func @transform_20(%arg0: i32) -> (i32, i32) {
    %c0_i32 = arith.constant 0 : i32
    %c0_i32_0 = arith.constant 0 : i32
    %c0_i32_1 = arith.constant 0 : i32
    return %c0_i32, %c0_i32_0 : i32, i32
  }
  func.func @transform_21(%arg0: i32) -> (i32, i32) {
    %c0_i32 = arith.constant 0 : i32
    %c0_i32_0 = arith.constant 0 : i32
    %c0_i32_1 = arith.constant 0 : i32
    return %c0_i32, %c0_i32_0 : i32, i32
  }
  func.func @transform_22(%arg0: i32) -> (i32, i32) {
    %c0_i32 = arith.constant 0 : i32
    %c0_i32_0 = arith.constant 0 : i32
    %c0_i32_1 = arith.constant 0 : i32
    return %c0_i32, %c0_i32_0 : i32, i32
  }
  func.func @transform_23(%arg0: i32) -> (i32, i32) {
    %c0_i32 = arith.constant 0 : i32
    %c0_i32_0 = arith.constant 0 : i32
    %c0_i32_1 = arith.constant 0 : i32
    return %c0_i32, %c0_i32_0 : i32, i32
  }
  func.func @transform_24(%arg0: i32) -> (i32, i32, i32) {
    %c0_i32 = arith.constant 0 : i32
    %c0_i32_0 = arith.constant 0 : i32
    %c0_i32_1 = arith.constant 0 : i32
    return %arg0, %c0_i32, %c0_i32_0 : i32, i32, i32
  }
}

</mosaic_0001>

<bundles_post_ra>
// kernel: pretrained_dit_forward.1
= control target key start
LH: loop header
LB: loop body
LE: loop exit
PB: predicated region body
PF: predicated region fallthrough
CT: control target
= control target key end

     0   :  { %s16337_s0 = inlined_call_operand.vmem [shape: f32[2,64,16], index: 0, kind: input, shape index: {}]   ;;  %s16338_s1 = inlined_call_operand.vmem [shape: f32[2,1,256], index: 1, kind: input, shape index: {}]   ;;  %s16339_s2 = inlined_call_operand.vmem [shape: f32[2,2,128], index: 2, kind: input, shape index: {}]   ;;  %s16340_s3 = inlined_call_operand.hbm [shape: f32[64,128], index: 3, kind: input, shape index: {}]   ;;  %s16341_s4 = inlined_call_operand.hbm [shape: bf16[16,128], index: 4, kind: input, shape index: {}]   ;;  %s16342_s5 = inlined_call_operand.hbm [shape: f32[1,128], index: 5, kind: input, shape index: {}]   ;;  %s16343_s6 = inlined_call_operand.vmem [shape: bf16[2,256,128], index: 6, kind: input, shape index: {}]   ;;  %s16344_s7 = inlined_call_operand.vmem [shape: f32[2,1,128], index: 7, kind: input, shape index: {}]   ;;  %s16345_s8 = inlined_call_operand.hbm [shape: bf16[2,128,128], index: 8, kind: input, shape index: {}]   ;;  %s16346_s9 = inlined_call_operand.hbm [shape: f32[2,1,128], index: 9, kind: input, shape index: {}]   ;;  %s16347_s10 = inlined_call_operand.vmem [shape: bf16[2,128,768], index: 10, kind: input, shape index: {}]   ;;  %s16348_s11 = inlined_call_operand.hbm [shape: f32[2,1,768], index: 11, kind: input, shape index: {}]   ;;  %s16349_s12 = inlined_call_operand.hbm [shape: bf16[2,128,384], index: 12, kind: input, shape index: {}]   ;;  %s16350_s13 = inlined_call_operand.hbm [shape: f32[2,1,384], index: 13, kind: input, shape index: {}]   ;;  %s16351_s14 = inlined_call_operand.hbm [shape: bf16[2,128,128], index: 14, kind: input, shape index: {}]   ;;  %s16352_s15 = inlined_call_operand.hbm [shape: f32[2,1,128], index: 15, kind: input, shape index: {}]   ;;  %s16353_s16 = inlined_call_operand.vmem [shape: bf16[2,128,512], index: 16, kind: input, shape index: {}]   ;;  %s16354_s17 = inlined_call_operand.hbm [shape: f32[2,1,512], index: 17, kind: input, shape index: {}]   ;;  %s16355_s18 = inlined_call_operand.vmem [shape: bf16[2,512,128], index: 18, kind: input, shape index: {}]   ;;  %s16356_s19 = inlined_call_operand.hbm [shape: f32[2,1,128], index: 19, kind: input, shape index: {}]   ;;  %s16357_s20 = inlined_call_operand.hbm [shape: bf16[128,256], index: 20, kind: input, shape index: {}]   ;;  %s16358_s21 = inlined_call_operand.hbm [shape: f32[1,256], index: 21, kind: input, shape index: {}]   ;;  %s16359_s22 = inlined_call_operand.vmem [shape: bf16[128,32], index: 22, kind: input, shape index: {}]   ;;  %s16360_s23 = inlined_call_operand.hbm [shape: f32[1,32], index: 23, kind: input, shape index: {}]   ;;  %s16361_s24 = inlined_call_operand.vmem [shape: f32[2,64,32], index: 24, kind: output, shape index: {}]  }
   0x1   :  { %16432 = sst [smem:[#allocation54_spill]] %s16337_s0 }
   0x2   :  { %16433 = sst [smem:[#allocation55_spill]] %s16338_s1 }
   0x3   :  { %16434 = sst [smem:[#allocation56_spill]] %s16339_s2 }
   0x4   :  { %16435 = sst [smem:[#allocation57_spill]] %s16340_s3 }
   0x5   :  { %16436 = sst [smem:[#allocation58_spill]] %s16341_s4 }
   0x6   :  { %16437 = sst [smem:[#allocation59_spill]] %s16342_s5 }
   0x7   :  { %16438 = sst [smem:[#allocation60_spill]] %s16343_s6 }
   0x8   :  { %16439 = sst [smem:[#allocation61_spill]] %s16344_s7 }
   0x9   :  { %16440 = sst [smem:[#allocation62_spill]] %s16345_s8 }
   0xa   :  { %16441 = sst [smem:[#allocation63_spill]] %s16347_s10 }
   0xb   :  { %16442 = sst [smem:[#allocation64_spill]] %s16348_s11 }
   0xc   :  { %16443 = sst [smem:[#allocation65_spill]] %s16350_s13 }
   0xd   :  { %16444 = sst [smem:[#allocation66_spill]] %s16352_s15 }
   0xe   :  { %16445 = sst [smem:[#allocation67_spill]] %s16353_s16 }
   0xf   :  { %16446 = sst [smem:[#allocation68_spill]] %s16355_s18 }
  0x10   :  { %16447 = sst [smem:[#allocation69_spill]] %s16359_s22 }
  0x11   :  { %16448 = sst [smem:[#allocation70_spill]] %s16361_s24 }
  0x12   :  { %29 = vsyncpa [#allocation3], 0 }
  0x13   :  { %30 = vsyncpa [#allocation5], 0 }
  0x14   :  { %31 = vsyncpa [#allocation8], 0 }
  0x15   :  { %32 = vsyncpa [#allocation11], 0 }
  0x16   :  { %33 = vsyncpa [#allocation14], 0 }
  0x17   :  { %34 = vsyncpa [#allocation17], 0 }
  0x18   :  { %35 = vsyncpa [#allocation20], 0 }
  0x19   :  { %36 = vsyncpa [#allocation23], 0  ;;  %s12799_s5 = smov 0  }
  0x1a LB: > { %16449 = sst [smem:[#allocation33_spill]] %s12639_s5  ;;  %s12641_s26 = smov [#allocation4]   ;;  %s12639_s5 = sphi %s12799_s5, %s42_s5  }
  0x1b   : > { %s617_s27 = sshll.u32 %s12641_s26, 4  ;;  %s12805_s28 = sadd.s32 4294967295, %s12639_s5   ;;  %s12810_s27 = int_to_ptr.vmem [resolvable:$true] %s617_s27 }
  0x1c   : > { %p9402_p0 = scmp.ge.s32.totalorder %s12639_s5, 1  ;;  %p592_p1 = scmp.lt.s32.totalorder %s12639_s5, 3 }
  0x1d   : > { %p16377_p2 = scmp.eq.s32.totalorder %s12805_s28, 0  ;;  %s12642_s2 = smov [#allocation7]  }
  0x1e   : > { %p12812_p3 = pnand %p9402_p0, %p592_p1  ;;  %s647_s29 = sshll.u32 %s12642_s2, 4  ;;  %s12818_s29 = int_to_ptr.vmem [resolvable:$true] %s647_s29 }
  0x1f   : > { %s12643_s7 = smov [#allocation10]   ;;  %s16452_s8 = sld [smem:[#allocation58_spill]] }
  0x20   : > { %s16450_s6 = scalar_select %p12812_p3, 1, 0 }
  0x21   : > { %p10994_p4 = pneg %p12812_p3  ;;  %s676_s30 = sshll.u32 %s12643_s7, 4  ;;  %s12826_s30 = int_to_ptr.vmem [resolvable:$true] %s676_s30 }
  0x23   : > { %p12822_p5 = pnand %p16377_p2, %p10994_p4 }
  0x25   : > { %s12181_s4 = scalar_lea.hbm %s16452_s8, 128  ;;  %p12836_p7 = pneg %p12822_p5 }
  0x26   : > { %p12182_p6 = scmp.ne.s32.totalorder %s16452_s8, %s12181_s4  ;;  %p12188_p10 = scmp.lt.u32.totalorder %s12181_s4, %s16452_s8 }
  0x28   : > { %p12184_p8 = pnand %p12836_p7, %p12182_p6 }
  0x2a   : > { %p12185_p9 = pneg %p12184_p8 }
  0x2c   : > { %p12190_p11 = pnand %p12188_p10, %p12185_p9 }
  0x2e   : > { %12193 = shalt.err (!%p12190_p11)
}
  0x2f   : > { %s12194_s3 = scalar_lea.vmem %s12810_s27, 128  ;;  %p12202_p1 = scmp.lt.s32.totalorder %s12810_s27, %s12810_s27 }
  0x30   : > { %p12195_p12 = scmp.ne.s32.totalorder %s12810_s27, %s12194_s3  ;;  %p12203_p4 = scmp.lt.s32.totalorder %s12194_s3, %s12194_s3 }
  0x32   : > { %p12197_p13 = pnand %p12195_p12, %p12836_p7  ;;  %p12204_p6 = por %p12203_p4, %p12202_p1 }
  0x34   : > { %p12198_p0 = pneg %p12197_p13 }
  0x36   : > { %p12205_p8 = pnand %p12204_p6, %p12198_p0 }
  0x38   : > { %12208 = shalt.err (!%p12205_p8)
}
  0x39   : > { %s16373_s25 = smov 64   ;;  %s16375_s5 = smov 4  }
  0x3a   : > { %11000 = dma.hbm_to_vmem [thread:$0]  (!%p12822_p5), %s16452_s8, 128, %s12810_s27, [#allocation5], %s16373_s25, %s16373_s25, %s16375_s5  }
  0x3b   : > { %s16454_s24 = sld [smem:[#allocation62_spill]] }
  0x41   : > { %s12209_s3 = scalar_lea.hbm %s16454_s24, 2048 }
  0x42   : > { %p12210_p9 = scmp.ne.s32.totalorder %s16454_s24, %s12209_s3  ;;  %p12216_p12 = scmp.lt.u32.totalorder %s12209_s3, %s16454_s24 }
  0x44   : > { %p12212_p10 = pnand %p12210_p9, %p12836_p7 }
  0x46   : > { %p12213_p11 = pneg %p12212_p10 }
  0x48   : > { %p12218_p13 = pnand %p12216_p12, %p12213_p11 }
  0x4a   : > { %12221 = shalt.err (!%p12218_p13)
}
  0x4b   : > { %s12222_s27 = scalar_lea.vmem %s12818_s29, 2048  ;;  %p12230_p6 = scmp.lt.s32.totalorder %s12818_s29, %s12818_s29 }
  0x4c   : > { %p12223_p0 = scmp.ne.s32.totalorder %s12818_s29, %s12222_s27  ;;  %p12231_p8 = scmp.lt.s32.totalorder %s12222_s27, %s12222_s27 }
  0x4e   : > { %p12225_p1 = pnand %p12223_p0, %p12836_p7  ;;  %p12232_p9 = por %p12231_p8, %p12230_p6 }
  0x50   : > { %p12226_p4 = pneg %p12225_p1 }
  0x52   : > { %p12233_p10 = pnand %p12232_p9, %p12226_p4 }
  0x54   : > { %12236 = shalt.err (!%p12233_p10)
}
  0x55   : > { %11006 = dma.hbm_to_vmem [thread:$0]  (!%p12822_p5), %s16454_s24, 2048, %s12818_s29, [#allocation8], %s16373_s25, %s16373_s25, %s16375_s5  }
  0x56   : > { %s16455_s11 = sld [smem:[#allocation64_spill]] }
  0x5c   : > { %s12237_s4 = scalar_lea.hbm %s16455_s11, 192 }
  0x5d   : > { %p12238_p11 = scmp.ne.s32.totalorder %s16455_s11, %s12237_s4  ;;  %p12244_p0 = scmp.lt.u32.totalorder %s12237_s4, %s16455_s11 }
  0x5f   : > { %p12240_p12 = pnand %p12238_p11, %p12836_p7 }
  0x61   : > { %p12241_p13 = pneg %p12240_p12 }
  0x63   : > { %p12246_p1 = pnand %p12244_p0, %p12241_p13 }
  0x65   : > { %12249 = shalt.err (!%p12246_p1)
}
  0x66   : > { %s12250_s29 = scalar_lea.vmem %s12826_s30, 192  ;;  %p12258_p9 = scmp.lt.s32.totalorder %s12826_s30, %s12826_s30 }
  0x67   : > { %p12251_p4 = scmp.ne.s32.totalorder %s12826_s30, %s12250_s29  ;;  %p12259_p10 = scmp.lt.s32.totalorder %s12250_s29, %s12250_s29 }
  0x69   : > { %p12253_p6 = pnand %p12251_p4, %p12836_p7  ;;  %p12260_p11 = por %p12259_p10, %p12258_p9 }
  0x6b   : > { %p12254_p8 = pneg %p12253_p6 }
  0x6d   : > { %p12261_p12 = pnand %p12260_p11, %p12254_p8 }
  0x6f   : > { %12264 = shalt.err (!%p12261_p12)
}
  0x70   : > { %s12646_s27 = smov 96   ;;  %s12647_s10 = smov 6  }
  0x71   : > { %11012 = dma.hbm_to_vmem [thread:$0]  (!%p12822_p5), %s16455_s11, 192, %s12826_s30, [#allocation11], %s12646_s27, %s12646_s27, %s12647_s10  }
  0x72   : > { %s12648_s22 = smov [#allocation13]   ;;  %s16456_s13 = sld [smem:[#allocation65_spill]] }
  0x73   : > { %s702_s4 = sshll.u32 %s12648_s22, 4  ;;  %s703_s4 = int_to_ptr.vmem [resolvable:$true] %s702_s4 }
  0x78   : > { %s12265_s7 = scalar_lea.hbm %s16456_s13, 96 }
  0x79   : > { %p12266_p13 = scmp.ne.s32.totalorder %s16456_s13, %s12265_s7  ;;  %p12272_p4 = scmp.lt.u32.totalorder %s12265_s7, %s16456_s13 }
  0x7b   : > { %p12268_p0 = pnand %p12266_p13, %p12836_p7 }
  0x7d   : > { %p12269_p1 = pneg %p12268_p0 }
  0x7f   : > { %p12274_p6 = pnand %p12272_p4, %p12269_p1 }
  0x81   : > { %12277 = shalt.err (!%p12274_p6)
}
  0x82   : > { %s12278_s30 = scalar_lea.vmem %s703_s4, 96  ;;  %p12286_p11 = scmp.lt.s32.totalorder %s703_s4, %s703_s4 }
  0x83   : > { %p12279_p8 = scmp.ne.s32.totalorder %s703_s4, %s12278_s30  ;;  %p12287_p12 = scmp.lt.s32.totalorder %s12278_s30, %s12278_s30 }
  0x85   : > { %p12281_p9 = pnand %p12279_p8, %p12836_p7  ;;  %p12288_p2 = por %p12287_p12, %p12286_p11 }
  0x87   : > { %p12282_p10 = pneg %p12281_p9 }
  0x89   : > { %p12289_p3 = pnand %p12288_p2, %p12282_p10 }
  0x8b   : > { %12292 = shalt.err (!%p12289_p3)
}
  0x8c   : > { %s12649_s27 = smov 48   ;;  %s12650_s10 = smov 3  }
  0x8d   : > { %11018 = dma.hbm_to_vmem [thread:$0]  (!%p12822_p5), %s16456_s13, 96, %s703_s4, [#allocation14], %s12649_s27, %s12649_s27, %s12650_s10  }
  0x8e   : > { %s12651_s16 = smov [#allocation16]   ;;  %s12652_s22 = smov [#allocation19]  }
  0x8f   : > { %s728_s18 = sshll.u32 %s12651_s16, 4  ;;  %s760_s1 = sshll.u32 %s12652_s22, 4  ;;  %s729_s18 = int_to_ptr.vmem [resolvable:$true] %s728_s18  ;;  %s761_s1 = int_to_ptr.vmem [resolvable:$true] %s760_s1 }
  0x90   : > { %s16457_s15 = sld [smem:[#allocation66_spill]] }
  0x96   : > { %s12293_s3 = scalar_lea.hbm %s16457_s15, 32 }
  0x97   : > { %p12294_p2 = scmp.ne.s32.totalorder %s16457_s15, %s12293_s3  ;;  %p12300_p0 = scmp.lt.u32.totalorder %s12293_s3, %s16457_s15 }
  0x99   : > { %p12296_p3 = pnand %p12294_p2, %p12836_p7 }
  0x9b   : > { %p12297_p13 = pneg %p12296_p3 }
  0x9d   : > { %p12302_p1 = pnand %p12300_p0, %p12297_p13 }
  0x9f   : > { %12305 = shalt.err (!%p12302_p1)
}
  0xa0   : > { %s12306_s4 = scalar_lea.vmem %s729_s18, 32  ;;  %p12314_p9 = scmp.lt.s32.totalorder %s729_s18, %s729_s18 }
  0xa1   : > { %p12307_p4 = scmp.ne.s32.totalorder %s729_s18, %s12306_s4  ;;  %p12315_p10 = scmp.lt.s32.totalorder %s12306_s4, %s12306_s4 }
  0xa3   : > { %p12309_p6 = pnand %p12307_p4, %p12836_p7  ;;  %p12316_p11 = por %p12315_p10, %p12314_p9 }
  0xa5   : > { %p12310_p8 = pneg %p12309_p6 }
  0xa7   : > { %p12317_p12 = pnand %p12316_p11, %p12310_p8 }
  0xa9   : > { %12320 = shalt.err (!%p12317_p12)
}
  0xaa   : > { %s16380_s27 = smov 16   ;;  %s16381_s10 = smov 1  }
  0xab   : > { %11024 = dma.hbm_to_vmem [thread:$0]  (!%p12822_p5), %s16457_s15, 32, %s729_s18, [#allocation17], %s16380_s27, %s16380_s27, %s16381_s10  }
  0xac   : > { %s12321_s16 = scalar_lea.hbm %s16356_s19, 32 }
  0xad   : > { %p12322_p2 = scmp.ne.s32.totalorder %s16356_s19, %s12321_s16  ;;  %p12328_p0 = scmp.lt.u32.totalorder %s12321_s16, %s16356_s19 }
  0xaf   : > { %p12324_p3 = pnand %p12322_p2, %p12836_p7 }
  0xb1   : > { %p12325_p13 = pneg %p12324_p3 }
  0xb3   : > { %p12330_p1 = pnand %p12328_p0, %p12325_p13 }
  0xb5   : > { %12333 = shalt.err (!%p12330_p1)
}
  0xb6   : > { %s12334_s29 = scalar_lea.vmem %s761_s1, 32  ;;  %p12342_p9 = scmp.lt.s32.totalorder %s761_s1, %s761_s1 }
  0xb7   : > { %p12335_p4 = scmp.ne.s32.totalorder %s761_s1, %s12334_s29  ;;  %p12343_p10 = scmp.lt.s32.totalorder %s12334_s29, %s12334_s29 }
  0xb9   : > { %p12337_p6 = pnand %p12335_p4, %p12836_p7  ;;  %p12344_p11 = por %p12343_p10, %p12342_p9 }
  0xbb   : > { %p12338_p8 = pneg %p12337_p6 }
  0xbd   : > { %p12345_p12 = pnand %p12344_p11, %p12338_p8 }
  0xbf   : > { %12348 = shalt.err (!%p12345_p12)
}
  0xc0   : > { %11030 = dma.hbm_to_vmem [thread:$0]  (!%p12822_p5), %s16356_s19, 32, %s761_s1, [#allocation20], %s16380_s27, %s16380_s27, %s16381_s10  }
  0xc1   : > { %s12655_s4 = smov [#allocation22]   ;;  %s12656_s8 = smov [#allocation2]  }
  0xc2   : > { %s787_s11 = sshll.u32 %s12655_s4, 4  ;;  %s604_s25 = sshll.u32 %s12656_s8, 4  ;;  %s788_s11 = int_to_ptr.vmem [resolvable:$true] %s787_s11  ;;  %s605_s25 = int_to_ptr.vmem [resolvable:$true] %s604_s25 }
  0xc3   : > { %s12349_s22 = scalar_lea.hbm %s16358_s21, 32 }
  0xc4   : > { %p12350_p2 = scmp.ne.s32.totalorder %s16358_s21, %s12349_s22  ;;  %p12356_p0 = scmp.lt.u32.totalorder %s12349_s22, %s16358_s21 }
  0xc6   : > { %p12352_p3 = pnand %p12350_p2, %p12836_p7 }
  0xc8   : > { %p12353_p13 = pneg %p12352_p3 }
  0xca   : > { %p12358_p1 = pnand %p12356_p0, %p12353_p13 }
  0xcc   : > { %12361 = shalt.err (!%p12358_p1)
}
  0xcd   : > { %s12362_s1 = scalar_lea.vmem %s788_s11, 32  ;;  %p12370_p9 = scmp.lt.s32.totalorder %s788_s11, %s788_s11 }
  0xce   : > { %p12363_p4 = scmp.ne.s32.totalorder %s788_s11, %s12362_s1  ;;  %p12371_p10 = scmp.lt.s32.totalorder %s12362_s1, %s12362_s1 }
  0xd0   : > { %p12365_p6 = pnand %p12363_p4, %p12836_p7  ;;  %p12372_p11 = por %p12371_p10, %p12370_p9 }
  0xd2   : > { %p12366_p8 = pneg %p12365_p6 }
  0xd4   : > { %p12373_p12 = pnand %p12372_p11, %p12366_p8 }
  0xd6   : > { %12376 = shalt.err (!%p12373_p12)
}
  0xd7   : > { %11036 = dma.hbm_to_vmem [thread:$0]  (!%p12822_p5), %s16358_s21, 32, %s788_s11, [#allocation23]  }
  0xd8   : > { %s16458_s5 = sld [smem:[#allocation57_spill]] }
  0xde   : > { %s16459_s16 = smov %s16458_s5  ;;  %s12377_s22 = scalar_lea.hbm %s16458_s5, 1024 }
  0xdf   : > { %p12378_p2 = scmp.ne.s32.totalorder %s16459_s16, %s12377_s22  ;;  %p12384_p0 = scmp.lt.u32.totalorder %s12377_s22, %s16459_s16 }
  0xe1   : > { %p12380_p3 = pnand %p12378_p2, %p12836_p7 }
  0xe3   : > { %p12381_p13 = pneg %p12380_p3 }
  0xe5   : > { %p12386_p1 = pnand %p12384_p0, %p12381_p13 }
  0xe7   : > { %12389 = shalt.err (!%p12386_p1)
}
  0xe8   : > { %s12390_s1 = scalar_lea.vmem %s605_s25, 1024  ;;  %p12398_p9 = scmp.lt.s32.totalorder %s605_s25, %s605_s25 }
  0xe9   : > { %p12391_p4 = scmp.ne.s32.totalorder %s605_s25, %s12390_s1  ;;  %p12399_p10 = scmp.lt.s32.totalorder %s12390_s1, %s12390_s1 }
  0xeb   : > { %p12393_p6 = pnand %p12391_p4, %p12836_p7  ;;  %p12400_p11 = por %p12399_p10, %p12398_p9 }
  0xed   : > { %p12394_p8 = pneg %p12393_p6 }
  0xef   : > { %p12401_p12 = pnand %p12400_p11, %p12394_p8 }
  0xf1   : > { %12404 = shalt.err (!%p12401_p12)
}
  0xf2   : > { %s12657_s11 = smov 128   ;;  %s12658_s18 = smov 8  }
  0xf3   : > { %10997 = dma.hbm_to_vmem [thread:$0]  (!%p12822_p5), %s16459_s16, 1024, %s605_s25, [#allocation3], %s12657_s11, %s12657_s11, %s12658_s18  }
  0xf4   : > { %s12659_s8 = smov [#allocation6]   ;;  %s12660_s22 = smov [#allocation9]  }
  0xf5   : > { %s631_s5 = sshll.u32 %s12659_s8, 4  ;;  %s660_s26 = sshll.u32 %s12660_s22, 4  ;;  %s632_s5 = int_to_ptr.vmem [resolvable:$true] %s631_s5  ;;  %s661_s26 = int_to_ptr.vmem [resolvable:$true] %s660_s26 }
  0xf6   : > { %s16460_s29 = sld [smem:[#allocation59_spill]] }
  0xfc   : > { %s12405_s1 = scalar_lea.hbm %s16460_s29, 16 }
  0xfd   : > { %p12406_p2 = scmp.ne.s32.totalorder %s16460_s29, %s12405_s1  ;;  %p12412_p0 = scmp.lt.u32.totalorder %s12405_s1, %s16460_s29 }
  0xff   : > { %p12408_p3 = pnand %p12406_p2, %p12836_p7 }
 0x101   : > { %p12409_p13 = pneg %p12408_p3 }
 0x103   : > { %p12414_p1 = pnand %p12412_p0, %p12409_p13 }
 0x105   : > { %12417 = shalt.err (!%p12414_p1)
}
 0x106   : > { %s12418_s25 = scalar_lea.vmem %s632_s5, 16  ;;  %s12425_s30 = scalar_lea.vmem %s632_s5, 32 }
 0x107   : > { %p12419_p4 = scmp.ne.s32.totalorder %s632_s5, %s12418_s25  ;;  %p12426_p9 = scmp.lt.s32.totalorder %s632_s5, %s632_s5 }
 0x108   : > { %p12427_p10 = scmp.lt.s32.totalorder %s12425_s30, %s12418_s25 }
 0x109   : > { %p12421_p6 = pnand %p12419_p4, %p12836_p7 }
 0x10a   : > { %p12428_p11 = por %p12427_p10, %p12426_p9 }
 0x10b   : > { %p12422_p8 = pneg %p12421_p6 }
 0x10d   : > { %p12429_p12 = pnand %p12428_p11, %p12422_p8 }
 0x10f   : > { %12432 = shalt.err (!%p12429_p12)
}
 0x110   : > { %11003 = dma.hbm_to_vmem [thread:$0]  (!%p12822_p5), %s16460_s29, 16, %s632_s5, [#allocation5]  }
 0x111   : > { %s12433_s4 = scalar_lea.hbm %s16346_s9, 32 }
 0x112   : > { %p12434_p2 = scmp.ne.s32.totalorder %s16346_s9, %s12433_s4  ;;  %p12440_p0 = scmp.lt.u32.totalorder %s12433_s4, %s16346_s9 }
 0x114   : > { %p12436_p3 = pnand %p12434_p2, %p12836_p7 }
 0x116   : > { %p12437_p13 = pneg %p12436_p3 }
 0x118   : > { %p12442_p1 = pnand %p12440_p0, %p12437_p13 }
 0x11a   : > { %12445 = shalt.err (!%p12442_p1)
}
 0x11b   : > { %s12446_s1 = scalar_lea.vmem %s661_s26, 32  ;;  %p12454_p9 = scmp.lt.s32.totalorder %s661_s26, %s661_s26 }
 0x11c   : > { %p12447_p4 = scmp.ne.s32.totalorder %s661_s26, %s12446_s1  ;;  %p12455_p10 = scmp.lt.s32.totalorder %s12446_s1, %s12446_s1 }
 0x11e   : > { %p12449_p6 = pnand %p12447_p4, %p12836_p7  ;;  %p12456_p11 = por %p12455_p10, %p12454_p9 }
 0x120   : > { %p12450_p8 = pneg %p12449_p6 }
 0x122   : > { %p12457_p12 = pnand %p12456_p11, %p12450_p8 }
 0x124   : > { %12460 = shalt.err (!%p12457_p12)
}
 0x125   : > { %s16461_s5 = smov 1   ;;  %s16462_s25 = smov 16  }
 0x126   : > { %11009 = dma.hbm_to_vmem [thread:$0]  (!%p12822_p5), %s16346_s9, 32, %s661_s26, [#allocation8], %s16462_s25, %s16462_s25, %s16461_s5  }
 0x127   : > { %s12661_s10 = smov [#allocation12]   ;;  %s12461_s8 = scalar_lea.hbm %s16349_s12, 6144 }
 0x128   : > { %s689_s13 = sshll.u32 %s12661_s10, 4  ;;  %p12462_p2 = scmp.ne.s32.totalorder %s16349_s12, %s12461_s8  ;;  %s690_s13 = int_to_ptr.vmem [resolvable:$true] %s689_s13 }
 0x129   : > { %p12468_p0 = scmp.lt.u32.totalorder %s12461_s8, %s16349_s12 }
 0x12a   : > { %p12464_p3 = pnand %p12462_p2, %p12836_p7 }
 0x12c   : > { %p12465_p13 = pneg %p12464_p3 }
 0x12e   : > { %p12470_p1 = pnand %p12468_p0, %p12465_p13 }
 0x130   : > { %12473 = shalt.err (!%p12470_p1)
}
 0x131   : > { %s12474_s26 = scalar_lea.vmem %s690_s13, 6144  ;;  %p12482_p9 = scmp.lt.s32.totalorder %s690_s13, %s690_s13 }
 0x132   : > { %p12475_p4 = scmp.ne.s32.totalorder %s690_s13, %s12474_s26  ;;  %p12483_p10 = scmp.lt.s32.totalorder %s12474_s26, %s12474_s26 }
 0x134   : > { %p12477_p6 = pnand %p12475_p4, %p12836_p7  ;;  %p12484_p11 = por %p12483_p10, %p12482_p9 }
 0x136   : > { %p12478_p8 = pneg %p12477_p6 }
 0x138   : > { %p12485_p12 = pnand %p12484_p11, %p12478_p8 }
 0x13a   : > { %12488 = shalt.err (!%p12485_p12)
}
 0x13b   : > { %s12662_s5 = smov 192   ;;  %s12663_s25 = smov 12  }
 0x13c   : > { %11015 = dma.hbm_to_vmem [thread:$0]  (!%p12822_p5), %s16349_s12, 6144, %s690_s13, [#allocation11], %s12662_s5, %s12662_s5, %s12663_s25  }
 0x13d   : > { %s12664_s10 = smov [#allocation15]   ;;  %s12665_s4 = smov [#allocation18]  }
 0x13e   : > { %s715_s15 = sshll.u32 %s12664_s10, 4  ;;  %s744_s8 = sshll.u32 %s12665_s4, 4  ;;  %s716_s15 = int_to_ptr.vmem [resolvable:$true] %s715_s15  ;;  %s13065_s8 = int_to_ptr.vmem [resolvable:$true] %s744_s8 }
 0x13f   : > { %s12489_s3 = scalar_lea.hbm %s16351_s14, 2048 }
 0x140   : > { %p12490_p2 = scmp.ne.s32.totalorder %s16351_s14, %s12489_s3  ;;  %p12496_p0 = scmp.lt.u32.totalorder %s12489_s3, %s16351_s14 }
 0x142   : > { %p12492_p3 = pnand %p12490_p2, %p12836_p7 }
 0x144   : > { %p12493_p13 = pneg %p12492_p3 }
 0x146   : > { %p12498_p1 = pnand %p12496_p0, %p12493_p13 }
 0x148   : > { %12501 = shalt.err (!%p12498_p1)
}
 0x149   : > { %s12502_s5 = scalar_lea.vmem %s716_s15, 2048  ;;  %p12510_p9 = scmp.lt.s32.totalorder %s716_s15, %s716_s15 }
 0x14a   : > { %p12503_p4 = scmp.ne.s32.totalorder %s716_s15, %s12502_s5  ;;  %p12511_p10 = scmp.lt.s32.totalorder %s12502_s5, %s12502_s5 }
 0x14c   : > { %p12505_p6 = pnand %p12503_p4, %p12836_p7  ;;  %p12512_p11 = por %p12511_p10, %p12510_p9 }
 0x14e   : > { %p12506_p8 = pneg %p12505_p6 }
 0x150   : > { %p12513_p12 = pnand %p12512_p11, %p12506_p8 }
 0x152   : > { %12516 = shalt.err (!%p12513_p12)
}
 0x153   : > { %s16463_s25 = smov 4   ;;  %s16464_s27 = smov 64  }
 0x154   : > { %11021 = dma.hbm_to_vmem [thread:$0]  (!%p12822_p5), %s16351_s14, 2048, %s716_s15, [#allocation14], %s16464_s27, %s16464_s27, %s16463_s25  }
 0x155   : > { %s12517_s3 = scalar_lea.hbm %s16354_s17, 128 }
 0x156   : > { %p12518_p2 = scmp.ne.s32.totalorder %s16354_s17, %s12517_s3  ;;  %p12524_p0 = scmp.lt.u32.totalorder %s12517_s3, %s16354_s17 }
 0x158   : > { %p12520_p3 = pnand %p12518_p2, %p12836_p7 }
 0x15a   : > { %p12521_p13 = pneg %p12520_p3 }
 0x15c   : > { %p12526_p1 = pnand %p12524_p0, %p12521_p13 }
 0x15e   : > { %12529 = shalt.err (!%p12526_p1)
}
 0x15f   : > { %s12530_s15 = scalar_lea.vmem %s13065_s8, 128  ;;  %p12538_p9 = scmp.lt.s32.totalorder %s13065_s8, %s13065_s8 }
 0x160   : > { %p12531_p4 = scmp.ne.s32.totalorder %s13065_s8, %s12530_s15  ;;  %p12539_p10 = scmp.lt.s32.totalorder %s12530_s15, %s12530_s15 }
 0x162   : > { %p12533_p6 = pnand %p12531_p4, %p12836_p7  ;;  %p12540_p11 = por %p12539_p10, %p12538_p9 }
 0x164   : > { %p12534_p8 = pneg %p12533_p6 }
 0x166   : > { %p12541_p12 = pnand %p12540_p11, %p12534_p8 }
 0x168   : > { %12544 = shalt.err (!%p12541_p12)
}
 0x169   : > { %11027 = dma.hbm_to_vmem [thread:$0]  (!%p12822_p5), %s16354_s17, 128, %s13065_s8, [#allocation17], %s16464_s27, %s16464_s27, %s16463_s25  }
 0x16a   : > { %s12666_s4 = smov [#allocation21]   ;;  %s12667_s7 = smov [#allocation24]  }
 0x16b   : > { %s773_s22 = sshll.u32 %s12666_s4, 4  ;;  %s801_s3 = sshll.u32 %s12667_s7, 4  ;;  %s774_s22 = int_to_ptr.vmem [resolvable:$true] %s773_s22  ;;  %s13114_s3 = int_to_ptr.vmem [resolvable:$true] %s801_s3 }
 0x16c   : > { %s12545_s30 = scalar_lea.hbm %s16357_s20, 2048 }
 0x16d   : > { %p12546_p2 = scmp.ne.s32.totalorder %s16357_s20, %s12545_s30  ;;  %p12552_p0 = scmp.lt.u32.totalorder %s12545_s30, %s16357_s20 }
 0x16f   : > { %p12548_p3 = pnand %p12546_p2, %p12836_p7 }
 0x171   : > { %p12549_p13 = pneg %p12548_p3 }
 0x173   : > { %p12554_p1 = pnand %p12552_p0, %p12549_p13 }
 0x175   : > { %12557 = shalt.err (!%p12554_p1)
}
 0x176   : > { %s12558_s25 = scalar_lea.vmem %s774_s22, 2048  ;;  %p12566_p9 = scmp.lt.s32.totalorder %s774_s22, %s774_s22 }
 0x177   : > { %p12559_p4 = scmp.ne.s32.totalorder %s774_s22, %s12558_s25  ;;  %p12567_p10 = scmp.lt.s32.totalorder %s12558_s25, %s12558_s25 }
 0x179   : > { %p12561_p6 = pnand %p12559_p4, %p12836_p7  ;;  %p12568_p11 = por %p12567_p10, %p12566_p9 }
 0x17b   : > { %p12562_p8 = pneg %p12561_p6 }
 0x17d   : > { %p12569_p12 = pnand %p12568_p11, %p12562_p8 }
 0x17f   : > { %12572 = shalt.err (!%p12569_p12)
}
 0x180   : > { %11033 = dma.hbm_to_vmem [thread:$0]  (!%p12822_p5), %s16357_s20, 2048, %s774_s22, [#allocation20], %s12657_s11, %s12657_s11, %s12658_s18  }
 0x181   : > { %s12573_s1 = scalar_lea.hbm %s16360_s23, 16 }
 0x182   : > { %p12574_p2 = scmp.ne.s32.totalorder %s16360_s23, %s12573_s1  ;;  %p12580_p0 = scmp.lt.u32.totalorder %s12573_s1, %s16360_s23 }
 0x184   : > { %p12576_p3 = pnand %p12574_p2, %p12836_p7 }
 0x186   : > { %p12577_p13 = pneg %p12576_p3 }
 0x188   : > { %p12582_p1 = pnand %p12580_p0, %p12577_p13 }
 0x18a   : > { %12585 = shalt.err (!%p12582_p1)
}
 0x18b   : > { %s12586_s11 = scalar_lea.vmem %s13114_s3, 16  ;;  %s12593_s18 = scalar_lea.vmem %s13114_s3, 32 }
 0x18c   : > { %p12587_p4 = scmp.ne.s32.totalorder %s13114_s3, %s12586_s11  ;;  %p12594_p9 = scmp.lt.s32.totalorder %s13114_s3, %s13114_s3 }
 0x18d   : > { %p12595_p10 = scmp.lt.s32.totalorder %s12593_s18, %s12586_s11 }
 0x18e   : > { %p12589_p6 = pnand %p12587_p4, %p12836_p7 }
 0x18f   : > { %p12596_p11 = por %p12595_p10, %p12594_p9 }
 0x190   : > { %p12590_p8 = pneg %p12589_p6 }
 0x192   : > { %p12597_p12 = pnand %p12596_p11, %p12590_p8 }
 0x194   : > { %12600 = shalt.err (!%p12597_p12)
}
 0x195   : > { %11039 = dma.hbm_to_vmem [thread:$0]  (!%p12822_p5), %s16360_s23, 16, %s13114_s3, [#allocation23]  }
 0x196   : > { %p16465_p2 = scmp.ne.s32.totalorder %s16450_s6, 0 }
 0x198   : > { %836 = sbr.rel (%p16465_p2) target bundleno = 10318 (0x284e), region = 116 }
 0x19f   : > { %p16466_p7 = scmp.eq.s32.totalorder %s12805_s28, 0 }
 0x1a1   : > { %12606 = dma.done.wait (%p16466_p7), [#allocation3], 1024   ;;  %p16467_p3 = pmov %p16466_p7 }
 0x1a3   : > { %12608 = vsyncadd (%p16467_p3), [#allocation3], 4294966272  ;;  %p16468_p13 = pmov %p16467_p3 }
 0x1a4   : > { %p16469_p0 = pmov %p16467_p3 }
 0x1a5   : > { %12610 = dma.done.wait (%p16468_p13), [#allocation5], 144  }
 0x1a6   : > { %12612 = vsyncadd (%p16469_p0), [#allocation5], 4294967152  ;;  %p16470_p1 = pmov %p16469_p0 }
 0x1a7   : > { %p16471_p5 = pmov %p16469_p0 }
 0x1a8   : > { %12614 = dma.done.wait (%p16470_p1), [#allocation8], 2080  }
 0x1a9   : > { %12616 = vsyncadd (%p16471_p5), [#allocation8], 4294965216  ;;  %p16472_p4 = pmov %p16469_p0 }
 0x1aa   : > { %p16473_p6 = pmov %p16469_p0 }
 0x1ab   : > { %12618 = dma.done.wait (%p16472_p4), [#allocation11], 6336  }
 0x1ac   : > { %12620 = vsyncadd (%p16473_p6), [#allocation11], 4294960960  ;;  %p16474_p8 = pmov %p16469_p0 }
 0x1ad   : > { %p16475_p9 = pmov %p16469_p0 }
 0x1ae   : > { %12622 = dma.done.wait (%p16474_p8), [#allocation14], 2144  }
 0x1af   : > { %12624 = vsyncadd (%p16475_p9), [#allocation14], 4294965152  ;;  %p16476_p10 = pmov %p16469_p0 }
 0x1b0   : > { %p16477_p11 = pmov %p16469_p0 }
 0x1b1   : > { %12626 = dma.done.wait (%p16476_p10), [#allocation17], 160  }
 0x1b2   : > { %12628 = vsyncadd (%p16477_p11), [#allocation17], 4294967136  ;;  %p16478_p12 = pmov %p16469_p0 }
 0x1b3   : > { %p16479_p2 = pmov %p16469_p0 }
 0x1b4   : > { %12630 = dma.done.wait (%p16478_p12), [#allocation20], 2080  }
 0x1b5   : > { %12632 = vsyncadd (%p16479_p2), [#allocation20], 4294965216  ;;  %p16480_p7 = pmov %p16469_p0 }
 0x1b6   : > { %p16481_p3 = pmov %p16469_p0 }
 0x1b7   : > { %12634 = dma.done.wait (%p16480_p7), [#allocation23], 48  }
 0x1b8   : > { %12636 = vsyncadd (%p16481_p3), [#allocation23], 4294967248  ;;  %p966_p13 = scmp.lt.s32.totalorder %s12805_s28, 1  ;;  %v11231_v0 = vld [vmem:[#allocation4] sm:$0xff]   ;;  %s16482_s3 = sld [smem:[#allocation54_spill]]  ;;  %vm1014_vm0 = vcmask 130048   ;;  %v1142_v15 = vlaneseq }
 0x1b9   : > { %s16483_s10 = sld [smem:[#allocation60_spill]]  ;;  %10476 = vmatprep.subr.bf16.mxu0 %v11231_v0  ;;  %s16485_s30 = sld [smem:[#allocation55_spill]]  ;;  %v11248_v38 = vld [vmem:[#allocation7] sm:$0xff]   ;;  %v16382_v39 = vmov 0.0   ;;  %v11249_v40 = vld [vmem:[#allocation7 + $0x8] sm:$0xff]   ;;  %v11250_v41 = vld [vmem:[#allocation7 + $0x10] sm:$0xff]  }
 0x1ba   : > { %s16603_s28 = smov (!%p966_p13, %s12805_s28), 1  ;;  %10477 = vmatpush3.bf16.msra.mxu0 %v11231_v0  ;;  %v13232_v22 = vshrl.u32 %v1142_v15, 7  ;;  %v11251_v42 = vld [vmem:[#allocation7 + $0x18] sm:$0xff]   ;;  %v11252_v43 = vld [vmem:[#allocation7 + $0x20] sm:$0xff]   ;;  %v11253_v44 = vld [vmem:[#allocation7 + $0x28] sm:$0xff]   ;;  %vm12669_vm1 = vmmov 0  }
 0x1bb   : > { %s16393_s6 = sshll.u32 %s16603_s28, 6  ;;  %10486 = vmatprep.subr.bf16.mxu0 %v16382_v39  ;;  %v11254_v45 = vld [vmem:[#allocation7 + $0x30] sm:$0xff]   ;;  %v11255_v46 = vld [vmem:[#allocation7 + $0x38] sm:$0xff]   ;;  %v1094_v49 = vld [vmem:[#allocation2 + $0x10] sm:$0xff]  ;;  %s16491_s11 = sld [smem:[#allocation63_spill]]  ;;  %vm2296_vm2 = vcmask 261120  }
 0x1bc   : > { %16484 = vst [vmem:[#allocation34_spill] sm:$0xff] %v13232_v22  ;;  %v13248_v25 = vsub.s32 1, %v13232_v22  ;;  %v13260_v30 = vsub.s32 0, %v13232_v22  ;;  %v9441_v47 = vld [vmem:[#allocation6] ss:$0 sm:$0xff]  ;;  %v1092_v52 = vld [vmem:[#allocation2] sm:$0xff] }
 0x1bd   : > { %v1095_v55 = vld [vmem:[#allocation2 + $0x18] sm:$0xff]  ;;  %v1093_v59 = vld [vmem:[#allocation2 + $0x8] sm:$0xff]  ;;  %s16492_s1 = sld [smem:[#allocation56_spill]]  ;;  %vm2394_vm3 = vcmask 523264   ;;  %s12672_s18 = smov 64   ;;  %vm3574_vm4 = vcmask 785408  }
 0x1be   : > { %s970_s8 = scalar_lea.vmem %s16482_s3, %s16393_s6  ;;  %16486 = vst [vmem:[#allocation35_spill] sm:$0xff] %v13248_v25  ;;  %16487 = vst [vmem:[#allocation36_spill] sm:$0xff] %v13260_v30  ;;  %s16394_s22 = smov 32  }
 0x1bf   : > { %v11232_v1 = vld [vmem:[%s16483_s10 + $0x40] sm:$0xff]   ;;  %v988_v4 = vld [vmem:[%s970_s8 + $0x8] sm:$0xff]  ;;  %v989_v5 = vld [vmem:[%s970_s8 + $0x10] sm:$0xff]  ;;  %s16515_s2 = sld [smem:[#allocation67_spill]]  ;;  %s16520_s5 = sld [smem:[#allocation68_spill]] }
 0x1c0   : > { %v11233_v2 = vld [vmem:[%s16483_s10] sm:$0xff]   ;;  %10066 = vmatprep.subr.bf16.mxu1 %v11232_v1  ;;  %v990_v7 = vld [vmem:[%s970_s8 + $0x18] sm:$0xff]  ;;  %v11234_v9 = vld [vmem:[%s16483_s10 + $0x48] sm:$0xff]   ;;  %s16552_s27 = smov 32  }
 0x1c1   : > { %v987_v3 = vld [vmem:[%s970_s8] sm:$0xff]  ;;  %10067 = vmatpush3.bf16.msra.mxu1 %v11233_v2  ;;  %v999_v8 = vpack.c.bf16 %v990_v7, %v989_v5  ;;  %v11235_v10 = vld [vmem:[%s16483_s10 + $0x8] sm:$0xff]   ;;  %v11236_v11 = vld [vmem:[%s16483_s10 + $0x50] sm:$0xff]  }
 0x1c2   : > { %v998_v6 = vpack.c.bf16 %v988_v4, %v987_v3  ;;  %10068 = vmatprep.subr.bf16.mxu1 %v11234_v9  ;;  %v11237_v12 = vld [vmem:[%s16483_s10 + $0x10] sm:$0xff]   ;;  %v991_v13 = vld [vmem:[%s970_s8 + $0x20] sm:$0xff]  ;;  %v992_v14 = vld [vmem:[%s970_s8 + $0x28] sm:$0xff] }
 0x1c3   : > { %v1000_v16 = vpack.c.bf16 %v992_v14, %v991_v13  ;;  %v993_v17 = vld [vmem:[%s970_s8 + $0x30] sm:$0xff]  ;;  %v994_v18 = vld [vmem:[%s970_s8 + $0x38] sm:$0xff]  ;;  %v11240_v23 = vld [vmem:[%s16483_s10 + $0x60] sm:$0xff]   ;;  %s9437_s8 = sshll.u32 %s16603_s28, 1 }
 0x1c4   : > { %10478 = vmatprep.mubr.msk.bf16.mxu0 %vm1014_vm0, %v998_v6  ;;  %v11238_v19 = vld [vmem:[%s16483_s10 + $0x58] sm:$0xff]   ;;  %v1001_v20 = vpack.c.bf16 %v994_v18, %v993_v17  ;;  %v11241_v24 = vld [vmem:[%s16483_s10 + $0x20] sm:$0xff]   ;;  %s974_s13 = scalar_lea.vmem %s16485_s30, %s9437_s8  ;;  %v11242_v26 = vld [vmem:[%s16483_s10 + $0x68] sm:$0xff]   ;;  %s16490_s30 = sld [smem:[#allocation61_spill]] }
 0x1c5   : > { %10479 = vmatmul.mubr.msk.bf16.vlgmr.msra.gmra.mrb[0].mxu0 %vm1014_vm0, %v999_v8  ;;  %10069 = vmatpush3.bf16.msra.mxu1 %v11235_v10  ;;  %v11239_v21 = vld [vmem:[%s16483_s10 + $0x18] sm:$0xff]   ;;  %v11243_v27 = vld [vmem:[%s16483_s10 + $0x28] sm:$0xff]   ;;  %v11244_v28 = vld [vmem:[%s16483_s10 + $0x70] sm:$0xff]   ;;  %s13462_s26 = scalar_lea.vmem %s16492_s1, %s9437_s8  ;;  %s12671_s8 = smov 96  }
 0x1c6   : > { %10070 = vmatprep.subr.bf16.mxu1 %v11236_v11  ;;  %10482 = vmatprep.mubr.msk.bf16.mxu0 %vm1014_vm0, %v1000_v16  ;;  %v985_v29 = vld [vmem:[%s974_s13] sm:$0x3]  ;;  %v11245_v32 = vld [vmem:[%s16483_s10 + $0x30] sm:$0xff]   ;;  %v11246_v34 = vld [vmem:[%s16483_s10 + $0x78] sm:$0xff]   ;;  %s16521_s0 = smov %s16520_s5  ;;  %s16599_s1 = sshll.u32 %s16603_s28, 6 }
 0x1c7   : > { %v1149_v31 = vrot.slane %v985_v29, %v13248_v25  ;;  %v11247_v35 = vld [vmem:[%s16483_s10 + $0x38] sm:$0xff]   ;;  %v1145_v36 = vrot.slane %v985_v29, %v13260_v30  ;;  %10487 = vmatpush3.bf16.msra.mxu0 %v11248_v38  ;;  %v1096_v2 = vld [vmem:[#allocation2 + $0x20] sm:$0xff]  ;;  %v1098_v6 = vld [vmem:[#allocation2 + $0x30] sm:$0xff] }
 0x1c8   : > { %10488 = vmatprep.subr.bf16.mxu0 %v16382_v39  ;;  %v1097_v8 = vld [vmem:[#allocation2 + $0x28] sm:$0xff] }
 0x1c9   : > { %10071 = vmatpush3.bf16.msra.mxu1 %v11237_v12  ;;  %v13266_v33 = vpack.c.bf16 %v1149_v31, %v1149_v31  ;;  %v13276_v37 = vpack.c.bf16 %v1145_v36, %v1145_v36  ;;  %v1099_v12 = vld [vmem:[#allocation2 + $0x38] sm:$0xff] }
 0x1ca   : > { %10072 = vmatprep.subr.bf16.mxu1 %v11238_v19  ;;  %v1140_v17 = vld [vmem:[%s16490_s30] sm:$0x1]  ;;  %v11258_v36 = vld [vmem:[%s16491_s11 + $0x4] ss:$24 sps:$4 sm:$0xff]  }
 0x1cb   : > { %16488 = vst [vmem:[#allocation37_spill] sm:$0xff] %v13266_v33  ;;  %1282 = vmatprep.mubr.bf16.mxu1 %v13266_v33  ;;  %16489 = vst [vmem:[#allocation38_spill] sm:$0xff] %v13276_v37  ;;  %10489 = vmatpush3.bf16.msra.mxu0 %v11249_v40  ;;  %v11256_v40 = vld [vmem:[%s16491_s11] ss:$24 sps:$4 sm:$0xff]  }
 0x1cc   : > { %10490 = vmatprep.subr.bf16.mxu0 %v16382_v39 }
 0x1cd   : > { %10483 = vmatmul.mubr.msk.bf16.gmra.mrb[4].mxu0 %vm1014_vm0, %v1001_v20  ;;  %10073 = vmatpush3.bf16.msra.mxu1 %v11239_v21 }
 0x1ce   : > { %10074 = vmatprep.subr.bf16.mxu1 %v11240_v23  ;;  %10502 = vmatprep.mubr.msk.bf16.mxu0 %vm12669_vm1, %v16382_v39 }
 0x1cf   : > { %10491 = vmatpush3.bf16.msra.mxu0 %v11250_v41  ;;  %v11261_v41 = vld [vmem:[%s16491_s11 + $0xc] ss:$24 sps:$4 sm:$0xff]  }
 0x1d0   : > { %10492 = vmatprep.subr.bf16.mxu0 %v16382_v39 }
 0x1d1   : > { %10075 = vmatpush3.bf16.msra.mxu1 %v11241_v24 }
 0x1d2   : > { %10076 = vmatprep.subr.bf16.mxu1 %v11242_v26 }
 0x1d3   : > { %10493 = vmatpush3.bf16.msra.mxu0 %v11251_v42  ;;  %v11259_v42 = vld [vmem:[%s16491_s11 + $0x8] ss:$24 sps:$4 sm:$0xff]  }
 0x1d4   : > { %10494 = vmatprep.subr.bf16.mxu0 %v16382_v39 }
 0x1d5   : > { %10077 = vmatpush3.bf16.msra.mxu1 %v11243_v27 }
 0x1d6   : > { %10078 = vmatprep.subr.bf16.mxu1 %v11244_v28 }
 0x1d7   : > { %10495 = vmatpush3.bf16.msra.mxu0 %v11252_v43 }
 0x1d8   : > { %10496 = vmatprep.subr.bf16.mxu0 %v16382_v39 }
 0x1d9   : > { %10079 = vmatpush3.bf16.msra.mxu1 %v11245_v32 }
 0x1da   : > { %10080 = vmatprep.subr.bf16.mxu1 %v11246_v34 }
 0x1db   : > { %10497 = vmatpush3.bf16.msra.mxu0 %v11253_v44 }
 0x1dc   : > { %10498 = vmatprep.subr.bf16.mxu0 %v16382_v39 }
 0x1dd   : > { %10081 = vmatpush3.bf16.msra.mxu1 %v11247_v35 }
 0x1de   : > { %1732 = vmatprep.subr.bf16.mxu1 %v11258_v36  ;;  %v11286_v36 = vld [vmem:[%s16491_s11 + $0xf0] ss:$24 sps:$4 sm:$0xff]  }
 0x1df   : > { %10499 = vmatpush3.bf16.msra.mxu0 %v11254_v45 }
 0x1e0   : > { %1283 = vmatmul.mubr.bf16.vlgmr.msra.gmra.mrb[0].mxu1 %v13276_v37  ;;  %10500 = vmatprep.subr.bf16.mxu0 %v16382_v39 }
 0x1e1   : > { %1733 = vmatpush1.bf16.msra.mxu1 %v11256_v40  ;;  %v11289_v40 = vld [vmem:[%s16491_s11 + $0xf8] ss:$24 sps:$4 sm:$0xff]  }
 0x1e3   : > { %10501 = vmatpush3.bf16.msra.mxu0 %v11255_v46 }
 0x1e4   : > { %1773 = vmatprep.subr.bf16.mxu0 %v11261_v41  ;;  %v11294_v41 = vld [vmem:[%s16491_s11 + $0x124] ss:$24 sps:$4 sm:$0xff]  }
 0x298   : > { %v10480_v48 = vpop.f32.mrb[0].mxu0 }
 0x299   : > { %v1070_v50 = vadd.f32 %v10480_v48, %v9441_v47  ;;  %v1061_v51 = vpop.f32.mrb[1].mxu0  ;;  %v11264_v48 = vld [vmem:[%s16491_s11 + $0x34] ss:$24 sps:$4 sm:$0xff]  }
 0x29a   : > { %v1062_v53 = vadd.f32 %v9441_v47, %v1061_v51  ;;  %v10481_v54 = vpop.f32.mrb[2].mxu0  ;;  %v11262_v51 = vld [vmem:[%s16491_s11 + $0x30] ss:$24 sps:$4 sm:$0xff]   ;;  %1734 = vmatprep.subr.bf16.mxu1 %v11264_v48 }
 0x29b   : > { %v13289_v56 = vadd.f32 %v1094_v49, %v1070_v50  ;;  %v1073_v57 = vadd.f32 %v10481_v54, %v9441_v47  ;;  %v1064_v58 = vpop.f32.mrb[3].mxu0  ;;  %1735 = vmatpush1.bf16.msra.mxu1 %v11262_v51  ;;  %v11298_v48 = vld [vmem:[%s16491_s11 + $0x150] ss:$24 sps:$4 sm:$0xff]   ;;  %v11306_v51 = vld [vmem:[%s16491_s11 + $0x14] ss:$24 sps:$4 sm:$0xff]  }
 0x29c   : > { %v13291_v60 = vadd.f32 %v1092_v52, %v1062_v53  ;;  %v1065_v61 = vadd.f32 %v9441_v47, %v1064_v58  ;;  %v11267_v52 = vld [vmem:[%s16491_s11 + $0x3c] ss:$24 sps:$4 sm:$0xff]   ;;  %v11265_v53 = vld [vmem:[%s16491_s11 + $0x38] ss:$24 sps:$4 sm:$0xff]  }
 0x29d   : > { %v13293_v62 = vadd.f32 %v1095_v55, %v1073_v57  ;;  %1859 = vadd.xlane.f32.xlu1 %v13289_v56 }
 0x29e   : > { %v13296_v63 = vadd.f32 %v1093_v59, %v1065_v61  ;;  %1855 = vadd.xlane.f32.xlu0 %v13291_v60  ;;  %v11270_v59 = vld [vmem:[%s16491_s11 + $0x64] ss:$24 sps:$4 sm:$0xff]  }
 0x29f   : > { %1736 = vmatprep.subr.bf16.mxu1 %v11270_v59 }
 0x2a0   : > { %v10484_v0 = vpop.f32.mrb[4].mxu0 }
 0x2a1   : > { %v1077_v1 = vpop.f32.mrb[5].mxu0  ;;  %1861 = vadd.xlane.f32.xlu1 %v13293_v62  ;;  %v1086_v3 = vadd.f32 %v10484_v0, %v9441_v47 }
 0x2a2   : > { %v1078_v4 = vadd.f32 %v9441_v47, %v1077_v1  ;;  %1857 = vadd.xlane.f32.xlu0 %v13296_v63  ;;  %v10485_v5 = vpop.f32.mrb[6].mxu0  ;;  %v11268_v1 = vld [vmem:[%s16491_s11 + $0x60] ss:$24 sps:$4 sm:$0xff]  }
 0x2a3   : > { %v1080_v7 = vpop.f32.mrb[7].mxu0  ;;  %v1089_v10 = vadd.f32 %v10485_v5, %v9441_v47  ;;  %v13303_v13 = vadd.f32 %v1098_v6, %v1086_v3  ;;  %1737 = vmatpush1.bf16.msra.mxu1 %v11268_v1 }
 0x2a4   : > { %v13301_v9 = vadd.f32 %v1096_v2, %v1078_v4  ;;  %v1081_v11 = vadd.f32 %v9441_v47, %v1080_v7  ;;  %v11273_v2 = vld [vmem:[%s16491_s11 + $0x6c] ss:$24 sps:$4 sm:$0xff]   ;;  %v11271_v4 = vld [vmem:[%s16491_s11 + $0x68] ss:$24 sps:$4 sm:$0xff]  }
 0x2a5   : > { %v13308_v15 = vadd.f32 %v1099_v12, %v1089_v10  ;;  %v11276_v10 = vld [vmem:[%s16491_s11 + $0x94] ss:$24 sps:$4 sm:$0xff]  }
 0x2a6   : > { %v13305_v14 = vadd.f32 %v1097_v8, %v1081_v11  ;;  %1863 = vadd.xlane.f32.xlu0 %v13301_v9  ;;  %1738 = vmatprep.subr.bf16.mxu1 %v11276_v10 }
 0x2a8   : > { %1865 = vadd.xlane.f32.xlu1 %v13305_v14 }
 0x2aa   : > { %1867 = vadd.xlane.f32.xlu0 %v13303_v13 }
 0x2ac   : > { %1869 = vadd.xlane.f32.xlu1 %v13308_v15 }
 0x2b3   : > { %v10082_v16 = vpop.f32.mrb[0].mxu1 }
 0x2b4   : > { %v10083_v18 = vpop.f32.mrb[1].mxu1 }
 0x2b5   : > { %v10084_v19 = vadd.f32 %v10083_v18, %v10082_v16  ;;  %v10085_v20 = vpop.f32.mrb[2].mxu1  ;;  %v11279_v18 = vld [vmem:[%s16491_s11 + $0x9c] ss:$24 sps:$4 sm:$0xff]  }
 0x2b6   : > { %v10086_v21 = vpop.f32.mrb[3].mxu1  ;;  %v11277_v20 = vld [vmem:[%s16491_s11 + $0x98] ss:$24 sps:$4 sm:$0xff]  }
 0x2b7   : > { %v1285_v23 = vadd.f32 %v10084_v19, %v1140_v17  ;;  %v11274_v17 = vld [vmem:[%s16491_s11 + $0x90] ss:$24 sps:$4 sm:$0xff]  }
 0x2b8   : > { %1739 = vmatpush1.bf16.msra.mxu1 %v11274_v17  ;;  %v11309_v17 = vld [vmem:[%s16491_s11 + $0x44] ss:$24 sps:$4 sm:$0xff]  }
 0x2b9   : > { %v9463_v24 = vmul.f32 -1.442695, %v1285_v23 }
 0x2bb   : > { %11696 = vpow2.f32 %v9463_v24 }
 0x2c5   : > { %v11697_v26 = vpop.eup %11696 }
 0x2c6   : > { %v1293_v27 = vadd.f32 1.0, %v11697_v26  ;;  %v11282_v26 = vld [vmem:[%s16491_s11 + $0xc4] ss:$24 sps:$4 sm:$0xff]  }
 0x2c7   : > { %1740 = vmatprep.subr.bf16.mxu1 %v11282_v26  ;;  %v11338_v26 = vld [vmem:[#allocation12 + $0x34] ss:$12 sps:$4 sm:$0xff]  }
 0x2c8   : > { %11698 = vrcp.f32 %v1293_v27 }
 0x2d2   : > { %v11699_v28 = vpop.eup %11698 }
 0x2d3   : > { %v1296_v29 = vmul.f32 %v11699_v28, %v1285_v23 }
 0x2d5   : > { %v1314_v31 = vpack.c.bf16 %v1296_v29, %v1296_v29  ;;  %v11280_v29 = vld [vmem:[%s16491_s11 + $0xc0] ss:$24 sps:$4 sm:$0xff]  }
 0x2d6   : > { %1741 = vmatpush1.bf16.msra.mxu1 %v11280_v29  ;;  %v11315_v29 = vld [vmem:[%s16491_s11 + $0xa4] ss:$24 sps:$4 sm:$0xff]  }
 0x2d7   : > { %10503 = vmatmul.mubr.bf16.vlgmr.msra.gmra.mrb[8].mxu0 %v1314_v31  ;;  %v11285_v31 = vld [vmem:[%s16491_s11 + $0xcc] ss:$24 sps:$4 sm:$0xff]  }
 0x2d8   : > { %1774 = vmatpush1.bf16.msra.mxu0 %v11259_v42  ;;  %v11292_v42 = vld [vmem:[%s16491_s11 + $0x120] ss:$24 sps:$4 sm:$0xff]  }
 0x2d9   : > { %1775 = vmatprep.subr.bf16.mxu0 %v11267_v52  ;;  %v16384_v52 = vmov 0  }
 0x2da   : > { %1764 = vmatprep.mubr.bf16.mxu1 %v16384_v52  ;;  %1805 = vmatprep.mubr.bf16.mxu0 %v16384_v52 }
 0x2dc   : > { %1776 = vmatpush1.bf16.msra.mxu0 %v11265_v53  ;;  %v11330_v53 = vld [vmem:[#allocation12 + $0x4] ss:$12 sps:$4 sm:$0xff]  }
 0x2dd   : > { %1777 = vmatprep.subr.bf16.mxu0 %v11273_v2 }
 0x2e0   : > { %1778 = vmatpush1.bf16.msra.mxu0 %v11271_v4 }
 0x2e1   : > { %1779 = vmatprep.subr.bf16.mxu0 %v11279_v18  ;;  %v11328_v18 = vld [vmem:[#allocation12] ss:$12 sps:$4 sm:$0xff]  }
 0x2e4   : > { %1780 = vmatpush1.bf16.msra.mxu0 %v11277_v20  ;;  %v11307_v20 = vld [vmem:[%s16491_s11 + $0x40] ss:$24 sps:$4 sm:$0xff]  }
 0x2e5   : > { %1781 = vmatprep.subr.bf16.mxu0 %v11285_v31  ;;  %v11336_v31 = vld [vmem:[#allocation12 + $0x30] ss:$12 sps:$4 sm:$0xff]  }
 0x32a   : > { %v1860_v32 = vpop.xlane.xlu1 %1859 }
 0x32b   : > { %v1856_v34 = vpop.xlane.xlu0 %1855  ;;  %v1874_v35 = vmul.f32 0.0078125, %v1860_v32  ;;  %v11283_v32 = vld [vmem:[%s16491_s11 + $0xc8] ss:$24 sps:$4 sm:$0xff]  }
 0x32c   : > { %v1872_v38 = vmul.f32 0.0078125, %v1856_v34  ;;  %1782 = vmatpush1.bf16.msra.mxu0 %v11283_v32  ;;  %v11342_v32 = vld [vmem:[#allocation12 + $0x4c] ss:$12 sps:$4 sm:$0xff]  }
 0x32d   : > { %v13332_v45 = vsub.f32 %v13289_v56, %v1874_v35  ;;  %v11288_v35 = vld [vmem:[%s16491_s11 + $0xf4] ss:$24 sps:$4 sm:$0xff]  }
 0x32e   : > { %v13329_v43 = vsub.f32 %v13291_v60, %v1872_v38  ;;  %v1862_v44 = vpop.xlane.xlu1 %1861  ;;  %v11291_v38 = vld [vmem:[%s16491_s11 + $0xfc] ss:$24 sps:$4 sm:$0xff]   ;;  %1742 = vmatprep.subr.bf16.mxu1 %v11288_v35 }
 0x32f   : > { %v1858_v46 = vpop.xlane.xlu0 %1857  ;;  %v1875_v47 = vmul.f32 0.0078125, %v1862_v44  ;;  %v1890_v54 = vmul.f32 %v13332_v45, %v13332_v45  ;;  %1783 = vmatprep.subr.bf16.mxu0 %v11291_v38  ;;  %1743 = vmatpush1.bf16.msra.mxu1 %v11286_v36  ;;  %v11297_v44 = vld [vmem:[%s16491_s11 + $0x12c] ss:$24 sps:$4 sm:$0xff]   ;;  %v11346_v38 = vld [vmem:[#allocation12 + $0x64] ss:$12 sps:$4 sm:$0xff]  }
 0x330   : > { %v1873_v49 = vmul.f32 0.0078125, %v1858_v46  ;;  %v1888_v50 = vmul.f32 %v13329_v43, %v13329_v43  ;;  %1784 = vmatpush1.bf16.msra.mxu0 %v11289_v40  ;;  %1744 = vmatprep.subr.bf16.mxu1 %v11294_v41  ;;  %v11295_v46 = vld [vmem:[%s16491_s11 + $0x128] ss:$24 sps:$4 sm:$0xff]   ;;  %v11318_v35 = vld [vmem:[%s16491_s11 + $0xd4] ss:$24 sps:$4 sm:$0xff]  }
 0x331   : > { %v13354_v57 = vsub.f32 %v13293_v62, %v1875_v47  ;;  %1785 = vmatprep.subr.bf16.mxu0 %v11297_v44  ;;  %v11300_v47 = vld [vmem:[%s16491_s11 + $0x154] ss:$24 sps:$4 sm:$0xff]   ;;  %v11316_v40 = vld [vmem:[%s16491_s11 + $0xd0] ss:$24 sps:$4 sm:$0xff]   ;;  %v11321_v41 = vld [vmem:[%s16491_s11 + $0x104] ss:$24 sps:$4 sm:$0xff]  }
 0x332   : > { %1896 = vadd.xlane.f32.xlu0 %v1888_v50  ;;  %v13351_v55 = vsub.f32 %v13296_v63, %v1873_v49  ;;  %v11303_v49 = vld [vmem:[%s16491_s11 + $0x15c] ss:$24 sps:$4 sm:$0xff]   ;;  %v11301_v50 = vld [vmem:[%s16491_s11 + $0x158] ss:$24 sps:$4 sm:$0xff]   ;;  %v11340_v36 = vld [vmem:[#allocation12 + $0x48] ss:$12 sps:$4 sm:$0xff]  }
 0x333   : > { %v1864_v58 = vpop.xlane.xlu0 %1863  ;;  %v1891_v6 = vmul.f32 %v13354_v57, %v13354_v57  ;;  %1745 = vmatpush1.bf16.msra.mxu1 %v11292_v42  ;;  %v11344_v42 = vld [vmem:[#allocation12 + $0x60] ss:$12 sps:$4 sm:$0xff]  }
 0x334   : > { %v1876_v61 = vmul.f32 0.0078125, %v1864_v58  ;;  %v1889_v0 = vmul.f32 %v13351_v55, %v13351_v55  ;;  %1786 = vmatpush1.bf16.msra.mxu0 %v11295_v46  ;;  %1746 = vmatprep.subr.bf16.mxu1 %v11300_v47  ;;  %v986_v58 = vld [vmem:[%s13462_s26] sm:$0x3]  ;;  %v11324_v46 = vld [vmem:[%s16491_s11 + $0x134] ss:$24 sps:$4 sm:$0xff]  }
 0x335   : > { %v1866_v3 = vpop.xlane.xlu1 %1865  ;;  %1787 = vmatprep.subr.bf16.mxu0 %v11303_v49  ;;  %v11319_v44 = vld [vmem:[%s16491_s11 + $0x100] ss:$24 sps:$4 sm:$0xff]   ;;  %v11322_v47 = vld [vmem:[%s16491_s11 + $0x130] ss:$24 sps:$4 sm:$0xff]  }
 0x336   : > { %1900 = vadd.xlane.f32.xlu0 %v1890_v54  ;;  %1898 = vadd.xlane.f32.xlu1 %v1889_v0  ;;  %v1877_v5 = vmul.f32 0.0078125, %v1866_v3  ;;  %v13373_v7 = vsub.f32 %v13301_v9, %v1876_v61  ;;  %v1313_v54 = vld [vmem:[#allocation9] sm:$0x1]  ;;  %v11325_v49 = vld [vmem:[%s16491_s11 + $0x160] ss:$24 sps:$4 sm:$0xff]  }
 0x337   : > { %v1868_v8 = vpop.xlane.xlu0 %1867  ;;  %1747 = vmatpush1.bf16.msra.mxu1 %v11298_v48  ;;  %v11327_v48 = vld [vmem:[%s16491_s11 + $0x164] ss:$24 sps:$4 sm:$0xff]  }
 0x338   : > { %v1878_v11 = vmul.f32 0.0078125, %v1868_v8  ;;  %v1892_v12 = vmul.f32 %v13373_v7, %v13373_v7  ;;  %v13381_v16 = vsub.f32 %v13305_v14, %v1877_v5  ;;  %1788 = vmatpush1.bf16.msra.mxu0 %v11301_v50  ;;  %1814 = vmatprep.subr.bf16.mxu1 %v11306_v51  ;;  %v11331_v50 = vld [vmem:[#allocation12 + $0x8] ss:$12 sps:$4 sm:$0xff]   ;;  %v11335_v51 = vld [vmem:[#allocation12 + $0x20] ss:$12 sps:$4 sm:$0xff]  }
 0x339   : > { %v1870_v19 = vpop.xlane.xlu1 %1869  ;;  %2150 = vmatprep.subr.bf16.mxu0 %v11330_v53  ;;  %v11339_v53 = vld [vmem:[#allocation12 + $0x38] ss:$12 sps:$4 sm:$0xff]  }
 0x33a   : > { %1902 = vadd.xlane.f32.xlu1 %v1891_v6  ;;  %1904 = vadd.xlane.f32.xlu0 %v1892_v12  ;;  %v1879_v21 = vmul.f32 0.0078125, %v1870_v19  ;;  %v1893_v23 = vmul.f32 %v13381_v16, %v13381_v16  ;;  %v13395_v24 = vsub.f32 %v13303_v13, %v1878_v11  ;;  %v11304_v11 = vld [vmem:[%s16491_s11 + $0x10] ss:$24 sps:$4 sm:$0xff]   ;;  %v11334_v19 = vld [vmem:[#allocation12 + $0x1c] ss:$12 sps:$4 sm:$0xff]  }
 0x33c   : > { %v1894_v27 = vmul.f32 %v13395_v24, %v13395_v24  ;;  %v13403_v28 = vsub.f32 %v13308_v15, %v1879_v21  ;;  %v11312_v21 = vld [vmem:[%s16491_s11 + $0x74] ss:$24 sps:$4 sm:$0xff]  }
 0x33e   : > { %1906 = vadd.xlane.f32.xlu1 %v1893_v23  ;;  %1908 = vadd.xlane.f32.xlu0 %v1894_v27  ;;  %v1895_v34 = vmul.f32 %v13403_v28, %v13403_v28  ;;  %v11332_v23 = vld [vmem:[#allocation12 + $0x18] ss:$12 sps:$4 sm:$0xff]  }
 0x33f   : > { %v11310_v27 = vld [vmem:[%s16491_s11 + $0x70] ss:$24 sps:$4 sm:$0xff]  }
 0x342   : > { %1910 = vadd.xlane.f32.xlu1 %v1895_v34  ;;  %v11313_v34 = vld [vmem:[%s16491_s11 + $0xa0] ss:$24 sps:$4 sm:$0xff]  }
 0x3aa   : > { %v1397_v59 = vpop.f32.mrb[8].mxu0 }
 0x3ab   : > { %v1398_v61 = vadd.f32 %v1397_v59, %v1313_v54  ;;  %v10504_v0 = vpop.f32.mrb[9].mxu0  ;;  %v11343_v54 = vld [vmem:[#allocation12 + $0x50] ss:$12 sps:$4 sm:$0xff]  }
 0x3ac   : > { %v1400_v1 = vpop.f32.mrb[10].mxu0  ;;  %v11350_v59 = vld [vmem:[#allocation12 + $0x7c] ss:$12 sps:$4 sm:$0xff]   ;;  %v11351_v0 = vld [vmem:[#allocation12 + $0x80] ss:$12 sps:$4 sm:$0xff]  }
 0x3ad   : > { %v1403_v2 = vadd.f32 %v1398_v61, %v986_v58  ;;  %v10505_v3 = vpop.f32.mrb[11].mxu0  ;;  %v11347_v58 = vld [vmem:[#allocation12 + $0x68] ss:$12 sps:$4 sm:$0xff]   ;;  %v11348_v61 = vld [vmem:[#allocation12 + $0x78] ss:$12 sps:$4 sm:$0xff]  }
 0x3ae   : > { %v11354_v1 = vld [vmem:[#allocation12 + $0x94] ss:$12 sps:$4 sm:$0xff]   ;;  %v11355_v3 = vld [vmem:[#allocation12 + $0x98] ss:$12 sps:$4 sm:$0xff]  }
 0x3af   : > { %v9472_v4 = vmul.f32 -1.442695, %v1403_v2 }
 0x3b1   : > { %11700 = vpow2.f32 %v9472_v4  ;;  %v11358_v4 = vld [vmem:[#allocation12 + $0xac] ss:$12 sps:$4 sm:$0xff]  }
 0x3bb   : > { %v11701_v5 = vpop.eup %11700 }
 0x3bc   : > { %v1407_v6 = vadd.f32 1.0, %v11701_v5  ;;  %v11356_v5 = vld [vmem:[#allocation12 + $0xa8] ss:$12 sps:$4 sm:$0xff]  }
 0x3be   : > { %11702 = vrcp.f32 %v1407_v6  ;;  %v11359_v6 = vld [vmem:[#allocation12 + $0xb0] ss:$12 sps:$4 sm:$0xff]  }
 0x3c8   : > { %v11703_v8 = vpop.eup %11702 }
 0x3c9   : > { %v1410_v10 = vmul.f32 %v11703_v8, %v1403_v2  ;;  %v11352_v2 = vld [vmem:[#allocation12 + $0x90] ss:$12 sps:$4 sm:$0xff]   ;;  %v1897_v8 = vpop.xlane.xlu0 %1896 }
 0x3cb   : > { %v13468_v12 = vpack.c.bf16 %v1410_v10, %v1410_v10  ;;  %v1899_v10 = vpop.xlane.xlu1 %1898 }
 0x3cd   : > { %16493 = vst [vmem:[#allocation39_spill] sm:$0xff] %v13468_v12  ;;  %1765 = vmatmul.mubr.bf16.vlgmr.msra.gmra.mrb[4].mxu1 %v13468_v12  ;;  %1806 = vmatmul.mubr.bf16.vlgmr.msra.gmra.mrb[12].mxu0 %v13468_v12 }
 0x3ce   : > { %1815 = vmatpush1.bf16.msra.mxu1 %v11304_v11  ;;  %1846 = vmatprep.mubr.bf16.mxu1 %v16384_v52  ;;  %v1901_v11 = vpop.xlane.xlu0 %1900 }
 0x3cf   : > { %1816 = vmatprep.subr.bf16.mxu1 %v11309_v17  ;;  %2151 = vmatpush1.bf16.msra.mxu0 %v11328_v18  ;;  %v1903_v17 = vpop.xlane.xlu1 %1902 }
 0x3d0   : > { %2152 = vmatprep.subr.bf16.mxu0 %v11334_v19  ;;  %2182 = vmatprep.mubr.bf16.mxu0 %v16384_v52 }
 0x3d2   : > { %1817 = vmatpush1.bf16.msra.mxu1 %v11307_v20  ;;  %v1905_v18 = vpop.xlane.xlu0 %1904  ;;  %v1912_v20 = vmul.f32 0.0078125, %v1897_v8 }
 0x3d3   : > { %1818 = vmatprep.subr.bf16.mxu1 %v11312_v21  ;;  %2153 = vmatpush1.bf16.msra.mxu0 %v11332_v23  ;;  %v1907_v19 = vpop.xlane.xlu1 %1906  ;;  %v1913_v21 = vmul.f32 0.0078125, %v1899_v10  ;;  %v1914_v23 = vmul.f32 0.0078125, %v1901_v11 }
 0x3d4   : > { %2154 = vmatprep.subr.bf16.mxu0 %v11338_v26  ;;  %v1915_v26 = vmul.f32 0.0078125, %v1903_v17 }
 0x3d6   : > { %1819 = vmatpush1.bf16.msra.mxu1 %v11310_v27  ;;  %v1909_v27 = vpop.xlane.xlu0 %1908 }
 0x3d7   : > { %1820 = vmatprep.subr.bf16.mxu1 %v11315_v29  ;;  %2155 = vmatpush1.bf16.msra.mxu0 %v11336_v31  ;;  %v1920_v29 = vadd.f32 1e-06, %v1912_v20  ;;  %v1916_v31 = vmul.f32 0.0078125, %v1905_v18 }
 0x3d8   : > { %2156 = vmatprep.subr.bf16.mxu0 %v11342_v32  ;;  %v1911_v32 = vpop.xlane.xlu1 %1910 }
 0x3d9   : > { %11704 = vrsqrt.f32 %v1920_v29 }
 0x3da   : > { %1821 = vmatpush1.bf16.msra.mxu1 %v11313_v34  ;;  %v1921_v34 = vadd.f32 1e-06, %v1913_v21 }
 0x3db   : > { %1822 = vmatprep.subr.bf16.mxu1 %v11318_v35  ;;  %2157 = vmatpush1.bf16.msra.mxu0 %v11340_v36  ;;  %v1917_v35 = vmul.f32 0.0078125, %v1907_v19  ;;  %v1922_v36 = vadd.f32 1e-06, %v1914_v23 }
 0x3dc   : > { %2158 = vmatprep.subr.bf16.mxu0 %v11346_v38  ;;  %v1918_v38 = vmul.f32 0.0078125, %v1909_v27  ;;  %11706 = vrsqrt.f32 %v1921_v34 }
 0x3dd   : > { %11708 = vrsqrt.f32 %v1922_v36 }
 0x3de   : > { %1823 = vmatpush1.bf16.msra.mxu1 %v11316_v40  ;;  %v1923_v40 = vadd.f32 1e-06, %v1915_v26 }
 0x3df   : > { %1824 = vmatprep.subr.bf16.mxu1 %v11321_v41  ;;  %2159 = vmatpush1.bf16.msra.mxu0 %v11344_v42  ;;  %v1919_v41 = vmul.f32 0.0078125, %v1911_v32  ;;  %v1924_v42 = vadd.f32 1e-06, %v1916_v31 }
 0x3e0   : > { %2160 = vmatprep.subr.bf16.mxu0 %v11350_v59  ;;  %11710 = vrsqrt.f32 %v1923_v40 }
 0x3e1   : > { %11712 = vrsqrt.f32 %v1924_v42 }
 0x3e2   : > { %1825 = vmatpush1.bf16.msra.mxu1 %v11319_v44  ;;  %v1925_v44 = vadd.f32 1e-06, %v1917_v35 }
 0x3e3   : > { %1826 = vmatprep.subr.bf16.mxu1 %v11324_v46  ;;  %2161 = vmatpush1.bf16.msra.mxu0 %v11348_v61  ;;  %v1926_v46 = vadd.f32 1e-06, %v1918_v38 }
 0x3e4   : > { %2162 = vmatprep.subr.bf16.mxu0 %v11354_v1  ;;  %11714 = vrsqrt.f32 %v1925_v44 }
 0x3e5   : > { %11716 = vrsqrt.f32 %v1926_v46 }
 0x3e6   : > { %1827 = vmatpush1.bf16.msra.mxu1 %v11322_v47  ;;  %v1927_v47 = vadd.f32 1e-06, %v1919_v41 }
 0x3e7   : > { %1828 = vmatprep.subr.bf16.mxu1 %v11327_v48  ;;  %2163 = vmatpush1.bf16.msra.mxu0 %v11352_v2  ;;  %v1459_v48 = vld [vmem:[#allocation10] sm:$0x3f] }
 0x3e8   : > { %2164 = vmatprep.subr.bf16.mxu0 %v11358_v4  ;;  %11718 = vrsqrt.f32 %v1927_v47 }
 0x3ea   : > { %1829 = vmatpush1.bf16.msra.mxu1 %v11325_v49  ;;  %v11705_v49 = vpop.eup %11704 }
 0x3eb   : > { %10506 = vmatprep.subr.bf16.mxu1 %v11331_v50  ;;  %2165 = vmatpush1.bf16.msra.mxu0 %v11356_v5  ;;  %v1936_v20 = vmul.f32 %v11705_v49, %v13329_v43 }
 0x3ed   : > { %1847 = vmatmul.mubr.bf16.vlgmr.msra.gmra.mrb[8].mxu1 %v13468_v12 }
 0x3ee   : > { %10507 = vmatpush3.bf16.msra.mxu1 %v11331_v50  ;;  %v11707_v50 = vpop.eup %11706 }
 0x3ef   : > { %10508 = vmatprep.subr.bf16.mxu1 %v11335_v51  ;;  %v1937_v21 = vmul.f32 %v11707_v50, %v13351_v55 }
 0x3f2   : > { %10509 = vmatpush3.bf16.msra.mxu1 %v11335_v51  ;;  %v1709_v51 = vrot.slane %v1459_v48, %v13248_v25 }
 0x3f3   : > { %10510 = vmatprep.subr.bf16.mxu1 %v11339_v53 }
 0x3f6   : > { %10511 = vmatpush3.bf16.msra.mxu1 %v11339_v53  ;;  %v11709_v53 = vpop.eup %11708 }
 0x3f7   : > { %10512 = vmatprep.subr.bf16.mxu1 %v11343_v54  ;;  %v1938_v26 = vmul.f32 %v11709_v53, %v13332_v45 }
 0x3fa   : > { %10513 = vmatpush3.bf16.msra.mxu1 %v11343_v54  ;;  %v1705_v54 = vrot.slane %v1459_v48, %v13260_v30 }
 0x3fb   : > { %10514 = vmatprep.subr.bf16.mxu1 %v11347_v58 }
 0x3fe   : > { %10515 = vmatpush3.bf16.msra.mxu1 %v11347_v58  ;;  %v11711_v58 = vpop.eup %11710 }
 0x3ff   : > { %10516 = vmatprep.subr.bf16.mxu1 %v11351_v0  ;;  %v1939_v27 = vmul.f32 %v11711_v58, %v13354_v57 }
 0x402   : > { %10517 = vmatpush3.bf16.msra.mxu1 %v11351_v0  ;;  %v11713_v0 = vpop.eup %11712 }
 0x403   : > { %10518 = vmatprep.subr.bf16.mxu1 %v11355_v3  ;;  %v1940_v29 = vmul.f32 %v11713_v0, %v13373_v7  ;;  %v2001_v0 = vld [vmem:[#allocation13] sm:$0x7] }
 0x406   : > { %10519 = vmatpush3.bf16.msra.mxu1 %v11355_v3  ;;  %v11715_v3 = vpop.eup %11714 }
 0x407   : > { %10520 = vmatprep.subr.bf16.mxu1 %v11359_v6  ;;  %v11717_v8 = vpop.eup %11716  ;;  %v1941_v32 = vmul.f32 %v11715_v3, %v13381_v16  ;;  %v13544_v3 = vrot.slane %v2001_v0, %v13260_v30 }
 0x408   : > { %v11719_v18 = vpop.eup %11718  ;;  %v1942_v34 = vmul.f32 %v11717_v8, %v13395_v24 }
 0x409   : > { %v1943_v35 = vmul.f32 %v11719_v18, %v13403_v28 }
 0x40a   : > { %10521 = vmatpush3.bf16.msra.mxu1 %v11359_v6 }
 0x4a0   : > { %v1766_v59 = vpop.f32.mrb[4].mxu1  ;;  %v13519_v61 = vpop.f32.mrb[12].mxu0 }
 0x4a1   : > { %v1768_v1 = vpop.f32.mrb[5].mxu1  ;;  %v13521_v2 = vpop.f32.mrb[13].mxu0  ;;  %v1767_v10 = vadd.f32 %v1766_v59, %v1705_v54 }
 0x4a2   : > { %16494 = vst [vmem:[#allocation40_spill] sm:$0xff] %v13521_v2  ;;  %v1769_v4 = vadd.f32 %v1768_v1, %v1709_v51  ;;  %v1770_v5 = vpop.f32.mrb[6].mxu1  ;;  %v1811_v6 = vpop.f32.mrb[14].mxu0  ;;  %v13541_v1 = vsub.s32 2, %v13232_v22 }
 0x4a3   : > { %v1771_v11 = vpop.f32.mrb[7].mxu1  ;;  %v1812_v17 = vpop.f32.mrb[15].mxu0  ;;  %v1960_v31 = vrot.slane %v1767_v10, %v13260_v30  ;;  %v13547_v5 = vrot.slane %v2001_v0, %v13248_v25 }
 0x4a4   : > { %v1944_v19 = vadd.f32 1.0, %v1769_v4  ;;  %16497 = vst [vmem:[#allocation43_spill] sm:$0xff] %v13541_v1  ;;  %v2018_v6 = vrot.slane %v2001_v0, %v13541_v1 }
 0x4a6   : > { %v1948_v23 = vrot.slane %v1944_v19, %v13260_v30 }
 0x4a8   : > { %v1949_v36 = vmul.f32 %v1948_v23, %v1936_v20  ;;  %v1950_v43 = vmul.f32 %v1948_v23, %v1937_v21  ;;  %v1951_v38 = vmul.f32 %v1948_v23, %v1938_v26  ;;  %v1952_v55 = vmul.f32 %v1948_v23, %v1939_v27 }
 0x4a9   : > { %v1953_v40 = vmul.f32 %v1948_v23, %v1940_v29  ;;  %v1954_v41 = vmul.f32 %v1948_v23, %v1941_v32  ;;  %v1955_v42 = vmul.f32 %v1948_v23, %v1942_v34  ;;  %v1956_v45 = vmul.f32 %v1948_v23, %v1943_v35 }
 0x4aa   : > { %v1961_v44 = vadd.f32 %v1960_v31, %v1949_v36  ;;  %v1962_v57 = vadd.f32 %v1960_v31, %v1950_v43  ;;  %v1963_v46 = vadd.f32 %v1960_v31, %v1951_v38  ;;  %v1964_v7 = vadd.f32 %v1960_v31, %v1952_v55 }
 0x4ab   : > { %v1965_v47 = vadd.f32 %v1960_v31, %v1953_v40  ;;  %v1966_v48 = vadd.f32 %v1960_v31, %v1954_v41  ;;  %v1967_v49 = vadd.f32 %v1960_v31, %v1955_v42  ;;  %v1968_v16 = vadd.f32 %v1960_v31, %v1956_v45 }
 0x4ac   : > { %v2002_v50 = vpack.c.bf16 %v1962_v57, %v1961_v44  ;;  %v2003_v24 = vpack.c.bf16 %v1964_v7, %v1963_v46 }
 0x4ad   : > { %v2004_v51 = vpack.c.bf16 %v1966_v48, %v1965_v47  ;;  %v2005_v28 = vpack.c.bf16 %v1968_v16, %v1967_v49 }
 0x4ae   : > { %2183 = vmatmul.mubr.bf16.vlgmr.msra.gmra.mrb[16].mxu0 %v2002_v50  ;;  %10522 = vmatprep.mubr.bf16.mxu1 %v2002_v50 }
 0x4af   : > { %10523 = vmatmul.mubr.bf16.vlgmr.msra.gmra.mrb[12].mxu1 %v2003_v24  ;;  %2192 = vmatprep.mubr.bf16.mxu0 %v16384_v52 }
 0x4b0   : > { %10526 = vmatprep.mubr.bf16.mxu1 %v2004_v51 }
 0x4b6   : > { %2193 = vmatmul.mubr.bf16.gmra.mrb[20].mxu0 %v2003_v24 }
 0x4b7   : > { %10527 = vmatmul.mubr.bf16.gmra.mrb[16].mxu1 %v2005_v28  ;;  %2202 = vmatprep.mubr.bf16.mxu0 %v16384_v52 }
 0x4be   : > { %2203 = vmatmul.mubr.bf16.gmra.mrb[24].mxu0 %v2004_v51 }
 0x4bf   : > { %2212 = vmatprep.mubr.bf16.mxu0 %v16384_v52 }
 0x4c0   : > { %v13536_v53 = vpop.f32.mrb[8].mxu1 }
 0x4c1   : > { %16495 = vst [vmem:[#allocation41_spill] sm:$0xff] %v13536_v53  ;;  %v13538_v54 = vpop.f32.mrb[9].mxu1 }
 0x4c2   : > { %16496 = vst [vmem:[#allocation42_spill] sm:$0xff] %v13538_v54  ;;  %v1852_v58 = vpop.f32.mrb[10].mxu1 }
 0x4c3   : > { %v1853_v59 = vpop.f32.mrb[11].mxu1 }
 0x4c6   : > { %2213 = vmatmul.mubr.bf16.gmra.mrb[28].mxu0 %v2005_v28 }
 0x581   : > { %v2184_v4 = vpop.f32.mrb[16].mxu0 }
 0x582   : > { %v2186_v8 = vpop.f32.mrb[17].mxu0  ;;  %v10524_v10 = vpop.f32.mrb[12].mxu1  ;;  %v2185_v18 = vadd.f32 %v2184_v4, %v13544_v3 }
 0x583   : > { %v2188_v11 = vpop.f32.mrb[18].mxu0  ;;  %v2257_v17 = vpop.f32.mrb[13].mxu1  ;;  %v2187_v23 = vadd.f32 %v2186_v8, %v13547_v5  ;;  %v2266_v26 = vadd.f32 %v10524_v10, %v2018_v6 }
 0x584   : > { %v2189_v19 = vadd.f32 %v2188_v11, %v13544_v3  ;;  %v2190_v20 = vpop.f32.mrb[19].mxu0  ;;  %v10525_v21 = vpop.f32.mrb[14].mxu1  ;;  %v2258_v34 = vadd.f32 %v2257_v17, %v2018_v6 }
 0x585   : > { %v2191_v27 = vadd.f32 %v2190_v20, %v13547_v5  ;;  %v2269_v29 = vadd.f32 %v10525_v21, %v2018_v6  ;;  %v2260_v31 = vpop.f32.mrb[15].mxu1 }
 0x586   : > { %v13554_v32 = vpack.c.bf16 %v2189_v19, %v2185_v18  ;;  %v2261_v35 = vadd.f32 %v2260_v31, %v2018_v6 }
 0x587   : > { %v13556_v36 = vpack.c.bf16 %v2191_v27, %v2187_v23  ;;  %v13558_v43 = vpack.c.bf16 %v2269_v29, %v2266_v26 }
 0x588   : > { %v13560_v38 = vpack.c.bf16 %v2261_v35, %v2258_v34  ;;  %10538 = vmatprep.mubr.msk.bf16.mxu0 %vm2296_vm2, %v13554_v32 }
 0x589   : > { %v2194_v55 = vpop.f32.mrb[20].mxu0  ;;  %10902 = vmatprep.subr.msk.bf16.mxu0 %vm2296_vm2, %v13556_v36  ;;  %v2310_v40 = vsel %vm2296_vm2, %v13556_v36, 0 }
 0x58a   : > { %v2196_v41 = vpop.f32.mrb[21].mxu0  ;;  %v10528_v42 = vpop.f32.mrb[16].mxu1  ;;  %10531 = vmatpush3.bf16.xpose.msra.mxu0 %v2310_v40  ;;  %v2195_v57 = vadd.f32 %v2194_v55, %v13544_v3 }
 0x58b   : > { %v2198_v45 = vpop.f32.mrb[22].mxu0  ;;  %v2273_v44 = vpop.f32.mrb[17].mxu1  ;;  %v2197_v48 = vadd.f32 %v2196_v41, %v13547_v5  ;;  %v2282_v49 = vadd.f32 %v10528_v42, %v2018_v6 }
 0x58c   : > { %v2199_v46 = vadd.f32 %v2198_v45, %v13544_v3  ;;  %v2200_v7 = vpop.f32.mrb[23].mxu0  ;;  %v10529_v47 = vpop.f32.mrb[18].mxu1  ;;  %v2274_v28 = vadd.f32 %v2273_v44, %v2018_v6 }
 0x58d   : > { %v2201_v16 = vadd.f32 %v2200_v7, %v13547_v5  ;;  %v2285_v50 = vadd.f32 %v10529_v47, %v2018_v6  ;;  %v2276_v24 = vpop.f32.mrb[19].mxu1 }
 0x58e   : > { %v13572_v51 = vpack.c.bf16 %v2199_v46, %v2195_v57  ;;  %v2277_v58 = vadd.f32 %v2276_v24, %v2018_v6 }
 0x58f   : > { %v13574_v59 = vpack.c.bf16 %v2201_v16, %v2197_v48  ;;  %v13576_v0 = vpack.c.bf16 %v2285_v50, %v2282_v49 }
 0x590   : > { %v13578_v4 = vpack.c.bf16 %v2277_v58, %v2274_v28 }
 0x591   : > { %v2204_v8 = vpop.f32.mrb[24].mxu0  ;;  %10903 = vmatprep.subr.msk.bf16.mxu0 %vm2296_vm2, %v13574_v59  ;;  %v2313_v10 = vsel %vm2296_vm2, %v13574_v59, 0 }
 0x592   : > { %v2206_v11 = vpop.f32.mrb[25].mxu0  ;;  %10533 = vmatpush3.bf16.xpose.msra.mxu0 %v2313_v10  ;;  %v2205_v18 = vadd.f32 %v2204_v8, %v13544_v3 }
 0x593   : > { %v2208_v17 = vpop.f32.mrb[26].mxu0  ;;  %v2207_v20 = vadd.f32 %v2206_v11, %v13547_v5 }
 0x594   : > { %v2209_v6 = vadd.f32 %v2208_v17, %v13544_v3  ;;  %v2210_v19 = vpop.f32.mrb[27].mxu0 }
 0x595   : > { %v2211_v21 = vadd.f32 %v2210_v19, %v13547_v5 }
 0x596   : > { %v13588_v23 = vpack.c.bf16 %v2209_v6, %v2205_v18 }
 0x597   : > { %v13590_v26 = vpack.c.bf16 %v2211_v21, %v2207_v20 }
 0x599   : > { %v2214_v27 = vpop.f32.mrb[28].mxu0  ;;  %10904 = vmatprep.subr.msk.bf16.mxu0 %vm2296_vm2, %v13590_v26  ;;  %v2316_v29 = vsel %vm2296_vm2, %v13590_v26, 0 }
 0x59a   : > { %v2216_v31 = vpop.f32.mrb[29].mxu0  ;;  %10535 = vmatpush3.bf16.xpose.msra.mxu0 %v2316_v29  ;;  %v2215_v35 = vadd.f32 %v2214_v27, %v13544_v3 }
 0x59b   : > { %v2218_v34 = vpop.f32.mrb[30].mxu0  ;;  %v2217_v41 = vadd.f32 %v2216_v31, %v13547_v5 }
 0x59c   : > { %v2219_v55 = vadd.f32 %v2218_v34, %v13544_v3  ;;  %v2220_v40 = vpop.f32.mrb[31].mxu0 }
 0x59d   : > { %v2221_v42 = vadd.f32 %v2220_v40, %v13547_v5 }
 0x59e   : > { %v13600_v45 = vpack.c.bf16 %v2219_v55, %v2215_v35 }
 0x59f   : > { %v13602_v44 = vpack.c.bf16 %v2221_v42, %v2217_v41 }
 0x5a1   : > { %10905 = vmatprep.subr.msk.bf16.mxu0 %vm2296_vm2, %v13602_v44  ;;  %v2319_v57 = vsel %vm2296_vm2, %v13602_v44, 0 }
 0x5a2   : > { %10537 = vmatpush3.bf16.xpose.msra.mxu0 %v2319_v57 }
 0x5a3   : > { %10546 = vmatprep.subr.bf16.mxu0 %v13560_v38 }
 0x5a9   : > { %10539 = vmatmul.mubr.msk.bf16.vlgmr.msra.gmra.mrb[32].mxu0 %vm2296_vm2, %v13572_v51 }
 0x5aa   : > { %10542 = vmatprep.mubr.msk.bf16.mxu0 %vm2296_vm2, %v13588_v23  ;;  %10547 = vmatpush3.bf16.msra.mxu0 %v13560_v38 }
 0x5ab   : > { %10548 = vmatprep.subr.bf16.mxu0 %v13558_v43 }
 0x5ae   : > { %10549 = vmatpush3.bf16.msra.mxu0 %v13558_v43 }
 0x5af   : > { %10550 = vmatprep.subr.bf16.mxu0 %v13578_v4 }
 0x5b1   : > { %10543 = vmatmul.mubr.msk.bf16.gmra.mrb[36].mxu0 %vm2296_vm2, %v13600_v45 }
 0x5b2   : > { %10551 = vmatpush3.bf16.msra.mxu0 %v13578_v4 }
 0x5b3   : > { %10552 = vmatprep.subr.bf16.mxu0 %v13576_v0 }
 0x5b6   : > { %10553 = vmatpush3.bf16.msra.mxu0 %v13576_v0 }
 0x67c   : > { %v10540_v3 = vpop.f32.mrb[32].mxu0 }
 0x67d   : > { %v2355_v5 = vpop.f32.mrb[33].mxu0  ;;  %v2388_v48 = vmul.f32 0.17677669, %v10540_v3 }
 0x67e   : > { %v2386_v46 = vmul.f32 0.17677669, %v2355_v5  ;;  %v10541_v7 = vpop.f32.mrb[34].mxu0 }
 0x67f   : > { %v2358_v47 = vpop.f32.mrb[35].mxu0  ;;  %v2389_v50 = vmul.f32 0.17677669, %v10541_v7  ;;  %v2401_v58 = vsel %vm2394_vm3, %v2388_v48, -inf }
 0x680   : > { %v2387_v49 = vmul.f32 0.17677669, %v2358_v47  ;;  %v2395_v16 = vsel %vm2394_vm3, %v2386_v46, -inf }
 0x681   : > { %2396 = vmax.xlane.f32.xlu0 %v2395_v16  ;;  %v2404_v17 = vsel %vm2394_vm3, %v2389_v50, -inf }
 0x682   : > { %v2398_v24 = vsel %vm2394_vm3, %v2387_v49, -inf }
 0x683   : > { %2399 = vmax.xlane.f32.xlu1 %v2398_v24 }
 0x684   : > { %v10544_v28 = vpop.f32.mrb[36].mxu0 }
 0x685   : > { %2402 = vmax.xlane.f32.xlu0 %v2401_v58  ;;  %v2371_v8 = vpop.f32.mrb[37].mxu0  ;;  %v2392_v6 = vmul.f32 0.17677669, %v10544_v28 }
 0x686   : > { %v2390_v10 = vmul.f32 0.17677669, %v2371_v8  ;;  %v10545_v11 = vpop.f32.mrb[38].mxu0 }
 0x687   : > { %2405 = vmax.xlane.f32.xlu1 %v2404_v17  ;;  %v2374_v18 = vpop.f32.mrb[39].mxu0  ;;  %v2393_v21 = vmul.f32 0.17677669, %v10545_v11  ;;  %v2413_v29 = vsel %vm2394_vm3, %v2392_v6, -inf }
 0x688   : > { %v13626_v19 = vmul.f32 0.17677669, %v2374_v18  ;;  %v2407_v20 = vsel %vm2394_vm3, %v2390_v10, -inf }
 0x689   : > { %2408 = vmax.xlane.f32.xlu0 %v2407_v20  ;;  %v2416_v31 = vsel %vm2394_vm3, %v2393_v21, -inf }
 0x68a   : > { %v2410_v27 = vsel %vm2394_vm3, %v13626_v19, -inf }
 0x68b   : > { %2411 = vmax.xlane.f32.xlu1 %v2410_v27 }
 0x68d   : > { %2414 = vmax.xlane.f32.xlu0 %v2413_v29 }
 0x68f   : > { %2417 = vmax.xlane.f32.xlu1 %v2416_v31 }
 0x70e   : > { %v2397_v34 = vpop.xlane.xlu0 %2396 }
 0x70f   : > { %v2419_v35 = vsub.f32 %v2386_v46, %v2397_v34 }
 0x710   : > { %v2400_v55 = vpop.xlane.xlu1 %2399 }
 0x711   : > { %v2420_v41 = vsub.f32 %v2387_v49, %v2400_v55  ;;  %v2427_v57 = vmul.f32 1.442695, %v2419_v35 }
 0x712   : > { %v2403_v40 = vpop.xlane.xlu0 %2402 }
 0x713   : > { %v2421_v42 = vsub.f32 %v2388_v48, %v2403_v40  ;;  %v2429_v16 = vmul.f32 1.442695, %v2420_v41 }
 0x714   : > { %v2406_v3 = vpop.xlane.xlu1 %2405 }
 0x715   : > { %v2431_v5 = vmul.f32 1.442695, %v2421_v42  ;;  %v2422_v7 = vsub.f32 %v2389_v50, %v2406_v3 }
 0x716   : > { %v2409_v47 = vpop.xlane.xlu0 %2408 }
 0x717   : > { %11720 = vpow2.f32 %v2431_v5  ;;  %v2433_v24 = vmul.f32 1.442695, %v2422_v7  ;;  %v2423_v28 = vsub.f32 %v2390_v10, %v2409_v47 }
 0x718   : > { %11722 = vpow2.f32 %v2427_v57  ;;  %v2412_v35 = vpop.xlane.xlu1 %2411 }
 0x719   : > { %11724 = vpow2.f32 %v2433_v24  ;;  %v2435_v11 = vmul.f32 1.442695, %v2423_v28  ;;  %v2424_v41 = vsub.f32 %v13626_v19, %v2412_v35 }
 0x71a   : > { %v2415_v58 = vpop.xlane.xlu0 %2414  ;;  %11726 = vpow2.f32 %v2429_v16 }
 0x71b   : > { %v2425_v8 = vsub.f32 %v2392_v6, %v2415_v58  ;;  %v2437_v57 = vmul.f32 1.442695, %v2424_v41 }
 0x71c   : > { %v2418_v55 = vpop.xlane.xlu1 %2417 }
 0x71d   : > { %v2439_v46 = vmul.f32 1.442695, %v2425_v8  ;;  %v2426_v40 = vsub.f32 %v2393_v21, %v2418_v55 }
 0x71f   : > { %11728 = vpow2.f32 %v2439_v46  ;;  %v2441_v42 = vmul.f32 1.442695, %v2426_v40 }
 0x720   : > { %11730 = vpow2.f32 %v2435_v11 }
 0x721   : > { %v11721_v17 = vpop.eup %11720  ;;  %11732 = vpow2.f32 %v2441_v42 }
 0x722   : > { %v11723_v48 = vpop.eup %11722  ;;  %v2449_v49 = vsel %vm2394_vm3, %v11721_v17, 0.0  ;;  %11734 = vpow2.f32 %v2437_v57 }
 0x723   : > { %v11725_v18 = vpop.eup %11724  ;;  %2450 = vadd.xlane.f32.xlu0 %v2449_v49  ;;  %v2443_v27 = vsel %vm2394_vm3, %v11723_v48, 0.0 }
 0x724   : > { %v2452_v50 = vsel %vm2394_vm3, %v11725_v18, 0.0  ;;  %v11727_v20 = vpop.eup %11726 }
 0x725   : > { %2453 = vadd.xlane.f32.xlu1 %v2452_v50  ;;  %v2446_v10 = vsel %vm2394_vm3, %v11727_v20, 0.0 }
 0x727   : > { %2444 = vadd.xlane.f32.xlu0 %v2443_v27 }
 0x729   : > { %v13637_v6 = vpop.eup %11728  ;;  %2447 = vadd.xlane.f32.xlu1 %v2446_v10 }
 0x72a   : > { %v2461_v29 = vsel %vm2394_vm3, %v13637_v6, 0.0  ;;  %v13641_v31 = vpop.eup %11730 }
 0x72b   : > { %2462 = vadd.xlane.f32.xlu0 %v2461_v29  ;;  %v2455_v34 = vsel %vm2394_vm3, %v13641_v31, 0.0  ;;  %v11733_v3 = vpop.eup %11732 }
 0x72c   : > { %v2464_v5 = vsel %vm2394_vm3, %v11733_v3, 0.0  ;;  %v11735_v7 = vpop.eup %11734 }
 0x72d   : > { %v2458_v47 = vsel %vm2394_vm3, %v11735_v7, 0.0 }
 0x72f   : > { %2456 = vadd.xlane.f32.xlu0 %v2455_v34 }
 0x73a   : > { %2586 = vrot.lane.b32.xlu1 %v13574_v59, %s12671_s8 }
 0x73e   : > { %2588 = vrot.lane.b32.xlu1 %v13590_v26, %s12671_s8 }
 0x745   : > { %2584 = vrot.lane.b32.xlu0 %v13556_v36, %s12671_s8 }
 0x749   : > { %2572 = vrot.lane.b32.xlu0 %v13554_v32, %s12671_s8 }
 0x74d   : > { %2576 = vrot.lane.b32.xlu0 %v13588_v23, %s12671_s8 }
 0x762   : > { %2465 = vadd.xlane.f32.xlu1 %v2464_v5 }
 0x766   : > { %2459 = vadd.xlane.f32.xlu1 %v2458_v47 }
 0x777   : > { %2590 = vrot.lane.b32.xlu1 %v13602_v44, %s12671_s8 }
 0x77b   : > { %2574 = vrot.lane.b32.xlu1 %v13572_v51, %s12671_s8 }
 0x77f   : > { %2578 = vrot.lane.b32.xlu1 %v13600_v45, %s12671_s8 }
 0x7b0   : > { %v2451_v19 = vpop.xlane.xlu0 %2450 }
 0x7b2   : > { %v2454_v21 = vpop.xlane.xlu1 %2453 }
 0x7b3   : > { %11736 = vrcp.f32 %v2454_v21 }
 0x7b4   : > { %v2445_v16 = vpop.xlane.xlu0 %2444 }
 0x7b5   : > { %11738 = vrcp.f32 %v2445_v16 }
 0x7b6   : > { %11740 = vrcp.f32 %v2451_v19  ;;  %v2448_v24 = vpop.xlane.xlu1 %2447 }
 0x7b7   : > { %11742 = vrcp.f32 %v2448_v24 }
 0x7b8   : > { %v2463_v28 = vpop.xlane.xlu0 %2462 }
 0x7ba   : > { %v2587_v41 = vpop.permute.xlu1 %2586 }
 0x7bb   : > { %v2608_v42 = vsel %vm2296_vm2, %v2587_v41, 0 }
 0x7bc   : > { %v2457_v58 = vpop.xlane.xlu0 %2456 }
 0x7bd   : > { %v11737_v8 = vpop.eup %11736 }
 0x7be   : > { %v2478_v27 = vmul.f32 %v11737_v8, %v11725_v18  ;;  %v2589_v18 = vpop.permute.xlu1 %2588 }
 0x7bf   : > { %v11739_v11 = vpop.eup %11738 }
 0x7c0   : > { %v11741_v46 = vpop.eup %11740  ;;  %v2585_v49 = vpop.permute.xlu0 %2584  ;;  %v2475_v10 = vmul.f32 %v11739_v11, %v11723_v48 }
 0x7c1   : > { %v11743_v50 = vpop.eup %11742  ;;  %10906 = vmatprep.subr.msk.bf16.mxu0 %vm2296_vm2, %v2585_v49  ;;  %v2477_v34 = vmul.f32 %v11741_v46, %v11721_v17  ;;  %v2605_v40 = vsel %vm2296_vm2, %v2585_v49, 0  ;;  %v2611_v17 = vsel %vm2296_vm2, %v2589_v18, 0 }
 0x7c2   : > { %v2476_v29 = vmul.f32 %v11743_v50, %v11727_v20 }
 0x7c3   : > { %v2484_v55 = vpack.c.bf16 %v2478_v27, %v2477_v34 }
 0x7c4   : > { %v2483_v35 = vpack.c.bf16 %v2476_v29, %v2475_v10  ;;  %v2573_v49 = vpop.permute.xlu0 %2572 }
 0x7c6   : > { %10554 = vmatprep.mubr.msk.bf16.mxu0 %vm2394_vm3, %v2483_v35 }
 0x7c7   : > { %10555 = vmatmul.mubr.msk.bf16.vlgmr.msra.gmra.mrb[40].mxu0 %vm2394_vm3, %v2484_v55 }
 0x7c8   : > { %10563 = vmatpush3.bf16.xpose.msra.mxu0 %v2605_v40  ;;  %v2577_v27 = vpop.permute.xlu0 %2576 }
 0x7c9   : > { %10907 = vmatprep.subr.msk.bf16.mxu0 %vm2296_vm2, %v2587_v41 }
 0x7d0   : > { %10565 = vmatpush3.bf16.xpose.msra.mxu0 %v2608_v42 }
 0x7d1   : > { %10908 = vmatprep.subr.msk.bf16.mxu0 %vm2296_vm2, %v2589_v18 }
 0x7d8   : > { %10567 = vmatpush3.bf16.xpose.msra.mxu0 %v2611_v17 }
 0x7ef   : > { %v2466_v48 = vpop.xlane.xlu1 %2465 }
 0x7f0   : > { %11744 = vrcp.f32 %v2466_v48 }
 0x7f1   : > { %11746 = vrcp.f32 %v2457_v58 }
 0x7f2   : > { %11748 = vrcp.f32 %v2463_v28 }
 0x7f3   : > { %v2460_v20 = vpop.xlane.xlu1 %2459 }
 0x7f4   : > { %11750 = vrcp.f32 %v2460_v20 }
 0x7f7   : > { %v2591_v57 = vpop.permute.xlu1 %2590 }
 0x7f8   : > { %10909 = vmatprep.subr.msk.bf16.mxu0 %vm2296_vm2, %v2591_v57  ;;  %v2614_v5 = vsel %vm2296_vm2, %v2591_v57, 0 }
 0x7f9   : > { %10569 = vmatpush3.bf16.xpose.msra.mxu0 %v2614_v5 }
 0x7fa   : > { %v11745_v47 = vpop.eup %11744 }
 0x7fb   : > { %v11747_v19 = vpop.eup %11746  ;;  %v2482_v24 = vmul.f32 %v11745_v47, %v11733_v3  ;;  %v2575_v50 = vpop.permute.xlu1 %2574 }
 0x7fc   : > { %v11749_v21 = vpop.eup %11748  ;;  %v2479_v8 = vmul.f32 %v11747_v19, %v13641_v31 }
 0x7fd   : > { %v2481_v46 = vmul.f32 %v11749_v21, %v13637_v6 }
 0x7fe   : > { %v11751_v16 = vpop.eup %11750 }
 0x7ff   : > { %v2480_v11 = vmul.f32 %v11751_v16, %v11735_v7  ;;  %v2486_v28 = vpack.c.bf16 %v2482_v24, %v2481_v46  ;;  %v2579_v3 = vpop.permute.xlu1 %2578 }
 0x801   : > { %v2485_v58 = vpack.c.bf16 %v2480_v11, %v2479_v8 }
 0x803   : > { %10558 = vmatprep.mubr.msk.bf16.mxu0 %vm2394_vm3, %v2485_v58 }
 0x804   : > { %10559 = vmatmul.mubr.msk.bf16.gmra.mrb[44].mxu0 %vm2394_vm3, %v2486_v28 }
 0x805   : > { %10570 = vmatprep.mubr.msk.bf16.mxu0 %vm2296_vm2, %v2573_v49 }
 0x80c   : > { %10571 = vmatmul.mubr.msk.bf16.vlgmr.msra.gmra.mrb[48].mxu0 %vm2296_vm2, %v2575_v50 }
 0x80d   : > { %10574 = vmatprep.mubr.msk.bf16.mxu0 %vm2296_vm2, %v2577_v27 }
 0x814   : > { %10575 = vmatmul.mubr.msk.bf16.gmra.mrb[52].mxu0 %vm2296_vm2, %v2579_v3 }
 0x89a   : > { %v13682_v31 = vpop.f32.mrb[40].mxu0 }
 0x89b   : > { %v13684_v6 = vpop.f32.mrb[41].mxu0 }
 0x89c   : > { %v13686_v7 = vpop.f32.mrb[42].mxu0 }
 0x89d   : > { %v13688_v10 = vpop.f32.mrb[43].mxu0 }
 0x8d7   : > { %v13690_v29 = vpop.f32.mrb[44].mxu0 }
 0x8d8   : > { %v13692_v34 = vpop.f32.mrb[45].mxu0 }
 0x8d9   : > { %v13694_v35 = vpop.f32.mrb[46].mxu0 }
 0x8da   : > { %v13696_v55 = vpop.f32.mrb[47].mxu0 }
 0x8df   : > { %v10572_v40 = vpop.f32.mrb[48].mxu0 }
 0x8e0   : > { %v2683_v41 = vmul.f32 0.17677669, %v10572_v40  ;;  %v2650_v42 = vpop.f32.mrb[49].mxu0 }
 0x8e1   : > { %v10573_v18 = vpop.f32.mrb[50].mxu0  ;;  %v2681_v17 = vmul.f32 0.17677669, %v2650_v42 }
 0x8e2   : > { %v2653_v48 = vpop.f32.mrb[51].mxu0  ;;  %v2695_v20 = vsel %vm2394_vm3, %v2683_v41, -inf  ;;  %v2684_v47 = vmul.f32 0.17677669, %v10573_v18 }
 0x8e3   : > { %v2682_v57 = vmul.f32 0.17677669, %v2653_v48  ;;  %2696 = vmax.xlane.f32.xlu0 %v2695_v20  ;;  %v2689_v19 = vsel %vm2394_vm3, %v2681_v17, -inf }
 0x8e4   : > { %v2698_v46 = vsel %vm2394_vm3, %v2684_v47, -inf }
 0x8e5   : > { %v2692_v5 = vsel %vm2394_vm3, %v2682_v57, -inf }
 0x8e6   : > { %2693 = vmax.xlane.f32.xlu1 %v2692_v5 }
 0x8e7   : > { %2690 = vmax.xlane.f32.xlu0 %v2689_v19  ;;  %v10576_v21 = vpop.f32.mrb[52].mxu0 }
 0x8e8   : > { %v2666_v16 = vpop.f32.mrb[53].mxu0  ;;  %v2687_v8 = vmul.f32 0.17677669, %v10576_v21 }
 0x8e9   : > { %v10577_v24 = vpop.f32.mrb[54].mxu0  ;;  %v2685_v58 = vmul.f32 0.17677669, %v2666_v16 }
 0x8ea   : > { %v2669_v11 = vpop.f32.mrb[55].mxu0  ;;  %v2707_v28 = vsel %vm2394_vm3, %v2687_v8, -inf  ;;  %v13710_v50 = vmul.f32 0.17677669, %v10577_v24 }
 0x8eb   : > { %2699 = vmax.xlane.f32.xlu0 %v2698_v46  ;;  %v2701_v49 = vsel %vm2394_vm3, %v2685_v58, -inf  ;;  %v13712_v27 = vmul.f32 0.17677669, %v2669_v11 }
 0x8ec   : > { %v2710_v3 = vsel %vm2394_vm3, %v13710_v50, -inf }
 0x8ed   : > { %v2704_v40 = vsel %vm2394_vm3, %v13712_v27, -inf }
 0x8ef   : > { %2708 = vmax.xlane.f32.xlu0 %v2707_v28 }
 0x8f3   : > { %2702 = vmax.xlane.f32.xlu0 %v2701_v49 }
 0x8f7   : > { %2787 = vrot.lane.b32.xlu1 %v13558_v43, %s12671_s8 }
 0x8fb   : > { %2789 = vrot.lane.b32.xlu1 %v13578_v4, %s12671_s8 }
 0x909   : > { %2785 = vrot.lane.b32.xlu0 %v13560_v38, %s12671_s8 }
 0x91f   : > { %2711 = vmax.xlane.f32.xlu1 %v2710_v3 }
 0x923   : > { %2705 = vmax.xlane.f32.xlu1 %v2704_v40 }
 0x934   : > { %2791 = vrot.lane.b32.xlu1 %v13576_v0, %s12671_s8 }
 0x970   : > { %v2697_v42 = vpop.xlane.xlu0 %2696 }
 0x971   : > { %v2715_v18 = vsub.f32 %v2683_v41, %v2697_v42 }
 0x973   : > { %v2725_v48 = vmul.f32 1.442695, %v2715_v18  ;;  %v2694_v20 = vpop.xlane.xlu1 %2693 }
 0x974   : > { %v2691_v5 = vpop.xlane.xlu0 %2690  ;;  %v2714_v21 = vsub.f32 %v2682_v57, %v2694_v20 }
 0x975   : > { %11752 = vpow2.f32 %v2725_v48  ;;  %v2713_v19 = vsub.f32 %v2681_v17, %v2691_v5 }
 0x976   : > { %v2723_v46 = vmul.f32 1.442695, %v2714_v21 }
 0x977   : > { %v2721_v16 = vmul.f32 1.442695, %v2713_v19 }
 0x978   : > { %v2700_v24 = vpop.xlane.xlu0 %2699 }
 0x979   : > { %11754 = vpow2.f32 %v2721_v16  ;;  %v2716_v11 = vsub.f32 %v2684_v47, %v2700_v24  ;;  %v2788_v47 = vpop.permute.xlu1 %2787 }
 0x97b   : > { %v2727_v28 = vmul.f32 1.442695, %v2716_v11 }
 0x97c   : > { %v2709_v49 = vpop.xlane.xlu0 %2708 }
 0x97d   : > { %11756 = vpow2.f32 %v2727_v28  ;;  %v2719_v3 = vsub.f32 %v2687_v8, %v2709_v49 }
 0x97e   : > { %11758 = vpow2.f32 %v2723_v46 }
 0x97f   : > { %v13720_v40 = vpop.eup %11752  ;;  %v2733_v39 = vmul.f32 1.442695, %v2719_v3 }
 0x980   : > { %v2703_v41 = vpop.xlane.xlu0 %2702  ;;  %v2743_v42 = vsel %vm2394_vm3, %v13720_v40, 0.0 }
 0x981   : > { %11760 = vpow2.f32 %v2733_v39  ;;  %v2717_v17 = vsub.f32 %v2685_v58, %v2703_v41  ;;  %2744 = vadd.xlane.f32.xlu0 %v2743_v42  ;;  %v2790_v39 = vpop.permute.xlu1 %2789 }
 0x983   : > { %v13724_v57 = vpop.eup %11754  ;;  %v2729_v18 = vmul.f32 1.442695, %v2717_v17 }
 0x984   : > { %v2786_v48 = vpop.permute.xlu0 %2785  ;;  %v2737_v20 = vsel %vm2394_vm3, %v13724_v57, 0.0 }
 0x985   : > { %11762 = vpow2.f32 %v2729_v18  ;;  %2738 = vadd.xlane.f32.xlu0 %v2737_v20  ;;  %10578 = vmatprep.subr.bf16.mxu1 %v2786_v48 }
 0x986   : > { %10579 = vmatpush3.bf16.msra.mxu1 %v2786_v48 }
 0x987   : > { %v11757_v8 = vpop.eup %11756  ;;  %10580 = vmatprep.subr.bf16.mxu1 %v2788_v47 }
 0x988   : > { %v2746_v5 = vsel %vm2394_vm3, %v11757_v8, 0.0  ;;  %v11759_v19 = vpop.eup %11758 }
 0x989   : > { %2747 = vadd.xlane.f32.xlu1 %v2746_v5  ;;  %v2740_v16 = vsel %vm2394_vm3, %v11759_v19, 0.0 }
 0x98a   : > { %10581 = vmatpush3.bf16.msra.mxu1 %v2788_v47 }
 0x98b   : > { %v13729_v58 = vpop.eup %11760  ;;  %10582 = vmatprep.subr.bf16.mxu1 %v2790_v39 }
 0x98c   : > { %v2755_v21 = vsel %vm2394_vm3, %v13729_v58, 0.0 }
 0x98d   : > { %2756 = vadd.xlane.f32.xlu0 %v2755_v21  ;;  %2741 = vadd.xlane.f32.xlu1 %v2740_v16 }
 0x98e   : > { %10583 = vmatpush3.bf16.msra.mxu1 %v2790_v39 }
 0x98f   : > { %v13734_v24 = vpop.eup %11762 }
 0x990   : > { %v2749_v11 = vsel %vm2394_vm3, %v13734_v24, 0.0 }
 0x991   : > { %2750 = vadd.xlane.f32.xlu0 %v2749_v11 }
 0x99e   : > { %2884 = vrot.lane.b32.xlu1 %v13574_v59, %s12672_s18 }
 0x9a2   : > { %2886 = vrot.lane.b32.xlu1 %v13590_v26, %s12672_s18 }
 0x9ac   : > { %v2712_v46 = vpop.xlane.xlu1 %2711 }
 0x9ad   : > { %v2720_v28 = vsub.f32 %v13710_v50, %v2712_v46 }
 0x9af   : > { %v2735_v49 = vmul.f32 1.442695, %v2720_v28 }
 0x9b0   : > { %v2706_v3 = vpop.xlane.xlu1 %2705 }
 0x9b1   : > { %11764 = vpow2.f32 %v2735_v49  ;;  %v2718_v41 = vsub.f32 %v13712_v27, %v2706_v3 }
 0x9b3   : > { %v2731_v42 = vmul.f32 1.442695, %v2718_v41 }
 0x9b4   : > { %v2792_v17 = vpop.permute.xlu1 %2791 }
 0x9b5   : > { %10584 = vmatprep.subr.bf16.mxu1 %v2792_v17  ;;  %11766 = vpow2.f32 %v2731_v42 }
 0x9b6   : > { %10585 = vmatpush3.bf16.msra.mxu1 %v2792_v17 }
 0x9bb   : > { %v11765_v18 = vpop.eup %11764 }
 0x9bc   : > { %v2758_v47 = vsel %vm2394_vm3, %v11765_v18, 0.0 }
 0x9bd   : > { %2759 = vadd.xlane.f32.xlu0 %v2758_v47 }
 0x9bf   : > { %v11767_v48 = vpop.eup %11766 }
 0x9c0   : > { %v2752_v20 = vsel %vm2394_vm3, %v11767_v48, 0.0 }
 0x9c6   : > { %2753 = vadd.xlane.f32.xlu1 %v2752_v20 }
 0x9d3   : > { %2882 = vrot.lane.b32.xlu0 %v13556_v36, %s12672_s18 }
 0x9d7   : > { %2874 = vrot.lane.b32.xlu0 %v13554_v32, %s12672_s18  ;;  %2888 = vrot.lane.b32.xlu1 %v13602_v44, %s12672_s18 }
 0x9db   : > { %2878 = vrot.lane.b32.xlu0 %v13588_v23, %s12672_s18  ;;  %2876 = vrot.lane.b32.xlu1 %v13572_v51, %s12672_s18 }
 0x9df   : > { %2880 = vrot.lane.b32.xlu1 %v13600_v45, %s12672_s18 }
 0xa0e   : > { %v2745_v50 = vpop.xlane.xlu0 %2744 }
 0xa12   : > { %v2739_v5 = vpop.xlane.xlu0 %2738 }
 0xa16   : > { %v2748_v27 = vpop.xlane.xlu1 %2747 }
 0xa17   : > { %11768 = vrcp.f32 %v2748_v27 }
 0xa18   : > { %11770 = vrcp.f32 %v2739_v5 }
 0xa19   : > { %11772 = vrcp.f32 %v2745_v50 }
 0xa1a   : > { %v2742_v39 = vpop.xlane.xlu1 %2741  ;;  %v2757_v47 = vpop.xlane.xlu0 %2756 }
 0xa1b   : > { %11774 = vrcp.f32 %v2742_v39 }
 0xa1e   : > { %v2751_v20 = vpop.xlane.xlu0 %2750  ;;  %v2885_v50 = vpop.permute.xlu1 %2884 }
 0xa21   : > { %v11769_v21 = vpop.eup %11768 }
 0xa22   : > { %v11771_v16 = vpop.eup %11770  ;;  %v2772_v28 = vmul.f32 %v11769_v21, %v11757_v8  ;;  %v2887_v39 = vpop.permute.xlu1 %2886 }
 0xa23   : > { %v11773_v11 = vpop.eup %11772  ;;  %v2769_v49 = vmul.f32 %v11771_v16, %v13724_v57  ;;  %v2906_v57 = vsel %vm2296_vm2, %v2885_v50, 0 }
 0xa24   : > { %v2771_v41 = vmul.f32 %v11773_v11, %v13720_v40 }
 0xa25   : > { %v11775_v46 = vpop.eup %11774 }
 0xa26   : > { %v2770_v3 = vmul.f32 %v11775_v46, %v11759_v19  ;;  %v2778_v17 = vpack.c.bf16 %v2772_v28, %v2771_v41  ;;  %v2909_v28 = vsel %vm2296_vm2, %v2887_v39, 0 }
 0xa28   : > { %v2777_v42 = vpack.c.bf16 %v2770_v3, %v2769_v49 }
 0xa2a   : > { %10586 = vmatprep.mubr.msk.bf16.mxu1 %vm2394_vm3, %v2777_v42 }
 0xa2b   : > { %10587 = vmatmul.mubr.msk.bf16.vlgmr.msra.gmra.mrb[20].mxu1 %vm2394_vm3, %v2778_v17 }
 0xa4a   : > { %v2760_v27 = vpop.xlane.xlu0 %2759 }
 0xa4b   : > { %11776 = vrcp.f32 %v2760_v27 }
 0xa4c   : > { %11778 = vrcp.f32 %v2751_v20 }
 0xa4d   : > { %11780 = vrcp.f32 %v2757_v47 }
 0xa4e   : > { %v2883_v5 = vpop.permute.xlu0 %2882 }
 0xa4f   : > { %10910 = vmatprep.subr.msk.bf16.mxu1 %vm2296_vm2, %v2883_v5  ;;  %v2903_v8 = vsel %vm2296_vm2, %v2883_v5, 0 }
 0xa50   : > { %10595 = vmatpush3.bf16.xpose.msra.mxu1 %v2903_v8 }
 0xa51   : > { %10911 = vmatprep.subr.msk.bf16.mxu1 %vm2296_vm2, %v2885_v50 }
 0xa52   : > { %v2875_v20 = vpop.permute.xlu0 %2874 }
 0xa53   : > { %v2754_v40 = vpop.xlane.xlu1 %2753 }
 0xa54   : > { %11782 = vrcp.f32 %v2754_v40 }
 0xa55   : > { %v11777_v19 = vpop.eup %11776 }
 0xa56   : > { %v11779_v21 = vpop.eup %11778  ;;  %v2776_v46 = vmul.f32 %v11777_v19, %v11765_v18 }
 0xa57   : > { %v11781_v16 = vpop.eup %11780  ;;  %v2773_v49 = vmul.f32 %v11779_v21, %v13734_v24  ;;  %v2889_v41 = vpop.permute.xlu1 %2888 }
 0xa58   : > { %10597 = vmatpush3.bf16.xpose.msra.mxu1 %v2906_v57  ;;  %v2775_v42 = vmul.f32 %v11781_v16, %v13729_v58  ;;  %v2912_v18 = vsel %vm2296_vm2, %v2889_v41, 0 }
 0xa59   : > { %10912 = vmatprep.subr.msk.bf16.mxu1 %vm2296_vm2, %v2887_v39 }
 0xa5a   : > { %v2780_v47 = vpack.c.bf16 %v2776_v46, %v2775_v42 }
 0xa5b   : > { %v2877_v24 = vpop.permute.xlu1 %2876 }
 0xa5e   : > { %v11783_v11 = vpop.eup %11782 }
 0xa5f   : > { %v2774_v3 = vmul.f32 %v11783_v11, %v11767_v48  ;;  %v2879_v48 = vpop.permute.xlu0 %2878  ;;  %v2881_v58 = vpop.permute.xlu1 %2880 }
 0xa60   : > { %10599 = vmatpush3.bf16.xpose.msra.mxu1 %v2909_v28 }
 0xa61   : > { %10913 = vmatprep.subr.msk.bf16.mxu1 %vm2296_vm2, %v2889_v41  ;;  %v2779_v17 = vpack.c.bf16 %v2774_v3, %v2773_v49 }
 0xa63   : > { %10590 = vmatprep.mubr.msk.bf16.mxu1 %vm2394_vm3, %v2779_v17 }
 0xa64   : > { %10591 = vmatmul.mubr.msk.bf16.gmra.mrb[24].mxu1 %vm2394_vm3, %v2780_v47 }
 0xa65   : > { %10602 = vmatprep.mubr.msk.bf16.mxu1 %vm2296_vm2, %v2875_v20 }
 0xa68   : > { %10601 = vmatpush3.bf16.xpose.msra.mxu1 %v2912_v18 }
 0xa6f   : > { %10603 = vmatmul.mubr.msk.bf16.vlgmr.msra.gmra.mrb[28].mxu1 %vm2296_vm2, %v2877_v24 }
 0xa70   : > { %10606 = vmatprep.mubr.msk.bf16.mxu1 %vm2296_vm2, %v2879_v48 }
 0xa77   : > { %10607 = vmatmul.mubr.msk.bf16.gmra.mrb[32].mxu1 %vm2296_vm2, %v2881_v58 }
 0xafe   : > { %v13778_v50 = vpop.f32.mrb[20].mxu1 }
 0xaff   : > { %v13780_v27 = vpop.f32.mrb[21].mxu1 }
 0xb00   : > { %v13782_v5 = vpop.f32.mrb[22].mxu1 }
 0xb01   : > { %v13786_v8 = vpop.f32.mrb[23].mxu1 }
 0xb37   : > { %v13790_v57 = vpop.f32.mrb[24].mxu1 }
 0xb38   : > { %v13792_v19 = vpop.f32.mrb[25].mxu1 }
 0xb39   : > { %v13794_v21 = vpop.f32.mrb[26].mxu1 }
 0xb3a   : > { %v13798_v11 = vpop.f32.mrb[27].mxu1 }
 0xb42   : > { %v10604_v28 = vpop.f32.mrb[28].mxu1 }
 0xb43   : > { %v2981_v49 = vmul.f32 0.17677669, %v10604_v28  ;;  %v2948_v3 = vpop.f32.mrb[29].mxu1 }
 0xb44   : > { %v10605_v41 = vpop.f32.mrb[30].mxu1  ;;  %v2979_v42 = vmul.f32 0.17677669, %v2948_v3 }
 0xb45   : > { %v2951_v17 = vpop.f32.mrb[31].mxu1  ;;  %v2993_v47 = vsel %vm2394_vm3, %v2981_v49, -inf  ;;  %v2982_v24 = vmul.f32 0.17677669, %v10605_v41 }
 0xb46   : > { %v2980_v20 = vmul.f32 0.17677669, %v2951_v17  ;;  %2994 = vmax.xlane.f32.xlu0 %v2993_v47  ;;  %v2987_v48 = vsel %vm2394_vm3, %v2979_v42, -inf }
 0xb47   : > { %v2996_v40 = vsel %vm2394_vm3, %v2982_v24, -inf }
 0xb48   : > { %v2990_v18 = vsel %vm2394_vm3, %v2980_v20, -inf }
 0xb49   : > { %2991 = vmax.xlane.f32.xlu1 %v2990_v18 }
 0xb4a   : > { %2988 = vmax.xlane.f32.xlu0 %v2987_v48  ;;  %v10608_v58 = vpop.f32.mrb[32].mxu1 }
 0xb4b   : > { %v2964_v16 = vpop.f32.mrb[33].mxu1  ;;  %v2985_v39 = vmul.f32 0.17677669, %v10608_v58 }
 0xb4c   : > { %v10609_v46 = vpop.f32.mrb[34].mxu1  ;;  %v2983_v3 = vmul.f32 0.17677669, %v2964_v16 }
 0xb4d   : > { %v2967_v28 = vpop.f32.mrb[35].mxu1  ;;  %v3005_v52 = vsel %vm2394_vm3, %v2985_v39, -inf  ;;  %v13814_v41 = vmul.f32 0.17677669, %v10609_v46 }
 0xb4e   : > { %2997 = vmax.xlane.f32.xlu0 %v2996_v40  ;;  %v2999_v17 = vsel %vm2394_vm3, %v2983_v3, -inf  ;;  %v13816_v47 = vmul.f32 0.17677669, %v2967_v28 }
 0xb4f   : > { %v3008_v40 = vsel %vm2394_vm3, %v13814_v41, -inf }
 0xb52   : > { %3006 = vmax.xlane.f32.xlu0 %v3005_v52  ;;  %v3002_v52 = vsel %vm2394_vm3, %v13816_v47, -inf }
 0xb56   : > { %3000 = vmax.xlane.f32.xlu0 %v2999_v17 }
 0xb5a   : > { %3081 = vrot.lane.b32.xlu1 %v13558_v43, %s12672_s18 }
 0xb5e   : > { %3083 = vrot.lane.b32.xlu1 %v13578_v4, %s12672_s18 }
 0xb6c   : > { %3079 = vrot.lane.b32.xlu0 %v13560_v38, %s12672_s18 }
 0xb82   : > { %3009 = vmax.xlane.f32.xlu1 %v3008_v40 }
 0xb86   : > { %3003 = vmax.xlane.f32.xlu1 %v3002_v52 }
 0xb97   : > { %3085 = vrot.lane.b32.xlu1 %v13576_v0, %s12672_s18 }
 0xbd3   : > { %v2995_v16 = vpop.xlane.xlu0 %2994 }
 0xbd4   : > { %v3013_v18 = vsub.f32 %v2981_v49, %v2995_v16 }
 0xbd6   : > { %v3023_v48 = vmul.f32 1.442695, %v3013_v18  ;;  %v2992_v58 = vpop.xlane.xlu1 %2991 }
 0xbd7   : > { %v2989_v17 = vpop.xlane.xlu0 %2988  ;;  %v3012_v28 = vsub.f32 %v2980_v20, %v2992_v58 }
 0xbd8   : > { %11784 = vpow2.f32 %v3023_v48  ;;  %v3011_v46 = vsub.f32 %v2979_v42, %v2989_v17 }
 0xbd9   : > { %v3021_v40 = vmul.f32 1.442695, %v3012_v28 }
 0xbda   : > { %v3019_v12 = vmul.f32 1.442695, %v3011_v46 }
 0xbdb   : > { %v2998_v54 = vpop.xlane.xlu0 %2997 }
 0xbdc   : > { %11786 = vpow2.f32 %v3019_v12  ;;  %v3014_v37 = vsub.f32 %v2982_v24, %v2998_v54  ;;  %v3082_v54 = vpop.permute.xlu1 %3081 }
 0xbde   : > { %v3025_v33 = vmul.f32 1.442695, %v3014_v37 }
 0xbdf   : > { %v3007_v25 = vpop.xlane.xlu0 %3006 }
 0xbe0   : > { %11788 = vpow2.f32 %v3025_v33  ;;  %v3017_v52 = vsub.f32 %v2985_v39, %v3007_v25 }
 0xbe1   : > { %11790 = vpow2.f32 %v3021_v40 }
 0xbe2   : > { %v13824_v2 = vpop.eup %11784  ;;  %v3031_v53 = vmul.f32 1.442695, %v3017_v52 }
 0xbe3   : > { %v3001_v49 = vpop.xlane.xlu0 %3000  ;;  %v3041_v16 = vsel %vm2394_vm3, %v13824_v2, 0.0 }
 0xbe4   : > { %11792 = vpow2.f32 %v3031_v53  ;;  %v3015_v42 = vsub.f32 %v2983_v3, %v3001_v49  ;;  %3042 = vadd.xlane.f32.xlu0 %v3041_v16  ;;  %v3084_v53 = vpop.permute.xlu1 %3083 }
 0xbe6   : > { %v13828_v20 = vpop.eup %11786  ;;  %v3027_v12 = vmul.f32 1.442695, %v3015_v42 }
 0xbe7   : > { %v3080_v24 = vpop.permute.xlu0 %3079  ;;  %v3035_v33 = vsel %vm2394_vm3, %v13828_v20, 0.0 }
 0xbe8   : > { %11794 = vpow2.f32 %v3027_v12  ;;  %3036 = vadd.xlane.f32.xlu0 %v3035_v33  ;;  %10610 = vmatprep.subr.bf16.mxu0 %v3080_v24 }
 0xbe9   : > { %10611 = vmatpush3.bf16.msra.mxu0 %v3080_v24 }
 0xbea   : > { %v11789_v25 = vpop.eup %11788  ;;  %10612 = vmatprep.subr.bf16.mxu0 %v3082_v54 }
 0xbeb   : > { %v3044_v37 = vsel %vm2394_vm3, %v11789_v25, 0.0  ;;  %v11791_v39 = vpop.eup %11790 }
 0xbec   : > { %3045 = vadd.xlane.f32.xlu1 %v3044_v37  ;;  %v3038_v48 = vsel %vm2394_vm3, %v11791_v39, 0.0 }
 0xbed   : > { %10613 = vmatpush3.bf16.msra.mxu0 %v3082_v54 }
 0xbee   : > { %v13833_v3 = vpop.eup %11792  ;;  %10614 = vmatprep.subr.bf16.mxu0 %v3084_v53 }
 0xbef   : > { %v3053_v18 = vsel %vm2394_vm3, %v13833_v3, 0.0 }
 0xbf0   : > { %3054 = vadd.xlane.f32.xlu0 %v3053_v18  ;;  %3039 = vadd.xlane.f32.xlu1 %v3038_v48 }
 0xbf1   : > { %10615 = vmatpush3.bf16.msra.mxu0 %v3084_v53 }
 0xbf2   : > { %v13838_v58 = vpop.eup %11794 }
 0xbf3   : > { %v3047_v17 = vsel %vm2394_vm3, %v13838_v58, 0.0 }
 0xbf4   : > { %3048 = vadd.xlane.f32.xlu0 %v3047_v17 }
 0xc01   : > { %3178 = vrot.lane.b32.xlu1 %v13574_v59, %s16394_s22 }
 0xc05   : > { %3180 = vrot.lane.b32.xlu1 %v13590_v26, %s16394_s22 }
 0xc0f   : > { %v3010_v46 = vpop.xlane.xlu1 %3009 }
 0xc10   : > { %v3018_v28 = vsub.f32 %v13814_v41, %v3010_v46 }
 0xc12   : > { %v3033_v40 = vmul.f32 1.442695, %v3018_v28 }
 0xc13   : > { %v3004_v52 = vpop.xlane.xlu1 %3003 }
 0xc14   : > { %11796 = vpow2.f32 %v3033_v40  ;;  %v3016_v49 = vsub.f32 %v13816_v47, %v3004_v52 }
 0xc16   : > { %v3029_v16 = vmul.f32 1.442695, %v3016_v49 }
 0xc17   : > { %v3086_v42 = vpop.permute.xlu1 %3085 }
 0xc18   : > { %10616 = vmatprep.subr.bf16.mxu0 %v3086_v42  ;;  %11798 = vpow2.f32 %v3029_v16 }
 0xc19   : > { %10617 = vmatpush3.bf16.msra.mxu0 %v3086_v42 }
 0xc1e   : > { %v11797_v12 = vpop.eup %11796 }
 0xc1f   : > { %v3056_v54 = vsel %vm2394_vm3, %v11797_v12, 0.0 }
 0xc20   : > { %3057 = vadd.xlane.f32.xlu0 %v3056_v54 }
 0xc22   : > { %v11799_v59 = vpop.eup %11798 }
 0xc23   : > { %v3050_v26 = vsel %vm2394_vm3, %v11799_v59, 0.0 }
 0xc29   : > { %3051 = vadd.xlane.f32.xlu1 %v3050_v26 }
 0xc36   : > { %3176 = vrot.lane.b32.xlu0 %v13556_v36, %s16394_s22 }
 0xc3a   : > { %3168 = vrot.lane.b32.xlu0 %v13554_v32, %s16394_s22  ;;  %3182 = vrot.lane.b32.xlu1 %v13602_v44, %s16394_s22 }
 0xc3e   : > { %3172 = vrot.lane.b32.xlu0 %v13588_v23, %s16394_s22  ;;  %3170 = vrot.lane.b32.xlu1 %v13572_v51, %s16394_s22 }
 0xc42   : > { %3174 = vrot.lane.b32.xlu1 %v13600_v45, %s16394_s22 }
 0xc71   : > { %v3043_v41 = vpop.xlane.xlu0 %3042 }
 0xc75   : > { %v3037_v24 = vpop.xlane.xlu0 %3036 }
 0xc79   : > { %v3046_v47 = vpop.xlane.xlu1 %3045 }
 0xc7a   : > { %11800 = vrcp.f32 %v3046_v47 }
 0xc7b   : > { %11802 = vrcp.f32 %v3037_v24 }
 0xc7c   : > { %11804 = vrcp.f32 %v3043_v41 }
 0xc7d   : > { %v3040_v36 = vpop.xlane.xlu1 %3039  ;;  %v3055_v17 = vpop.xlane.xlu0 %3054 }
 0xc7e   : > { %11806 = vrcp.f32 %v3040_v36 }
 0xc81   : > { %v3049_v46 = vpop.xlane.xlu0 %3048  ;;  %v3179_v28 = vpop.permute.xlu1 %3178 }
 0xc84   : > { %v11801_v32 = vpop.eup %11800 }
 0xc85   : > { %v11803_v33 = vpop.eup %11802  ;;  %v3070_v53 = vmul.f32 %v11801_v32, %v11789_v25  ;;  %v3181_v49 = vpop.permute.xlu1 %3180 }
 0xc86   : > { %v11805_v44 = vpop.eup %11804  ;;  %v3067_v23 = vmul.f32 %v11803_v33, %v13828_v20  ;;  %v3200_v20 = vsel %vm2296_vm2, %v3179_v28, 0  ;;  %v3203_v41 = vsel %vm2296_vm2, %v3181_v49, 0 }
 0xc87   : > { %v3069_v51 = vmul.f32 %v11805_v44, %v13824_v2 }
 0xc88   : > { %v11807_v37 = vpop.eup %11806 }
 0xc89   : > { %v3068_v18 = vmul.f32 %v11807_v37, %v11791_v39  ;;  %v3076_v45 = vpack.c.bf16 %v3070_v53, %v3069_v51  ;;  %v16498_v53 = vmov 0  }
 0xc8b   : > { %v3075_v48 = vpack.c.bf16 %v3068_v18, %v3067_v23 }
 0xc8d   : > { %10618 = vmatprep.mubr.msk.bf16.mxu0 %vm2394_vm3, %v3075_v48 }
 0xc8e   : > { %10619 = vmatmul.mubr.msk.bf16.vlgmr.msra.gmra.mrb[56].mxu0 %vm2394_vm3, %v3076_v45 }
 0xcad   : > { %v3058_v40 = vpop.xlane.xlu0 %3057 }
 0xcae   : > { %11808 = vrcp.f32 %v3058_v40 }
 0xcaf   : > { %11810 = vrcp.f32 %v3049_v46 }
 0xcb0   : > { %11812 = vrcp.f32 %v3055_v17 }
 0xcb1   : > { %v3177_v52 = vpop.permute.xlu0 %3176 }
 0xcb2   : > { %10914 = vmatprep.subr.msk.bf16.mxu0 %vm2296_vm2, %v3177_v52  ;;  %v3197_v25 = vsel %vm2296_vm2, %v3177_v52, 0 }
 0xcb3   : > { %10627 = vmatpush3.bf16.xpose.msra.mxu0 %v3197_v25 }
 0xcb4   : > { %10915 = vmatprep.subr.msk.bf16.mxu0 %vm2296_vm2, %v3179_v28 }
 0xcb5   : > { %v3169_v37 = vpop.permute.xlu0 %3168 }
 0xcb6   : > { %v3052_v2 = vpop.xlane.xlu1 %3051 }
 0xcb7   : > { %11814 = vrcp.f32 %v3052_v2 }
 0xcb8   : > { %v11809_v39 = vpop.eup %11808 }
 0xcb9   : > { %v11811_v16 = vpop.eup %11810  ;;  %v3074_v26 = vmul.f32 %v11809_v39, %v11797_v12 }
 0xcba   : > { %v11813_v42 = vpop.eup %11812  ;;  %v3071_v47 = vmul.f32 %v11811_v16, %v13838_v58  ;;  %v3183_v36 = vpop.permute.xlu1 %3182 }
 0xcbb   : > { %10629 = vmatpush3.bf16.xpose.msra.mxu0 %v3200_v20  ;;  %v3073_v32 = vmul.f32 %v11813_v42, %v13833_v3  ;;  %v3206_v12 = vsel %vm2296_vm2, %v3183_v36, 0 }
 0xcbc   : > { %10916 = vmatprep.subr.msk.bf16.mxu0 %vm2296_vm2, %v3181_v49 }
 0xcbd   : > { %v3078_v44 = vpack.c.bf16 %v3074_v26, %v3073_v32 }
 0xcbe   : > { %v3171_v58 = vpop.permute.xlu1 %3170 }
 0xcc1   : > { %v11815_v54 = vpop.eup %11814 }
 0xcc2   : > { %v3072_v24 = vmul.f32 %v11815_v54, %v11799_v59  ;;  %v3173_v59 = vpop.permute.xlu0 %3172  ;;  %v3175_v3 = vpop.permute.xlu1 %3174 }
 0xcc3   : > { %10631 = vmatpush3.bf16.xpose.msra.mxu0 %v3203_v41 }
 0xcc4   : > { %10917 = vmatprep.subr.msk.bf16.mxu0 %vm2296_vm2, %v3183_v36  ;;  %v3077_v33 = vpack.c.bf16 %v3072_v24, %v3071_v47 }
 0xcc6   : > { %10622 = vmatprep.mubr.msk.bf16.mxu0 %vm2394_vm3, %v3077_v33 }
 0xcc7   : > { %10623 = vmatmul.mubr.msk.bf16.gmra.mrb[60].mxu0 %vm2394_vm3, %v3078_v44 }
 0xcc8   : > { %10634 = vmatprep.mubr.msk.bf16.mxu0 %vm2296_vm2, %v3169_v37 }
 0xccb   : > { %10633 = vmatpush3.bf16.xpose.msra.mxu0 %v3206_v12 }
 0xcd2   : > { %10635 = vmatmul.mubr.msk.bf16.vlgmr.msra.gmra.mrb[64].mxu0 %vm2296_vm2, %v3171_v58 }
 0xcd3   : > { %10638 = vmatprep.mubr.msk.bf16.mxu0 %vm2296_vm2, %v3173_v59 }
 0xcda   : > { %10639 = vmatmul.mubr.msk.bf16.gmra.mrb[68].mxu0 %vm2296_vm2, %v3175_v3 }
 0xcdb   : > { %4106 = vmatprep.mubr.bf16.mxu0 %v16498_v53 }
 0xd61   : > { %v13883_v23 = vpop.f32.mrb[56].mxu0 }
 0xd62   : > { %v13885_v18 = vpop.f32.mrb[57].mxu0 }
 0xd63   : > { %v13887_v51 = vpop.f32.mrb[58].mxu0 }
 0xd64   : > { %v13891_v45 = vpop.f32.mrb[59].mxu0 }
 0xd9a   : > { %v13895_v46 = vpop.f32.mrb[60].mxu0 }
 0xd9b   : > { %v13897_v28 = vpop.f32.mrb[61].mxu0 }
 0xd9c   : > { %v13899_v40 = vpop.f32.mrb[62].mxu0 }
 0xd9d   : > { %v13903_v49 = vpop.f32.mrb[63].mxu0 }
 0xda5   : > { %v10636_v2 = vpop.f32.mrb[64].mxu0 }
 0xda6   : > { %v3242_v20 = vpop.f32.mrb[65].mxu0  ;;  %v3275_v54 = vmul.f32 0.17677669, %v10636_v2 }
 0xda7   : > { %v3273_v39 = vmul.f32 0.17677669, %v3242_v20  ;;  %v10637_v16 = vpop.f32.mrb[66].mxu0 }
 0xda8   : > { %v3245_v42 = vpop.f32.mrb[67].mxu0  ;;  %v3276_v24 = vmul.f32 0.17677669, %v10637_v16  ;;  %v3287_v32 = vsel %vm2394_vm3, %v3275_v54, -inf }
 0xda9   : > { %v3274_v26 = vmul.f32 0.17677669, %v3245_v42  ;;  %v3281_v41 = vsel %vm2394_vm3, %v3273_v39, -inf }
 0xdaa   : > { %3282 = vmax.xlane.f32.xlu0 %v3281_v41  ;;  %v3290_v59 = vsel %vm2394_vm3, %v3276_v24, -inf }
 0xdab   : > { %v3284_v47 = vsel %vm2394_vm3, %v3274_v26, -inf }
 0xdac   : > { %3285 = vmax.xlane.f32.xlu1 %v3284_v47 }
 0xdad   : > { %v10640_v36 = vpop.f32.mrb[68].mxu0 }
 0xdae   : > { %3288 = vmax.xlane.f32.xlu0 %v3287_v32  ;;  %v3258_v33 = vpop.f32.mrb[69].mxu0  ;;  %v3279_v20 = vmul.f32 0.17677669, %v10640_v36 }
 0xdaf   : > { %v10641_v44 = vpop.f32.mrb[70].mxu0  ;;  %v3277_v12 = vmul.f32 0.17677669, %v3258_v33 }
 0xdb0   : > { %v3261_v37 = vpop.f32.mrb[71].mxu0  ;;  %v3280_v3 = vmul.f32 0.17677669, %v10641_v44  ;;  %v3299_v41 = vsel %vm2394_vm3, %v3279_v20, -inf }
 0xdb1   : > { %v3278_v58 = vmul.f32 0.17677669, %v3261_v37  ;;  %v3293_v42 = vsel %vm2394_vm3, %v3277_v12, -inf }
 0xdb2   : > { %3291 = vmax.xlane.f32.xlu0 %v3290_v59  ;;  %v3302_v16 = vsel %vm2394_vm3, %v3280_v3, -inf }
 0xdb3   : > { %v3296_v2 = vsel %vm2394_vm3, %v3278_v58, -inf }
 0xdb4   : > { %3297 = vmax.xlane.f32.xlu1 %v3296_v2 }
 0xdb6   : > { %3294 = vmax.xlane.f32.xlu0 %v3293_v42 }
 0xdb8   : > { %3303 = vmax.xlane.f32.xlu1 %v3302_v16 }
 0xdba   : > { %3300 = vmax.xlane.f32.xlu0 %v3299_v41 }
 0xdd0   : > { %3373 = vrot.lane.b32.xlu0 %v13560_v38, %s16394_s22 }
 0xe37   : > { %v3283_v47 = vpop.xlane.xlu0 %3282 }
 0xe38   : > { %v3305_v32 = vsub.f32 %v3273_v39, %v3283_v47 }
 0xe39   : > { %v3286_v33 = vpop.xlane.xlu1 %3285 }
 0xe3a   : > { %v3313_v59 = vmul.f32 1.442695, %v3305_v32  ;;  %v3306_v2 = vsub.f32 %v3274_v26, %v3286_v33 }
 0xe3b   : > { %v3289_v44 = vpop.xlane.xlu0 %3288 }
 0xe3c   : > { %v3307_v37 = vsub.f32 %v3275_v54, %v3289_v44  ;;  %v3315_v16 = vmul.f32 1.442695, %v3306_v2 }
 0xe3e   : > { %v3317_v36 = vmul.f32 1.442695, %v3307_v37 }
 0xe3f   : > { %v3292_v25 = vpop.xlane.xlu0 %3291 }
 0xe40   : > { %11816 = vpow2.f32 %v3317_v36  ;;  %v3308_v42 = vsub.f32 %v3276_v24, %v3292_v25 }
 0xe41   : > { %v3298_v52 = vpop.xlane.xlu1 %3297  ;;  %11818 = vpow2.f32 %v3313_v59 }
 0xe42   : > { %v3319_v48 = vmul.f32 1.442695, %v3308_v42 }
 0xe43   : > { %v3295_v17 = vpop.xlane.xlu0 %3294 }
 0xe44   : > { %11820 = vpow2.f32 %v3319_v48  ;;  %v3309_v41 = vsub.f32 %v3277_v12, %v3295_v17  ;;  %v3310_v17 = vsub.f32 %v3278_v58, %v3298_v52 }
 0xe45   : > { %11822 = vpow2.f32 %v3315_v16  ;;  %v3304_v38 = vpop.xlane.xlu1 %3303 }
 0xe46   : > { %v3321_v54 = vmul.f32 1.442695, %v3309_v41  ;;  %v3312_v32 = vsub.f32 %v3280_v3, %v3304_v38  ;;  %v3323_v44 = vmul.f32 1.442695, %v3310_v17  ;;  %v16499_v38 = vpack.i.bf16 %v13786_v8, %v13780_v27 }
 0xe47   : > { %v3301_v22 = vpop.xlane.xlu0 %3300 }
 0xe48   : > { %v3311_v39 = vsub.f32 %v3279_v20, %v3301_v22  ;;  %v3327_v12 = vmul.f32 1.442695, %v3312_v32 }
 0xe4a   : > { %v13917_v47 = vpop.eup %11816  ;;  %v3325_v26 = vmul.f32 1.442695, %v3311_v39  ;;  %v16500_v39 = vpack.i.bf16 %v13891_v45, %v13885_v18 }
 0xe4b   : > { %v3374_v33 = vpop.permute.xlu0 %3373  ;;  %v3335_v25 = vsel %vm2394_vm3, %v13917_v47, 0.0  ;;  %v11819_v24 = vpop.eup %11818 }
 0xe4c   : > { %11824 = vpow2.f32 %v3325_v26  ;;  %3336 = vadd.xlane.f32.xlu0 %v3335_v25  ;;  %10642 = vmatprep.subr.bf16.mxu1 %v3374_v33  ;;  %v3329_v22 = vsel %vm2394_vm3, %v11819_v24, 0.0 }
 0xe4d   : > { %10643 = vmatpush3.bf16.msra.mxu1 %v3374_v33  ;;  %11826 = vpow2.f32 %v3321_v54 }
 0xe4e   : > { %v13921_v48 = vpop.eup %11820  ;;  %11828 = vpow2.f32 %v3327_v12 }
 0xe4f   : > { %v3338_v3 = vsel %vm2394_vm3, %v13921_v48, 0.0  ;;  %v11823_v20 = vpop.eup %11822  ;;  %11830 = vpow2.f32 %v3323_v44 }
 0xe50   : > { %3330 = vadd.xlane.f32.xlu0 %v3329_v22  ;;  %3339 = vadd.xlane.f32.xlu1 %v3338_v3  ;;  %v3332_v37 = vsel %vm2394_vm3, %v11823_v20, 0.0 }
 0xe54   : > { %3333 = vadd.xlane.f32.xlu1 %v3332_v37 }
 0xe56   : > { %v13927_v59 = vpop.eup %11824 }
 0xe57   : > { %v3347_v52 = vsel %vm2394_vm3, %v13927_v59, 0.0  ;;  %v11827_v58 = vpop.eup %11826 }
 0xe58   : > { %3348 = vadd.xlane.f32.xlu1 %v3347_v52  ;;  %v3341_v2 = vsel %vm2394_vm3, %v11827_v58, 0.0  ;;  %v11829_v36 = vpop.eup %11828 }
 0xe59   : > { %v3350_v42 = vsel %vm2394_vm3, %v11829_v36, 0.0  ;;  %v11831_v16 = vpop.eup %11830 }
 0xe5a   : > { %v3344_v41 = vsel %vm2394_vm3, %v11831_v16, 0.0 }
 0xe5c   : > { %3342 = vadd.xlane.f32.xlu1 %v3341_v2 }
 0xe60   : > { %3351 = vadd.xlane.f32.xlu1 %v3350_v42 }
 0xe64   : > { %3345 = vadd.xlane.f32.xlu1 %v3344_v41 }
 0xe66   : > { %3377 = vrot.lane.b32.xlu0 %v13578_v4, %s16394_s22  ;;  %v16501_v4 = vpack.i.bf16 %v13782_v5, %v13778_v50 }
 0xe6a   : > { %3379 = vrot.lane.b32.xlu0 %v13576_v0, %s16394_s22  ;;  %v16502_v0 = vpack.i.bf16 %v13887_v51, %v13883_v23 }
 0xe6e   : > { %11112 = vrot.lane.b32.xlu0 %v16499_v38, %s16394_s22 }
 0xe72   : > { %11122 = vrot.lane.b32.xlu0 %v16500_v39, %s12672_s18 }
 0xe75   : > { %3375 = vrot.lane.b32.xlu1 %v13558_v43, %s16394_s22 }
 0xe79   : > { %11117 = vrot.lane.b32.xlu1 %v16501_v4, %s16394_s22 }
 0xe7d   : > { %11127 = vrot.lane.b32.xlu1 %v16502_v0, %s12672_s18 }
 0xed9   : > { %v3337_v27 = vpop.xlane.xlu0 %3336 }
 0xedd   : > { %v3331_v8 = vpop.xlane.xlu0 %3330  ;;  %v3340_v54 = vpop.xlane.xlu1 %3339 }
 0xede   : > { %11832 = vrcp.f32 %v3331_v8  ;;  %v11364_v8 = vld [vmem:[#allocation15 + $0x20] sm:$0xff]  }
 0xee1   : > { %v3334_v32 = vpop.xlane.xlu1 %3333  ;;  %v3378_v23 = vpop.permute.xlu0 %3377 }
 0xee2   : > { %11834 = vrcp.f32 %v3334_v32 }
 0xee3   : > { %11836 = vrcp.f32 %v3340_v54  ;;  %v11367_v54 = vld [vmem:[#allocation15 + $0x38] sm:$0xff]  }
 0xee4   : > { %11838 = vrcp.f32 %v3337_v27 }
 0xee5   : > { %v3349_v18 = vpop.xlane.xlu1 %3348 }
 0xee8   : > { %v11833_v26 = vpop.eup %11832 }
 0xee9   : > { %v3343_v45 = vpop.xlane.xlu1 %3342  ;;  %v3361_v25 = vmul.f32 %v11833_v26, %v11819_v24  ;;  %v3380_v24 = vpop.permute.xlu0 %3379 }
 0xeea   : > { %11840 = vrcp.f32 %v3343_v45 }
 0xeec   : > { %v11835_v43 = vpop.eup %11834 }
 0xeed   : > { %v3352_v33 = vpop.xlane.xlu1 %3351  ;;  %v3362_v17 = vmul.f32 %v11835_v43, %v11823_v20  ;;  %v11837_v12 = vpop.eup %11836 }
 0xeee   : > { %v11839_v22 = vpop.eup %11838  ;;  %v3364_v44 = vmul.f32 %v11837_v12, %v13921_v48  ;;  %v11360_v48 = vld [vmem:[#allocation15] sm:$0xff]  }
 0xeef   : > { %v3369_v50 = vpack.c.bf16 %v3362_v17, %v3361_v25  ;;  %v3363_v52 = vmul.f32 %v11839_v22, %v13917_v47  ;;  %v11362_v47 = vld [vmem:[#allocation15 + $0x10] sm:$0xff]   ;;  %v16503_v17 = vpack.i.bf16 %v13794_v21, %v13790_v57  ;;  %v16506_v57 = vpack.i.bf16 %v13903_v49, %v13897_v28  ;;  %v11113_v21 = vpop.permute.xlu0 %11112 }
 0xef1   : > { %10650 = vmatprep.mubr.msk.bf16.mxu1 %vm2394_vm3, %v3369_v50  ;;  %v3346_v5 = vpop.xlane.xlu1 %3345  ;;  %v3370_v42 = vpack.c.bf16 %v3364_v44, %v3363_v52 }
 0xef2   : > { %11842 = vrcp.f32 %v3346_v5  ;;  %v16504_v5 = vpack.i.bf16 %v13798_v11, %v13792_v19 }
 0xef3   : > { %11844 = vrcp.f32 %v3352_v33  ;;  %v11123_v44 = vpop.permute.xlu0 %11122 }
 0xef4   : > { %11846 = vrcp.f32 %v3349_v18  ;;  %v11841_v3 = vpop.eup %11840 }
 0xef5   : > { %v3376_v51 = vpop.permute.xlu1 %3375  ;;  %v3365_v2 = vmul.f32 %v11841_v3, %v11827_v58  ;;  %v11363_v58 = vld [vmem:[#allocation15 + $0x18] sm:$0xff]   ;;  %v16505_v3 = vpack.i.bf16 %v13899_v40, %v13895_v46  ;;  %v11125_v40 = vunpack.i.h.bf16 %v11123_v44 }
 0xef6   : > { %10644 = vmatprep.subr.bf16.mxu1 %v3376_v51 }
 0xef7   : > { %10645 = vmatpush3.bf16.msra.mxu1 %v3376_v51 }
 0xef8   : > { %10646 = vmatprep.subr.bf16.mxu1 %v3378_v23 }
 0xef9   : > { %v11118_v19 = vpop.permute.xlu1 %11117 }
 0xefa   : > { %v11119_v52 = vunpack.i.l.bf16 %v11118_v19 }
 0xefb   : > { %10647 = vmatpush3.bf16.msra.mxu1 %v3378_v23 }
 0xefc   : > { %v11843_v20 = vpop.eup %11842  ;;  %10648 = vmatprep.subr.bf16.mxu1 %v3380_v24 }
 0xefd   : > { %v3366_v37 = vmul.f32 %v11843_v20, %v11831_v16  ;;  %v11845_v41 = vpop.eup %11844  ;;  %v11361_v16 = vld [vmem:[#allocation15 + $0x8] sm:$0xff]   ;;  %v11128_v11 = vpop.permute.xlu1 %11127  ;;  %v11114_v20 = vunpack.i.l.bf16 %v11113_v21 }
 0xefe   : > { %v11847_v39 = vpop.eup %11846  ;;  %v3368_v4 = vmul.f32 %v11845_v41, %v11829_v36  ;;  %v11365_v36 = vld [vmem:[#allocation15 + $0x28] sm:$0xff]   ;;  %v11129_v46 = vunpack.i.l.bf16 %v11128_v11 }
 0xeff   : > { %10649 = vmatpush3.bf16.msra.mxu1 %v3380_v24  ;;  %v3371_v38 = vpack.c.bf16 %v3366_v37, %v3365_v2  ;;  %v3367_v0 = vmul.f32 %v11847_v39, %v13927_v59  ;;  %v11366_v59 = vld [vmem:[#allocation15 + $0x30] sm:$0xff]   ;;  %v11115_v24 = vunpack.i.h.bf16 %v11113_v21  ;;  %v11120_v37 = vunpack.i.h.bf16 %v11118_v19 }
 0xf00   : > { %10658 = vmatprep.subr.bf16.mxu1 %v11360_v48  ;;  %v11130_v2 = vunpack.i.h.bf16 %v11128_v11  ;;  %v3558_v49 = vsel %vm2296_vm2, %v13684_v6, %v11114_v20  ;;  %v3560_v39 = vsel %vm2296_vm2, %v13682_v31, %v11119_v52 }
 0xf01   : > { %v3372_v27 = vpack.c.bf16 %v3368_v4, %v3367_v0  ;;  %v3559_v28 = vsel %vm2296_vm2, %v13688_v10, %v11115_v24 }
 0xf02   : > { %10651 = vmatmul.mubr.msk.bf16.vlgmr.msra.gmra.mrb[36].mxu1 %vm2394_vm3, %v3370_v42  ;;  %v11124_v42 = vunpack.i.l.bf16 %v11123_v44 }
 0xf03   : > { %10654 = vmatprep.mubr.msk.bf16.mxu1 %vm2394_vm3, %v3371_v38  ;;  %10659 = vmatpush3.bf16.msra.mxu1 %v11360_v48  ;;  %v3561_v38 = vsel %vm2296_vm2, %v13686_v7, %v11120_v37  ;;  %v3568_v48 = vsel %vm2394_vm3, %v3560_v39, %v11129_v46  ;;  %v3567_v7 = vsel %vm2394_vm3, %v3559_v28, %v11125_v40  ;;  %v14016_v28 = vld [vmem:[#allocation10] sm:$0x3f] }
 0xf04   : > { %10660 = vmatprep.subr.bf16.mxu1 %v11361_v16 }
 0xf07   : > { %10661 = vmatpush3.bf16.msra.mxu1 %v11361_v16  ;;  %v3569_v16 = vsel %vm2394_vm3, %v3561_v38, %v11130_v2  ;;  %v9577_v38 = vld [vmem:[#allocation16] ss:$0 sm:$0xff] }
 0xf08   : > { %10662 = vmatprep.subr.bf16.mxu1 %v11362_v47 }
 0xf0a   : > { %10655 = vmatmul.mubr.msk.bf16.gmra.mrb[40].mxu1 %vm2394_vm3, %v3372_v27 }
 0xf0b   : > { %10663 = vmatpush3.bf16.msra.mxu1 %v11362_v47 }
 0xf0c   : > { %10664 = vmatprep.subr.bf16.mxu1 %v11363_v58 }
 0xf0f   : > { %10665 = vmatpush3.bf16.msra.mxu1 %v11363_v58 }
 0xf10   : > { %10666 = vmatprep.subr.bf16.mxu1 %v11364_v8 }
 0xf13   : > { %10667 = vmatpush3.bf16.msra.mxu1 %v11364_v8  ;;  %v3566_v8 = vsel %vm2394_vm3, %v3558_v49, %v11124_v42  ;;  %v1713_v49 = vrot.slane %v14016_v28, %v13541_v1 }
 0xf14   : > { %10668 = vmatprep.subr.bf16.mxu1 %v11365_v36 }
 0xf17   : > { %10669 = vmatpush3.bf16.msra.mxu1 %v11365_v36 }
 0xf18   : > { %10670 = vmatprep.subr.bf16.mxu1 %v11366_v59 }
 0xf1b   : > { %10671 = vmatpush3.bf16.msra.mxu1 %v11366_v59 }
 0xf1c   : > { %10672 = vmatprep.subr.bf16.mxu1 %v11367_v54 }
 0xf1f   : > { %10673 = vmatpush3.bf16.msra.mxu1 %v11367_v54 }
 0xfd5   : > { %v10652_v32 = vpop.f32.mrb[36].mxu1 }
 0xfd6   : > { %v3431_v18 = vpop.f32.mrb[37].mxu1 }
 0xfd7   : > { %v10653_v45 = vpop.f32.mrb[38].mxu1 }
 0xfd8   : > { %v11136_v26 = vpack.i.bf16 %v10653_v45, %v10652_v32  ;;  %v3434_v43 = vpop.f32.mrb[39].mxu1 }
 0xfd9   : > { %v11131_v33 = vpack.i.bf16 %v3434_v43, %v3431_v18 }
 0xfda   : > { %11137 = vrot.lane.b32.xlu1 %v11136_v26, %s12671_s8 }
 0xfdb   : > { %11132 = vrot.lane.b32.xlu0 %v11131_v33, %s12671_s8 }
 0xfdd   : > { %v10656_v25 = vpop.f32.mrb[40].mxu1 }
 0xfde   : > { %11147 = vrot.lane.b32.xlu1 %v16503_v17, %s16394_s22  ;;  %v3447_v50 = vpop.f32.mrb[41].mxu1 }
 0xfdf   : > { %11142 = vrot.lane.b32.xlu0 %v16504_v5, %s16394_s22  ;;  %v10657_v23 = vpop.f32.mrb[42].mxu1  ;;  %s16597_s22 = sld [smem:[#allocation69_spill]] }
 0xfe0   : > { %v11166_v51 = vpack.i.bf16 %v10657_v23, %v10656_v25  ;;  %v3450_v12 = vpop.f32.mrb[43].mxu1 }
 0xfe1   : > { %v11161_v22 = vpack.i.bf16 %v3450_v12, %v3447_v50 }
 0xfe2   : > { %11157 = vrot.lane.b32.xlu1 %v16505_v3, %s12672_s18 }
 0xfe3   : > { %11152 = vrot.lane.b32.xlu0 %v16506_v57, %s12672_s18 }
 0xfe6   : > { %11167 = vrot.lane.b32.xlu1 %v11166_v51, %s12671_s8 }
 0xfe7   : > { %11162 = vrot.lane.b32.xlu0 %v11161_v22, %s12671_s8 }
0x104c   : > { %v11138_v41 = vpop.permute.xlu1 %11137 }
0x104d   : > { %v11140_v4 = vunpack.i.h.bf16 %v11138_v41  ;;  %v11139_v0 = vunpack.i.l.bf16 %v11138_v41  ;;  %v11133_v27 = vpop.permute.xlu0 %11132  ;;  %v1808_v41 = vadd.f32 %v13519_v61, %v1713_v49 }
0x104e   : > { %v11135_v47 = vunpack.i.h.bf16 %v11133_v27  ;;  %v11134_v10 = vunpack.i.l.bf16 %v11133_v27 }
0x104f   : > { %v3577_v58 = vsel %vm3574_vm4, %v3568_v48, %v11139_v0  ;;  %v3578_v6 = vsel %vm3574_vm4, %v3569_v16, %v11140_v4  ;;  %v3726_v4 = vrot.slane %v1808_v41, %v13260_v30 }
0x1050   : > { %v3601_v36 = vpack.c.bf16 %v3578_v6, %v3577_v58  ;;  %v11148_v59 = vpop.permute.xlu1 %11147  ;;  %v3575_v31 = vsel %vm3574_vm4, %v3566_v8, %v11134_v10  ;;  %v3576_v54 = vsel %vm3574_vm4, %v3567_v7, %v11135_v47 }
0x1051   : > { %v11143_v32 = vpop.permute.xlu0 %11142  ;;  %v3600_v18 = vpack.c.bf16 %v3576_v54, %v3575_v31  ;;  %v11150_v45 = vunpack.i.h.bf16 %v11148_v59  ;;  %v11149_v26 = vunpack.i.l.bf16 %v11148_v59 }
0x1052   : > { %v11145_v33 = vunpack.i.h.bf16 %v11143_v32  ;;  %v11144_v25 = vunpack.i.l.bf16 %v11143_v32 }
0x1053   : > { %10674 = vmatprep.mubr.bf16.mxu1 %v3600_v18  ;;  %v3565_v12 = vsel %vm2296_vm2, %v13694_v35, %v11150_v45  ;;  %v3564_v22 = vsel %vm2296_vm2, %v13690_v29, %v11149_v26 }
0x1054   : > { %v11158_v43 = vpop.permute.xlu1 %11157  ;;  %10675 = vmatmul.mubr.bf16.vlgmr.msra.gmra.mrb[44].mxu1 %v3601_v36  ;;  %v3563_v57 = vsel %vm2296_vm2, %v13696_v55, %v11145_v33  ;;  %v3562_v19 = vsel %vm2296_vm2, %v13692_v34, %v11144_v25 }
0x1055   : > { %v11153_v17 = vpop.permute.xlu0 %11152  ;;  %v11160_v50 = vunpack.i.h.bf16 %v11158_v43  ;;  %v11159_v5 = vunpack.i.l.bf16 %v11158_v43 }
0x1056   : > { %v11155_v23 = vunpack.i.h.bf16 %v11153_v17  ;;  %v11154_v51 = vunpack.i.l.bf16 %v11153_v17 }
0x1057   : > { %v3572_v37 = vsel %vm2394_vm3, %v3564_v22, %v11159_v5  ;;  %v3573_v52 = vsel %vm2394_vm3, %v3565_v12, %v11160_v50  ;;  %v11373_v12 = vld [vmem:[%s16515_s2 + $0xc] ss:$16 sps:$4 sm:$0xff]  }
0x1058   : > { %v11168_v3 = vpop.permute.xlu1 %11167  ;;  %v3570_v35 = vsel %vm2394_vm3, %v3562_v19, %v11154_v51  ;;  %v3571_v29 = vsel %vm2394_vm3, %v3563_v57, %v11155_v23  ;;  %v11379_v22 = vld [vmem:[%s16515_s2 + $0x2c] ss:$16 sps:$4 sm:$0xff]   ;;  %4147 = vmatprep.subr.bf16.mxu1 %v11373_v12  ;;  %v11377_v57 = vld [vmem:[%s16515_s2 + $0x28] ss:$16 sps:$4 sm:$0xff]  }
0x1059   : > { %v11170_v21 = vunpack.i.h.bf16 %v11168_v3  ;;  %v11169_v11 = vunpack.i.l.bf16 %v11168_v3  ;;  %v11163_v24 = vpop.permute.xlu0 %11162  ;;  %v11374_v3 = vld [vmem:[%s16515_s2 + $0x20] ss:$16 sps:$4 sm:$0xff]   ;;  %v11401_v12 = vld [vmem:[%s16515_s2 + $0xa8] ss:$16 sps:$4 sm:$0xff]  }
0x105a   : > { %v11165_v20 = vunpack.i.h.bf16 %v11163_v24  ;;  %v11164_v44 = vunpack.i.l.bf16 %v11163_v24 }
0x105b   : > { %v3581_v2 = vsel %vm3574_vm4, %v3572_v37, %v11169_v11  ;;  %v3582_v55 = vsel %vm3574_vm4, %v3573_v52, %v11170_v21 }
0x105c   : > { %v3579_v46 = vsel %vm3574_vm4, %v3570_v35, %v11164_v44  ;;  %v3580_v34 = vsel %vm3574_vm4, %v3571_v29, %v11165_v20  ;;  %v3603_v40 = vpack.c.bf16 %v3582_v55, %v3581_v2 }
0x105d   : > { %v3602_v42 = vpack.c.bf16 %v3580_v34, %v3579_v46 }
0x105f   : > { %10678 = vmatprep.mubr.bf16.mxu1 %v3602_v42 }
0x1060   : > { %10679 = vmatmul.mubr.bf16.gmra.mrb[48].mxu1 %v3603_v40 }
0x1061   : > { %4179 = vmatprep.mubr.bf16.mxu1 %v16498_v53 }
0x1127   : > { %v10676_v39 = vpop.f32.mrb[44].mxu1 }
0x1128   : > { %v3701_v0 = vadd.f32 %v10676_v39, %v9577_v38  ;;  %v3692_v27 = vpop.f32.mrb[45].mxu1 }
0x1129   : > { %v3693_v48 = vadd.f32 %v9577_v38, %v3692_v27  ;;  %v10677_v16 = vpop.f32.mrb[46].mxu1 }
0x112a   : > { %v3729_v47 = vmul.f32 %v3726_v4, %v3701_v0  ;;  %v3704_v10 = vadd.f32 %v10677_v16, %v9577_v38  ;;  %v3695_v58 = vpop.f32.mrb[47].mxu1 }
0x112b   : > { %v3727_v6 = vmul.f32 %v3726_v4, %v3693_v48  ;;  %v3696_v8 = vadd.f32 %v9577_v38, %v3695_v58 }
0x112c   : > { %v3730_v7 = vmul.f32 %v3726_v4, %v3704_v10  ;;  %v14031_v31 = vadd.f32 %v3729_v47, %v13289_v56 }
0x112d   : > { %v3728_v36 = vmul.f32 %v3726_v4, %v3696_v8  ;;  %v14023_v59 = vadd.f32 %v3727_v6, %v13291_v60 }
0x112e   : > { %16509 = vst [vmem:[#allocation46_spill] sm:$0xff] %v14031_v31  ;;  %v14035_v60 = vadd.f32 %v3730_v7, %v13293_v62 }
0x112f   : > { %16507 = vst [vmem:[#allocation44_spill] sm:$0xff] %v14023_v59  ;;  %3743 = vadd.xlane.f32.xlu0 %v14023_v59  ;;  %v14027_v61 = vadd.f32 %v3728_v36, %v13296_v63  ;;  %v11382_v36 = vld [vmem:[%s16515_s2 + $0x44] ss:$16 sps:$4 sm:$0xff]  }
0x1130   : > { %16510 = vst [vmem:[#allocation47_spill] sm:$0xff] %v14035_v60 }
0x1131   : > { %16508 = vst [vmem:[#allocation45_spill] sm:$0xff] %v14027_v61  ;;  %3745 = vadd.xlane.f32.xlu1 %v14027_v61 }
0x1133   : > { %v10680_v54 = vpop.f32.mrb[48].mxu1  ;;  %3747 = vadd.xlane.f32.xlu0 %v14031_v31 }
0x1134   : > { %v3717_v32 = vadd.f32 %v10680_v54, %v9577_v38  ;;  %v3708_v18 = vpop.f32.mrb[49].mxu1  ;;  %v11385_v54 = vld [vmem:[%s16515_s2 + $0x4c] ss:$16 sps:$4 sm:$0xff]  }
0x1135   : > { %v3709_v45 = vadd.f32 %v9577_v38, %v3708_v18  ;;  %v10681_v26 = vpop.f32.mrb[50].mxu1  ;;  %v11383_v18 = vld [vmem:[%s16515_s2 + $0x48] ss:$16 sps:$4 sm:$0xff]  }
0x1136   : > { %v3733_v43 = vmul.f32 %v3726_v4, %v3717_v32  ;;  %v3720_v33 = vadd.f32 %v10681_v26, %v9577_v38  ;;  %v3711_v25 = vpop.f32.mrb[51].mxu1  ;;  %v11380_v32 = vld [vmem:[%s16515_s2 + $0x40] ss:$16 sps:$4 sm:$0xff]   ;;  %v11388_v26 = vld [vmem:[%s16515_s2 + $0x64] ss:$16 sps:$4 sm:$0xff]  }
0x1137   : > { %v3731_v63 = vmul.f32 %v3726_v4, %v3709_v45  ;;  %v3712_v17 = vadd.f32 %v9577_v38, %v3711_v25  ;;  %3749 = vadd.xlane.f32.xlu0 %v14035_v60  ;;  %v11389_v25 = vld [vmem:[%s16515_s2 + $0x68] ss:$16 sps:$4 sm:$0xff]  }
0x1138   : > { %v3734_v50 = vmul.f32 %v3726_v4, %v3720_v33  ;;  %v14047_v62 = vadd.f32 %v3733_v43, %v13303_v13  ;;  %v11371_v13 = vld [vmem:[%s16515_s2 + $0x8] ss:$16 sps:$4 sm:$0xff]   ;;  %v11391_v43 = vld [vmem:[%s16515_s2 + $0x6c] ss:$16 sps:$4 sm:$0xff]   ;;  %v11386_v33 = vld [vmem:[%s16515_s2 + $0x60] ss:$16 sps:$4 sm:$0xff]  }
0x1139   : > { %v3732_v56 = vmul.f32 %v3726_v4, %v3712_v17  ;;  %v14039_v5 = vadd.f32 %v3731_v63, %v13301_v9  ;;  %v11368_v9 = vld [vmem:[%s16515_s2] ss:$16 sps:$4 sm:$0xff]   ;;  %4148 = vmatpush1.bf16.msra.mxu1 %v11371_v13  ;;  %v11394_v63 = vld [vmem:[%s16515_s2 + $0x84] ss:$16 sps:$4 sm:$0xff]   ;;  %v11397_v17 = vld [vmem:[%s16515_s2 + $0x8c] ss:$16 sps:$4 sm:$0xff]  }
0x113a   : > { %16513 = vst [vmem:[#allocation50_spill] sm:$0xff] %v14047_v62  ;;  %v14051_v51 = vadd.f32 %v3734_v50, %v13308_v15  ;;  %v11376_v15 = vld [vmem:[%s16515_s2 + $0x24] ss:$16 sps:$4 sm:$0xff]   ;;  %4149 = vmatprep.subr.bf16.mxu1 %v11379_v22  ;;  %v11392_v50 = vld [vmem:[%s16515_s2 + $0x80] ss:$16 sps:$4 sm:$0xff]  }
0x113b   : > { %16511 = vst [vmem:[#allocation48_spill] sm:$0xff] %v14039_v5  ;;  %3751 = vadd.xlane.f32.xlu0 %v14039_v5  ;;  %v14043_v23 = vadd.f32 %v3732_v56, %v13305_v14  ;;  %v11370_v14 = vld [vmem:[%s16515_s2 + $0x4] ss:$16 sps:$4 sm:$0xff]   ;;  %v11395_v56 = vld [vmem:[%s16515_s2 + $0x88] ss:$16 sps:$4 sm:$0xff]  }
0x113c   : > { %16514 = vst [vmem:[#allocation51_spill] sm:$0xff] %v14051_v51  ;;  %4074 = vmatprep.subr.bf16.mxu0 %v11370_v14  ;;  %v11403_v14 = vld [vmem:[%s16515_s2 + $0xac] ss:$16 sps:$4 sm:$0xff]   ;;  %v11398_v13 = vld [vmem:[%s16515_s2 + $0xa0] ss:$16 sps:$4 sm:$0xff]  }
0x113d   : > { %16512 = vst [vmem:[#allocation49_spill] sm:$0xff] %v14043_v23  ;;  %3753 = vadd.xlane.f32.xlu1 %v14043_v23  ;;  %4075 = vmatpush1.bf16.msra.mxu0 %v11368_v9  ;;  %v11400_v9 = vld [vmem:[%s16515_s2 + $0xa4] ss:$16 sps:$4 sm:$0xff]   ;;  %v11409_v22 = vld [vmem:[%s16515_s2 + $0xcc] ss:$16 sps:$4 sm:$0xff]  }
0x113e   : > { %4076 = vmatprep.subr.bf16.mxu0 %v11376_v15  ;;  %4150 = vmatpush1.bf16.msra.mxu1 %v11377_v57  ;;  %v11406_v15 = vld [vmem:[%s16515_s2 + $0xc4] ss:$16 sps:$4 sm:$0xff]   ;;  %v11407_v57 = vld [vmem:[%s16515_s2 + $0xc8] ss:$16 sps:$4 sm:$0xff]  }
0x113f   : > { %3755 = vadd.xlane.f32.xlu0 %v14047_v62  ;;  %4151 = vmatprep.subr.bf16.mxu1 %v11385_v54 }
0x1141   : > { %3757 = vadd.xlane.f32.xlu1 %v14051_v51  ;;  %4077 = vmatpush1.bf16.msra.mxu0 %v11374_v3  ;;  %v11404_v3 = vld [vmem:[%s16515_s2 + $0xc0] ss:$16 sps:$4 sm:$0xff]  }
0x1142   : > { %4078 = vmatprep.subr.bf16.mxu0 %v11382_v36  ;;  %4152 = vmatpush1.bf16.msra.mxu1 %v11383_v18  ;;  %v16519_v18 = vld [vmem:[#allocation40_spill] sm:$0xff] }
0x1143   : > { %4153 = vmatprep.subr.bf16.mxu1 %v11391_v43 }
0x1145   : > { %4079 = vmatpush1.bf16.msra.mxu0 %v11380_v32 }
0x1146   : > { %4080 = vmatprep.subr.bf16.mxu0 %v11388_v26  ;;  %4154 = vmatpush1.bf16.msra.mxu1 %v11389_v25 }
0x1147   : > { %4155 = vmatprep.subr.bf16.mxu1 %v11397_v17 }
0x1149   : > { %4081 = vmatpush1.bf16.msra.mxu0 %v11386_v33 }
0x114a   : > { %4082 = vmatprep.subr.bf16.mxu0 %v11394_v63  ;;  %4156 = vmatpush1.bf16.msra.mxu1 %v11395_v56 }
0x114b   : > { %4157 = vmatprep.subr.bf16.mxu1 %v11403_v14 }
0x114d   : > { %4083 = vmatpush1.bf16.msra.mxu0 %v11392_v50 }
0x114e   : > { %4084 = vmatprep.subr.bf16.mxu0 %v11400_v9  ;;  %4158 = vmatpush1.bf16.msra.mxu1 %v11401_v12 }
0x114f   : > { %4159 = vmatprep.subr.bf16.mxu1 %v11409_v22 }
0x1151   : > { %4085 = vmatpush1.bf16.msra.mxu0 %v11398_v13 }
0x1152   : > { %4086 = vmatprep.subr.bf16.mxu0 %v11406_v15  ;;  %4160 = vmatpush1.bf16.msra.mxu1 %v11407_v57 }
0x1155   : > { %4087 = vmatpush1.bf16.msra.mxu0 %v11404_v3 }
0x11bc   : > { %v3744_v19 = vpop.xlane.xlu0 %3743 }
0x11bd   : > { %v3759_v21 = vmul.f32 0.0078125, %v3744_v19  ;;  %v11412_v19 = vld [vmem:[%s16515_s2 + $0xe4] ss:$16 sps:$4 sm:$0xff]  }
0x11be   : > { %v3746_v11 = vpop.xlane.xlu1 %3745  ;;  %4088 = vmatprep.subr.bf16.mxu0 %v11412_v19 }
0x11bf   : > { %v14079_v24 = vsub.f32 %v14023_v59, %v3759_v21  ;;  %v3760_v20 = vmul.f32 0.0078125, %v3746_v11  ;;  %v11415_v21 = vld [vmem:[%s16515_s2 + $0xec] ss:$16 sps:$4 sm:$0xff]   ;;  %v11410_v11 = vld [vmem:[%s16515_s2 + $0xe0] ss:$16 sps:$4 sm:$0xff]  }
0x11c0   : > { %v3748_v44 = vpop.xlane.xlu0 %3747  ;;  %4161 = vmatprep.subr.bf16.mxu1 %v11415_v21  ;;  %4089 = vmatpush1.bf16.msra.mxu0 %v11410_v11 }
0x11c1   : > { %v14082_v37 = vsub.f32 %v14027_v61, %v3760_v20  ;;  %v3761_v52 = vmul.f32 0.0078125, %v3748_v44  ;;  %v3775_v35 = vmul.f32 %v14079_v24, %v14079_v24  ;;  %v11413_v20 = vld [vmem:[%s16515_s2 + $0xe8] ss:$16 sps:$4 sm:$0xff]   ;;  %v16516_v44 = vld [vmem:[#allocation34_spill] sm:$0xff] }
0x11c2   : > { %4162 = vmatpush1.bf16.msra.mxu1 %v11413_v20 }
0x11c3   : > { %v14087_v29 = vsub.f32 %v14031_v31, %v3761_v52  ;;  %3783 = vadd.xlane.f32.xlu0 %v3775_v35  ;;  %v3776_v2 = vmul.f32 %v14082_v37, %v14082_v37  ;;  %v16396_v52 = vsub.s32 4, %v16516_v44 }
0x11c4   : > { %v3750_v55 = vpop.xlane.xlu0 %3749 }
0x11c5   : > { %v3762_v46 = vmul.f32 0.0078125, %v3750_v55  ;;  %3785 = vadd.xlane.f32.xlu1 %v3776_v2  ;;  %v3777_v34 = vmul.f32 %v14087_v29, %v14087_v29 }
0x11c7   : > { %v14094_v40 = vsub.f32 %v14035_v60, %v3762_v46  ;;  %3787 = vadd.xlane.f32.xlu0 %v3777_v34 }
0x11c8   : > { %v3752_v42 = vpop.xlane.xlu0 %3751 }
0x11c9   : > { %v3763_v49 = vmul.f32 0.0078125, %v3752_v42  ;;  %v3778_v41 = vmul.f32 %v14094_v40, %v14094_v40  ;;  %v1721_v42 = vrot.slane %v14016_v28, %v16396_v52 }
0x11ca   : > { %v3754_v38 = vpop.xlane.xlu1 %3753 }
0x11cb   : > { %v14099_v39 = vsub.f32 %v14039_v5, %v3763_v49  ;;  %v3764_v4 = vmul.f32 0.0078125, %v3754_v38  ;;  %3789 = vadd.xlane.f32.xlu1 %v3778_v41 }
0x11cc   : > { %v3756_v0 = vpop.xlane.xlu0 %3755 }
0x11cd   : > { %v14102_v27 = vsub.f32 %v14043_v23, %v3764_v4  ;;  %v3765_v48 = vmul.f32 0.0078125, %v3756_v0  ;;  %v3779_v16 = vmul.f32 %v14099_v39, %v14099_v39  ;;  %v14195_v4 = vsub.s32 3, %v16516_v44 }
0x11ce   : > { %v3758_v47 = vpop.xlane.xlu1 %3757 }
0x11cf   : > { %v14107_v10 = vsub.f32 %v14047_v62, %v3765_v48  ;;  %v3766_v58 = vmul.f32 0.0078125, %v3758_v47  ;;  %3791 = vadd.xlane.f32.xlu0 %v3779_v16  ;;  %v3780_v6 = vmul.f32 %v14102_v27, %v14102_v27  ;;  %16517 = vst [vmem:[#allocation52_spill] sm:$0xff] %v14195_v4  ;;  %v16518_v48 = vld [vmem:[#allocation41_spill] sm:$0xff] }
0x11d0   : > { %v1849_v16 = vadd.f32 %v16518_v48, %v1721_v42 }
0x11d1   : > { %v14112_v8 = vsub.f32 %v14051_v51, %v3766_v58  ;;  %3793 = vadd.xlane.f32.xlu1 %v3780_v6  ;;  %v3781_v7 = vmul.f32 %v14107_v10, %v14107_v10  ;;  %v1717_v6 = vrot.slane %v14016_v28, %v14195_v4 }
0x11d2   : > { %v3831_v36 = vadd.f32 1.0, %v1849_v16 }
0x11d3   : > { %3795 = vadd.xlane.f32.xlu0 %v3781_v7  ;;  %v3782_v45 = vmul.f32 %v14112_v8, %v14112_v8 }
0x11d4   : > { %v3835_v63 = vrot.slane %v3831_v36, %v13260_v30 }
0x11d5   : > { %3797 = vadd.xlane.f32.xlu1 %v3782_v45  ;;  %v1810_v45 = vadd.f32 %v16519_v18, %v1717_v6 }
0x11d7   : > { %v3847_v14 = vrot.slane %v1810_v45, %v13260_v30 }
0x1250   : > { %v3784_v35 = vpop.xlane.xlu0 %3783 }
0x1251   : > { %v3799_v2 = vmul.f32 0.0078125, %v3784_v35 }
0x1252   : > { %v3786_v55 = vpop.xlane.xlu1 %3785 }
0x1253   : > { %v3807_v46 = vadd.f32 1e-05, %v3799_v2  ;;  %v3800_v34 = vmul.f32 0.0078125, %v3786_v55 }
0x1254   : > { %v3788_v49 = vpop.xlane.xlu0 %3787 }
0x1255   : > { %11848 = vrsqrt.f32 %v3807_v46  ;;  %v3808_v41 = vadd.f32 1e-05, %v3800_v34  ;;  %v3801_v38 = vmul.f32 0.0078125, %v3788_v49 }
0x1257   : > { %11850 = vrsqrt.f32 %v3808_v41  ;;  %v3809_v0 = vadd.f32 1e-05, %v3801_v38 }
0x1258   : > { %v3790_v47 = vpop.xlane.xlu1 %3789 }
0x1259   : > { %11852 = vrsqrt.f32 %v3809_v0  ;;  %v3802_v58 = vmul.f32 0.0078125, %v3790_v47 }
0x125b   : > { %v3810_v7 = vadd.f32 1e-05, %v3802_v58 }
0x125c   : > { %v3792_v54 = vpop.xlane.xlu0 %3791 }
0x125d   : > { %11854 = vrsqrt.f32 %v3810_v7  ;;  %v3803_v32 = vmul.f32 0.0078125, %v3792_v54 }
0x125e   : > { %v3794_v26 = vpop.xlane.xlu1 %3793 }
0x125f   : > { %v11849_v43 = vpop.eup %11848  ;;  %v3811_v33 = vadd.f32 1e-05, %v3803_v32  ;;  %v3804_v25 = vmul.f32 0.0078125, %v3794_v26  ;;  %v11418_v26 = vld [vmem:[%s16521_s0] sm:$0xff]  }
0x1260   : > { %v3823_v17 = vmul.f32 %v11849_v43, %v14079_v24  ;;  %v3796_v50 = vpop.xlane.xlu0 %3795  ;;  %v11419_v43 = vld [vmem:[%s16521_s0 + $0x80] sm:$0xff]  }
0x1261   : > { %v11851_v56 = vpop.eup %11850  ;;  %11856 = vrsqrt.f32 %v3811_v33  ;;  %v3812_v9 = vadd.f32 1e-05, %v3804_v25  ;;  %v3805_v28 = vmul.f32 0.0078125, %v3796_v50  ;;  %v11420_v33 = vld [vmem:[%s16521_s0 + $0x48] sm:$0xff]   ;;  %v11424_v50 = vld [vmem:[%s16521_s0 + $0x50] sm:$0xff]  }
0x1262   : > { %v3836_v13 = vmul.f32 %v3835_v63, %v3823_v17  ;;  %v3824_v12 = vmul.f32 %v11851_v56, %v14082_v37  ;;  %v3798_v15 = vpop.xlane.xlu1 %3797  ;;  %v11421_v25 = vld [vmem:[%s16521_s0 + $0xc8] sm:$0xff]   ;;  %v11425_v56 = vld [vmem:[%s16521_s0 + $0xd0] sm:$0xff]  }
0x1263   : > { %v11853_v22 = vpop.eup %11852  ;;  %11858 = vrsqrt.f32 %v3812_v9  ;;  %v3813_v3 = vadd.f32 1e-05, %v3805_v28  ;;  %v3806_v57 = vmul.f32 0.0078125, %v3798_v15  ;;  %v11423_v17 = vld [vmem:[%s16521_s0 + $0x88] sm:$0xff]   ;;  %v11426_v9 = vld [vmem:[%s16521_s0 + $0x10] sm:$0xff]   ;;  %v11431_v15 = vld [vmem:[%s16521_s0 + $0x98] sm:$0xff]  }
0x1264   : > { %v3837_v19 = vmul.f32 %v3835_v63, %v3824_v12  ;;  %v3848_v21 = vadd.f32 %v3847_v14, %v3836_v13  ;;  %v3825_v11 = vmul.f32 %v11853_v22, %v14087_v29  ;;  %v11427_v28 = vld [vmem:[%s16521_s0 + $0x90] sm:$0xff]   ;;  %v11429_v13 = vld [vmem:[%s16521_s0 + $0xd8] sm:$0xff]   ;;  %v11432_v22 = vld [vmem:[%s16521_s0 + $0x60] sm:$0xff]  }
0x1265   : > { %11860 = vrsqrt.f32 %v3813_v3  ;;  %v3814_v24 = vadd.f32 1e-05, %v3806_v57  ;;  %v11430_v12 = vld [vmem:[%s16521_s0 + $0x18] sm:$0xff]   ;;  %v11433_v3 = vld [vmem:[%s16521_s0 + $0xe0] sm:$0xff]  }
0x1266   : > { %v3849_v20 = vadd.f32 %v3847_v14, %v3837_v19  ;;  %v3838_v35 = vmul.f32 %v3835_v63, %v3825_v11  ;;  %v11434_v57 = vld [vmem:[%s16521_s0 + $0x20] sm:$0xff]   ;;  %v11437_v11 = vld [vmem:[%s16521_s0 + $0xe8] sm:$0xff]  }
0x1267   : > { %v11855_v2 = vpop.eup %11854  ;;  %11862 = vrsqrt.f32 %v3814_v24  ;;  %v11435_v19 = vld [vmem:[%s16521_s0 + $0xa0] sm:$0xff]   ;;  %v11438_v24 = vld [vmem:[%s16521_s0 + $0x28] sm:$0xff]  }
0x1268   : > { %v3889_v55 = vpack.c.bf16 %v3849_v20, %v3848_v21  ;;  %v3826_v46 = vmul.f32 %v11855_v2, %v14094_v40  ;;  %v3850_v34 = vadd.f32 %v3847_v14, %v3838_v35  ;;  %v11436_v21 = vld [vmem:[%s16521_s0 + $0x68] sm:$0xff]   ;;  %v11440_v35 = vld [vmem:[%s16521_s0 + $0x70] sm:$0xff]  }
0x1269   : > { %v11439_v20 = vld [vmem:[%s16521_s0 + $0xa8] sm:$0xff]   ;;  %v11441_v2 = vld [vmem:[%s16521_s0 + $0xf0] sm:$0xff]  }
0x126a   : > { %4107 = vmatmul.mubr.bf16.vlgmr.msra.gmra.mrb[72].mxu0 %v3889_v55  ;;  %4180 = vmatmul.mubr.bf16.vlgmr.msra.gmra.mrb[52].mxu1 %v3889_v55  ;;  %v3839_v37 = vmul.f32 %v3835_v63, %v3826_v46  ;;  %v11442_v55 = vld [vmem:[%s16521_s0 + $0x30] sm:$0xff]  }
0x126b   : > { %v11857_v42 = vpop.eup %11856  ;;  %4116 = vmatprep.mubr.bf16.mxu0 %v16498_v53  ;;  %4189 = vmatprep.mubr.bf16.mxu1 %v16498_v53  ;;  %v11443_v46 = vld [vmem:[%s16521_s0 + $0xb0] sm:$0xff]  }
0x126c   : > { %v3851_v49 = vadd.f32 %v3847_v14, %v3839_v37  ;;  %v3827_v29 = vmul.f32 %v11857_v42, %v14099_v39  ;;  %v11445_v37 = vld [vmem:[%s16521_s0 + $0xf8] sm:$0xff]  }
0x126d   : > { %v11859_v41 = vpop.eup %11858  ;;  %v11446_v42 = vld [vmem:[%s16521_s0 + $0x38] sm:$0xff]  }
0x126e   : > { %v3890_v38 = vpack.c.bf16 %v3851_v49, %v3850_v34  ;;  %v3828_v0 = vmul.f32 %v11859_v41, %v14102_v27  ;;  %v3840_v48 = vmul.f32 %v3835_v63, %v3827_v29  ;;  %v11444_v34 = vld [vmem:[%s16521_s0 + $0x78] sm:$0xff]   ;;  %v16522_v29 = vmov 0.0   ;;  %v11448_v41 = vld [vmem:[%s16483_s10 + $0xc0] sm:$0xff]  }
0x126f   : > { %v11861_v16 = vpop.eup %11860  ;;  %v11447_v49 = vld [vmem:[%s16521_s0 + $0xb8] sm:$0xff]  }
0x1270   : > { %v3841_v47 = vmul.f32 %v3835_v63, %v3828_v0  ;;  %v3852_v40 = vadd.f32 %v3847_v14, %v3840_v48  ;;  %v3829_v58 = vmul.f32 %v11861_v16, %v14107_v10  ;;  %v11416_v10 = vld [vmem:[%s16520_s5 + $0x40] sm:$0xff]  }
0x1271   : > { %v11863_v6 = vpop.eup %11862  ;;  %10185 = vmatprep.subr.bf16.mxu0 %v11416_v10 }
0x1272   : > { %4117 = vmatmul.mubr.bf16.gmra.mrb[76].mxu0 %v3890_v38  ;;  %4190 = vmatmul.mubr.bf16.gmra.mrb[56].mxu1 %v3890_v38  ;;  %v3853_v7 = vadd.f32 %v3847_v14, %v3841_v47  ;;  %v3830_v36 = vmul.f32 %v11863_v6, %v14112_v8  ;;  %v3842_v54 = vmul.f32 %v3835_v63, %v3829_v58  ;;  %v11417_v8 = vld [vmem:[%s16521_s0 + $0xc0] sm:$0xff]   ;;  %v16523_v47 = vld [vmem:[#allocation35_spill] sm:$0xff] }
0x1273   : > { %4126 = vmatprep.mubr.bf16.mxu0 %v16498_v53  ;;  %4199 = vmatprep.mubr.bf16.mxu1 %v16498_v53  ;;  %v3888_v38 = vld [vmem:[#allocation18] sm:$0xf] }
0x1274   : > { %v3891_v39 = vpack.c.bf16 %v3853_v7, %v3852_v40  ;;  %v3843_v32 = vmul.f32 %v3835_v63, %v3830_v36  ;;  %v3854_v27 = vadd.f32 %v3847_v14, %v3842_v54  ;;  %10225 = vmatprep.subr.bf16.mxu1 %v11417_v8  ;;  %10186 = vmatpush3.bf16.msra.mxu0 %v11418_v26  ;;  %v11422_v63 = vld [vmem:[%s16521_s0 + $0x8] sm:$0xff]  }
0x1275   : > { %10226 = vmatpush3.bf16.msra.mxu1 %v11419_v43  ;;  %10187 = vmatprep.subr.bf16.mxu0 %v11420_v33  ;;  %v14318_v0 = vrot.slane %v3888_v38, %v13260_v30  ;;  %v14321_v48 = vrot.slane %v3888_v38, %v13541_v1  ;;  %v14324_v16 = vrot.slane %v3888_v38, %v14195_v4 }
0x1276   : > { %v3855_v18 = vadd.f32 %v3847_v14, %v3843_v32  ;;  %10227 = vmatprep.subr.bf16.mxu1 %v11421_v25  ;;  %v11428_v14 = vld [vmem:[%s16521_s0 + $0x58] sm:$0xff]   ;;  %v14327_v40 = vrot.slane %v3888_v38, %v16523_v47 }
0x1278   : > { %v3892_v45 = vpack.c.bf16 %v3855_v18, %v3854_v27  ;;  %10188 = vmatpush3.bf16.msra.mxu0 %v11422_v63 }
0x1279   : > { %10228 = vmatpush3.bf16.msra.mxu1 %v11423_v17  ;;  %10189 = vmatprep.subr.bf16.mxu0 %v11424_v50 }
0x127a   : > { %4127 = vmatmul.mubr.bf16.gmra.mrb[80].mxu0 %v3891_v39  ;;  %4200 = vmatmul.mubr.bf16.gmra.mrb[60].mxu1 %v3891_v39 }
0x127b   : > { %4136 = vmatprep.mubr.bf16.mxu0 %v16498_v53  ;;  %4209 = vmatprep.mubr.bf16.mxu1 %v16498_v53 }
0x127c   : > { %10229 = vmatprep.subr.bf16.mxu1 %v11425_v56  ;;  %10190 = vmatpush3.bf16.msra.mxu0 %v11426_v9 }
0x127d   : > { %10230 = vmatpush3.bf16.msra.mxu1 %v11427_v28  ;;  %10191 = vmatprep.subr.bf16.mxu0 %v11428_v14 }
0x127e   : > { %10231 = vmatprep.subr.bf16.mxu1 %v11429_v13 }
0x1280   : > { %10192 = vmatpush3.bf16.msra.mxu0 %v11430_v12 }
0x1281   : > { %10232 = vmatpush3.bf16.msra.mxu1 %v11431_v15  ;;  %10193 = vmatprep.subr.bf16.mxu0 %v11432_v22 }
0x1282   : > { %4137 = vmatmul.mubr.bf16.gmra.mrb[84].mxu0 %v3892_v45  ;;  %4210 = vmatmul.mubr.bf16.gmra.mrb[64].mxu1 %v3892_v45 }
0x1283   : > { %10233 = vmatprep.subr.bf16.mxu1 %v11433_v3 }
0x1284   : > { %10194 = vmatpush3.bf16.msra.mxu0 %v11434_v57 }
0x1285   : > { %10234 = vmatpush3.bf16.msra.mxu1 %v11435_v19  ;;  %10195 = vmatprep.subr.bf16.mxu0 %v11436_v21 }
0x1286   : > { %10235 = vmatprep.subr.bf16.mxu1 %v11437_v11 }
0x1288   : > { %10196 = vmatpush3.bf16.msra.mxu0 %v11438_v24 }
0x1289   : > { %10236 = vmatpush3.bf16.msra.mxu1 %v11439_v20  ;;  %10197 = vmatprep.subr.bf16.mxu0 %v11440_v35 }
0x128a   : > { %10237 = vmatprep.subr.bf16.mxu1 %v11441_v2 }
0x128c   : > { %10198 = vmatpush3.bf16.msra.mxu0 %v11442_v55 }
0x128d   : > { %10238 = vmatpush3.bf16.msra.mxu1 %v11443_v46  ;;  %10199 = vmatprep.subr.bf16.mxu0 %v11444_v34 }
0x128e   : > { %10239 = vmatprep.subr.bf16.mxu1 %v11445_v37 }
0x1290   : > { %10200 = vmatpush3.bf16.msra.mxu0 %v11446_v42 }
0x1291   : > { %10240 = vmatpush3.bf16.msra.mxu1 %v11447_v49  ;;  %10265 = vmatprep.subr.bf16.mxu0 %v11448_v41 }
0x1292   : > { %10682 = vmatprep.subr.bf16.mxu1 %v16522_v29 }
0x133d   : > { %v4108_v58 = vpop.f32.mrb[72].mxu0  ;;  %v4181_v6 = vpop.f32.mrb[52].mxu1 }
0x133e   : > { %v14330_v7 = vadd.f32 %v4108_v58, %v14318_v0  ;;  %v14333_v36 = vadd.f32 %v4181_v6, %v14321_v48  ;;  %v4110_v54 = vpop.f32.mrb[73].mxu0  ;;  %v4183_v39 = vpop.f32.mrb[53].mxu1 }
0x133f   : > { %v14336_v32 = vadd.f32 %v4110_v54, %v14327_v40  ;;  %v14339_v27 = vadd.f32 %v4183_v39, %v14324_v16  ;;  %v4112_v18 = vpop.f32.mrb[74].mxu0  ;;  %v4185_v45 = vpop.f32.mrb[54].mxu1 }
0x1340   : > { %v4220_v10 = vmul.f32 %v14330_v7, %v14330_v7  ;;  %v4222_v8 = vmul.f32 %v14333_v36, %v14333_v36  ;;  %v14346_v26 = vadd.f32 %v4112_v18, %v14318_v0  ;;  %v14349_v43 = vadd.f32 %v4185_v45, %v14321_v48  ;;  %v4114_v33 = vpop.f32.mrb[75].mxu0  ;;  %v4187_v25 = vpop.f32.mrb[55].mxu1 }
0x1341   : > { %v4221_v63 = vmul.f32 %v14336_v32, %v14336_v32  ;;  %v4223_v17 = vmul.f32 %v14339_v27, %v14339_v27  ;;  %v14356_v50 = vadd.f32 %v4114_v33, %v14327_v40  ;;  %v14359_v56 = vadd.f32 %v4187_v25, %v14324_v16 }
0x1342   : > { %v4252_v9 = vmul.f32 %v4220_v10, %v14330_v7  ;;  %v4254_v28 = vmul.f32 %v4222_v8, %v14333_v36  ;;  %v4224_v14 = vmul.f32 %v14346_v26, %v14346_v26  ;;  %v4226_v13 = vmul.f32 %v14349_v43, %v14349_v43 }
0x1343   : > { %v4253_v12 = vmul.f32 %v4221_v63, %v14336_v32  ;;  %v4255_v15 = vmul.f32 %v4223_v17, %v14339_v27  ;;  %v4225_v22 = vmul.f32 %v14356_v50, %v14356_v50  ;;  %v4227_v3 = vmul.f32 %v14359_v56, %v14359_v56 }
0x1344   : > { %v4284_v57 = vmul.f32 0.044715, %v4252_v9  ;;  %v4286_v19 = vmul.f32 0.044715, %v4254_v28  ;;  %v4256_v21 = vmul.f32 %v4224_v14, %v14346_v26  ;;  %v4258_v11 = vmul.f32 %v4226_v13, %v14349_v43 }
0x1345   : > { %v4285_v24 = vmul.f32 0.044715, %v4253_v12  ;;  %v4287_v20 = vmul.f32 0.044715, %v4255_v15  ;;  %v4257_v35 = vmul.f32 %v4225_v22, %v14356_v50  ;;  %v4259_v2 = vmul.f32 %v4227_v3, %v14359_v56  ;;  %v4118_v55 = vpop.f32.mrb[76].mxu0  ;;  %v4191_v46 = vpop.f32.mrb[56].mxu1 }
0x1346   : > { %v4316_v34 = vadd.f32 %v4284_v57, %v14330_v7  ;;  %v4318_v37 = vadd.f32 %v4286_v19, %v14333_v36  ;;  %v4288_v42 = vmul.f32 0.044715, %v4256_v21  ;;  %v4290_v49 = vmul.f32 0.044715, %v4258_v11  ;;  %v4120_v41 = vpop.f32.mrb[77].mxu0  ;;  %v4193_v38 = vpop.f32.mrb[57].mxu1 }
0x1347   : > { %v4317_v58 = vadd.f32 %v4285_v24, %v14336_v32  ;;  %v4319_v6 = vadd.f32 %v4287_v20, %v14339_v27  ;;  %v4289_v54 = vmul.f32 0.044715, %v4257_v35  ;;  %v4291_v39 = vmul.f32 0.044715, %v4259_v2  ;;  %v4122_v18 = vpop.f32.mrb[78].mxu0  ;;  %v4195_v45 = vpop.f32.mrb[58].mxu1 }
0x1348   : > { %v4348_v10 = vmul.f32 0.7978846, %v4316_v34  ;;  %v4350_v8 = vmul.f32 0.7978846, %v4318_v37  ;;  %v4320_v33 = vadd.f32 %v4288_v42, %v14346_v26  ;;  %v4322_v25 = vadd.f32 %v4290_v49, %v14349_v43  ;;  %v4124_v63 = vpop.f32.mrb[79].mxu0  ;;  %v4197_v17 = vpop.f32.mrb[59].mxu1 }
0x1349   : > { %v4349_v9 = vmul.f32 0.7978846, %v4317_v58  ;;  %v4351_v28 = vmul.f32 0.7978846, %v4319_v6  ;;  %v4321_v14 = vadd.f32 %v4289_v54, %v14356_v50  ;;  %v4323_v13 = vadd.f32 %v4291_v39, %v14359_v56 }
0x134a   : > { %11864 = vtanh.f32 %v4348_v10  ;;  %v4352_v12 = vmul.f32 0.7978846, %v4320_v33  ;;  %v4354_v15 = vmul.f32 0.7978846, %v4322_v25  ;;  %v14386_v22 = vadd.f32 %v4118_v55, %v14318_v0 }
0x134b   : > { %11866 = vtanh.f32 %v4350_v8  ;;  %v4353_v3 = vmul.f32 0.7978846, %v4321_v14  ;;  %v4355_v57 = vmul.f32 0.7978846, %v4323_v13  ;;  %v14389_v19 = vadd.f32 %v4191_v46, %v14321_v48 }
0x134c   : > { %11868 = vtanh.f32 %v4349_v9  ;;  %v4228_v21 = vmul.f32 %v14386_v22, %v14386_v22  ;;  %v14394_v11 = vadd.f32 %v4120_v41, %v14327_v40  ;;  %v14397_v24 = vadd.f32 %v4193_v38, %v14324_v16 }
0x134d   : > { %11870 = vtanh.f32 %v4351_v28  ;;  %v4230_v20 = vmul.f32 %v14389_v19, %v14389_v19  ;;  %v14402_v35 = vadd.f32 %v4122_v18, %v14318_v0  ;;  %v14405_v2 = vadd.f32 %v4195_v45, %v14321_v48  ;;  %v14407_v55 = vpop.f32.mrb[80].mxu0  ;;  %v14409_v46 = vpop.f32.mrb[60].mxu1 }
0x134e   : > { %11872 = vtanh.f32 %v4352_v12  ;;  %v4260_v34 = vmul.f32 %v4228_v21, %v14386_v22  ;;  %v4229_v37 = vmul.f32 %v14394_v11, %v14394_v11  ;;  %v4231_v42 = vmul.f32 %v14397_v24, %v14397_v24  ;;  %v14416_v49 = vpop.f32.mrb[81].mxu0  ;;  %v14418_v41 = vpop.f32.mrb[61].mxu1 }
0x134f   : > { %11874 = vtanh.f32 %v4354_v15  ;;  %v4262_v38 = vmul.f32 %v4230_v20, %v14389_v19  ;;  %v4232_v58 = vmul.f32 %v14402_v35, %v14402_v35  ;;  %v4234_v6 = vmul.f32 %v14405_v2, %v14405_v2  ;;  %v14425_v54 = vpop.f32.mrb[82].mxu0  ;;  %v14427_v39 = vpop.f32.mrb[62].mxu1 }
0x1350   : > { %11876 = vtanh.f32 %v4353_v3  ;;  %v4292_v18 = vmul.f32 0.044715, %v4260_v34  ;;  %v4261_v45 = vmul.f32 %v4229_v37, %v14394_v11  ;;  %v4263_v10 = vmul.f32 %v4231_v42, %v14397_v24  ;;  %v14431_v8 = vpop.f32.mrb[83].mxu0  ;;  %v14433_v33 = vpop.f32.mrb[63].mxu1 }
0x1351   : > { %11878 = vtanh.f32 %v4355_v57  ;;  %v4294_v25 = vmul.f32 0.044715, %v4262_v38  ;;  %v4264_v9 = vmul.f32 %v4232_v58, %v14402_v35  ;;  %v4266_v28 = vmul.f32 %v4234_v6, %v14405_v2 }
0x1352   : > { %v4324_v14 = vadd.f32 %v4292_v18, %v14386_v22  ;;  %v4293_v13 = vmul.f32 0.044715, %v4261_v45  ;;  %v4295_v12 = vmul.f32 0.044715, %v4263_v10  ;;  %v14439_v15 = vadd.f32 %v4124_v63, %v14327_v40 }
0x1353   : > { %v4326_v3 = vadd.f32 %v4294_v25, %v14389_v19  ;;  %v4296_v21 = vmul.f32 0.044715, %v4264_v9  ;;  %v4298_v20 = vmul.f32 0.044715, %v4266_v28  ;;  %v14443_v34 = vadd.f32 %v4197_v17, %v14324_v16 }
0x1354   : > { %v11865_v57 = vpop.eup %11864  ;;  %v4356_v37 = vmul.f32 0.7978846, %v4324_v14  ;;  %v4325_v42 = vadd.f32 %v4293_v13, %v14394_v11  ;;  %v4327_v38 = vadd.f32 %v4295_v12, %v14397_v24  ;;  %v4233_v58 = vmul.f32 %v14439_v15, %v14439_v15 }
0x1355   : > { %v11867_v6 = vpop.eup %11866  ;;  %v4412_v18 = vadd.f32 1.0, %v11865_v57  ;;  %v4358_v63 = vmul.f32 0.7978846, %v4326_v3  ;;  %v4328_v45 = vadd.f32 %v4296_v21, %v14402_v35  ;;  %v4330_v10 = vadd.f32 %v4298_v20, %v14405_v2  ;;  %v14451_v25 = vpop.f32.mrb[84].mxu0 }
0x1356   : > { %v14453_v17 = vpop.f32.mrb[64].mxu1  ;;  %v14455_v9 = vpop.eup %11868  ;;  %v4414_v28 = vadd.f32 1.0, %v11867_v6  ;;  %11880 = vtanh.f32 %v4356_v37  ;;  %v4357_v14 = vmul.f32 0.7978846, %v4325_v42  ;;  %v4359_v13 = vmul.f32 0.7978846, %v4327_v38 }
0x1357   : > { %v14457_v12 = vpop.f32.mrb[85].mxu0  ;;  %v14459_v52 = vpop.eup %11870  ;;  %v4444_v57 = vmul.f32 0.5, %v4412_v18  ;;  %11882 = vtanh.f32 %v4358_v63  ;;  %v4360_v3 = vmul.f32 0.7978846, %v4328_v45  ;;  %v4362_v21 = vmul.f32 0.7978846, %v4330_v10 }
0x1358   : > { %v14461_v4 = vpop.f32.mrb[65].mxu1  ;;  %v11873_v20 = vpop.eup %11872  ;;  %v4446_v1 = vmul.f32 0.5, %v4414_v28  ;;  %11884 = vtanh.f32 %v4357_v14  ;;  %v4265_v47 = vmul.f32 %v4233_v58, %v14439_v15  ;;  %v4235_v37 = vmul.f32 %v14443_v34, %v14443_v34 }
0x1359   : > { %v14466_v42 = vpop.f32.mrb[86].mxu0  ;;  %v14468_v38 = vpop.f32.mrb[66].mxu1  ;;  %v14471_v18 = vmul.f32 %v4444_v57, %v14330_v7  ;;  %v4416_v63 = vadd.f32 1.0, %v11873_v20  ;;  %11886 = vtanh.f32 %v4359_v13  ;;  %v14475_v45 = vadd.f32 %v14407_v55, %v14318_v0 }
0x135a   : > { %v11875_v6 = vpop.eup %11874  ;;  %v14477_v10 = vpop.f32.mrb[87].mxu0  ;;  %v14484_v14 = vmul.f32 %v4446_v1, %v14333_v36  ;;  %11888 = vtanh.f32 %v4360_v3  ;;  %v4297_v62 = vmul.f32 0.044715, %v4265_v47  ;;  %v4267_v13 = vmul.f32 %v4235_v37, %v14443_v34 }
0x135b   : > { %v14479_v58 = vpop.f32.mrb[67].mxu1  ;;  %v14481_v28 = vpop.eup %11876  ;;  %v4418_v51 = vadd.f32 1.0, %v11875_v6  ;;  %v4448_v57 = vmul.f32 0.5, %v4416_v63  ;;  %11890 = vtanh.f32 %v4362_v21  ;;  %v4236_v55 = vmul.f32 %v14475_v45, %v14475_v45 }
0x135c   : > { %v14486_v7 = vpop.eup %11878  ;;  %v4329_v23 = vadd.f32 %v4297_v62, %v14439_v15  ;;  %v14494_v5 = vadd.f32 %v14409_v46, %v14321_v48  ;;  %v14498_v1 = vadd.f32 %v14416_v49, %v14327_v40  ;;  %v4299_v36 = vmul.f32 0.044715, %v4267_v13 }
0x135d   : > { %v4450_v20 = vmul.f32 0.5, %v4418_v51  ;;  %v14501_v47 = vmul.f32 %v4448_v57, %v14346_v26  ;;  %v4268_v3 = vmul.f32 %v4236_v55, %v14475_v45  ;;  %v14506_v21 = vadd.f32 %v14418_v41, %v14324_v16 }
0x135e   : > { %v4361_v51 = vmul.f32 0.7978846, %v4329_v23  ;;  %v4238_v46 = vmul.f32 %v14494_v5, %v14494_v5  ;;  %v4237_v49 = vmul.f32 %v14498_v1, %v14498_v1  ;;  %v4331_v37 = vadd.f32 %v4299_v36, %v14443_v34 }
0x135f   : > { %v14509_v62 = vmul.f32 %v4450_v20, %v14349_v43  ;;  %v4300_v6 = vmul.f32 0.044715, %v4268_v3  ;;  %v4239_v41 = vmul.f32 %v14506_v21, %v14506_v21  ;;  %v14532_v3 = vadd.f32 %v14425_v54, %v14318_v0 }
0x1360   : > { %v14520_v63 = vpop.eup %11880  ;;  %11892 = vtanh.f32 %v4361_v51  ;;  %v4270_v43 = vmul.f32 %v4238_v46, %v14494_v5  ;;  %v4269_v57 = vmul.f32 %v4237_v49, %v14498_v1  ;;  %v4363_v55 = vmul.f32 0.7978846, %v4331_v37 }
0x1361   : > { %v14526_v13 = vpop.eup %11882  ;;  %v4332_v20 = vadd.f32 %v4300_v6, %v14475_v45  ;;  %v4271_v36 = vmul.f32 %v4239_v41, %v14506_v21  ;;  %v14538_v51 = vadd.f32 %v14427_v39, %v14321_v48  ;;  %v14542_v46 = vadd.f32 %v14431_v8, %v14327_v40 }
0x1362   : > { %v14534_v26 = vpop.eup %11884  ;;  %v4302_v60 = vmul.f32 0.044715, %v4270_v43  ;;  %v4301_v23 = vmul.f32 0.044715, %v4269_v57  ;;  %11894 = vtanh.f32 %v4363_v55  ;;  %v4240_v54 = vmul.f32 %v14532_v3, %v14532_v3 }
0x1363   : > { %v14544_v49 = vpop.eup %11886  ;;  %v4364_v37 = vmul.f32 0.7978846, %v4332_v20  ;;  %v4303_v6 = vmul.f32 0.044715, %v4271_v36  ;;  %v4242_v39 = vmul.f32 %v14538_v51, %v14538_v51  ;;  %v4241_v8 = vmul.f32 %v14542_v46, %v14542_v46 }
0x1364   : > { %v14548_v41 = vpop.eup %11888  ;;  %v4334_v43 = vadd.f32 %v4302_v60, %v14494_v5  ;;  %v4333_v57 = vadd.f32 %v4301_v23, %v14498_v1  ;;  %v4272_v20 = vmul.f32 %v4240_v54, %v14532_v3  ;;  %v14562_v36 = vadd.f32 %v14433_v33, %v14324_v16 }
0x1365   : > { %v14556_v31 = vpop.eup %11890  ;;  %11896 = vtanh.f32 %v4364_v37  ;;  %v4335_v55 = vadd.f32 %v4303_v6, %v14506_v21  ;;  %v4274_v23 = vmul.f32 %v4242_v39, %v14538_v51  ;;  %v4273_v59 = vmul.f32 %v4241_v8, %v14542_v46 }
0x1366   : > { %v4366_v60 = vmul.f32 0.7978846, %v4334_v43  ;;  %v4365_v61 = vmul.f32 0.7978846, %v4333_v57  ;;  %v4304_v44 = vmul.f32 0.044715, %v4272_v20  ;;  %v4243_v53 = vmul.f32 %v14562_v36, %v14562_v36 }
0x1367   : > { %v4367_v30 = vmul.f32 0.7978846, %v4335_v55  ;;  %v14570_v37 = vadd.f32 %v14451_v25, %v14318_v0  ;;  %v4306_v6 = vmul.f32 0.044715, %v4274_v23  ;;  %v4305_v54 = vmul.f32 0.044715, %v4273_v59 }
0x1368   : > { %11898 = vtanh.f32 %v4366_v60  ;;  %v14574_v33 = vadd.f32 %v14453_v17, %v14321_v48  ;;  %v4336_v43 = vadd.f32 %v4304_v44, %v14532_v3  ;;  %v4275_v57 = vmul.f32 %v4243_v53, %v14562_v36 }
0x1369   : > { %16524 = vst [vmem:[#allocation41_spill] sm:$0xff] %v14570_v37  ;;  %11900 = vtanh.f32 %v4365_v61  ;;  %v4244_v39 = vmul.f32 %v14570_v37, %v14570_v37  ;;  %v4338_v25 = vadd.f32 %v4306_v6, %v14538_v51  ;;  %v4337_v55 = vadd.f32 %v4305_v54, %v14542_v46 }
0x136a   : > { %16525 = vst [vmem:[#allocation40_spill] sm:$0xff] %v14574_v33  ;;  %v14580_v8 = vpop.eup %11892  ;;  %11902 = vtanh.f32 %v4367_v30  ;;  %v4246_v59 = vmul.f32 %v14574_v33, %v14574_v33  ;;  %v4368_v17 = vmul.f32 0.7978846, %v4336_v43  ;;  %v4307_v20 = vmul.f32 0.044715, %v4275_v57 }
0x136b   : > { %v4276_v61 = vmul.f32 %v4244_v39, %v14570_v37  ;;  %v14589_v53 = vadd.f32 %v14457_v12, %v14327_v40  ;;  %v4370_v44 = vmul.f32 0.7978846, %v4338_v25  ;;  %v4369_v60 = vmul.f32 0.7978846, %v4337_v55 }
0x136c   : > { %v4278_v23 = vmul.f32 %v4246_v59, %v14574_v33  ;;  %v14594_v30 = vadd.f32 %v14461_v4, %v14324_v16  ;;  %v14596_v6 = vpop.eup %11894  ;;  %11904 = vtanh.f32 %v4368_v17  ;;  %v4339_v54 = vadd.f32 %v4307_v20, %v14562_v36 }
0x136d   : > { %v4308_v43 = vmul.f32 0.044715, %v4276_v61  ;;  %v4245_v57 = vmul.f32 %v14589_v53, %v14589_v53  ;;  %11906 = vtanh.f32 %v4370_v44  ;;  %v14605_v25 = vadd.f32 %v14466_v42, %v14318_v0 }
0x136e   : > { %v4310_v12 = vmul.f32 0.044715, %v4278_v23  ;;  %v4247_v39 = vmul.f32 %v14594_v30, %v14594_v30  ;;  %11908 = vtanh.f32 %v4369_v60  ;;  %v4371_v55 = vmul.f32 0.7978846, %v4339_v54 }
0x136f   : > { %v14607_v4 = vpop.eup %11896  ;;  %v4340_v59 = vadd.f32 %v4308_v43, %v14570_v37  ;;  %v4277_v17 = vmul.f32 %v4245_v57, %v14589_v53  ;;  %v4248_v44 = vmul.f32 %v14605_v25, %v14605_v25  ;;  %v14617_v23 = vadd.f32 %v14468_v38, %v14321_v48 }
0x1370   : > { %v4342_v20 = vadd.f32 %v4310_v12, %v14574_v33  ;;  %v4279_v61 = vmul.f32 %v4247_v39, %v14594_v30  ;;  %11910 = vtanh.f32 %v4371_v55  ;;  %v14621_v60 = vadd.f32 %v14477_v10, %v14327_v40 }
0x1371   : > { %16526 = vst [vmem:[#allocation53_spill] sm:$0xff] %v14617_v23  ;;  %v4372_v0 = vmul.f32 0.7978846, %v4340_v59  ;;  %v4309_v42 = vmul.f32 0.044715, %v4277_v17  ;;  %v4280_v12 = vmul.f32 %v4248_v44, %v14605_v25  ;;  %v4250_v39 = vmul.f32 %v14617_v23, %v14617_v23 }
0x1372   : > { %v14623_v54 = vpop.eup %11898  ;;  %v4374_v43 = vmul.f32 0.7978846, %v4342_v20  ;;  %v4311_v57 = vmul.f32 0.044715, %v4279_v61  ;;  %v4249_v38 = vmul.f32 %v14621_v60, %v14621_v60  ;;  %v14635_v40 = vadd.f32 %v14479_v58, %v14324_v16 }
0x1373   : > { %v14628_v29 = vpop.eup %11900  ;;  %11912 = vtanh.f32 %v4372_v0  ;;  %v4341_v48 = vadd.f32 %v4309_v42, %v14589_v53  ;;  %v4312_v59 = vmul.f32 0.044715, %v4280_v12  ;;  %v4282_v17 = vmul.f32 %v4250_v39, %v14617_v23 }
0x1374   : > { %v14637_v10 = vpop.eup %11902  ;;  %11914 = vtanh.f32 %v4374_v43  ;;  %v4343_v55 = vadd.f32 %v4311_v57, %v14594_v30  ;;  %v4281_v61 = vmul.f32 %v4249_v38, %v14621_v60  ;;  %v4251_v44 = vmul.f32 %v14635_v40, %v14635_v40 }
0x1375   : > { %v4373_v20 = vmul.f32 0.7978846, %v4341_v48  ;;  %v4413_v0 = vadd.f32 1.0, %v14455_v9  ;;  %v4344_v16 = vadd.f32 %v4312_v59, %v14605_v25  ;;  %v4314_v58 = vmul.f32 0.044715, %v4282_v17 }
0x1376   : > { %v4375_v42 = vmul.f32 0.7978846, %v4343_v55  ;;  %v4417_v33 = vadd.f32 1.0, %v14481_v28  ;;  %v14647_v43 = vpop.eup %11904  ;;  %v4313_v57 = vmul.f32 0.044715, %v4281_v61  ;;  %v4283_v12 = vmul.f32 %v4251_v44, %v14635_v40 }
0x1377   : > { %11916 = vtanh.f32 %v4373_v20  ;;  %v4445_v39 = vmul.f32 0.5, %v4413_v0  ;;  %v14650_v48 = vpop.eup %11906  ;;  %v4376_v38 = vmul.f32 0.7978846, %v4344_v16  ;;  %v4346_v37 = vadd.f32 %v4314_v58, %v14617_v23 }
0x1378   : > { %11918 = vtanh.f32 %v4375_v42  ;;  %v4449_v9 = vmul.f32 0.5, %v4417_v33  ;;  %v14653_v55 = vpop.eup %11908  ;;  %v4345_v59 = vadd.f32 %v4313_v57, %v14621_v60  ;;  %v4315_v17 = vmul.f32 0.044715, %v4283_v12 }
0x1379   : > { %v4477_v28 = vmul.f32 %v4445_v39, %v14336_v32  ;;  %v4415_v20 = vadd.f32 1.0, %v14459_v52  ;;  %11920 = vtanh.f32 %v4376_v38  ;;  %v4378_v61 = vmul.f32 0.7978846, %v4346_v37  ;;  %v11449_v52 = vld [vmem:[%s16483_s10 + $0x80] sm:$0xff]   ;;  %v11450_v39 = vld [vmem:[%s16483_s10 + $0xc8] sm:$0xff]  }
0x137a   : > { %v4481_v44 = vmul.f32 %v4449_v9, %v14356_v50  ;;  %v4419_v0 = vadd.f32 1.0, %v14486_v7  ;;  %v14660_v42 = vpop.eup %11910  ;;  %v4377_v16 = vmul.f32 0.7978846, %v4345_v59  ;;  %v4347_v33 = vadd.f32 %v4315_v17, %v14635_v40 }
0x137b   : > { %v4447_v58 = vmul.f32 0.5, %v4415_v20  ;;  %v4421_v23 = vadd.f32 1.0, %v14534_v26  ;;  %11922 = vtanh.f32 %v4378_v61  ;;  %v4425_v32 = vadd.f32 1.0, %v14580_v8 }
0x137c   : > { %v4574_v57 = vpack.c.bf16 %v4481_v44, %v4477_v28  ;;  %v4451_v12 = vmul.f32 0.5, %v4419_v0  ;;  %11924 = vtanh.f32 %v4377_v16  ;;  %v4379_v7 = vmul.f32 0.7978846, %v4347_v33 }
0x137d   : > { %v14668_v50 = vpop.eup %11912  ;;  %v4479_v37 = vmul.f32 %v4447_v58, %v14339_v27  ;;  %v4453_v26 = vmul.f32 0.5, %v4421_v23  ;;  %v4457_v59 = vmul.f32 0.5, %v4425_v32  ;;  %v4423_v17 = vadd.f32 1.0, %v14544_v49 }
0x137e   : > { %v14674_v38 = vpop.eup %11914  ;;  %4819 = vmatprep.mubr.bf16.mxu0 %v4574_v57  ;;  %v4483_v9 = vmul.f32 %v4451_v12, %v14359_v56  ;;  %v4427_v8 = vadd.f32 1.0, %v14596_v6  ;;  %11926 = vtanh.f32 %v4379_v7  ;;  %v16527_v28 = vpack.c.bf16 %v14501_v47, %v14471_v18  ;;  %v11451_v56 = vld [vmem:[%s16483_s10 + $0x88] sm:$0xff]  }
0x137f   : > { %v4485_v27 = vmul.f32 %v4453_v26, %v14394_v11  ;;  %v4420_v20 = vadd.f32 1.0, %v14520_v63  ;;  %v4424_v23 = vadd.f32 1.0, %v14548_v41  ;;  %v4489_v49 = vmul.f32 %v4457_v59, %v14439_v15  ;;  %v11452_v41 = vld [vmem:[%s16483_s10 + $0xd0] sm:$0xff]  }
0x1380   : > { %4820 = vmatmul.mubr.bf16.vlgmr.msra.gmra.mrb[88].mxu0 %v16527_v28  ;;  %v4576_v61 = vpack.c.bf16 %v4483_v9, %v4479_v37  ;;  %v4455_v6 = vmul.f32 0.5, %v4423_v17  ;;  %v4459_v44 = vmul.f32 0.5, %v4427_v8  ;;  %v4422_v11 = vadd.f32 1.0, %v14526_v13 }
0x1381   : > { %10266 = vmatpush3.bf16.msra.mxu0 %v11449_v52  ;;  %v11917_v0 = vpop.eup %11916  ;;  %v4452_v18 = vmul.f32 0.5, %v4420_v20  ;;  %v4456_v47 = vmul.f32 0.5, %v4424_v23  ;;  %v4426_v63 = vadd.f32 1.0, %v14556_v31  ;;  %v4578_v33 = vpack.c.bf16 %v4489_v49, %v4485_v27 }
0x1382   : > { %10267 = vmatprep.subr.bf16.mxu0 %v11450_v39  ;;  %v14694_v16 = vpop.eup %11918  ;;  %4884 = vmatprep.mubr.bf16.mxu1 %v4576_v61  ;;  %v4487_v15 = vmul.f32 %v4455_v6, %v14397_v24  ;;  %v4491_v58 = vmul.f32 %v4459_v44, %v14443_v34  ;;  %v4429_v57 = vadd.f32 1.0, %v14628_v29  ;;  %v16528_v12 = vpack.c.bf16 %v14509_v62, %v14484_v14  ;;  %v11453_v24 = vld [vmem:[%s16483_s10 + $0x90] sm:$0xff]   ;;  %v11454_v39 = vld [vmem:[%s16483_s10 + $0xd8] sm:$0xff]  }
0x1383   : > { %v4484_v31 = vmul.f32 %v4452_v18, %v14386_v22  ;;  %v4488_v13 = vmul.f32 %v4456_v47, %v14402_v35  ;;  %v4454_v52 = vmul.f32 0.5, %v4422_v11  ;;  %v4458_v32 = vmul.f32 0.5, %v4426_v63  ;;  %v11921_v7 = vpop.eup %11920  ;;  %4827 = vmatprep.mubr.bf16.mxu0 %v4578_v33 }
0x1384   : > { %4885 = vmatmul.mubr.bf16.vlgmr.msra.gmra.mrb[68].mxu1 %v16528_v12  ;;  %v4580_v37 = vpack.c.bf16 %v4491_v58, %v4487_v15  ;;  %v4433_v29 = vadd.f32 1.0, %v14653_v55  ;;  %v4461_v34 = vmul.f32 0.5, %v4429_v57  ;;  %v4431_v14 = vadd.f32 1.0, %v14637_v10 }
0x1385   : > { %10268 = vmatpush3.bf16.msra.mxu0 %v11451_v56  ;;  %v4577_v62 = vpack.c.bf16 %v4488_v13, %v4484_v31  ;;  %v4486_v22 = vmul.f32 %v4454_v52, %v14389_v19  ;;  %v4490_v35 = vmul.f32 %v4458_v32, %v14405_v2  ;;  %v4435_v26 = vadd.f32 1.0, %v14660_v42  ;;  %v11923_v9 = vpop.eup %11922  ;;  %v11455_v42 = vld [vmem:[%s16483_s10 + $0x98] sm:$0xff]  }
0x1386   : > { %10269 = vmatprep.subr.bf16.mxu0 %v11452_v41  ;;  %4892 = vmatprep.mubr.bf16.mxu1 %v4580_v37  ;;  %v4465_v59 = vmul.f32 0.5, %v4433_v29  ;;  %v4493_v55 = vmul.f32 %v4461_v34, %v14498_v1  ;;  %v4463_v17 = vmul.f32 0.5, %v4431_v14  ;;  %v4428_v10 = vadd.f32 1.0, %v14607_v4  ;;  %v11925_v8 = vpop.eup %11924 }
0x1387   : > { %v4579_v19 = vpack.c.bf16 %v4490_v35, %v4486_v22  ;;  %v4467_v28 = vmul.f32 0.5, %v4435_v26  ;;  %v4432_v2 = vadd.f32 1.0, %v14647_v43  ;;  %v4430_v27 = vadd.f32 1.0, %v14623_v54  ;;  %v11456_v54 = vld [vmem:[%s16483_s10 + $0xe0] sm:$0xff]  }
0x1388   : > { %4828 = vmatmul.mubr.bf16.gmra.mrb[92].mxu0 %v4577_v62  ;;  %v4497_v20 = vmul.f32 %v4465_v59, %v14542_v46  ;;  %v4495_v1 = vmul.f32 %v4463_v17, %v14506_v21  ;;  %v4460_v23 = vmul.f32 0.5, %v4428_v10  ;;  %v4434_v4 = vadd.f32 1.0, %v14650_v48  ;;  %v11927_v61 = vpop.eup %11926  ;;  %v11462_v59 = vld [vmem:[%s16483_s10 + $0xf8] sm:$0xff]   ;;  %v16532_v17 = vld [vmem:[#allocation37_spill] sm:$0xff] }
0x1389   : > { %10270 = vmatpush3.bf16.msra.mxu0 %v11453_v24  ;;  %v4499_v56 = vmul.f32 %v4467_v28, %v14562_v36  ;;  %v4464_v49 = vmul.f32 0.5, %v4432_v2  ;;  %v4462_v43 = vmul.f32 0.5, %v4430_v27  ;;  %v4437_v6 = vadd.f32 1.0, %v11917_v0  ;;  %v11457_v0 = vld [vmem:[%s16483_s10 + $0xa0] sm:$0xff]   ;;  %v11459_v24 = vld [vmem:[%s16483_s10 + $0xa8] sm:$0xff]   ;;  %v11465_v2 = vld [vmem:[#allocation7 + $0x48] sm:$0xff]  }
0x138a   : > { %10271 = vmatprep.subr.bf16.mxu0 %v11454_v39  ;;  %v4582_v44 = vpack.c.bf16 %v4497_v20, %v4493_v55  ;;  %v4492_v18 = vmul.f32 %v4460_v23, %v14475_v45  ;;  %v4466_v46 = vmul.f32 0.5, %v4434_v4  ;;  %v4441_v47 = vadd.f32 1.0, %v11925_v8  ;;  %v16530_v39 = vld [vmem:[#allocation40_spill] sm:$0xff]  ;;  %v16534_v8 = vld [vmem:[#allocation38_spill] sm:$0xff] }
0x138b   : > { %v4584_v21 = vpack.c.bf16 %v4499_v56, %v4495_v1  ;;  %v4496_v48 = vmul.f32 %v4464_v49, %v14532_v3  ;;  %v4494_v11 = vmul.f32 %v4462_v43, %v14494_v5  ;;  %v4469_v63 = vmul.f32 0.5, %v4437_v6  ;;  %v11458_v5 = vld [vmem:[%s16483_s10 + $0xe8] sm:$0xff]   ;;  %v11463_v55 = vld [vmem:[%s16483_s10 + $0xb8] sm:$0xff]  }
0x138c   : > { %4893 = vmatmul.mubr.bf16.gmra.mrb[72].mxu1 %v4579_v19  ;;  %4835 = vmatprep.mubr.bf16.mxu0 %v4582_v44  ;;  %v4498_v36 = vmul.f32 %v4466_v46, %v14538_v51  ;;  %v4473_v41 = vmul.f32 0.5, %v4441_v47  ;;  %v4439_v45 = vadd.f32 1.0, %v14694_v16  ;;  %v4443_v33 = vadd.f32 1.0, %v11927_v61  ;;  %v11464_v28 = vld [vmem:[#allocation7 + $0x40] sm:$0xff]   ;;  %v11466_v27 = vld [vmem:[#allocation7 + $0x50] sm:$0xff]   ;;  %v11469_v1 = vld [vmem:[#allocation7 + $0x68] sm:$0xff]  }
0x138d   : > { %10272 = vmatpush3.bf16.msra.mxu0 %v11455_v42  ;;  %4900 = vmatprep.mubr.bf16.mxu1 %v4584_v21  ;;  %v4581_v15 = vpack.c.bf16 %v4496_v48, %v4492_v18  ;;  %v4501_v3 = vmul.f32 %v4469_v63, %v14589_v53  ;;  %v4436_v58 = vadd.f32 1.0, %v14668_v50  ;;  %v4440_v51 = vadd.f32 1.0, %v11921_v7  ;;  %v11467_v42 = vld [vmem:[#allocation7 + $0x58] sm:$0xff]   ;;  %v11468_v20 = vld [vmem:[#allocation7 + $0x60] sm:$0xff]   ;;  %v11470_v23 = vld [vmem:[#allocation7 + $0x70] sm:$0xff]  }
0x138e   : > { %10273 = vmatprep.subr.bf16.mxu0 %v11456_v54  ;;  %v4583_v57 = vpack.c.bf16 %v4498_v36, %v4494_v11  ;;  %v4505_v12 = vmul.f32 %v4473_v41, %v14621_v60  ;;  %v4471_v31 = vmul.f32 0.5, %v4439_v45  ;;  %v4475_v13 = vmul.f32 0.5, %v4443_v33  ;;  %v16529_v60 = vld [vmem:[#allocation41_spill] sm:$0xff]  ;;  %10683 = vmatpush3.bf16.msra.mxu1 %v11464_v28  ;;  %v16536_v61 = vld [vmem:[#allocation34_spill] sm:$0xff] }
0x138f   : > { %v4468_v16 = vmul.f32 0.5, %v4436_v58  ;;  %v4472_v52 = vmul.f32 0.5, %v4440_v51  ;;  %v4438_v32 = vadd.f32 1.0, %v14674_v38  ;;  %v4442_v37 = vadd.f32 1.0, %v11923_v9  ;;  %v11460_v38 = vld [vmem:[%s16483_s10 + $0xf0] sm:$0xff]   ;;  %v11471_v4 = vld [vmem:[#allocation7 + $0x78] sm:$0xff]  }
0x1390   : > { %4836 = vmatmul.mubr.bf16.gmra.mrb[96].mxu0 %v4581_v15  ;;  %v4586_v53 = vpack.c.bf16 %v4505_v12, %v4501_v3  ;;  %v4503_v50 = vmul.f32 %v4471_v31, %v14594_v30  ;;  %v4507_v7 = vmul.f32 %v4475_v13, %v14635_v40  ;;  %v16531_v30 = vld [vmem:[#allocation53_spill] sm:$0xff]  ;;  %v16533_v10 = vmov 0.0   ;;  %v16537_v21 = vld [vmem:[#allocation42_spill] sm:$0xff] }
0x1391   : > { %10274 = vmatpush3.bf16.msra.mxu0 %v11457_v0  ;;  %v4500_v29 = vmul.f32 %v4468_v16, %v16529_v60  ;;  %v4504_v34 = vmul.f32 %v4472_v52, %v14605_v25  ;;  %v4470_v14 = vmul.f32 0.5, %v4438_v32  ;;  %v4474_v62 = vmul.f32 0.5, %v4442_v37  ;;  %v11461_v25 = vld [vmem:[%s16483_s10 + $0xb0] sm:$0xff]   ;;  %10684 = vmatprep.subr.bf16.mxu1 %v16533_v10  ;;  %v14780_v6 = vld [vmem:[#allocation19] ss:$0 sm:$0xff] }
0x1392   : > { %10275 = vmatprep.subr.bf16.mxu0 %v11458_v5  ;;  %4843 = vmatprep.mubr.bf16.mxu0 %v4586_v53  ;;  %v4588_v22 = vpack.c.bf16 %v4507_v7, %v4503_v50  ;;  %v16535_v19 = vmov 0   ;;  %v16416_v56 = vsub.s32 5, %v16536_v61  ;;  %v12177_v49 = vld [vmem:[#allocation10] sm:$0x3f]  ;;  %v16538_v5 = vld [vmem:[#allocation36_spill] sm:$0xff] }
0x1393   : > { %v4585_v35 = vpack.c.bf16 %v4504_v34, %v4500_v29  ;;  %v4502_v26 = vmul.f32 %v4470_v14, %v16530_v39  ;;  %v4506_v9 = vmul.f32 %v4474_v62, %v16531_v30  ;;  %10685 = vmatpush3.bf16.msra.mxu1 %v11465_v2  ;;  %v16539_v7 = vld [vmem:[#allocation44_spill] sm:$0xff] }
0x1394   : > { %4901 = vmatmul.mubr.bf16.gmra.mrb[76].mxu1 %v4583_v57  ;;  %10686 = vmatprep.subr.bf16.mxu1 %v16533_v10  ;;  %v1725_v43 = vrot.slane %v12177_v49, %v16416_v56  ;;  %v16542_v49 = vld [vmem:[#allocation47_spill] sm:$0xff] }
0x1395   : > { %10276 = vmatpush3.bf16.msra.mxu0 %v11459_v24  ;;  %4908 = vmatprep.mubr.bf16.mxu1 %v4588_v22  ;;  %v4587_v40 = vpack.c.bf16 %v4506_v9, %v4502_v26 }
0x1396   : > { %10277 = vmatprep.subr.bf16.mxu0 %v11460_v38  ;;  %v1851_v48 = vadd.f32 %v16537_v21, %v1725_v43  ;;  %v16540_v38 = vld [vmem:[#allocation45_spill] sm:$0xff] }
0x1397   : > { %10687 = vmatpush3.bf16.msra.mxu1 %v11466_v27  ;;  %v16541_v27 = vld [vmem:[#allocation46_spill] sm:$0xff] }
0x1398   : > { %4844 = vmatmul.mubr.bf16.gmra.mrb[100].mxu0 %v4585_v35  ;;  %10688 = vmatprep.subr.bf16.mxu1 %v16533_v10  ;;  %v14786_v3 = vrot.slane %v1851_v48, %v16538_v5 }
0x1399   : > { %10278 = vmatpush3.bf16.msra.mxu0 %v11461_v25  ;;  %5100 = vmatprep.mubr.bf16.mxu0 %v16532_v17 }
0x139a   : > { %10279 = vmatprep.subr.bf16.mxu0 %v11462_v59 }
0x139b   : > { %10689 = vmatpush3.bf16.msra.mxu1 %v11467_v42 }
0x139c   : > { %4909 = vmatmul.mubr.bf16.gmra.mrb[80].mxu1 %v4587_v40  ;;  %10690 = vmatprep.subr.bf16.mxu1 %v16533_v10 }
0x139d   : > { %10280 = vmatpush3.bf16.msra.mxu0 %v11463_v55  ;;  %10698 = vmatprep.mubr.msk.bf16.mxu1 %vm12669_vm1, %v16533_v10 }
0x139f   : > { %10691 = vmatpush3.bf16.msra.mxu1 %v11468_v20 }
0x13a0   : > { %5101 = vmatmul.mubr.bf16.vlgmr.msra.gmra.mrb[104].mxu0 %v16534_v8  ;;  %10692 = vmatprep.subr.bf16.mxu1 %v16533_v10 }
0x13a1   : > { %5589 = vmatprep.mubr.bf16.mxu0 %v16535_v19 }
0x13a3   : > { %10693 = vmatpush3.bf16.msra.mxu1 %v11469_v1 }
0x13a4   : > { %10694 = vmatprep.subr.bf16.mxu1 %v16533_v10 }
0x13a7   : > { %10695 = vmatpush3.bf16.msra.mxu1 %v11470_v23 }
0x13a8   : > { %10696 = vmatprep.subr.bf16.mxu1 %v16533_v10 }
0x13ab   : > { %10697 = vmatpush3.bf16.msra.mxu1 %v11471_v4 }
0x1453   : > { %v10201_v54 = vpop.f32.mrb[88].mxu0 }
0x1454   : > { %v10202_v44 = vpop.f32.mrb[89].mxu0 }
0x1455   : > { %v10203_v18 = vadd.f32 %v10202_v44, %v10201_v54  ;;  %v10204_v46 = vpop.f32.mrb[90].mxu0 }
0x1456   : > { %v10205_v47 = vpop.f32.mrb[91].mxu0 }
0x1457   : > { %v10241_v11 = vpop.f32.mrb[68].mxu1  ;;  %v4822_v63 = vadd.f32 %v10203_v18, %v14780_v6  ;;  %v10206_v36 = vadd.f32 %v10205_v47, %v10204_v46 }
0x1458   : > { %v10242_v0 = vpop.f32.mrb[69].mxu1 }
0x1459   : > { %v10243_v41 = vadd.f32 %v10242_v0, %v10241_v11  ;;  %v10244_v45 = vpop.f32.mrb[70].mxu1  ;;  %v4825_v33 = vadd.f32 %v10206_v36, %v14780_v6 }
0x145a   : > { %v10245_v15 = vpop.f32.mrb[71].mxu1 }
0x145b   : > { %v4887_v58 = vadd.f32 %v10243_v41, %v4822_v63  ;;  %v10246_v51 = vadd.f32 %v10245_v15, %v10244_v45  ;;  %v10207_v57 = vpop.f32.mrb[92].mxu0  ;;  %v16543_v15 = vld [vmem:[#allocation48_spill] sm:$0xff] }
0x145c   : > { %v10208_v12 = vpop.f32.mrb[93].mxu0 }
0x145d   : > { %v4921_v31 = vmul.f32 %v14786_v3, %v4887_v58  ;;  %v4890_v13 = vadd.f32 %v10246_v51, %v4825_v33  ;;  %v10209_v16 = vadd.f32 %v10208_v12, %v10207_v57  ;;  %v10210_v52 = vpop.f32.mrb[94].mxu0 }
0x145e   : > { %v10211_v32 = vpop.f32.mrb[95].mxu0 }
0x145f   : > { %v4922_v37 = vmul.f32 %v14786_v3, %v4890_v13  ;;  %v10247_v24 = vpop.f32.mrb[72].mxu1  ;;  %v4830_v53 = vadd.f32 %v10209_v16, %v14780_v6  ;;  %v10212_v50 = vadd.f32 %v10211_v32, %v10210_v52  ;;  %v14792_v60 = vadd.f32 %v4921_v31, %v16539_v7  ;;  %v16544_v13 = vld [vmem:[#allocation49_spill] sm:$0xff] }
0x1460   : > { %v10248_v29 = vpop.f32.mrb[73].mxu1 }
0x1461   : > { %v10249_v34 = vadd.f32 %v10248_v29, %v10247_v24  ;;  %v10250_v14 = vpop.f32.mrb[74].mxu1  ;;  %v4833_v62 = vadd.f32 %v10212_v50, %v14780_v6  ;;  %5680 = vadd.xlane.f32.xlu0 %v14792_v60  ;;  %v14797_v22 = vadd.f32 %v4922_v37, %v16540_v38 }
0x1462   : > { %v10251_v35 = vpop.f32.mrb[75].mxu1 }
0x1463   : > { %v4895_v39 = vadd.f32 %v10249_v34, %v4830_v53  ;;  %v10252_v26 = vadd.f32 %v10251_v35, %v10250_v14  ;;  %5682 = vadd.xlane.f32.xlu1 %v14797_v22  ;;  %v10213_v30 = vpop.f32.mrb[96].mxu0  ;;  %v9683_v53 = vld [vmem:[%s16490_s30 + $0x1] sm:$0x1]  ;;  %v16545_v35 = vld [vmem:[#allocation50_spill] sm:$0xff] }
0x1464   : > { %v10214_v9 = vpop.f32.mrb[97].mxu0 }
0x1465   : > { %v4923_v25 = vmul.f32 %v14786_v3, %v4895_v39  ;;  %v4898_v40 = vadd.f32 %v10252_v26, %v4833_v62  ;;  %v10215_v59 = vadd.f32 %v10214_v9, %v10213_v30  ;;  %v10216_v55 = vpop.f32.mrb[98].mxu0  ;;  %v16546_v30 = vld [vmem:[#allocation51_spill] sm:$0xff] }
0x1466   : > { %v10217_v17 = vpop.f32.mrb[99].mxu0 }
0x1467   : > { %v4924_v10 = vmul.f32 %v14786_v3, %v4898_v40  ;;  %v10253_v8 = vpop.f32.mrb[76].mxu1  ;;  %v4838_v28 = vadd.f32 %v10215_v59, %v14780_v6  ;;  %v10218_v2 = vadd.f32 %v10217_v17, %v10216_v55  ;;  %v14804_v42 = vadd.f32 %v4923_v25, %v16541_v27 }
0x1468   : > { %v10254_v20 = vpop.f32.mrb[77].mxu1 }
0x1469   : > { %v10255_v1 = vadd.f32 %v10254_v20, %v10253_v8  ;;  %v10256_v23 = vpop.f32.mrb[78].mxu1  ;;  %v4841_v4 = vadd.f32 %v10218_v2, %v14780_v6  ;;  %5684 = vadd.xlane.f32.xlu0 %v14804_v42  ;;  %v14809_v43 = vadd.f32 %v4924_v10, %v16542_v49  ;;  %v11472_v20 = vld [vmem:[%s16491_s11 + $0x180] ss:$24 sps:$4 sm:$0xff]  }
0x146a   : > { %v10257_v54 = vpop.f32.mrb[79].mxu1 }
0x146b   : > { %v4903_v44 = vadd.f32 %v10255_v1, %v4838_v28  ;;  %v10258_v18 = vadd.f32 %v10257_v54, %v10256_v23  ;;  %5686 = vadd.xlane.f32.xlu1 %v14809_v43  ;;  %v10219_v46 = vpop.f32.mrb[100].mxu0  ;;  %v11474_v28 = vld [vmem:[%s16491_s11 + $0x184] ss:$24 sps:$4 sm:$0xff]   ;;  %v11475_v23 = vld [vmem:[%s16491_s11 + $0x188] ss:$24 sps:$4 sm:$0xff]  }
0x146c   : > { %v10220_v47 = vpop.f32.mrb[101].mxu0  ;;  %v11477_v1 = vld [vmem:[%s16491_s11 + $0x18c] ss:$24 sps:$4 sm:$0xff]   ;;  %5557 = vmatprep.subr.bf16.mxu0 %v11474_v28 }
0x146d   : > { %v4925_v21 = vmul.f32 %v14786_v3, %v4903_v44  ;;  %v4906_v48 = vadd.f32 %v10258_v18, %v4841_v4  ;;  %v10221_v11 = vadd.f32 %v10220_v47, %v10219_v46  ;;  %v10222_v63 = vpop.f32.mrb[102].mxu0  ;;  %5558 = vmatpush1.bf16.msra.mxu0 %v11472_v20  ;;  %5598 = vmatprep.subr.bf16.mxu1 %v11477_v1  ;;  %v11480_v54 = vld [vmem:[%s16491_s11 + $0x1b4] ss:$24 sps:$4 sm:$0xff]   ;;  %v11478_v18 = vld [vmem:[%s16491_s11 + $0x1b0] ss:$24 sps:$4 sm:$0xff]  }
0x146e   : > { %v10223_v36 = vpop.f32.mrb[103].mxu0  ;;  %v11483_v46 = vld [vmem:[%s16491_s11 + $0x1bc] ss:$24 sps:$4 sm:$0xff]   ;;  %5559 = vmatprep.subr.bf16.mxu0 %v11480_v54  ;;  %v11513_v28 = vld [vmem:[%s16491_s11 + $0x2ac] ss:$24 sps:$4 sm:$0xff]  }
0x146f   : > { %v4926_v0 = vmul.f32 %v14786_v3, %v4906_v48  ;;  %v10259_v41 = vpop.f32.mrb[80].mxu1  ;;  %v4846_v45 = vadd.f32 %v10221_v11, %v14780_v6  ;;  %v10224_v33 = vadd.f32 %v10223_v36, %v10222_v63  ;;  %v14816_v58 = vadd.f32 %v4925_v21, %v16543_v15  ;;  %v11481_v21 = vld [vmem:[%s16491_s11 + $0x1b8] ss:$24 sps:$4 sm:$0xff]   ;;  %v11486_v63 = vld [vmem:[%s16491_s11 + $0x1e4] ss:$24 sps:$4 sm:$0xff]  }
0x1470   : > { %v10260_v51 = vpop.f32.mrb[81].mxu1 }
0x1471   : > { %v10261_v57 = vadd.f32 %v10260_v51, %v10259_v41  ;;  %v10262_v12 = vpop.f32.mrb[82].mxu1  ;;  %v4849_v31 = vadd.f32 %v10224_v33, %v14780_v6  ;;  %5688 = vadd.xlane.f32.xlu0 %v14816_v58  ;;  %v14821_v16 = vadd.f32 %v4926_v0, %v16544_v13  ;;  %5560 = vmatpush1.bf16.msra.mxu0 %v11478_v18  ;;  %v11484_v41 = vld [vmem:[%s16491_s11 + $0x1e0] ss:$24 sps:$4 sm:$0xff]   ;;  %v11495_v13 = vld [vmem:[%s16491_s11 + $0x21c] ss:$24 sps:$4 sm:$0xff]  }
0x1472   : > { %v10263_v52 = vpop.f32.mrb[83].mxu1  ;;  %5561 = vmatprep.subr.bf16.mxu0 %v11486_v63  ;;  %v11487_v33 = vld [vmem:[%s16491_s11 + $0x1e8] ss:$24 sps:$4 sm:$0xff]   ;;  %v11517_v18 = vld [vmem:[%s16491_s11 + $0x2d8] ss:$24 sps:$4 sm:$0xff]  }
0x1473   : > { %v4911_v32 = vadd.f32 %v10261_v57, %v4846_v45  ;;  %v10264_v37 = vadd.f32 %v10263_v52, %v10262_v12  ;;  %5690 = vadd.xlane.f32.xlu1 %v14821_v16  ;;  %v10281_v24 = vpop.f32.mrb[104].mxu0  ;;  %v11489_v45 = vld [vmem:[%s16491_s11 + $0x1ec] ss:$24 sps:$4 sm:$0xff]  }
0x1474   : > { %v10282_v50 = vpop.f32.mrb[105].mxu0  ;;  %v11492_v57 = vld [vmem:[%s16491_s11 + $0x214] ss:$24 sps:$4 sm:$0xff]  }
0x1475   : > { %v4927_v7 = vmul.f32 %v14786_v3, %v4911_v32  ;;  %v4914_v29 = vadd.f32 %v10264_v37, %v4849_v31  ;;  %v10283_v6 = vadd.f32 %v10282_v50, %v10281_v24  ;;  %v10284_v34 = vpop.f32.mrb[106].mxu0  ;;  %5562 = vmatpush1.bf16.msra.mxu0 %v11484_v41  ;;  %v11490_v31 = vld [vmem:[%s16491_s11 + $0x210] ss:$24 sps:$4 sm:$0xff]  }
0x1476   : > { %v10285_v14 = vpop.f32.mrb[107].mxu0  ;;  %5563 = vmatprep.subr.bf16.mxu0 %v11492_v57  ;;  %v11493_v32 = vld [vmem:[%s16491_s11 + $0x218] ss:$24 sps:$4 sm:$0xff]   ;;  %v11499_v34 = vld [vmem:[%s16491_s11 + $0x248] ss:$24 sps:$4 sm:$0xff]  }
0x1477   : > { %v4928_v62 = vmul.f32 %v14786_v3, %v4914_v29  ;;  %v5103_v38 = vadd.f32 %v10283_v6, %v9683_v53  ;;  %v14830_v39 = vadd.f32 %v4927_v7, %v16545_v35  ;;  %v11498_v53 = vld [vmem:[%s16491_s11 + $0x244] ss:$24 sps:$4 sm:$0xff]   ;;  %v11496_v29 = vld [vmem:[%s16491_s11 + $0x240] ss:$24 sps:$4 sm:$0xff]  }
0x1478   : > { %v11501_v6 = vld [vmem:[%s16491_s11 + $0x24c] ss:$24 sps:$4 sm:$0xff]  }
0x1479   : > { %v9700_v26 = vmul.f32 -1.442695, %v5103_v38  ;;  %5692 = vadd.xlane.f32.xlu0 %v14830_v39  ;;  %v14834_v9 = vadd.f32 %v4928_v62, %v16546_v30  ;;  %5564 = vmatpush1.bf16.msra.mxu0 %v11490_v31  ;;  %v11507_v30 = vld [vmem:[%s16491_s11 + $0x27c] ss:$24 sps:$4 sm:$0xff]  }
0x147a   : > { %5565 = vmatprep.subr.bf16.mxu0 %v11498_v53  ;;  %v11544_v53 = vld [vmem:[#allocation12 + $0xc0] ss:$12 sps:$4 sm:$0xff]  }
0x147b   : > { %11928 = vpow2.f32 %v9700_v26  ;;  %5694 = vadd.xlane.f32.xlu1 %v14834_v9  ;;  %v11502_v26 = vld [vmem:[%s16491_s11 + $0x270] ss:$24 sps:$4 sm:$0xff]  }
0x147d   : > { %5566 = vmatpush1.bf16.msra.mxu0 %v11496_v29  ;;  %v11523_v29 = vld [vmem:[%s16491_s11 + $0x1c0] ss:$24 sps:$4 sm:$0xff]  }
0x1485   : > { %v11929_v25 = vpop.eup %11928 }
0x1486   : > { %v5111_v40 = vadd.f32 1.0, %v11929_v25 }
0x1488   : > { %11930 = vrcp.f32 %v5111_v40  ;;  %v11505_v40 = vld [vmem:[%s16491_s11 + $0x278] ss:$24 sps:$4 sm:$0xff]  }
0x1492   : > { %v11931_v59 = vpop.eup %11930 }
0x1493   : > { %v5114_v55 = vmul.f32 %v11931_v59, %v5103_v38  ;;  %v11504_v38 = vld [vmem:[%s16491_s11 + $0x274] ss:$24 sps:$4 sm:$0xff]  }
0x1494   : > { %5567 = vmatprep.subr.bf16.mxu0 %v11504_v38  ;;  %v11526_v38 = vld [vmem:[%s16491_s11 + $0x1f0] ss:$24 sps:$4 sm:$0xff]  }
0x1495   : > { %v5134_v17 = vpack.c.bf16 %v5114_v55, %v5114_v55  ;;  %5568 = vmatpush1.bf16.msra.mxu0 %v11502_v26  ;;  %v11552_v26 = vld [vmem:[#allocation12 + $0xf0] ss:$12 sps:$4 sm:$0xff]  }
0x1497   : > { %10699 = vmatmul.mubr.bf16.vlgmr.msra.gmra.mrb[84].mxu1 %v5134_v17  ;;  %v11510_v17 = vld [vmem:[%s16491_s11 + $0x2a4] ss:$24 sps:$4 sm:$0xff]  }
0x1498   : > { %5630 = vmatprep.mubr.bf16.mxu1 %v16535_v19  ;;  %5599 = vmatpush1.bf16.msra.mxu1 %v11475_v23  ;;  %v11514_v23 = vld [vmem:[%s16491_s11 + $0x2d0] ss:$24 sps:$4 sm:$0xff]  }
0x1499   : > { %5600 = vmatprep.subr.bf16.mxu1 %v11483_v46  ;;  %5569 = vmatprep.subr.bf16.mxu0 %v11510_v17  ;;  %v11522_v46 = vld [vmem:[%s16491_s11 + $0x194] ss:$24 sps:$4 sm:$0xff]   ;;  %v11532_v17 = vld [vmem:[%s16491_s11 + $0x250] ss:$24 sps:$4 sm:$0xff]  }
0x149c   : > { %5601 = vmatpush1.bf16.msra.mxu1 %v11481_v21  ;;  %v5133_v21 = vld [vmem:[#allocation9 + $0x1] sm:$0x1] }
0x149d   : > { %5602 = vmatprep.subr.bf16.mxu1 %v11489_v45 }
0x14a0   : > { %5603 = vmatpush1.bf16.msra.mxu1 %v11487_v33 }
0x14a1   : > { %5604 = vmatprep.subr.bf16.mxu1 %v11495_v13 }
0x14a4   : > { %5605 = vmatpush1.bf16.msra.mxu1 %v11493_v32  ;;  %v11520_v32 = vld [vmem:[%s16491_s11 + $0x190] ss:$24 sps:$4 sm:$0xff]  }
0x14a5   : > { %5606 = vmatprep.subr.bf16.mxu1 %v11501_v6  ;;  %v11528_v6 = vld [vmem:[%s16491_s11 + $0x1f4] ss:$24 sps:$4 sm:$0xff]  }
0x14a8   : > { %5607 = vmatpush1.bf16.msra.mxu1 %v11499_v34  ;;  %v11548_v34 = vld [vmem:[#allocation12 + $0xd8] ss:$12 sps:$4 sm:$0xff]  }
0x14a9   : > { %5608 = vmatprep.subr.bf16.mxu1 %v11507_v30  ;;  %v11558_v30 = vld [vmem:[#allocation12 + $0x10c] ss:$12 sps:$4 sm:$0xff]  }
0x14ac   : > { %5609 = vmatpush1.bf16.msra.mxu1 %v11505_v40  ;;  %v11534_v40 = vld [vmem:[%s16491_s11 + $0x254] ss:$24 sps:$4 sm:$0xff]  }
0x14ad   : > { %5610 = vmatprep.subr.bf16.mxu1 %v11513_v28  ;;  %v11535_v28 = vld [vmem:[%s16491_s11 + $0x280] ss:$24 sps:$4 sm:$0xff]  }
0x14ee   : > { %v5681_v3 = vpop.xlane.xlu0 %5680 }
0x14ef   : > { %v5696_v10 = vmul.f32 0.0078125, %v5681_v3 }
0x14f0   : > { %v5683_v8 = vpop.xlane.xlu1 %5682 }
0x14f1   : > { %v14842_v2 = vsub.f32 %v14792_v60, %v5696_v10  ;;  %v5697_v27 = vmul.f32 0.0078125, %v5683_v8  ;;  %v11508_v8 = vld [vmem:[%s16491_s11 + $0x2a0] ss:$24 sps:$4 sm:$0xff]  }
0x14f2   : > { %5570 = vmatpush1.bf16.msra.mxu0 %v11508_v8  ;;  %v11560_v8 = vld [vmem:[#allocation12 + $0x120] ss:$12 sps:$4 sm:$0xff]  }
0x14f3   : > { %v14854_v4 = vsub.f32 %v14797_v22, %v5697_v27  ;;  %v5712_v49 = vmul.f32 %v14842_v2, %v14842_v2  ;;  %v11511_v27 = vld [vmem:[%s16491_s11 + $0x2a8] ss:$24 sps:$4 sm:$0xff]  }
0x14f4   : > { %5611 = vmatpush1.bf16.msra.mxu1 %v11511_v27  ;;  %v11540_v27 = vld [vmem:[%s16491_s11 + $0x2b4] ss:$24 sps:$4 sm:$0xff]  }
0x14f5   : > { %5720 = vadd.xlane.f32.xlu0 %v5712_v49  ;;  %v5713_v44 = vmul.f32 %v14854_v4, %v14854_v4  ;;  %v11516_v49 = vld [vmem:[%s16491_s11 + $0x2d4] ss:$24 sps:$4 sm:$0xff]  }
0x14f6   : > { %v5685_v47 = vpop.xlane.xlu0 %5684  ;;  %5571 = vmatprep.subr.bf16.mxu0 %v11516_v49  ;;  %v11541_v49 = vld [vmem:[%s16491_s11 + $0x2e0] ss:$24 sps:$4 sm:$0xff]  }
0x14f7   : > { %v5698_v48 = vmul.f32 0.0078125, %v5685_v47  ;;  %5722 = vadd.xlane.f32.xlu1 %v5713_v44  ;;  %v11519_v44 = vld [vmem:[%s16491_s11 + $0x2dc] ss:$24 sps:$4 sm:$0xff]   ;;  %5572 = vmatpush1.bf16.msra.mxu0 %v11514_v23 }
0x14f8   : > { %v5687_v11 = vpop.xlane.xlu1 %5686  ;;  %5612 = vmatprep.subr.bf16.mxu1 %v11519_v44  ;;  %5639 = vmatprep.subr.bf16.mxu0 %v11522_v46  ;;  %v11546_v47 = vld [vmem:[#allocation12 + $0xc4] ss:$12 sps:$4 sm:$0xff]   ;;  %v11551_v44 = vld [vmem:[#allocation12 + $0xe0] ss:$12 sps:$4 sm:$0xff]  }
0x14f9   : > { %v14876_v36 = vsub.f32 %v14804_v42, %v5698_v48  ;;  %v5699_v0 = vmul.f32 0.0078125, %v5687_v11  ;;  %5613 = vmatpush1.bf16.msra.mxu1 %v11517_v18  ;;  %v12178_v48 = vld [vmem:[%s13462_s26] sm:$0x3]  ;;  %v11543_v23 = vld [vmem:[%s16491_s11 + $0x2e4] ss:$24 sps:$4 sm:$0xff]   ;;  %s16600_s26 = sld [smem:[#allocation70_spill]] }
0x14fa   : > { %5976 = vmatprep.subr.bf16.mxu1 %v11546_v47  ;;  %v5224_v11 = vrot.slane %v12178_v48, 1  ;;  %v11555_v18 = vld [vmem:[#allocation12 + $0xf8] ss:$12 sps:$4 sm:$0xff]   ;;  %v11559_v46 = vld [vmem:[#allocation12 + $0x110] ss:$12 sps:$4 sm:$0xff]  }
0x14fb   : > { %v14888_v15 = vsub.f32 %v14809_v43, %v5699_v0  ;;  %v5714_v51 = vmul.f32 %v14876_v36, %v14876_v36  ;;  %v11563_v47 = vld [vmem:[#allocation12 + $0x128] ss:$12 sps:$4 sm:$0xff]  }
0x14fc   : > { %v11566_v48 = vld [vmem:[#allocation12 + $0x13c] ss:$12 sps:$4 sm:$0xff]  }
0x14fd   : > { %5724 = vadd.xlane.f32.xlu0 %v5714_v51  ;;  %v5715_v12 = vmul.f32 %v14888_v15, %v14888_v15 }
0x14fe   : > { %v5689_v52 = vpop.xlane.xlu0 %5688 }
0x14ff   : > { %v5700_v37 = vmul.f32 0.0078125, %v5689_v52  ;;  %5726 = vadd.xlane.f32.xlu1 %v5715_v12  ;;  %s983_s5 = scalar_lea.vmem %s16600_s26, %s16599_s1 }
0x1500   : > { %v5691_v24 = vpop.xlane.xlu1 %5690 }
0x1501   : > { %v14910_v50 = vsub.f32 %v14816_v58, %v5700_v37  ;;  %v5701_v7 = vmul.f32 0.0078125, %v5691_v24  ;;  %v11525_v24 = vld [vmem:[%s16491_s11 + $0x1c4] ss:$24 sps:$4 sm:$0xff]  }
0x1503   : > { %v14922_v14 = vsub.f32 %v14821_v16, %v5701_v7  ;;  %v5716_v62 = vmul.f32 %v14910_v50, %v14910_v50  ;;  %v11550_v7 = vld [vmem:[#allocation12 + $0xdc] ss:$12 sps:$4 sm:$0xff]  }
0x1505   : > { %5728 = vadd.xlane.f32.xlu0 %v5716_v62  ;;  %v5717_v35 = vmul.f32 %v14922_v14, %v14922_v14  ;;  %v11554_v62 = vld [vmem:[#allocation12 + $0xf4] ss:$12 sps:$4 sm:$0xff]  }
0x1506   : > { %v5693_v25 = vpop.xlane.xlu0 %5692 }
0x1507   : > { %v5702_v59 = vmul.f32 0.0078125, %v5693_v25  ;;  %5730 = vadd.xlane.f32.xlu1 %v5717_v35  ;;  %v11531_v35 = vld [vmem:[%s16491_s11 + $0x224] ss:$24 sps:$4 sm:$0xff]   ;;  %v11529_v25 = vld [vmem:[%s16491_s11 + $0x220] ss:$24 sps:$4 sm:$0xff]  }
0x1508   : > { %v5695_v55 = vpop.xlane.xlu1 %5694 }
0x1509   : > { %v14944_v3 = vsub.f32 %v14830_v39, %v5702_v59  ;;  %v5703_v10 = vmul.f32 0.0078125, %v5695_v55  ;;  %v11556_v59 = vld [vmem:[#allocation12 + $0x108] ss:$12 sps:$4 sm:$0xff]   ;;  %v11562_v55 = vld [vmem:[#allocation12 + $0x124] ss:$12 sps:$4 sm:$0xff]  }
0x150b   : > { %v14956_v20 = vsub.f32 %v14834_v9, %v5703_v10  ;;  %v5718_v1 = vmul.f32 %v14944_v3, %v14944_v3  ;;  %v11537_v10 = vld [vmem:[%s16491_s11 + $0x284] ss:$24 sps:$4 sm:$0xff]  }
0x150d   : > { %5732 = vadd.xlane.f32.xlu0 %v5718_v1  ;;  %v5719_v54 = vmul.f32 %v14956_v20, %v14956_v20  ;;  %v11538_v1 = vld [vmem:[%s16491_s11 + $0x2b0] ss:$24 sps:$4 sm:$0xff]  }
0x150f   : > { %5734 = vadd.xlane.f32.xlu1 %v5719_v54  ;;  %v11547_v54 = vld [vmem:[#allocation12 + $0xc8] ss:$12 sps:$4 sm:$0xff]  }
0x156a   : > { %v5217_v63 = vpop.f32.mrb[84].mxu1 }
0x156b   : > { %v5218_v0 = vadd.f32 %v5217_v63, %v5133_v21  ;;  %v10700_v41 = vpop.f32.mrb[85].mxu1  ;;  %v11564_v21 = vld [vmem:[#allocation12 + $0x138] ss:$12 sps:$4 sm:$0xff]   ;;  %v11570_v63 = vld [vmem:[#allocation12 + $0x154] ss:$12 sps:$4 sm:$0xff]  }
0x156c   : > { %v5220_v45 = vpop.f32.mrb[86].mxu1  ;;  %v11568_v41 = vld [vmem:[#allocation12 + $0x150] ss:$12 sps:$4 sm:$0xff]  }
0x156d   : > { %v5226_v33 = vadd.f32 %v5224_v11, %v5218_v0  ;;  %v10701_v51 = vpop.f32.mrb[87].mxu1  ;;  %v11567_v11 = vld [vmem:[#allocation12 + $0x140] ss:$12 sps:$4 sm:$0xff]   ;;  %v11571_v0 = vld [vmem:[#allocation12 + $0x158] ss:$12 sps:$4 sm:$0xff]  }
0x156e   : > { %v11574_v45 = vld [vmem:[#allocation12 + $0x16c] ss:$12 sps:$4 sm:$0xff]   ;;  %v11572_v51 = vld [vmem:[#allocation12 + $0x168] ss:$12 sps:$4 sm:$0xff]  }
0x156f   : > { %v9709_v57 = vmul.f32 -1.442695, %v5226_v33 }
0x1571   : > { %11932 = vpow2.f32 %v9709_v57 }
0x157b   : > { %v11933_v12 = vpop.eup %11932 }
0x157c   : > { %v5230_v31 = vadd.f32 1.0, %v11933_v12 }
0x157e   : > { %11934 = vrcp.f32 %v5230_v31 }
0x1582   : > { %v5721_v57 = vpop.xlane.xlu0 %5720 }
0x1584   : > { %v5723_v12 = vpop.xlane.xlu1 %5722 }
0x1588   : > { %v11935_v13 = vpop.eup %11934 }
0x1589   : > { %v5233_v52 = vmul.f32 %v11935_v13, %v5226_v33  ;;  %v11575_v33 = vld [vmem:[#allocation12 + $0x170] ss:$12 sps:$4 sm:$0xff]  }
0x158a   : > { %v5725_v31 = vpop.xlane.xlu0 %5724 }
0x158b   : > { %v5285_v37 = vpack.c.bf16 %v5233_v52, %v5233_v52 }
0x158c   : > { %v5727_v13 = vpop.xlane.xlu1 %5726 }
0x158d   : > { %5590 = vmatmul.mubr.bf16.vlgmr.msra.gmra.mrb[108].mxu0 %v5285_v37  ;;  %5631 = vmatmul.mubr.bf16.vlgmr.msra.gmra.mrb[88].mxu1 %v5285_v37 }
0x158e   : > { %5640 = vmatpush1.bf16.msra.mxu0 %v11520_v32  ;;  %5671 = vmatprep.mubr.bf16.mxu0 %v16535_v19  ;;  %v5736_v32 = vmul.f32 0.0078125, %v5721_v57 }
0x158f   : > { %5641 = vmatprep.subr.bf16.mxu0 %v11525_v24  ;;  %5977 = vmatpush1.bf16.msra.mxu1 %v11544_v53  ;;  %v5737_v24 = vmul.f32 0.0078125, %v5723_v12  ;;  %v5738_v53 = vmul.f32 0.0078125, %v5725_v31 }
0x1590   : > { %5978 = vmatprep.subr.bf16.mxu1 %v11550_v7  ;;  %6008 = vmatprep.mubr.bf16.mxu1 %v16535_v19  ;;  %v5739_v7 = vmul.f32 0.0078125, %v5727_v13 }
0x1592   : > { %5642 = vmatpush1.bf16.msra.mxu0 %v11523_v29  ;;  %v5729_v52 = vpop.xlane.xlu0 %5728 }
0x1593   : > { %5643 = vmatprep.subr.bf16.mxu0 %v11528_v6  ;;  %5979 = vmatpush1.bf16.msra.mxu1 %v11548_v34  ;;  %v5744_v6 = vadd.f32 1e-06, %v5736_v32  ;;  %v5740_v34 = vmul.f32 0.0078125, %v5729_v52 }
0x1594   : > { %5980 = vmatprep.subr.bf16.mxu1 %v11554_v62 }
0x1595   : > { %11936 = vrsqrt.f32 %v5744_v6 }
0x1596   : > { %5644 = vmatpush1.bf16.msra.mxu0 %v11526_v38  ;;  %v5745_v38 = vadd.f32 1e-06, %v5737_v24 }
0x1597   : > { %5645 = vmatprep.subr.bf16.mxu0 %v11531_v35  ;;  %5981 = vmatpush1.bf16.msra.mxu1 %v11552_v26  ;;  %v5746_v26 = vadd.f32 1e-06, %v5738_v53 }
0x1598   : > { %5982 = vmatprep.subr.bf16.mxu1 %v11558_v30  ;;  %11938 = vrsqrt.f32 %v5745_v38 }
0x1599   : > { %11940 = vrsqrt.f32 %v5746_v26 }
0x159a   : > { %5646 = vmatpush1.bf16.msra.mxu0 %v11529_v25  ;;  %v5733_v29 = vpop.xlane.xlu0 %5732  ;;  %v5747_v25 = vadd.f32 1e-06, %v5739_v7 }
0x159b   : > { %5647 = vmatprep.subr.bf16.mxu0 %v11534_v40  ;;  %5983 = vmatpush1.bf16.msra.mxu1 %v11556_v59  ;;  %v5742_v30 = vmul.f32 0.0078125, %v5733_v29  ;;  %v5748_v59 = vadd.f32 1e-06, %v5740_v34 }
0x159c   : > { %5984 = vmatprep.subr.bf16.mxu1 %v11562_v55  ;;  %11942 = vrsqrt.f32 %v5747_v25 }
0x159d   : > { %11944 = vrsqrt.f32 %v5748_v59 }
0x159e   : > { %5648 = vmatpush1.bf16.msra.mxu0 %v11532_v17  ;;  %v5750_v17 = vadd.f32 1e-06, %v5742_v30 }
0x159f   : > { %5649 = vmatprep.subr.bf16.mxu0 %v11537_v10  ;;  %5985 = vmatpush1.bf16.msra.mxu1 %v11560_v8  ;;  %v5284_v8 = vld [vmem:[#allocation10 + $0x6] sm:$0x3f] }
0x15a0   : > { %5986 = vmatprep.subr.bf16.mxu1 %v11566_v48 }
0x15a2   : > { %5650 = vmatpush1.bf16.msra.mxu0 %v11535_v28  ;;  %v11937_v28 = vpop.eup %11936 }
0x15a3   : > { %5651 = vmatprep.subr.bf16.mxu0 %v11540_v27  ;;  %5987 = vmatpush1.bf16.msra.mxu1 %v11564_v21  ;;  %v11939_v27 = vpop.eup %11938  ;;  %v5760_v13 = vmul.f32 %v11937_v28, %v14842_v2 }
0x15a4   : > { %5988 = vmatprep.subr.bf16.mxu1 %v11570_v63  ;;  %v5761_v52 = vmul.f32 %v11939_v27, %v14854_v4 }
0x15a6   : > { %5652 = vmatpush1.bf16.msra.mxu0 %v11538_v1  ;;  %v16547_v1 = vld [vmem:[#allocation35_spill] sm:$0xff] }
0x15a7   : > { %5653 = vmatprep.subr.bf16.mxu0 %v11543_v23  ;;  %5989 = vmatpush1.bf16.msra.mxu1 %v11568_v41  ;;  %v5534_v23 = vrot.slane %v5284_v8, %v16547_v1 }
0x15a8   : > { %5990 = vmatprep.subr.bf16.mxu1 %v11574_v45 }
0x15aa   : > { %5654 = vmatpush1.bf16.msra.mxu0 %v11541_v49  ;;  %v11941_v49 = vpop.eup %11940 }
0x15ab   : > { %10702 = vmatprep.subr.bf16.mxu0 %v11547_v54  ;;  %5991 = vmatpush1.bf16.msra.mxu1 %v11572_v51 }
0x15ad   : > { %5672 = vmatmul.mubr.bf16.vlgmr.msra.gmra.mrb[112].mxu0 %v5285_v37  ;;  %v5731_v37 = vpop.xlane.xlu1 %5730 }
0x15ae   : > { %10703 = vmatpush3.bf16.msra.mxu0 %v11547_v54  ;;  %v5741_v35 = vmul.f32 0.0078125, %v5731_v37  ;;  %v5530_v54 = vrot.slane %v5284_v8, %v16538_v5  ;;  %v5762_v37 = vmul.f32 %v11941_v49, %v14876_v36 }
0x15af   : > { %10704 = vmatprep.subr.bf16.mxu0 %v11551_v44 }
0x15b0   : > { %v5749_v55 = vadd.f32 1e-06, %v5741_v35 }
0x15b1   : > { %v5735_v62 = vpop.xlane.xlu1 %5734 }
0x15b2   : > { %10705 = vmatpush3.bf16.msra.mxu0 %v11551_v44  ;;  %v5743_v40 = vmul.f32 0.0078125, %v5735_v62  ;;  %11946 = vrsqrt.f32 %v5749_v55  ;;  %v11943_v44 = vpop.eup %11942 }
0x15b3   : > { %10706 = vmatprep.subr.bf16.mxu0 %v11555_v18  ;;  %11948 = vrsqrt.f32 %v5750_v17  ;;  %v5763_v24 = vmul.f32 %v11943_v44, %v14888_v15 }
0x15b4   : > { %v5751_v10 = vadd.f32 1e-06, %v5743_v40 }
0x15b6   : > { %10707 = vmatpush3.bf16.msra.mxu0 %v11555_v18  ;;  %11950 = vrsqrt.f32 %v5751_v10 }
0x15b7   : > { %10708 = vmatprep.subr.bf16.mxu0 %v11559_v46 }
0x15ba   : > { %10709 = vmatpush3.bf16.msra.mxu0 %v11559_v46 }
0x15bb   : > { %10710 = vmatprep.subr.bf16.mxu0 %v11563_v47 }
0x15be   : > { %10711 = vmatpush3.bf16.msra.mxu0 %v11563_v47  ;;  %v11945_v47 = vpop.eup %11944 }
0x15bf   : > { %10712 = vmatprep.subr.bf16.mxu0 %v11567_v11  ;;  %v5764_v53 = vmul.f32 %v11945_v47, %v14910_v50 }
0x15c2   : > { %10713 = vmatpush3.bf16.msra.mxu0 %v11567_v11  ;;  %v11947_v11 = vpop.eup %11946 }
0x15c3   : > { %10714 = vmatprep.subr.bf16.mxu0 %v11571_v0  ;;  %v11949_v45 = vpop.eup %11948  ;;  %v5765_v29 = vmul.f32 %v11947_v11, %v14922_v14 }
0x15c4   : > { %v11951_v12 = vpop.eup %11950  ;;  %v5766_v6 = vmul.f32 %v11949_v45, %v14944_v3 }
0x15c5   : > { %v5767_v34 = vmul.f32 %v11951_v12, %v14956_v20 }
0x15c6   : > { %10715 = vmatpush3.bf16.msra.mxu0 %v11571_v0 }
0x15c7   : > { %10716 = vmatprep.subr.bf16.mxu0 %v11575_v33 }
0x15ca   : > { %10717 = vmatpush3.bf16.msra.mxu0 %v11575_v33 }
0x1660   : > { %v5591_v18 = vpop.f32.mrb[108].mxu0  ;;  %v15027_v46 = vpop.f32.mrb[88].mxu1 }
0x1661   : > { %v5593_v21 = vpop.f32.mrb[109].mxu0  ;;  %v15029_v48 = vpop.f32.mrb[89].mxu1  ;;  %v5592_v33 = vadd.f32 %v5591_v18, %v5530_v54  ;;  %v5827_v54 = vld [vmem:[#allocation13 + $0x3] sm:$0x7] }
0x1662   : > { %16548 = vst [vmem:[#allocation41_spill] sm:$0xff] %v15029_v48  ;;  %v5594_v63 = vadd.f32 %v5593_v21, %v5534_v23  ;;  %v5595_v0 = vpop.f32.mrb[110].mxu0  ;;  %v5636_v41 = vpop.f32.mrb[90].mxu1  ;;  %v15049_v44 = vrot.slane %v5827_v54, %v16538_v5  ;;  %v15052_v47 = vrot.slane %v5827_v54, %v16547_v1  ;;  %v16551_v21 = vld [vmem:[#allocation43_spill] sm:$0xff] }
0x1663   : > { %v5596_v51 = vpop.f32.mrb[111].mxu0  ;;  %v5637_v57 = vpop.f32.mrb[91].mxu1  ;;  %v5784_v7 = vrot.slane %v5592_v33, %v16538_v5  ;;  %v5844_v11 = vrot.slane %v5827_v54, %v16551_v21 }
0x1664   : > { %v5768_v31 = vadd.f32 1.0, %v5594_v63 }
0x1666   : > { %v5772_v32 = vrot.slane %v5768_v31, %v16538_v5 }
0x1668   : > { %v5773_v62 = vmul.f32 %v5772_v32, %v5760_v13  ;;  %v5774_v2 = vmul.f32 %v5772_v32, %v5761_v52  ;;  %v5775_v38 = vmul.f32 %v5772_v32, %v5762_v37  ;;  %v5776_v4 = vmul.f32 %v5772_v32, %v5763_v24 }
0x1669   : > { %v5777_v35 = vmul.f32 %v5772_v32, %v5764_v53  ;;  %v5778_v26 = vmul.f32 %v5772_v32, %v5765_v29  ;;  %v5779_v30 = vmul.f32 %v5772_v32, %v5766_v6  ;;  %v5780_v36 = vmul.f32 %v5772_v32, %v5767_v34 }
0x166a   : > { %v5785_v25 = vadd.f32 %v5784_v7, %v5773_v62  ;;  %v5786_v15 = vadd.f32 %v5784_v7, %v5774_v2  ;;  %v5787_v40 = vadd.f32 %v5784_v7, %v5775_v38  ;;  %v5788_v50 = vadd.f32 %v5784_v7, %v5776_v4 }
0x166b   : > { %v5789_v59 = vadd.f32 %v5784_v7, %v5777_v35  ;;  %v5790_v55 = vadd.f32 %v5784_v7, %v5778_v26  ;;  %v5791_v17 = vadd.f32 %v5784_v7, %v5779_v30  ;;  %v5792_v14 = vadd.f32 %v5784_v7, %v5780_v36 }
0x166c   : > { %v5828_v10 = vpack.c.bf16 %v5786_v15, %v5785_v25  ;;  %v5829_v3 = vpack.c.bf16 %v5788_v50, %v5787_v40 }
0x166d   : > { %v5830_v8 = vpack.c.bf16 %v5790_v55, %v5789_v59  ;;  %v5831_v20 = vpack.c.bf16 %v5792_v14, %v5791_v17 }
0x166e   : > { %6009 = vmatmul.mubr.bf16.vlgmr.msra.gmra.mrb[92].mxu1 %v5828_v10  ;;  %10718 = vmatprep.mubr.bf16.mxu0 %v5828_v10 }
0x166f   : > { %10719 = vmatmul.mubr.bf16.vlgmr.msra.gmra.mrb[116].mxu0 %v5829_v3  ;;  %6018 = vmatprep.mubr.bf16.mxu1 %v16535_v19 }
0x1670   : > { %10722 = vmatprep.mubr.bf16.mxu0 %v5830_v8 }
0x1676   : > { %6019 = vmatmul.mubr.bf16.gmra.mrb[96].mxu1 %v5829_v3 }
0x1677   : > { %10723 = vmatmul.mubr.bf16.gmra.mrb[120].mxu0 %v5831_v20  ;;  %6028 = vmatprep.mubr.bf16.mxu1 %v16535_v19 }
0x167e   : > { %6029 = vmatmul.mubr.bf16.gmra.mrb[100].mxu1 %v5830_v8 }
0x167f   : > { %6038 = vmatprep.mubr.bf16.mxu1 %v16535_v19 }
0x1680   : > { %v15044_v28 = vpop.f32.mrb[112].mxu0 }
0x1681   : > { %16549 = vst [vmem:[#allocation40_spill] sm:$0xff] %v15044_v28  ;;  %v15046_v27 = vpop.f32.mrb[113].mxu0 }
0x1682   : > { %16550 = vst [vmem:[#allocation53_spill] sm:$0xff] %v15046_v27  ;;  %v5677_v23 = vpop.f32.mrb[114].mxu0 }
0x1683   : > { %v5678_v49 = vpop.f32.mrb[115].mxu0 }
0x1686   : > { %6039 = vmatmul.mubr.bf16.gmra.mrb[104].mxu1 %v5831_v20 }
0x1741   : > { %v6010_v18 = vpop.f32.mrb[92].mxu1 }
0x1742   : > { %v6012_v63 = vpop.f32.mrb[93].mxu1  ;;  %v10720_v0 = vpop.f32.mrb[116].mxu0  ;;  %v6011_v33 = vadd.f32 %v6010_v18, %v15049_v44 }
0x1743   : > { %v6014_v41 = vpop.f32.mrb[94].mxu1  ;;  %v6083_v45 = vpop.f32.mrb[117].mxu0  ;;  %v6013_v31 = vadd.f32 %v6012_v63, %v15052_v47  ;;  %v6092_v13 = vadd.f32 %v10720_v0, %v5844_v11 }
0x1744   : > { %v6015_v51 = vadd.f32 %v6014_v41, %v15049_v44  ;;  %v6016_v57 = vpop.f32.mrb[95].mxu1  ;;  %v10721_v12 = vpop.f32.mrb[118].mxu0  ;;  %v6084_v53 = vadd.f32 %v6083_v45, %v5844_v11 }
0x1745   : > { %v6017_v52 = vadd.f32 %v6016_v57, %v15052_v47  ;;  %v6095_v32 = vadd.f32 %v10721_v12, %v5844_v11  ;;  %v6086_v37 = vpop.f32.mrb[119].mxu0 }
0x1746   : > { %v15059_v24 = vpack.c.bf16 %v6015_v51, %v6011_v33  ;;  %v6087_v7 = vadd.f32 %v6086_v37, %v5844_v11 }
0x1747   : > { %v15061_v29 = vpack.c.bf16 %v6017_v52, %v6013_v31  ;;  %v15063_v6 = vpack.c.bf16 %v6095_v32, %v6092_v13 }
0x1748   : > { %v15065_v34 = vpack.c.bf16 %v6087_v7, %v6084_v53  ;;  %10734 = vmatprep.mubr.msk.bf16.mxu1 %vm2296_vm2, %v15059_v24 }
0x1749   : > { %v6020_v62 = vpop.f32.mrb[96].mxu1  ;;  %10918 = vmatprep.subr.msk.bf16.mxu1 %vm2296_vm2, %v15061_v29  ;;  %v6135_v2 = vsel %vm2296_vm2, %v15061_v29, 0 }
0x174a   : > { %v6022_v38 = vpop.f32.mrb[97].mxu1  ;;  %v10724_v4 = vpop.f32.mrb[120].mxu0  ;;  %10727 = vmatpush3.bf16.xpose.msra.mxu1 %v6135_v2  ;;  %10742 = vmatprep.subr.bf16.mxu0 %v15065_v34  ;;  %v6021_v30 = vadd.f32 %v6020_v62, %v15049_v44 }
0x174b   : > { %v6024_v35 = vpop.f32.mrb[98].mxu1  ;;  %v6099_v26 = vpop.f32.mrb[121].mxu0  ;;  %10743 = vmatpush3.bf16.msra.mxu0 %v15065_v34  ;;  %v6023_v40 = vadd.f32 %v6022_v38, %v15052_v47  ;;  %v6108_v50 = vadd.f32 %v10724_v4, %v5844_v11 }
0x174c   : > { %v6025_v36 = vadd.f32 %v6024_v35, %v15049_v44  ;;  %v6026_v25 = vpop.f32.mrb[99].mxu1  ;;  %v10725_v15 = vpop.f32.mrb[122].mxu0  ;;  %10744 = vmatprep.subr.bf16.mxu0 %v15063_v6  ;;  %v6100_v10 = vadd.f32 %v6099_v26, %v5844_v11 }
0x174d   : > { %v6027_v59 = vadd.f32 %v6026_v25, %v15052_v47  ;;  %v6111_v55 = vadd.f32 %v10725_v15, %v5844_v11  ;;  %v6102_v17 = vpop.f32.mrb[123].mxu0 }
0x174e   : > { %v15080_v14 = vpack.c.bf16 %v6025_v36, %v6021_v30  ;;  %v6103_v3 = vadd.f32 %v6102_v17, %v5844_v11 }
0x174f   : > { %v15082_v8 = vpack.c.bf16 %v6027_v59, %v6023_v40  ;;  %v15084_v20 = vpack.c.bf16 %v6111_v55, %v6108_v50  ;;  %10745 = vmatpush3.bf16.msra.mxu0 %v15063_v6 }
0x1750   : > { %v15087_v23 = vpack.c.bf16 %v6103_v3, %v6100_v10 }
0x1751   : > { %v6030_v49 = vpop.f32.mrb[100].mxu1  ;;  %10919 = vmatprep.subr.msk.bf16.mxu1 %vm2296_vm2, %v15082_v8  ;;  %v6138_v54 = vsel %vm2296_vm2, %v15082_v8, 0 }
0x1752   : > { %v6032_v18 = vpop.f32.mrb[101].mxu1  ;;  %10729 = vmatpush3.bf16.xpose.msra.mxu1 %v6138_v54  ;;  %10746 = vmatprep.subr.bf16.mxu0 %v15087_v23  ;;  %v6031_v63 = vadd.f32 %v6030_v49, %v15049_v44 }
0x1753   : > { %v6034_v11 = vpop.f32.mrb[102].mxu1  ;;  %10747 = vmatpush3.bf16.msra.mxu0 %v15087_v23  ;;  %v6033_v45 = vadd.f32 %v6032_v18, %v15052_v47 }
0x1754   : > { %v6035_v0 = vadd.f32 %v6034_v11, %v15049_v44  ;;  %v6036_v41 = vpop.f32.mrb[103].mxu1  ;;  %10748 = vmatprep.subr.bf16.mxu0 %v15084_v20 }
0x1755   : > { %v6037_v33 = vadd.f32 %v6036_v41, %v15052_v47 }
0x1756   : > { %v15100_v51 = vpack.c.bf16 %v6035_v0, %v6031_v63 }
0x1757   : > { %v15102_v57 = vpack.c.bf16 %v6037_v33, %v6033_v45  ;;  %10749 = vmatpush3.bf16.msra.mxu0 %v15084_v20 }
0x1759   : > { %v6040_v12 = vpop.f32.mrb[104].mxu1  ;;  %10920 = vmatprep.subr.msk.bf16.mxu1 %vm2296_vm2, %v15102_v57  ;;  %v6141_v31 = vsel %vm2296_vm2, %v15102_v57, 0 }
0x175a   : > { %v6042_v13 = vpop.f32.mrb[105].mxu1  ;;  %10731 = vmatpush3.bf16.xpose.msra.mxu1 %v6141_v31  ;;  %v6041_v32 = vadd.f32 %v6040_v12, %v15049_v44 }
0x175b   : > { %v6044_v52 = vpop.f32.mrb[106].mxu1  ;;  %v6043_v7 = vadd.f32 %v6042_v13, %v15052_v47 }
0x175c   : > { %v6045_v37 = vadd.f32 %v6044_v52, %v15049_v44  ;;  %v6046_v53 = vpop.f32.mrb[107].mxu1 }
0x175d   : > { %v6047_v62 = vadd.f32 %v6046_v53, %v15052_v47 }
0x175e   : > { %v15113_v2 = vpack.c.bf16 %v6045_v37, %v6041_v32 }
0x175f   : > { %v15115_v38 = vpack.c.bf16 %v6047_v62, %v6043_v7 }
0x1761   : > { %10921 = vmatprep.subr.msk.bf16.mxu1 %vm2296_vm2, %v15115_v38  ;;  %v6144_v4 = vsel %vm2296_vm2, %v15115_v38, 0 }
0x1762   : > { %10733 = vmatpush3.bf16.xpose.msra.mxu1 %v6144_v4 }
0x1769   : > { %10735 = vmatmul.mubr.msk.bf16.vlgmr.msra.gmra.mrb[108].mxu1 %vm2296_vm2, %v15080_v14 }
0x176a   : > { %10738 = vmatprep.mubr.msk.bf16.mxu1 %vm2296_vm2, %v15100_v51 }
0x1771   : > { %10739 = vmatmul.mubr.msk.bf16.gmra.mrb[112].mxu1 %vm2296_vm2, %v15113_v2 }
0x183c   : > { %v10736_v44 = vpop.f32.mrb[108].mxu1 }
0x183d   : > { %v6180_v47 = vpop.f32.mrb[109].mxu1  ;;  %v6213_v36 = vmul.f32 0.17677669, %v10736_v44 }
0x183e   : > { %v6211_v35 = vmul.f32 0.17677669, %v6180_v47  ;;  %v10737_v26 = vpop.f32.mrb[110].mxu1 }
0x183f   : > { %v6183_v30 = vpop.f32.mrb[111].mxu1  ;;  %v6214_v40 = vmul.f32 0.17677669, %v10737_v26  ;;  %v6225_v55 = vsel %vm2394_vm3, %v6213_v36, -inf }
0x1840   : > { %v6212_v25 = vmul.f32 0.17677669, %v6183_v30  ;;  %v6219_v15 = vsel %vm2394_vm3, %v6211_v35, -inf }
0x1841   : > { %6220 = vmax.xlane.f32.xlu0 %v6219_v15  ;;  %v6228_v49 = vsel %vm2394_vm3, %v6214_v40, -inf }
0x1842   : > { %v6222_v50 = vsel %vm2394_vm3, %v6212_v25, -inf }
0x1843   : > { %6223 = vmax.xlane.f32.xlu1 %v6222_v50 }
0x1844   : > { %v10740_v59 = vpop.f32.mrb[112].mxu1 }
0x1845   : > { %6226 = vmax.xlane.f32.xlu0 %v6225_v55  ;;  %v6196_v17 = vpop.f32.mrb[113].mxu1  ;;  %v6217_v18 = vmul.f32 0.17677669, %v10740_v59 }
0x1846   : > { %v6215_v10 = vmul.f32 0.17677669, %v6196_v17  ;;  %v10741_v3 = vpop.f32.mrb[114].mxu1 }
0x1847   : > { %6229 = vmax.xlane.f32.xlu1 %v6228_v49  ;;  %v6199_v54 = vpop.f32.mrb[115].mxu1  ;;  %v6218_v0 = vmul.f32 0.17677669, %v10741_v3  ;;  %v6237_v45 = vsel %vm2394_vm3, %v6217_v18, -inf }
0x1848   : > { %v6216_v11 = vmul.f32 0.17677669, %v6199_v54  ;;  %v6231_v63 = vsel %vm2394_vm3, %v6215_v10, -inf }
0x1849   : > { %6232 = vmax.xlane.f32.xlu0 %v6231_v63  ;;  %v6240_v33 = vsel %vm2394_vm3, %v6218_v0, -inf }
0x184a   : > { %v6234_v41 = vsel %vm2394_vm3, %v6216_v11, -inf }
0x184b   : > { %6235 = vmax.xlane.f32.xlu1 %v6234_v41 }
0x184d   : > { %6238 = vmax.xlane.f32.xlu0 %v6237_v45 }
0x184f   : > { %6241 = vmax.xlane.f32.xlu1 %v6240_v33 }
0x18ce   : > { %v6221_v12 = vpop.xlane.xlu0 %6220 }
0x18cf   : > { %v6243_v31 = vsub.f32 %v6211_v35, %v6221_v12 }
0x18d0   : > { %v6224_v13 = vpop.xlane.xlu1 %6223 }
0x18d1   : > { %v6244_v32 = vsub.f32 %v6212_v25, %v6224_v13  ;;  %v6251_v53 = vmul.f32 1.442695, %v6243_v31 }
0x18d2   : > { %v6227_v52 = vpop.xlane.xlu0 %6226 }
0x18d3   : > { %v6245_v37 = vsub.f32 %v6213_v36, %v6227_v52  ;;  %v6253_v47 = vmul.f32 1.442695, %v6244_v32 }
0x18d4   : > { %v6230_v7 = vpop.xlane.xlu1 %6229 }
0x18d5   : > { %v6255_v62 = vmul.f32 1.442695, %v6245_v37  ;;  %v6246_v4 = vsub.f32 %v6214_v40, %v6230_v7 }
0x18d6   : > { %v6233_v44 = vpop.xlane.xlu0 %6232 }
0x18d7   : > { %11952 = vpow2.f32 %v6255_v62  ;;  %v6257_v26 = vmul.f32 1.442695, %v6246_v4  ;;  %v6247_v30 = vsub.f32 %v6215_v10, %v6233_v44 }
0x18d8   : > { %11954 = vpow2.f32 %v6251_v53  ;;  %v6236_v45 = vpop.xlane.xlu1 %6235 }
0x18d9   : > { %11956 = vpow2.f32 %v6257_v26  ;;  %v6259_v59 = vmul.f32 1.442695, %v6247_v30  ;;  %v6248_v31 = vsub.f32 %v6216_v11, %v6236_v45 }
0x18da   : > { %v6239_v15 = vpop.xlane.xlu0 %6238  ;;  %11958 = vpow2.f32 %v6253_v47 }
0x18db   : > { %v6249_v50 = vsub.f32 %v6217_v18, %v6239_v15  ;;  %v6261_v52 = vmul.f32 1.442695, %v6248_v31 }
0x18dc   : > { %v6242_v33 = vpop.xlane.xlu1 %6241 }
0x18dd   : > { %v6263_v35 = vmul.f32 1.442695, %v6249_v50  ;;  %v6250_v12 = vsub.f32 %v6218_v0, %v6242_v33 }
0x18df   : > { %11960 = vpow2.f32 %v6263_v35  ;;  %v6265_v13 = vmul.f32 1.442695, %v6250_v12 }
0x18e0   : > { %11962 = vpow2.f32 %v6259_v59 }
0x18e1   : > { %v11953_v55 = vpop.eup %11952  ;;  %11964 = vpow2.f32 %v6265_v13 }
0x18e2   : > { %v11955_v36 = vpop.eup %11954  ;;  %v6273_v25 = vsel %vm2394_vm3, %v11953_v55, 0.0  ;;  %11966 = vpow2.f32 %v6261_v52 }
0x18e3   : > { %v11957_v17 = vpop.eup %11956  ;;  %6274 = vadd.xlane.f32.xlu0 %v6273_v25  ;;  %v6267_v49 = vsel %vm2394_vm3, %v11955_v36, 0.0 }
0x18e4   : > { %v6276_v40 = vsel %vm2394_vm3, %v11957_v17, 0.0  ;;  %v11959_v3 = vpop.eup %11958 }
0x18e5   : > { %6277 = vadd.xlane.f32.xlu1 %v6276_v40  ;;  %v6270_v10 = vsel %vm2394_vm3, %v11959_v3, 0.0 }
0x18e7   : > { %6268 = vadd.xlane.f32.xlu0 %v6267_v49 }
0x18e9   : > { %v15139_v54 = vpop.eup %11960  ;;  %6271 = vadd.xlane.f32.xlu1 %v6270_v10 }
0x18ea   : > { %v6285_v18 = vsel %vm2394_vm3, %v15139_v54, 0.0  ;;  %v15143_v63 = vpop.eup %11962 }
0x18eb   : > { %6286 = vadd.xlane.f32.xlu0 %v6285_v18  ;;  %v6279_v41 = vsel %vm2394_vm3, %v15143_v63, 0.0  ;;  %v11965_v32 = vpop.eup %11964 }
0x18ec   : > { %v6288_v37 = vsel %vm2394_vm3, %v11965_v32, 0.0  ;;  %v11967_v53 = vpop.eup %11966 }
0x18ed   : > { %v6282_v7 = vsel %vm2394_vm3, %v11967_v53, 0.0 }
0x18ef   : > { %6280 = vadd.xlane.f32.xlu0 %v6279_v41 }
0x18fa   : > { %6410 = vrot.lane.b32.xlu1 %v15082_v8, %s12671_s8 }
0x18fe   : > { %6412 = vrot.lane.b32.xlu1 %v15102_v57, %s12671_s8 }
0x1905   : > { %6408 = vrot.lane.b32.xlu0 %v15061_v29, %s12671_s8 }
0x1909   : > { %6396 = vrot.lane.b32.xlu0 %v15059_v24, %s12671_s8 }
0x190d   : > { %6400 = vrot.lane.b32.xlu0 %v15100_v51, %s12671_s8 }
0x1922   : > { %6289 = vadd.xlane.f32.xlu1 %v6288_v37 }
0x1926   : > { %6283 = vadd.xlane.f32.xlu1 %v6282_v7 }
0x1937   : > { %6414 = vrot.lane.b32.xlu1 %v15115_v38, %s12671_s8 }
0x193b   : > { %6398 = vrot.lane.b32.xlu1 %v15080_v14, %s12671_s8 }
0x193f   : > { %6402 = vrot.lane.b32.xlu1 %v15113_v2, %s12671_s8 }
0x1970   : > { %v6275_v11 = vpop.xlane.xlu0 %6274 }
0x1972   : > { %v6278_v0 = vpop.xlane.xlu1 %6277 }
0x1973   : > { %11968 = vrcp.f32 %v6278_v0 }
0x1974   : > { %v6269_v62 = vpop.xlane.xlu0 %6268 }
0x1975   : > { %11970 = vrcp.f32 %v6269_v62 }
0x1976   : > { %11972 = vrcp.f32 %v6275_v11  ;;  %v6272_v4 = vpop.xlane.xlu1 %6271 }
0x1977   : > { %11974 = vrcp.f32 %v6272_v4 }
0x1978   : > { %v6287_v44 = vpop.xlane.xlu0 %6286 }
0x197a   : > { %v6411_v45 = vpop.permute.xlu1 %6410 }
0x197b   : > { %v6432_v33 = vsel %vm2296_vm2, %v6411_v45, 0 }
0x197c   : > { %v6281_v47 = vpop.xlane.xlu0 %6280 }
0x197d   : > { %v11969_v26 = vpop.eup %11968 }
0x197e   : > { %v6302_v35 = vmul.f32 %v11969_v26, %v11957_v17  ;;  %v6413_v17 = vpop.permute.xlu1 %6412 }
0x197f   : > { %v11971_v30 = vpop.eup %11970 }
0x1980   : > { %v11973_v15 = vpop.eup %11972  ;;  %v6409_v50 = vpop.permute.xlu0 %6408  ;;  %v6299_v25 = vmul.f32 %v11971_v30, %v11955_v36 }
0x1981   : > { %v11975_v59 = vpop.eup %11974  ;;  %10922 = vmatprep.subr.msk.bf16.mxu0 %vm2296_vm2, %v6409_v50  ;;  %v6301_v49 = vmul.f32 %v11973_v15, %v11953_v55  ;;  %v6429_v41 = vsel %vm2296_vm2, %v6409_v50, 0  ;;  %v6435_v55 = vsel %vm2296_vm2, %v6413_v17, 0 }
0x1982   : > { %v6300_v40 = vmul.f32 %v11975_v59, %v11959_v3 }
0x1983   : > { %v6308_v18 = vpack.c.bf16 %v6302_v35, %v6301_v49 }
0x1984   : > { %v6307_v10 = vpack.c.bf16 %v6300_v40, %v6299_v25  ;;  %v6397_v26 = vpop.permute.xlu0 %6396 }
0x1986   : > { %10750 = vmatprep.mubr.msk.bf16.mxu0 %vm2394_vm3, %v6307_v10 }
0x1987   : > { %10751 = vmatmul.mubr.msk.bf16.vlgmr.msra.gmra.mrb[124].mxu0 %vm2394_vm3, %v6308_v18 }
0x1988   : > { %10759 = vmatpush3.bf16.xpose.msra.mxu0 %v6429_v41  ;;  %v6401_v15 = vpop.permute.xlu0 %6400 }
0x1989   : > { %10923 = vmatprep.subr.msk.bf16.mxu0 %vm2296_vm2, %v6411_v45 }
0x1990   : > { %10761 = vmatpush3.bf16.xpose.msra.mxu0 %v6432_v33 }
0x1991   : > { %10924 = vmatprep.subr.msk.bf16.mxu0 %vm2296_vm2, %v6413_v17 }
0x1998   : > { %10763 = vmatpush3.bf16.xpose.msra.mxu0 %v6435_v55 }
0x19af   : > { %v6290_v36 = vpop.xlane.xlu1 %6289 }
0x19b0   : > { %11976 = vrcp.f32 %v6290_v36 }
0x19b1   : > { %11978 = vrcp.f32 %v6281_v47 }
0x19b2   : > { %11980 = vrcp.f32 %v6287_v44 }
0x19b3   : > { %v6284_v3 = vpop.xlane.xlu1 %6283 }
0x19b4   : > { %11982 = vrcp.f32 %v6284_v3 }
0x19b7   : > { %v6415_v12 = vpop.permute.xlu1 %6414 }
0x19b8   : > { %10925 = vmatprep.subr.msk.bf16.mxu0 %vm2296_vm2, %v6415_v12  ;;  %v6438_v31 = vsel %vm2296_vm2, %v6415_v12, 0 }
0x19b9   : > { %10765 = vmatpush3.bf16.xpose.msra.mxu0 %v6438_v31 }
0x19ba   : > { %v11977_v13 = vpop.eup %11976 }
0x19bb   : > { %v11979_v52 = vpop.eup %11978  ;;  %v6306_v11 = vmul.f32 %v11977_v13, %v11965_v32  ;;  %v6399_v30 = vpop.permute.xlu1 %6398 }
0x19bc   : > { %v11981_v37 = vpop.eup %11980  ;;  %v6303_v0 = vmul.f32 %v11979_v52, %v15143_v63 }
0x19bd   : > { %v6305_v4 = vmul.f32 %v11981_v37, %v15139_v54 }
0x19be   : > { %v11983_v7 = vpop.eup %11982 }
0x19bf   : > { %v6304_v62 = vmul.f32 %v11983_v7, %v11967_v53  ;;  %v6310_v44 = vpack.c.bf16 %v6306_v11, %v6305_v4  ;;  %v6403_v32 = vpop.permute.xlu1 %6402 }
0x19c1   : > { %v6309_v47 = vpack.c.bf16 %v6304_v62, %v6303_v0 }
0x19c3   : > { %10754 = vmatprep.mubr.msk.bf16.mxu0 %vm2394_vm3, %v6309_v47 }
0x19c4   : > { %10755 = vmatmul.mubr.msk.bf16.gmra.mrb[128].mxu0 %vm2394_vm3, %v6310_v44 }
0x19c5   : > { %10766 = vmatprep.mubr.msk.bf16.mxu0 %vm2296_vm2, %v6397_v26 }
0x19cc   : > { %10767 = vmatmul.mubr.msk.bf16.vlgmr.msra.gmra.mrb[132].mxu0 %vm2296_vm2, %v6399_v30 }
0x19cd   : > { %10770 = vmatprep.mubr.msk.bf16.mxu0 %vm2296_vm2, %v6401_v15 }
0x19d4   : > { %10771 = vmatmul.mubr.msk.bf16.gmra.mrb[136].mxu0 %vm2296_vm2, %v6403_v32 }
0x1a5a   : > { %v15183_v63 = vpop.f32.mrb[124].mxu0 }
0x1a5b   : > { %v15185_v54 = vpop.f32.mrb[125].mxu0 }
0x1a5c   : > { %v15187_v53 = vpop.f32.mrb[126].mxu0 }
0x1a5d   : > { %v15189_v50 = vpop.f32.mrb[127].mxu0 }
0x1a97   : > { %v15191_v59 = vpop.f32.mrb[128].mxu0 }
0x1a98   : > { %v15193_v35 = vpop.f32.mrb[129].mxu0 }
0x1a99   : > { %v15195_v25 = vpop.f32.mrb[130].mxu0 }
0x1a9a   : > { %v15197_v40 = vpop.f32.mrb[131].mxu0 }
0x1a9f   : > { %v10768_v49 = vpop.f32.mrb[132].mxu0 }
0x1aa0   : > { %v6507_v10 = vmul.f32 0.17677669, %v10768_v49  ;;  %v6474_v18 = vpop.f32.mrb[133].mxu0 }
0x1aa1   : > { %v10769_v41 = vpop.f32.mrb[134].mxu0  ;;  %v6505_v45 = vmul.f32 0.17677669, %v6474_v18 }
0x1aa2   : > { %v6477_v33 = vpop.f32.mrb[135].mxu0  ;;  %v6519_v17 = vsel %vm2394_vm3, %v6507_v10, -inf  ;;  %v6508_v3 = vmul.f32 0.17677669, %v10769_v41 }
0x1aa3   : > { %v6506_v55 = vmul.f32 0.17677669, %v6477_v33  ;;  %6520 = vmax.xlane.f32.xlu0 %v6519_v17  ;;  %v6513_v12 = vsel %vm2394_vm3, %v6505_v45, -inf }
0x1aa4   : > { %v6522_v11 = vsel %vm2394_vm3, %v6508_v3, -inf }
0x1aa5   : > { %v6516_v36 = vsel %vm2394_vm3, %v6506_v55, -inf }
0x1aa6   : > { %6517 = vmax.xlane.f32.xlu1 %v6516_v36 }
0x1aa7   : > { %6514 = vmax.xlane.f32.xlu0 %v6513_v12  ;;  %v10772_v31 = vpop.f32.mrb[136].mxu0 }
0x1aa8   : > { %v6490_v13 = vpop.f32.mrb[137].mxu0  ;;  %v6511_v37 = vmul.f32 0.17677669, %v10772_v31 }
0x1aa9   : > { %v10773_v52 = vpop.f32.mrb[138].mxu0  ;;  %v6509_v0 = vmul.f32 0.17677669, %v6490_v13 }
0x1aaa   : > { %v6493_v7 = vpop.f32.mrb[139].mxu0  ;;  %v6531_v62 = vsel %vm2394_vm3, %v6511_v37, -inf  ;;  %v6512_v47 = vmul.f32 0.17677669, %v10773_v52 }
0x1aab   : > { %6523 = vmax.xlane.f32.xlu0 %v6522_v11  ;;  %v6525_v4 = vsel %vm2394_vm3, %v6509_v0, -inf  ;;  %v15211_v44 = vmul.f32 0.17677669, %v6493_v7 }
0x1aac   : > { %v6534_v26 = vsel %vm2394_vm3, %v6512_v47, -inf }
0x1aad   : > { %v6528_v30 = vsel %vm2394_vm3, %v15211_v44, -inf }
0x1aaf   : > { %6532 = vmax.xlane.f32.xlu0 %v6531_v62 }
0x1ab3   : > { %6526 = vmax.xlane.f32.xlu0 %v6525_v4 }
0x1ab7   : > { %6611 = vrot.lane.b32.xlu1 %v15063_v6, %s12671_s8 }
0x1abb   : > { %6613 = vrot.lane.b32.xlu1 %v15087_v23, %s12671_s8 }
0x1ac9   : > { %6609 = vrot.lane.b32.xlu0 %v15065_v34, %s12671_s8 }
0x1adf   : > { %6535 = vmax.xlane.f32.xlu1 %v6534_v26 }
0x1ae3   : > { %6529 = vmax.xlane.f32.xlu1 %v6528_v30 }
0x1af4   : > { %6615 = vrot.lane.b32.xlu1 %v15084_v20, %s12671_s8 }
0x1b30   : > { %v6521_v15 = vpop.xlane.xlu0 %6520 }
0x1b31   : > { %v6539_v32 = vsub.f32 %v6507_v10, %v6521_v15 }
0x1b33   : > { %v6549_v49 = vmul.f32 1.442695, %v6539_v32  ;;  %v6518_v18 = vpop.xlane.xlu1 %6517 }
0x1b34   : > { %v6515_v41 = vpop.xlane.xlu0 %6514  ;;  %v6538_v17 = vsub.f32 %v6506_v55, %v6518_v18 }
0x1b35   : > { %11984 = vpow2.f32 %v6549_v49  ;;  %v6537_v33 = vsub.f32 %v6505_v45, %v6515_v41 }
0x1b36   : > { %v6547_v13 = vmul.f32 1.442695, %v6538_v17 }
0x1b37   : > { %v6545_v36 = vmul.f32 1.442695, %v6537_v33 }
0x1b38   : > { %v6524_v12 = vpop.xlane.xlu0 %6523 }
0x1b39   : > { %11986 = vpow2.f32 %v6545_v36  ;;  %v6540_v31 = vsub.f32 %v6508_v3, %v6524_v12  ;;  %v6612_v3 = vpop.permute.xlu1 %6611 }
0x1b3b   : > { %v6551_v52 = vmul.f32 1.442695, %v6540_v31 }
0x1b3c   : > { %v6533_v7 = vpop.xlane.xlu0 %6532 }
0x1b3d   : > { %11988 = vpow2.f32 %v6551_v52  ;;  %v6543_v11 = vsub.f32 %v6511_v37, %v6533_v7 }
0x1b3e   : > { %11990 = vpow2.f32 %v6547_v13 }
0x1b3f   : > { %v15218_v62 = vpop.eup %11984  ;;  %v6557_v4 = vmul.f32 1.442695, %v6543_v11 }
0x1b40   : > { %v6527_v10 = vpop.xlane.xlu0 %6526  ;;  %v6567_v26 = vsel %vm2394_vm3, %v15218_v62, 0.0 }
0x1b41   : > { %11992 = vpow2.f32 %v6557_v4  ;;  %v6541_v45 = vsub.f32 %v6509_v0, %v6527_v10  ;;  %6568 = vadd.xlane.f32.xlu0 %v6567_v26  ;;  %v6614_v0 = vpop.permute.xlu1 %6613 }
0x1b43   : > { %v15222_v55 = vpop.eup %11986  ;;  %v6553_v30 = vmul.f32 1.442695, %v6541_v45 }
0x1b44   : > { %v6610_v15 = vpop.permute.xlu0 %6609  ;;  %v6561_v32 = vsel %vm2394_vm3, %v15222_v55, 0.0 }
0x1b45   : > { %11994 = vpow2.f32 %v6553_v30  ;;  %6562 = vadd.xlane.f32.xlu0 %v6561_v32  ;;  %10774 = vmatprep.subr.bf16.mxu1 %v6610_v15 }
0x1b46   : > { %10775 = vmatpush3.bf16.msra.mxu1 %v6610_v15 }
0x1b47   : > { %v11989_v37 = vpop.eup %11988  ;;  %10776 = vmatprep.subr.bf16.mxu1 %v6612_v3 }
0x1b48   : > { %v6570_v49 = vsel %vm2394_vm3, %v11989_v37, 0.0  ;;  %v11991_v18 = vpop.eup %11990 }
0x1b49   : > { %6571 = vadd.xlane.f32.xlu1 %v6570_v49  ;;  %v6564_v17 = vsel %vm2394_vm3, %v11991_v18, 0.0 }
0x1b4a   : > { %10777 = vmatpush3.bf16.msra.mxu1 %v6612_v3 }
0x1b4b   : > { %v15227_v41 = vpop.eup %11992  ;;  %10778 = vmatprep.subr.bf16.mxu1 %v6614_v0 }
0x1b4c   : > { %v6579_v33 = vsel %vm2394_vm3, %v15227_v41, 0.0 }
0x1b4d   : > { %6580 = vadd.xlane.f32.xlu0 %v6579_v33  ;;  %6565 = vadd.xlane.f32.xlu1 %v6564_v17 }
0x1b4e   : > { %10779 = vmatpush3.bf16.msra.mxu1 %v6614_v0 }
0x1b4f   : > { %v15232_v36 = vpop.eup %11994 }
0x1b50   : > { %v6573_v12 = vsel %vm2394_vm3, %v15232_v36, 0.0 }
0x1b51   : > { %6574 = vadd.xlane.f32.xlu0 %v6573_v12 }
0x1b5e   : > { %6708 = vrot.lane.b32.xlu1 %v15082_v8, %s12672_s18 }
0x1b62   : > { %6710 = vrot.lane.b32.xlu1 %v15102_v57, %s12672_s18 }
0x1b6c   : > { %v6536_v31 = vpop.xlane.xlu1 %6535 }
0x1b6d   : > { %v6544_v13 = vsub.f32 %v6512_v47, %v6536_v31 }
0x1b6f   : > { %v6559_v52 = vmul.f32 1.442695, %v6544_v13 }
0x1b70   : > { %v6530_v7 = vpop.xlane.xlu1 %6529 }
0x1b71   : > { %11996 = vpow2.f32 %v6559_v52  ;;  %v6542_v11 = vsub.f32 %v15211_v44, %v6530_v7 }
0x1b73   : > { %v6555_v4 = vmul.f32 1.442695, %v6542_v11 }
0x1b74   : > { %v6616_v10 = vpop.permute.xlu1 %6615 }
0x1b75   : > { %10780 = vmatprep.subr.bf16.mxu1 %v6616_v10  ;;  %11998 = vpow2.f32 %v6555_v4 }
0x1b76   : > { %10781 = vmatpush3.bf16.msra.mxu1 %v6616_v10 }
0x1b7b   : > { %v11997_v26 = vpop.eup %11996 }
0x1b7c   : > { %v6582_v45 = vsel %vm2394_vm3, %v11997_v26, 0.0 }
0x1b7d   : > { %6583 = vadd.xlane.f32.xlu0 %v6582_v45 }
0x1b7f   : > { %v11999_v30 = vpop.eup %11998 }
0x1b80   : > { %v6576_v3 = vsel %vm2394_vm3, %v11999_v30, 0.0 }
0x1b86   : > { %6577 = vadd.xlane.f32.xlu1 %v6576_v3 }
0x1b93   : > { %6706 = vrot.lane.b32.xlu0 %v15061_v29, %s12672_s18 }
0x1b97   : > { %6698 = vrot.lane.b32.xlu0 %v15059_v24, %s12672_s18  ;;  %6712 = vrot.lane.b32.xlu1 %v15115_v38, %s12672_s18 }
0x1b9b   : > { %6702 = vrot.lane.b32.xlu0 %v15100_v51, %s12672_s18  ;;  %6700 = vrot.lane.b32.xlu1 %v15080_v14, %s12672_s18 }
0x1b9f   : > { %6704 = vrot.lane.b32.xlu1 %v15113_v2, %s12672_s18 }
0x1bce   : > { %v6569_v47 = vpop.xlane.xlu0 %6568 }
0x1bd2   : > { %v6563_v15 = vpop.xlane.xlu0 %6562 }
0x1bd6   : > { %v6572_v44 = vpop.xlane.xlu1 %6571 }
0x1bd7   : > { %12000 = vrcp.f32 %v6572_v44 }
0x1bd8   : > { %12002 = vrcp.f32 %v6563_v15 }
0x1bd9   : > { %12004 = vrcp.f32 %v6569_v47 }
0x1bda   : > { %v6566_v32 = vpop.xlane.xlu1 %6565  ;;  %v6581_v4 = vpop.xlane.xlu0 %6580 }
0x1bdb   : > { %12006 = vrcp.f32 %v6566_v32 }
0x1bde   : > { %v6575_v10 = vpop.xlane.xlu0 %6574  ;;  %v6709_v45 = vpop.permute.xlu1 %6708 }
0x1be1   : > { %v12001_v49 = vpop.eup %12000 }
0x1be2   : > { %v12003_v0 = vpop.eup %12002  ;;  %v6596_v12 = vmul.f32 %v12001_v49, %v11989_v37  ;;  %v6711_v44 = vpop.permute.xlu1 %6710 }
0x1be3   : > { %v12005_v33 = vpop.eup %12004  ;;  %v6593_v31 = vmul.f32 %v12003_v0, %v15222_v55  ;;  %v6730_v55 = vsel %vm2296_vm2, %v6709_v45, 0 }
0x1be4   : > { %v6595_v52 = vmul.f32 %v12005_v33, %v15218_v62  ;;  %v6733_v33 = vsel %vm2296_vm2, %v6711_v44, 0 }
0x1be5   : > { %v12007_v17 = vpop.eup %12006 }
0x1be6   : > { %v6594_v13 = vmul.f32 %v12007_v17, %v11991_v18  ;;  %v6602_v11 = vpack.c.bf16 %v6596_v12, %v6595_v52 }
0x1be8   : > { %v6601_v7 = vpack.c.bf16 %v6594_v13, %v6593_v31 }
0x1bea   : > { %10782 = vmatprep.mubr.msk.bf16.mxu1 %vm2394_vm3, %v6601_v7 }
0x1beb   : > { %10783 = vmatmul.mubr.msk.bf16.vlgmr.msra.gmra.mrb[116].mxu1 %vm2394_vm3, %v6602_v11 }
0x1c0a   : > { %v6584_v3 = vpop.xlane.xlu0 %6583 }
0x1c0b   : > { %12008 = vrcp.f32 %v6584_v3 }
0x1c0c   : > { %12010 = vrcp.f32 %v6575_v10 }
0x1c0d   : > { %12012 = vrcp.f32 %v6581_v4 }
0x1c0e   : > { %v6707_v47 = vpop.permute.xlu0 %6706 }
0x1c0f   : > { %10926 = vmatprep.subr.msk.bf16.mxu1 %vm2296_vm2, %v6707_v47  ;;  %v6727_v37 = vsel %vm2296_vm2, %v6707_v47, 0 }
0x1c10   : > { %10791 = vmatpush3.bf16.xpose.msra.mxu1 %v6727_v37 }
0x1c11   : > { %10927 = vmatprep.subr.msk.bf16.mxu1 %vm2296_vm2, %v6709_v45 }
0x1c12   : > { %v6699_v11 = vpop.permute.xlu0 %6698 }
0x1c13   : > { %v6578_v62 = vpop.xlane.xlu1 %6577 }
0x1c14   : > { %12014 = vrcp.f32 %v6578_v62 }
0x1c15   : > { %v12009_v18 = vpop.eup %12008 }
0x1c16   : > { %v12011_v15 = vpop.eup %12010  ;;  %v6600_v0 = vmul.f32 %v12009_v18, %v11997_v26 }
0x1c17   : > { %v12013_v32 = vpop.eup %12012  ;;  %v6597_v17 = vmul.f32 %v12011_v15, %v15232_v36  ;;  %v6713_v31 = vpop.permute.xlu1 %6712 }
0x1c18   : > { %10793 = vmatpush3.bf16.xpose.msra.mxu1 %v6730_v55  ;;  %v6599_v13 = vmul.f32 %v12013_v32, %v15227_v41  ;;  %v6736_v26 = vsel %vm2296_vm2, %v6713_v31, 0 }
0x1c19   : > { %10928 = vmatprep.subr.msk.bf16.mxu1 %vm2296_vm2, %v6711_v44 }
0x1c1a   : > { %v6604_v7 = vpack.c.bf16 %v6600_v0, %v6599_v13 }
0x1c1b   : > { %v6701_v36 = vpop.permute.xlu1 %6700 }
0x1c1e   : > { %v12015_v49 = vpop.eup %12014 }
0x1c1f   : > { %v6598_v12 = vmul.f32 %v12015_v49, %v11999_v30  ;;  %v6703_v30 = vpop.permute.xlu0 %6702  ;;  %v6705_v41 = vpop.permute.xlu1 %6704 }
0x1c20   : > { %10795 = vmatpush3.bf16.xpose.msra.mxu1 %v6733_v33 }
0x1c21   : > { %10929 = vmatprep.subr.msk.bf16.mxu1 %vm2296_vm2, %v6713_v31  ;;  %v6603_v52 = vpack.c.bf16 %v6598_v12, %v6597_v17 }
0x1c23   : > { %10786 = vmatprep.mubr.msk.bf16.mxu1 %vm2394_vm3, %v6603_v52 }
0x1c24   : > { %10787 = vmatmul.mubr.msk.bf16.gmra.mrb[120].mxu1 %vm2394_vm3, %v6604_v7 }
0x1c25   : > { %10798 = vmatprep.mubr.msk.bf16.mxu1 %vm2296_vm2, %v6699_v11 }
0x1c28   : > { %10797 = vmatpush3.bf16.xpose.msra.mxu1 %v6736_v26 }
0x1c2f   : > { %10799 = vmatmul.mubr.msk.bf16.vlgmr.msra.gmra.mrb[124].mxu1 %vm2296_vm2, %v6701_v36 }
0x1c30   : > { %10802 = vmatprep.mubr.msk.bf16.mxu1 %vm2296_vm2, %v6703_v30 }
0x1c37   : > { %10803 = vmatmul.mubr.msk.bf16.gmra.mrb[128].mxu1 %vm2296_vm2, %v6705_v41 }
0x1cbe   : > { %v15275_v4 = vpop.f32.mrb[116].mxu1 }
0x1cbf   : > { %v15277_v10 = vpop.f32.mrb[117].mxu1 }
0x1cc0   : > { %v15279_v45 = vpop.f32.mrb[118].mxu1 }
0x1cc1   : > { %v15283_v47 = vpop.f32.mrb[119].mxu1 }
0x1cf7   : > { %v15287_v37 = vpop.f32.mrb[120].mxu1 }
0x1cf8   : > { %v15289_v62 = vpop.f32.mrb[121].mxu1 }
0x1cf9   : > { %v15291_v55 = vpop.f32.mrb[122].mxu1 }
0x1cfa   : > { %v15295_v15 = vpop.f32.mrb[123].mxu1 }
0x1d02   : > { %v10800_v49 = vpop.f32.mrb[124].mxu1 }
0x1d03   : > { %v6805_v0 = vmul.f32 0.17677669, %v10800_v49  ;;  %v6772_v33 = vpop.f32.mrb[125].mxu1 }
0x1d04   : > { %v10801_v17 = vpop.f32.mrb[126].mxu1  ;;  %v6803_v12 = vmul.f32 0.17677669, %v6772_v33 }
0x1d05   : > { %v6775_v31 = vpop.f32.mrb[127].mxu1  ;;  %v6817_v13 = vsel %vm2394_vm3, %v6805_v0, -inf  ;;  %v6806_v11 = vmul.f32 0.17677669, %v10801_v17 }
0x1d06   : > { %v6804_v52 = vmul.f32 0.17677669, %v6775_v31  ;;  %6818 = vmax.xlane.f32.xlu0 %v6817_v13  ;;  %v6811_v26 = vsel %vm2394_vm3, %v6803_v12, -inf }
0x1d07   : > { %v6820_v32 = vsel %vm2394_vm3, %v6806_v11, -inf }
0x1d08   : > { %v6814_v7 = vsel %vm2394_vm3, %v6804_v52, -inf }
0x1d09   : > { %6815 = vmax.xlane.f32.xlu1 %v6814_v7 }
0x1d0a   : > { %6812 = vmax.xlane.f32.xlu0 %v6811_v26  ;;  %v10804_v36 = vpop.f32.mrb[128].mxu1 }
0x1d0b   : > { %v6788_v30 = vpop.f32.mrb[129].mxu1  ;;  %v6809_v56 = vmul.f32 0.17677669, %v10804_v36 }
0x1d0c   : > { %v10805_v41 = vpop.f32.mrb[130].mxu1  ;;  %v6807_v33 = vmul.f32 0.17677669, %v6788_v30 }
0x1d0d   : > { %v6791_v49 = vpop.f32.mrb[131].mxu1  ;;  %v6829_v18 = vsel %vm2394_vm3, %v6809_v56, -inf  ;;  %v6810_v17 = vmul.f32 0.17677669, %v10805_v41 }
0x1d0e   : > { %6821 = vmax.xlane.f32.xlu0 %v6820_v32  ;;  %v6823_v31 = vsel %vm2394_vm3, %v6807_v33, -inf  ;;  %v15311_v13 = vmul.f32 0.17677669, %v6791_v49 }
0x1d0f   : > { %v6832_v32 = vsel %vm2394_vm3, %v6810_v17, -inf }
0x1d12   : > { %6830 = vmax.xlane.f32.xlu0 %v6829_v18  ;;  %v6826_v18 = vsel %vm2394_vm3, %v15311_v13, -inf }
0x1d16   : > { %6824 = vmax.xlane.f32.xlu0 %v6823_v31 }
0x1d1a   : > { %6905 = vrot.lane.b32.xlu1 %v15063_v6, %s12672_s18 }
0x1d1e   : > { %6907 = vrot.lane.b32.xlu1 %v15087_v23, %s12672_s18 }
0x1d2c   : > { %6903 = vrot.lane.b32.xlu0 %v15065_v34, %s12672_s18 }
0x1d42   : > { %6833 = vmax.xlane.f32.xlu1 %v6832_v32 }
0x1d46   : > { %6827 = vmax.xlane.f32.xlu1 %v6826_v18 }
0x1d57   : > { %6909 = vrot.lane.b32.xlu1 %v15084_v20, %s12672_s18 }
0x1d93   : > { %v6819_v7 = vpop.xlane.xlu0 %6818 }
0x1d94   : > { %v6837_v26 = vsub.f32 %v6805_v0, %v6819_v7 }
0x1d96   : > { %v6847_v36 = vmul.f32 1.442695, %v6837_v26  ;;  %v6816_v30 = vpop.xlane.xlu1 %6815 }
0x1d97   : > { %v6813_v31 = vpop.xlane.xlu0 %6812  ;;  %v6836_v41 = vsub.f32 %v6804_v52, %v6816_v30 }
0x1d98   : > { %12016 = vpow2.f32 %v6847_v36  ;;  %v6835_v3 = vsub.f32 %v6803_v12, %v6813_v31 }
0x1d99   : > { %v6845_v32 = vmul.f32 1.442695, %v6836_v41 }
0x1d9a   : > { %v6843_v49 = vmul.f32 1.442695, %v6835_v3 }
0x1d9b   : > { %v6822_v44 = vpop.xlane.xlu0 %6821 }
0x1d9c   : > { %12018 = vpow2.f32 %v6843_v49  ;;  %v6838_v27 = vsub.f32 %v6806_v11, %v6822_v44  ;;  %v6906_v44 = vpop.permute.xlu1 %6905 }
0x1d9e   : > { %v6849_v1 = vmul.f32 1.442695, %v6838_v27 }
0x1d9f   : > { %v6831_v48 = vpop.xlane.xlu0 %6830 }
0x1da0   : > { %12020 = vpow2.f32 %v6849_v1  ;;  %v6841_v18 = vsub.f32 %v6809_v56, %v6831_v48 }
0x1da1   : > { %12022 = vpow2.f32 %v6845_v32 }
0x1da2   : > { %v15318_v28 = vpop.eup %12016  ;;  %v6855_v61 = vmul.f32 1.442695, %v6841_v18 }
0x1da3   : > { %v6825_v0 = vpop.xlane.xlu0 %6824  ;;  %v6865_v7 = vsel %vm2394_vm3, %v15318_v28, 0.0 }
0x1da4   : > { %12024 = vpow2.f32 %v6855_v61  ;;  %v6839_v12 = vsub.f32 %v6807_v33, %v6825_v0  ;;  %6866 = vadd.xlane.f32.xlu0 %v6865_v7  ;;  %v6908_v61 = vpop.permute.xlu1 %6907 }
0x1da6   : > { %v15322_v3 = vpop.eup %12018  ;;  %v6851_v52 = vmul.f32 1.442695, %v6839_v12 }
0x1da7   : > { %v6904_v11 = vpop.permute.xlu0 %6903  ;;  %v6859_v1 = vsel %vm2394_vm3, %v15322_v3, 0.0 }
0x1da8   : > { %12026 = vpow2.f32 %v6851_v52  ;;  %6860 = vadd.xlane.f32.xlu0 %v6859_v1  ;;  %10806 = vmatprep.subr.bf16.mxu0 %v6904_v11 }
0x1da9   : > { %10807 = vmatpush3.bf16.msra.mxu0 %v6904_v11 }
0x1daa   : > { %v12021_v56 = vpop.eup %12020  ;;  %10808 = vmatprep.subr.bf16.mxu0 %v6906_v44 }
0x1dab   : > { %v6868_v48 = vsel %vm2394_vm3, %v12021_v56, 0.0  ;;  %v12023_v27 = vpop.eup %12022 }
0x1dac   : > { %6869 = vadd.xlane.f32.xlu1 %v6868_v48  ;;  %v6862_v36 = vsel %vm2394_vm3, %v12023_v27, 0.0 }
0x1dad   : > { %10809 = vmatpush3.bf16.msra.mxu0 %v6906_v44 }
0x1dae   : > { %v15327_v33 = vpop.eup %12024  ;;  %10810 = vmatprep.subr.bf16.mxu0 %v6908_v61 }
0x1daf   : > { %v6877_v26 = vsel %vm2394_vm3, %v15327_v33, 0.0 }
0x1db0   : > { %6878 = vadd.xlane.f32.xlu0 %v6877_v26  ;;  %6863 = vadd.xlane.f32.xlu1 %v6862_v36 }
0x1db1   : > { %10811 = vmatpush3.bf16.msra.mxu0 %v6908_v61 }
0x1db2   : > { %v15332_v30 = vpop.eup %12026 }
0x1db3   : > { %v6871_v31 = vsel %vm2394_vm3, %v15332_v30, 0.0 }
0x1db4   : > { %6872 = vadd.xlane.f32.xlu0 %v6871_v31 }
0x1dc1   : > { %7002 = vrot.lane.b32.xlu1 %v15082_v8, %s16552_s27 }
0x1dc5   : > { %7004 = vrot.lane.b32.xlu1 %v15102_v57, %s16552_s27 }
0x1dcf   : > { %v6834_v41 = vpop.xlane.xlu1 %6833 }
0x1dd0   : > { %v6842_v49 = vsub.f32 %v6810_v17, %v6834_v41 }
0x1dd2   : > { %v6857_v32 = vmul.f32 1.442695, %v6842_v49 }
0x1dd3   : > { %v6828_v18 = vpop.xlane.xlu1 %6827 }
0x1dd4   : > { %12028 = vpow2.f32 %v6857_v32  ;;  %v6840_v0 = vsub.f32 %v15311_v13, %v6828_v18 }
0x1dd6   : > { %v6853_v7 = vmul.f32 1.442695, %v6840_v0 }
0x1dd7   : > { %v6910_v12 = vpop.permute.xlu1 %6909 }
0x1dd8   : > { %10812 = vmatprep.subr.bf16.mxu0 %v6910_v12  ;;  %12030 = vpow2.f32 %v6853_v7 }
0x1dd9   : > { %10813 = vmatpush3.bf16.msra.mxu0 %v6910_v12 }
0x1dde   : > { %v12029_v52 = vpop.eup %12028 }
0x1ddf   : > { %v6880_v44 = vsel %vm2394_vm3, %v12029_v52, 0.0 }
0x1de0   : > { %6881 = vadd.xlane.f32.xlu0 %v6880_v44 }
0x1de2   : > { %v12031_v8 = vpop.eup %12030 }
0x1de3   : > { %v6874_v11 = vsel %vm2394_vm3, %v12031_v8, 0.0 }
0x1de9   : > { %6875 = vadd.xlane.f32.xlu1 %v6874_v11 }
0x1df6   : > { %7000 = vrot.lane.b32.xlu0 %v15061_v29, %s16552_s27 }
0x1dfa   : > { %6992 = vrot.lane.b32.xlu0 %v15059_v24, %s16552_s27  ;;  %7006 = vrot.lane.b32.xlu1 %v15115_v38, %s16552_s27 }
0x1dfe   : > { %6996 = vrot.lane.b32.xlu0 %v15100_v51, %s16552_s27  ;;  %6994 = vrot.lane.b32.xlu1 %v15080_v14, %s16552_s27 }
0x1e02   : > { %6998 = vrot.lane.b32.xlu1 %v15113_v2, %s16552_s27 }
0x1e31   : > { %v6867_v57 = vpop.xlane.xlu0 %6866 }
0x1e35   : > { %v6861_v13 = vpop.xlane.xlu0 %6860 }
0x1e39   : > { %v6870_v17 = vpop.xlane.xlu1 %6869 }
0x1e3a   : > { %12032 = vrcp.f32 %v6870_v17 }
0x1e3b   : > { %12034 = vrcp.f32 %v6861_v13 }
0x1e3c   : > { %12036 = vrcp.f32 %v6867_v57 }
0x1e3d   : > { %v6864_v29 = vpop.xlane.xlu1 %6863  ;;  %v6879_v31 = vpop.xlane.xlu0 %6878 }
0x1e3e   : > { %12038 = vrcp.f32 %v6864_v29 }
0x1e41   : > { %v6873_v41 = vpop.xlane.xlu0 %6872  ;;  %v7003_v49 = vpop.permute.xlu1 %7002 }
0x1e44   : > { %v12033_v24 = vpop.eup %12032 }
0x1e45   : > { %v12035_v1 = vpop.eup %12034  ;;  %v6894_v61 = vmul.f32 %v12033_v24, %v12021_v56  ;;  %v7005_v0 = vpop.permute.xlu1 %7004 }
0x1e46   : > { %v12037_v38 = vpop.eup %12036  ;;  %v6891_v51 = vmul.f32 %v12035_v1, %v15322_v3  ;;  %v7024_v3 = vsel %vm2296_vm2, %v7003_v49, 0  ;;  %v7027_v57 = vsel %vm2296_vm2, %v7005_v0, 0 }
0x1e47   : > { %v6893_v14 = vmul.f32 %v12037_v38, %v15318_v28 }
0x1e48   : > { %v12039_v48 = vpop.eup %12038 }
0x1e49   : > { %v6892_v26 = vmul.f32 %v12039_v48, %v12023_v27  ;;  %v6900_v2 = vpack.c.bf16 %v6894_v61, %v6893_v14 }
0x1e4b   : > { %v6899_v36 = vpack.c.bf16 %v6892_v26, %v6891_v51 }
0x1e4d   : > { %10814 = vmatprep.mubr.msk.bf16.mxu0 %vm2394_vm3, %v6899_v36 }
0x1e4e   : > { %10815 = vmatmul.mubr.msk.bf16.vlgmr.msra.gmra.mrb[140].mxu0 %vm2394_vm3, %v6900_v2 }
0x1e6d   : > { %v6882_v32 = vpop.xlane.xlu0 %6881 }
0x1e6e   : > { %12040 = vrcp.f32 %v6882_v32 }
0x1e6f   : > { %12042 = vrcp.f32 %v6873_v41 }
0x1e70   : > { %12044 = vrcp.f32 %v6879_v31 }
0x1e71   : > { %v7001_v18 = vpop.permute.xlu0 %7000 }
0x1e72   : > { %v7021_v7 = vsel %vm2296_vm2, %v7001_v18, 0  ;;  %10930 = vmatprep.subr.msk.bf16.mxu0 %vm2296_vm2, %v7001_v18 }
0x1e73   : > { %10823 = vmatpush3.bf16.xpose.msra.mxu0 %v7021_v7 }
0x1e74   : > { %10931 = vmatprep.subr.msk.bf16.mxu0 %vm2296_vm2, %v7003_v49 }
0x1e75   : > { %v6993_v48 = vpop.permute.xlu0 %6992 }
0x1e76   : > { %v6876_v28 = vpop.xlane.xlu1 %6875 }
0x1e77   : > { %12046 = vrcp.f32 %v6876_v28 }
0x1e78   : > { %v12041_v56 = vpop.eup %12040 }
0x1e79   : > { %v12043_v27 = vpop.eup %12042  ;;  %v6898_v11 = vmul.f32 %v12041_v56, %v12029_v52 }
0x1e7a   : > { %v12045_v12 = vpop.eup %12044  ;;  %v6895_v17 = vmul.f32 %v12043_v27, %v15332_v30  ;;  %v7007_v29 = vpop.permute.xlu1 %7006 }
0x1e7b   : > { %10825 = vmatpush3.bf16.xpose.msra.mxu0 %v7024_v3  ;;  %v6897_v24 = vmul.f32 %v12045_v12, %v15327_v33  ;;  %v7030_v52 = vsel %vm2296_vm2, %v7007_v29, 0 }
0x1e7c   : > { %10932 = vmatprep.subr.msk.bf16.mxu0 %vm2296_vm2, %v7005_v0 }
0x1e7d   : > { %v6902_v38 = vpack.c.bf16 %v6898_v11, %v6897_v24 }
0x1e7e   : > { %v6995_v30 = vpop.permute.xlu1 %6994 }
0x1e81   : > { %v12047_v44 = vpop.eup %12046 }
0x1e82   : > { %v6896_v13 = vmul.f32 %v12047_v44, %v12031_v8  ;;  %v6997_v8 = vpop.permute.xlu0 %6996  ;;  %v6999_v33 = vpop.permute.xlu1 %6998 }
0x1e83   : > { %10827 = vmatpush3.bf16.xpose.msra.mxu0 %v7027_v57 }
0x1e84   : > { %10933 = vmatprep.subr.msk.bf16.mxu0 %vm2296_vm2, %v7007_v29  ;;  %v6901_v1 = vpack.c.bf16 %v6896_v13, %v6895_v17 }
0x1e86   : > { %10818 = vmatprep.mubr.msk.bf16.mxu0 %vm2394_vm3, %v6901_v1 }
0x1e87   : > { %10819 = vmatmul.mubr.msk.bf16.gmra.mrb[144].mxu0 %vm2394_vm3, %v6902_v38 }
0x1e88   : > { %10830 = vmatprep.mubr.msk.bf16.mxu0 %vm2296_vm2, %v6993_v48 }
0x1e8b   : > { %10829 = vmatpush3.bf16.xpose.msra.mxu0 %v7030_v52 }
0x1e92   : > { %10831 = vmatmul.mubr.msk.bf16.vlgmr.msra.gmra.mrb[148].mxu0 %vm2296_vm2, %v6995_v30 }
0x1e93   : > { %10834 = vmatprep.mubr.msk.bf16.mxu0 %vm2296_vm2, %v6997_v8 }
0x1e9a   : > { %10835 = vmatmul.mubr.msk.bf16.gmra.mrb[152].mxu0 %vm2296_vm2, %v6999_v33 }
0x1e9b   : > { %7933 = vmatprep.mubr.bf16.mxu0 %v16535_v19 }
0x1f21   : > { %v15376_v61 = vpop.f32.mrb[140].mxu0 }
0x1f22   : > { %v15378_v51 = vpop.f32.mrb[141].mxu0 }
0x1f23   : > { %v15380_v26 = vpop.f32.mrb[142].mxu0 }
0x1f24   : > { %v15384_v36 = vpop.f32.mrb[143].mxu0 }
0x1f5a   : > { %v15388_v31 = vpop.f32.mrb[144].mxu0 }
0x1f5b   : > { %v15390_v41 = vpop.f32.mrb[145].mxu0 }
0x1f5c   : > { %v15392_v49 = vpop.f32.mrb[146].mxu0 }
0x1f5d   : > { %v15396_v18 = vpop.f32.mrb[147].mxu0 }
0x1f65   : > { %v10832_v7 = vpop.f32.mrb[148].mxu0 }
0x1f66   : > { %v7066_v28 = vpop.f32.mrb[149].mxu0  ;;  %v7099_v12 = vmul.f32 0.17677669, %v10832_v7 }
0x1f67   : > { %v7097_v3 = vmul.f32 0.17677669, %v7066_v28  ;;  %v10833_v56 = vpop.f32.mrb[150].mxu0 }
0x1f68   : > { %v7069_v27 = vpop.f32.mrb[151].mxu0  ;;  %v7100_v17 = vmul.f32 0.17677669, %v10833_v56  ;;  %v7111_v29 = vsel %vm2394_vm3, %v7099_v12, -inf }
0x1f69   : > { %v7098_v44 = vmul.f32 0.17677669, %v7069_v27  ;;  %v7105_v11 = vsel %vm2394_vm3, %v7097_v3, -inf }
0x1f6a   : > { %7106 = vmax.xlane.f32.xlu0 %v7105_v11  ;;  %v7114_v30 = vsel %vm2394_vm3, %v7100_v17, -inf }
0x1f6b   : > { %v7108_v57 = vsel %vm2394_vm3, %v7098_v44, -inf }
0x1f6c   : > { %7109 = vmax.xlane.f32.xlu1 %v7108_v57 }
0x1f6d   : > { %v10836_v13 = vpop.f32.mrb[152].mxu0 }
0x1f6e   : > { %7112 = vmax.xlane.f32.xlu0 %v7111_v29  ;;  %v7082_v24 = vpop.f32.mrb[153].mxu0  ;;  %v7103_v7 = vmul.f32 0.17677669, %v10836_v13 }
0x1f6f   : > { %v10837_v1 = vpop.f32.mrb[154].mxu0  ;;  %v7101_v48 = vmul.f32 0.17677669, %v7082_v24 }
0x1f70   : > { %v7085_v38 = vpop.f32.mrb[155].mxu0  ;;  %v7104_v8 = vmul.f32 0.17677669, %v10837_v1  ;;  %v7123_v27 = vsel %vm2394_vm3, %v7103_v7, -inf }
0x1f71   : > { %v7102_v52 = vmul.f32 0.17677669, %v7085_v38  ;;  %v7117_v28 = vsel %vm2394_vm3, %v7101_v48, -inf }
0x1f72   : > { %7115 = vmax.xlane.f32.xlu0 %v7114_v30  ;;  %v7126_v56 = vsel %vm2394_vm3, %v7104_v8, -inf }
0x1f73   : > { %v7120_v33 = vsel %vm2394_vm3, %v7102_v52, -inf }
0x1f74   : > { %7121 = vmax.xlane.f32.xlu1 %v7120_v33 }
0x1f76   : > { %7118 = vmax.xlane.f32.xlu0 %v7117_v28 }
0x1f78   : > { %7127 = vmax.xlane.f32.xlu1 %v7126_v56 }
0x1f7a   : > { %7124 = vmax.xlane.f32.xlu0 %v7123_v27 }
0x1f90   : > { %7197 = vrot.lane.b32.xlu0 %v15065_v34, %s16552_s27 }
0x1ff7   : > { %v7107_v11 = vpop.xlane.xlu0 %7106 }
0x1ff8   : > { %v7129_v57 = vsub.f32 %v7097_v3, %v7107_v11 }
0x1ff9   : > { %v7110_v29 = vpop.xlane.xlu1 %7109 }
0x1ffa   : > { %v7137_v38 = vmul.f32 1.442695, %v7129_v57  ;;  %v7130_v30 = vsub.f32 %v7098_v44, %v7110_v29 }
0x1ffb   : > { %v7113_v24 = vpop.xlane.xlu0 %7112 }
0x1ffc   : > { %v7131_v1 = vsub.f32 %v7099_v12, %v7113_v24  ;;  %v7139_v56 = vmul.f32 1.442695, %v7130_v30 }
0x1ffe   : > { %v7141_v13 = vmul.f32 1.442695, %v7131_v1 }
0x1fff   : > { %v7116_v33 = vpop.xlane.xlu0 %7115 }
0x2000   : > { %12048 = vpow2.f32 %v7141_v13  ;;  %v7132_v28 = vsub.f32 %v7100_v17, %v7116_v33 }
0x2001   : > { %v7122_v0 = vpop.xlane.xlu1 %7121  ;;  %12050 = vpow2.f32 %v7137_v38 }
0x2002   : > { %v7143_v32 = vmul.f32 1.442695, %v7132_v28 }
0x2003   : > { %v7119_v14 = vpop.xlane.xlu0 %7118 }
0x2004   : > { %12052 = vpow2.f32 %v7143_v32  ;;  %v7133_v27 = vsub.f32 %v7101_v48, %v7119_v14  ;;  %v7134_v14 = vsub.f32 %v7102_v52, %v7122_v0 }
0x2005   : > { %12054 = vpow2.f32 %v7139_v56  ;;  %v7128_v34 = vpop.xlane.xlu1 %7127 }
0x2006   : > { %v7145_v12 = vmul.f32 1.442695, %v7133_v27  ;;  %v7136_v57 = vsub.f32 %v7104_v8, %v7128_v34  ;;  %v7147_v1 = vmul.f32 1.442695, %v7134_v14  ;;  %v16553_v34 = vpack.i.bf16 %v15283_v47, %v15277_v10 }
0x2007   : > { %v7125_v2 = vpop.xlane.xlu0 %7124 }
0x2008   : > { %v7135_v3 = vsub.f32 %v7103_v7, %v7125_v2  ;;  %v7151_v48 = vmul.f32 1.442695, %v7136_v57 }
0x200a   : > { %v15410_v11 = vpop.eup %12048  ;;  %v7149_v44 = vmul.f32 1.442695, %v7135_v3  ;;  %v16554_v3 = vpack.i.bf16 %v15384_v36, %v15378_v51 }
0x200b   : > { %v7198_v29 = vpop.permute.xlu0 %7197  ;;  %v7159_v17 = vsel %vm2394_vm3, %v15410_v11, 0.0  ;;  %v12051_v24 = vpop.eup %12050 }
0x200c   : > { %12056 = vpow2.f32 %v7149_v44  ;;  %7160 = vadd.xlane.f32.xlu0 %v7159_v17  ;;  %10838 = vmatprep.subr.bf16.mxu1 %v7198_v29  ;;  %v7153_v2 = vsel %vm2394_vm3, %v12051_v24, 0.0 }
0x200d   : > { %10839 = vmatpush3.bf16.msra.mxu1 %v7198_v29  ;;  %12058 = vpow2.f32 %v7145_v12 }
0x200e   : > { %v15414_v32 = vpop.eup %12052  ;;  %12060 = vpow2.f32 %v7151_v48 }
0x200f   : > { %v7162_v8 = vsel %vm2394_vm3, %v15414_v32, 0.0  ;;  %v12055_v7 = vpop.eup %12054  ;;  %12062 = vpow2.f32 %v7147_v1 }
0x2010   : > { %7154 = vadd.xlane.f32.xlu0 %v7153_v2  ;;  %7163 = vadd.xlane.f32.xlu1 %v7162_v8  ;;  %v7156_v38 = vsel %vm2394_vm3, %v12055_v7, 0.0 }
0x2014   : > { %7157 = vadd.xlane.f32.xlu1 %v7156_v38 }
0x2016   : > { %v15420_v30 = vpop.eup %12056 }
0x2017   : > { %v7171_v0 = vsel %vm2394_vm3, %v15420_v30, 0.0  ;;  %v12059_v52 = vpop.eup %12058 }
0x2018   : > { %7172 = vadd.xlane.f32.xlu1 %v7171_v0  ;;  %v7165_v13 = vsel %vm2394_vm3, %v12059_v52, 0.0  ;;  %v12061_v33 = vpop.eup %12060 }
0x2019   : > { %v7174_v28 = vsel %vm2394_vm3, %v12061_v33, 0.0  ;;  %v12063_v56 = vpop.eup %12062 }
0x201a   : > { %v7168_v27 = vsel %vm2394_vm3, %v12063_v56, 0.0 }
0x201c   : > { %7166 = vadd.xlane.f32.xlu1 %v7165_v13 }
0x2020   : > { %7175 = vadd.xlane.f32.xlu1 %v7174_v28 }
0x2024   : > { %7169 = vadd.xlane.f32.xlu1 %v7168_v27 }
0x2026   : > { %7201 = vrot.lane.b32.xlu0 %v15087_v23, %s16552_s27  ;;  %v16555_v23 = vpack.i.bf16 %v15279_v45, %v15275_v4 }
0x202a   : > { %7203 = vrot.lane.b32.xlu0 %v15084_v20, %s16552_s27  ;;  %v16556_v20 = vpack.i.bf16 %v15380_v26, %v15376_v61 }
0x202e   : > { %11172 = vrot.lane.b32.xlu0 %v16553_v34, %s16552_s27 }
0x2032   : > { %11182 = vrot.lane.b32.xlu0 %v16554_v3, %s12672_s18 }
0x2035   : > { %7199 = vrot.lane.b32.xlu1 %v15063_v6, %s16552_s27 }
0x2039   : > { %11177 = vrot.lane.b32.xlu1 %v16555_v23, %s16552_s27 }
0x203d   : > { %11187 = vrot.lane.b32.xlu1 %v16556_v20, %s12672_s18 }
0x2099   : > { %v7161_v10 = vpop.xlane.xlu0 %7160 }
0x209d   : > { %v7155_v47 = vpop.xlane.xlu0 %7154  ;;  %v7164_v12 = vpop.xlane.xlu1 %7163 }
0x209e   : > { %12064 = vrcp.f32 %v7155_v47  ;;  %v11580_v47 = vld [vmem:[#allocation15 + $0x60] sm:$0xff]  }
0x20a1   : > { %v7158_v57 = vpop.xlane.xlu1 %7157  ;;  %v7202_v61 = vpop.permute.xlu0 %7201 }
0x20a2   : > { %12066 = vrcp.f32 %v7158_v57 }
0x20a3   : > { %12068 = vrcp.f32 %v7164_v12  ;;  %v11583_v12 = vld [vmem:[#allocation15 + $0x78] sm:$0xff]  }
0x20a4   : > { %12070 = vrcp.f32 %v7161_v10 }
0x20a5   : > { %v7173_v51 = vpop.xlane.xlu1 %7172 }
0x20a8   : > { %v12065_v44 = vpop.eup %12064 }
0x20a9   : > { %v7167_v36 = vpop.xlane.xlu1 %7166  ;;  %v7185_v17 = vmul.f32 %v12065_v44, %v12051_v24  ;;  %v7204_v24 = vpop.permute.xlu0 %7203 }
0x20aa   : > { %12072 = vrcp.f32 %v7167_v36 }
0x20ac   : > { %v12067_v6 = vpop.eup %12066 }
0x20ad   : > { %v7176_v29 = vpop.xlane.xlu1 %7175  ;;  %v7186_v14 = vmul.f32 %v12067_v6, %v12055_v7  ;;  %v12069_v48 = vpop.eup %12068 }
0x20ae   : > { %v12071_v2 = vpop.eup %12070  ;;  %v7188_v1 = vmul.f32 %v12069_v48, %v15414_v32  ;;  %v11576_v32 = vld [vmem:[#allocation15 + $0x40] sm:$0xff]  }
0x20af   : > { %v7193_v4 = vpack.c.bf16 %v7186_v14, %v7185_v17  ;;  %v7187_v0 = vmul.f32 %v12071_v2, %v15410_v11  ;;  %v11578_v11 = vld [vmem:[#allocation15 + $0x50] sm:$0xff]   ;;  %v16557_v14 = vpack.i.bf16 %v15291_v55, %v15287_v37  ;;  %v16560_v37 = vpack.i.bf16 %v15396_v18, %v15390_v41  ;;  %v11173_v55 = vpop.permute.xlu0 %11172 }
0x20b1   : > { %10846 = vmatprep.mubr.msk.bf16.mxu1 %vm2394_vm3, %v7193_v4  ;;  %v7170_v45 = vpop.xlane.xlu1 %7169  ;;  %v7194_v28 = vpack.c.bf16 %v7188_v1, %v7187_v0 }
0x20b2   : > { %12074 = vrcp.f32 %v7170_v45  ;;  %v16558_v45 = vpack.i.bf16 %v15295_v15, %v15289_v62 }
0x20b3   : > { %12076 = vrcp.f32 %v7176_v29  ;;  %v11183_v1 = vpop.permute.xlu0 %11182 }
0x20b4   : > { %12078 = vrcp.f32 %v7173_v51  ;;  %v12073_v8 = vpop.eup %12072 }
0x20b5   : > { %v7200_v26 = vpop.permute.xlu1 %7199  ;;  %v7189_v13 = vmul.f32 %v12073_v8, %v12059_v52  ;;  %v11579_v52 = vld [vmem:[#allocation15 + $0x58] sm:$0xff]   ;;  %v16559_v8 = vpack.i.bf16 %v15392_v49, %v15388_v31  ;;  %v11185_v49 = vunpack.i.h.bf16 %v11183_v1 }
0x20b6   : > { %10840 = vmatprep.subr.bf16.mxu1 %v7200_v26 }
0x20b7   : > { %10841 = vmatpush3.bf16.msra.mxu1 %v7200_v26 }
0x20b8   : > { %10842 = vmatprep.subr.bf16.mxu1 %v7202_v61 }
0x20b9   : > { %v11178_v62 = vpop.permute.xlu1 %11177 }
0x20ba   : > { %v11179_v0 = vunpack.i.l.bf16 %v11178_v62 }
0x20bb   : > { %10843 = vmatpush3.bf16.msra.mxu1 %v7202_v61 }
0x20bc   : > { %v12075_v7 = vpop.eup %12074  ;;  %10844 = vmatprep.subr.bf16.mxu1 %v7204_v24 }
0x20bd   : > { %v7190_v38 = vmul.f32 %v12075_v7, %v12063_v56  ;;  %v12077_v27 = vpop.eup %12076  ;;  %v11577_v56 = vld [vmem:[#allocation15 + $0x48] sm:$0xff]   ;;  %v11188_v15 = vpop.permute.xlu1 %11187  ;;  %v11174_v7 = vunpack.i.l.bf16 %v11173_v55 }
0x20be   : > { %v12079_v3 = vpop.eup %12078  ;;  %v7192_v23 = vmul.f32 %v12077_v27, %v12061_v33  ;;  %v11581_v33 = vld [vmem:[#allocation15 + $0x68] sm:$0xff]   ;;  %v11189_v31 = vunpack.i.l.bf16 %v11188_v15 }
0x20bf   : > { %10845 = vmatpush3.bf16.msra.mxu1 %v7204_v24  ;;  %v7195_v34 = vpack.c.bf16 %v7190_v38, %v7189_v13  ;;  %v7191_v20 = vmul.f32 %v12079_v3, %v15420_v30  ;;  %v11582_v30 = vld [vmem:[#allocation15 + $0x70] sm:$0xff]   ;;  %v11175_v24 = vunpack.i.h.bf16 %v11173_v55  ;;  %v11180_v38 = vunpack.i.h.bf16 %v11178_v62 }
0x20c0   : > { %10854 = vmatprep.subr.bf16.mxu1 %v11576_v32  ;;  %v11190_v13 = vunpack.i.h.bf16 %v11188_v15  ;;  %v7382_v18 = vsel %vm2296_vm2, %v15185_v54, %v11174_v7  ;;  %v7384_v3 = vsel %vm2296_vm2, %v15183_v63, %v11179_v0 }
0x20c1   : > { %v7196_v10 = vpack.c.bf16 %v7192_v23, %v7191_v20  ;;  %v7383_v41 = vsel %vm2296_vm2, %v15189_v50, %v11175_v24 }
0x20c2   : > { %10847 = vmatmul.mubr.msk.bf16.vlgmr.msra.gmra.mrb[132].mxu1 %vm2394_vm3, %v7194_v28  ;;  %v11184_v28 = vunpack.i.l.bf16 %v11183_v1  ;;  %v7391_v54 = vsel %vm2394_vm3, %v7383_v41, %v11185_v49  ;;  %v15509_v41 = vld [vmem:[#allocation10 + $0x6] sm:$0x3f] }
0x20c3   : > { %10850 = vmatprep.mubr.msk.bf16.mxu1 %vm2394_vm3, %v7195_v34  ;;  %10855 = vmatpush3.bf16.msra.mxu1 %v11576_v32  ;;  %v7385_v34 = vsel %vm2296_vm2, %v15187_v53, %v11180_v38  ;;  %v7392_v32 = vsel %vm2394_vm3, %v7384_v3, %v11189_v31 }
0x20c4   : > { %10856 = vmatprep.subr.bf16.mxu1 %v11577_v56  ;;  %v7390_v50 = vsel %vm2394_vm3, %v7382_v18, %v11184_v28  ;;  %v5538_v18 = vrot.slane %v15509_v41, %v16551_v21 }
0x20c7   : > { %10857 = vmatpush3.bf16.msra.mxu1 %v11577_v56  ;;  %v7393_v56 = vsel %vm2394_vm3, %v7385_v34, %v11190_v13  ;;  %v9862_v34 = vld [vmem:[#allocation16 + $0x1] ss:$0 sm:$0xff] }
0x20c8   : > { %10858 = vmatprep.subr.bf16.mxu1 %v11578_v11 }
0x20ca   : > { %10851 = vmatmul.mubr.msk.bf16.gmra.mrb[136].mxu1 %vm2394_vm3, %v7196_v10 }
0x20cb   : > { %10859 = vmatpush3.bf16.msra.mxu1 %v11578_v11 }
0x20cc   : > { %10860 = vmatprep.subr.bf16.mxu1 %v11579_v52 }
0x20cf   : > { %10861 = vmatpush3.bf16.msra.mxu1 %v11579_v52 }
0x20d0   : > { %10862 = vmatprep.subr.bf16.mxu1 %v11580_v47 }
0x20d3   : > { %10863 = vmatpush3.bf16.msra.mxu1 %v11580_v47 }
0x20d4   : > { %10864 = vmatprep.subr.bf16.mxu1 %v11581_v33 }
0x20d7   : > { %10865 = vmatpush3.bf16.msra.mxu1 %v11581_v33 }
0x20d8   : > { %10866 = vmatprep.subr.bf16.mxu1 %v11582_v30 }
0x20db   : > { %10867 = vmatpush3.bf16.msra.mxu1 %v11582_v30 }
0x20dc   : > { %10868 = vmatprep.subr.bf16.mxu1 %v11583_v12 }
0x20df   : > { %10869 = vmatpush3.bf16.msra.mxu1 %v11583_v12 }
0x2195   : > { %v10848_v57 = vpop.f32.mrb[132].mxu1 }
0x2196   : > { %v7255_v51 = vpop.f32.mrb[133].mxu1 }
0x2197   : > { %v10849_v36 = vpop.f32.mrb[134].mxu1 }
0x2198   : > { %v11196_v44 = vpack.i.bf16 %v10849_v36, %v10848_v57  ;;  %v7258_v6 = vpop.f32.mrb[135].mxu1 }
0x2199   : > { %v11191_v29 = vpack.i.bf16 %v7258_v6, %v7255_v51 }
0x219a   : > { %11197 = vrot.lane.b32.xlu1 %v11196_v44, %s12671_s8 }
0x219b   : > { %11192 = vrot.lane.b32.xlu0 %v11191_v29, %s12671_s8 }
0x219d   : > { %v10852_v17 = vpop.f32.mrb[136].mxu1 }
0x219e   : > { %11207 = vrot.lane.b32.xlu1 %v16557_v14, %s16552_s27  ;;  %v7271_v4 = vpop.f32.mrb[137].mxu1 }
0x219f   : > { %11202 = vrot.lane.b32.xlu0 %v16558_v45, %s16552_s27  ;;  %v10853_v61 = vpop.f32.mrb[138].mxu1 }
0x21a0   : > { %v11226_v26 = vpack.i.bf16 %v10853_v61, %v10852_v17  ;;  %v7274_v48 = vpop.f32.mrb[139].mxu1 }
0x21a1   : > { %v11221_v2 = vpack.i.bf16 %v7274_v48, %v7271_v4 }
0x21a2   : > { %11217 = vrot.lane.b32.xlu1 %v16559_v8, %s12672_s18 }
0x21a3   : > { %11212 = vrot.lane.b32.xlu0 %v16560_v37, %s12672_s18 }
0x21a6   : > { %11227 = vrot.lane.b32.xlu1 %v11226_v26, %s12671_s8 }
0x21a7   : > { %11222 = vrot.lane.b32.xlu0 %v11221_v2, %s12671_s8 }
0x220c   : > { %v11198_v27 = vpop.permute.xlu1 %11197 }
0x220d   : > { %v11200_v23 = vunpack.i.h.bf16 %v11198_v27  ;;  %v11199_v20 = vunpack.i.l.bf16 %v11198_v27  ;;  %v11193_v10 = vpop.permute.xlu0 %11192  ;;  %v5633_v27 = vadd.f32 %v15027_v46, %v5538_v18 }
0x220e   : > { %v11195_v11 = vunpack.i.h.bf16 %v11193_v10  ;;  %v11194_v52 = vunpack.i.l.bf16 %v11193_v10 }
0x220f   : > { %v7400_v47 = vsel %vm3574_vm4, %v7392_v32, %v11199_v20  ;;  %v7401_v53 = vsel %vm3574_vm4, %v7393_v56, %v11200_v23  ;;  %v7551_v23 = vrot.slane %v5633_v27, %v16538_v5 }
0x2210   : > { %v7426_v33 = vpack.c.bf16 %v7401_v53, %v7400_v47  ;;  %v11208_v30 = vpop.permute.xlu1 %11207  ;;  %v7398_v63 = vsel %vm3574_vm4, %v7390_v50, %v11194_v52  ;;  %v7399_v12 = vsel %vm3574_vm4, %v7391_v54, %v11195_v11 }
0x2211   : > { %v11203_v57 = vpop.permute.xlu0 %11202  ;;  %v7425_v51 = vpack.c.bf16 %v7399_v12, %v7398_v63  ;;  %v11210_v36 = vunpack.i.h.bf16 %v11208_v30  ;;  %v11209_v44 = vunpack.i.l.bf16 %v11208_v30 }
0x2212   : > { %v11205_v29 = vunpack.i.h.bf16 %v11203_v57  ;;  %v11204_v17 = vunpack.i.l.bf16 %v11203_v57 }
0x2213   : > { %10870 = vmatprep.mubr.bf16.mxu1 %v7425_v51  ;;  %v7389_v48 = vsel %vm2296_vm2, %v15195_v25, %v11210_v36  ;;  %v7388_v2 = vsel %vm2296_vm2, %v15191_v59, %v11209_v44 }
0x2214   : > { %v11218_v6 = vpop.permute.xlu1 %11217  ;;  %10871 = vmatmul.mubr.bf16.vlgmr.msra.gmra.mrb[140].mxu1 %v7426_v33  ;;  %v7387_v37 = vsel %vm2296_vm2, %v15197_v40, %v11205_v29  ;;  %v7386_v62 = vsel %vm2296_vm2, %v15193_v35, %v11204_v17 }
0x2215   : > { %v11213_v14 = vpop.permute.xlu0 %11212  ;;  %v11220_v4 = vunpack.i.h.bf16 %v11218_v6  ;;  %v11219_v45 = vunpack.i.l.bf16 %v11218_v6 }
0x2216   : > { %v11215_v61 = vunpack.i.h.bf16 %v11213_v14  ;;  %v11214_v26 = vunpack.i.l.bf16 %v11213_v14 }
0x2217   : > { %v7396_v7 = vsel %vm2394_vm3, %v7388_v2, %v11219_v45  ;;  %v7397_v1 = vsel %vm2394_vm3, %v7389_v48, %v11220_v4  ;;  %v11589_v48 = vld [vmem:[%s16515_s2 + $0x10c] ss:$16 sps:$4 sm:$0xff]  }
0x2218   : > { %v11228_v8 = vpop.permute.xlu1 %11227  ;;  %v7394_v25 = vsel %vm2394_vm3, %v7386_v62, %v11214_v26  ;;  %v7395_v59 = vsel %vm2394_vm3, %v7387_v37, %v11215_v61  ;;  %v11595_v2 = vld [vmem:[%s16515_s2 + $0x12c] ss:$16 sps:$4 sm:$0xff]   ;;  %7974 = vmatprep.subr.bf16.mxu1 %v11589_v48  ;;  %v11593_v37 = vld [vmem:[%s16515_s2 + $0x128] ss:$16 sps:$4 sm:$0xff]  }
0x2219   : > { %v11230_v55 = vunpack.i.h.bf16 %v11228_v8  ;;  %v11229_v15 = vunpack.i.l.bf16 %v11228_v8  ;;  %v11223_v24 = vpop.permute.xlu0 %11222  ;;  %v11590_v8 = vld [vmem:[%s16515_s2 + $0x120] ss:$16 sps:$4 sm:$0xff]   ;;  %v11617_v48 = vld [vmem:[%s16515_s2 + $0x1a8] ss:$16 sps:$4 sm:$0xff]  }
0x221a   : > { %v11225_v38 = vunpack.i.h.bf16 %v11223_v24  ;;  %v11224_v0 = vunpack.i.l.bf16 %v11223_v24 }
0x221b   : > { %v7404_v13 = vsel %vm3574_vm4, %v7396_v7, %v11229_v15  ;;  %v7405_v40 = vsel %vm3574_vm4, %v7397_v1, %v11230_v55 }
0x221c   : > { %v7402_v31 = vsel %vm3574_vm4, %v7394_v25, %v11224_v0  ;;  %v7403_v35 = vsel %vm3574_vm4, %v7395_v59, %v11225_v38  ;;  %v7428_v49 = vpack.c.bf16 %v7405_v40, %v7404_v13 }
0x221d   : > { %v7427_v28 = vpack.c.bf16 %v7403_v35, %v7402_v31 }
0x221f   : > { %10874 = vmatprep.mubr.bf16.mxu1 %v7427_v28 }
0x2220   : > { %10875 = vmatmul.mubr.bf16.gmra.mrb[144].mxu1 %v7428_v49 }
0x2221   : > { %8006 = vmatprep.mubr.bf16.mxu1 %v16535_v19 }
0x22e7   : > { %v10872_v3 = vpop.f32.mrb[140].mxu1 }
0x22e8   : > { %v7526_v20 = vadd.f32 %v10872_v3, %v9862_v34  ;;  %v7517_v10 = vpop.f32.mrb[141].mxu1 }
0x22e9   : > { %v7518_v32 = vadd.f32 %v9862_v34, %v7517_v10  ;;  %v10873_v56 = vpop.f32.mrb[142].mxu1 }
0x22ea   : > { %v7554_v11 = vmul.f32 %v7551_v23, %v7526_v20  ;;  %v7529_v52 = vadd.f32 %v10873_v56, %v9862_v34  ;;  %v7520_v50 = vpop.f32.mrb[143].mxu1 }
0x22eb   : > { %v7552_v54 = vmul.f32 %v7551_v23, %v7518_v32  ;;  %v7521_v47 = vadd.f32 %v9862_v34, %v7520_v50 }
0x22ec   : > { %v7555_v53 = vmul.f32 %v7551_v23, %v7529_v52  ;;  %v15524_v63 = vadd.f32 %v7554_v11, %v14804_v42 }
0x22ed   : > { %v7553_v33 = vmul.f32 %v7551_v23, %v7521_v47  ;;  %v15516_v30 = vadd.f32 %v7552_v54, %v14792_v60 }
0x22ee   : > { %16563 = vst [vmem:[#allocation42_spill] sm:$0xff] %v15524_v63  ;;  %v15528_v60 = vadd.f32 %v7555_v53, %v14809_v43 }
0x22ef   : > { %16561 = vst [vmem:[#allocation37_spill] sm:$0xff] %v15516_v30  ;;  %7568 = vadd.xlane.f32.xlu0 %v15516_v30  ;;  %v15520_v46 = vadd.f32 %v7553_v33, %v14797_v22 }
0x22f0   : > { %16564 = vst [vmem:[#allocation44_spill] sm:$0xff] %v15528_v60 }
0x22f1   : > { %16562 = vst [vmem:[#allocation38_spill] sm:$0xff] %v15520_v46  ;;  %7570 = vadd.xlane.f32.xlu1 %v15520_v46 }
0x22f3   : > { %v10876_v12 = vpop.f32.mrb[144].mxu1  ;;  %7572 = vadd.xlane.f32.xlu0 %v15524_v63 }
0x22f4   : > { %v7542_v57 = vadd.f32 %v10876_v12, %v9862_v34  ;;  %v7533_v51 = vpop.f32.mrb[145].mxu1  ;;  %v11598_v12 = vld [vmem:[%s16515_s2 + $0x144] ss:$16 sps:$4 sm:$0xff]  }
0x22f5   : > { %v7534_v36 = vadd.f32 %v9862_v34, %v7533_v51  ;;  %v10877_v44 = vpop.f32.mrb[146].mxu1  ;;  %v11596_v51 = vld [vmem:[%s16515_s2 + $0x140] ss:$16 sps:$4 sm:$0xff]  }
0x22f6   : > { %v7558_v6 = vmul.f32 %v7551_v23, %v7542_v57  ;;  %v7545_v29 = vadd.f32 %v10877_v44, %v9862_v34  ;;  %v7536_v17 = vpop.f32.mrb[147].mxu1  ;;  %v11601_v57 = vld [vmem:[%s16515_s2 + $0x14c] ss:$16 sps:$4 sm:$0xff]   ;;  %v11604_v44 = vld [vmem:[%s16515_s2 + $0x164] ss:$16 sps:$4 sm:$0xff]  }
0x22f7   : > { %v7556_v22 = vmul.f32 %v7551_v23, %v7534_v36  ;;  %v7537_v14 = vadd.f32 %v9862_v34, %v7536_v17  ;;  %7574 = vadd.xlane.f32.xlu0 %v15528_v60  ;;  %v11599_v36 = vld [vmem:[%s16515_s2 + $0x148] ss:$16 sps:$4 sm:$0xff]  }
0x22f8   : > { %v7559_v4 = vmul.f32 %v7551_v23, %v7545_v29  ;;  %v15540_v43 = vadd.f32 %v7558_v6, %v14830_v39  ;;  %v11587_v39 = vld [vmem:[%s16515_s2 + $0x108] ss:$16 sps:$4 sm:$0xff]   ;;  %v11607_v6 = vld [vmem:[%s16515_s2 + $0x16c] ss:$16 sps:$4 sm:$0xff]   ;;  %v11602_v29 = vld [vmem:[%s16515_s2 + $0x160] ss:$16 sps:$4 sm:$0xff]  }
0x22f9   : > { %v7557_v42 = vmul.f32 %v7551_v23, %v7537_v14  ;;  %v15532_v45 = vadd.f32 %v7556_v22, %v14816_v58  ;;  %v11584_v58 = vld [vmem:[%s16515_s2 + $0x100] ss:$16 sps:$4 sm:$0xff]   ;;  %7975 = vmatpush1.bf16.msra.mxu1 %v11587_v39  ;;  %v11605_v17 = vld [vmem:[%s16515_s2 + $0x168] ss:$16 sps:$4 sm:$0xff]   ;;  %v11610_v22 = vld [vmem:[%s16515_s2 + $0x184] ss:$16 sps:$4 sm:$0xff]  }
0x22fa   : > { %16567 = vst [vmem:[#allocation47_spill] sm:$0xff] %v15540_v43  ;;  %v15544_v26 = vadd.f32 %v7559_v4, %v14834_v9  ;;  %v11592_v9 = vld [vmem:[%s16515_s2 + $0x124] ss:$16 sps:$4 sm:$0xff]   ;;  %7976 = vmatprep.subr.bf16.mxu1 %v11595_v2  ;;  %v11613_v14 = vld [vmem:[%s16515_s2 + $0x18c] ss:$16 sps:$4 sm:$0xff]  }
0x22fb   : > { %16565 = vst [vmem:[#allocation45_spill] sm:$0xff] %v15532_v45  ;;  %7576 = vadd.xlane.f32.xlu0 %v15532_v45  ;;  %v15536_v61 = vadd.f32 %v7557_v42, %v14821_v16  ;;  %v11586_v16 = vld [vmem:[%s16515_s2 + $0x104] ss:$16 sps:$4 sm:$0xff]   ;;  %v11608_v4 = vld [vmem:[%s16515_s2 + $0x180] ss:$16 sps:$4 sm:$0xff]  }
0x22fc   : > { %16568 = vst [vmem:[#allocation48_spill] sm:$0xff] %v15544_v26  ;;  %7901 = vmatprep.subr.bf16.mxu0 %v11586_v16  ;;  %v11611_v42 = vld [vmem:[%s16515_s2 + $0x188] ss:$16 sps:$4 sm:$0xff]   ;;  %v11619_v16 = vld [vmem:[%s16515_s2 + $0x1ac] ss:$16 sps:$4 sm:$0xff]  }
0x22fd   : > { %16566 = vst [vmem:[#allocation46_spill] sm:$0xff] %v15536_v61  ;;  %7578 = vadd.xlane.f32.xlu1 %v15536_v61  ;;  %7902 = vmatpush1.bf16.msra.mxu0 %v11584_v58  ;;  %v11616_v58 = vld [vmem:[%s16515_s2 + $0x1a4] ss:$16 sps:$4 sm:$0xff]   ;;  %v11614_v39 = vld [vmem:[%s16515_s2 + $0x1a0] ss:$16 sps:$4 sm:$0xff]  }
0x22fe   : > { %7903 = vmatprep.subr.bf16.mxu0 %v11592_v9  ;;  %7977 = vmatpush1.bf16.msra.mxu1 %v11593_v37  ;;  %v11620_v9 = vld [vmem:[%s16515_s2 + $0x1c0] ss:$16 sps:$4 sm:$0xff]   ;;  %v11622_v2 = vld [vmem:[%s16515_s2 + $0x1c4] ss:$16 sps:$4 sm:$0xff]   ;;  %v11625_v37 = vld [vmem:[%s16515_s2 + $0x1cc] ss:$16 sps:$4 sm:$0xff]  }
0x22ff   : > { %7580 = vadd.xlane.f32.xlu0 %v15540_v43  ;;  %7978 = vmatprep.subr.bf16.mxu1 %v11601_v57 }
0x2301   : > { %7582 = vadd.xlane.f32.xlu1 %v15544_v26  ;;  %7904 = vmatpush1.bf16.msra.mxu0 %v11590_v8  ;;  %v11623_v8 = vld [vmem:[%s16515_s2 + $0x1c8] ss:$16 sps:$4 sm:$0xff]  }
0x2302   : > { %7905 = vmatprep.subr.bf16.mxu0 %v11598_v12  ;;  %7979 = vmatpush1.bf16.msra.mxu1 %v11599_v36 }
0x2303   : > { %7980 = vmatprep.subr.bf16.mxu1 %v11607_v6 }
0x2305   : > { %7906 = vmatpush1.bf16.msra.mxu0 %v11596_v51  ;;  %v16573_v51 = vld [vmem:[#allocation41_spill] sm:$0xff] }
0x2306   : > { %7907 = vmatprep.subr.bf16.mxu0 %v11604_v44  ;;  %7981 = vmatpush1.bf16.msra.mxu1 %v11605_v17 }
0x2307   : > { %7982 = vmatprep.subr.bf16.mxu1 %v11613_v14 }
0x2309   : > { %7908 = vmatpush1.bf16.msra.mxu0 %v11602_v29 }
0x230a   : > { %7909 = vmatprep.subr.bf16.mxu0 %v11610_v22  ;;  %7983 = vmatpush1.bf16.msra.mxu1 %v11611_v42 }
0x230b   : > { %7984 = vmatprep.subr.bf16.mxu1 %v11619_v16 }
0x230d   : > { %7910 = vmatpush1.bf16.msra.mxu0 %v11608_v4 }
0x230e   : > { %7911 = vmatprep.subr.bf16.mxu0 %v11616_v58  ;;  %7985 = vmatpush1.bf16.msra.mxu1 %v11617_v48 }
0x230f   : > { %7986 = vmatprep.subr.bf16.mxu1 %v11625_v37 }
0x2311   : > { %7912 = vmatpush1.bf16.msra.mxu0 %v11614_v39 }
0x2312   : > { %7913 = vmatprep.subr.bf16.mxu0 %v11622_v2  ;;  %7987 = vmatpush1.bf16.msra.mxu1 %v11623_v8 }
0x2315   : > { %7914 = vmatpush1.bf16.msra.mxu0 %v11620_v9 }
0x237c   : > { %v7569_v62 = vpop.xlane.xlu0 %7568 }
0x237d   : > { %v7584_v55 = vmul.f32 0.0078125, %v7569_v62  ;;  %v11628_v62 = vld [vmem:[%s16515_s2 + $0x1e4] ss:$16 sps:$4 sm:$0xff]  }
0x237e   : > { %v7571_v15 = vpop.xlane.xlu1 %7570  ;;  %7915 = vmatprep.subr.bf16.mxu0 %v11628_v62 }
0x237f   : > { %v15572_v24 = vsub.f32 %v15516_v30, %v7584_v55  ;;  %v7585_v7 = vmul.f32 0.0078125, %v7571_v15  ;;  %v11631_v55 = vld [vmem:[%s16515_s2 + $0x1ec] ss:$16 sps:$4 sm:$0xff]   ;;  %v11626_v15 = vld [vmem:[%s16515_s2 + $0x1e0] ss:$16 sps:$4 sm:$0xff]  }
0x2380   : > { %v7573_v1 = vpop.xlane.xlu0 %7572  ;;  %7988 = vmatprep.subr.bf16.mxu1 %v11631_v55  ;;  %7916 = vmatpush1.bf16.msra.mxu0 %v11626_v15 }
0x2381   : > { %v15575_v38 = vsub.f32 %v15520_v46, %v7585_v7  ;;  %v7586_v0 = vmul.f32 0.0078125, %v7573_v1  ;;  %v7600_v25 = vmul.f32 %v15572_v24, %v15572_v24  ;;  %v11629_v7 = vld [vmem:[%s16515_s2 + $0x1e8] ss:$16 sps:$4 sm:$0xff]  }
0x2382   : > { %7989 = vmatpush1.bf16.msra.mxu1 %v11629_v7 }
0x2383   : > { %v15580_v59 = vsub.f32 %v15524_v63, %v7586_v0  ;;  %7608 = vadd.xlane.f32.xlu0 %v7600_v25  ;;  %v7601_v13 = vmul.f32 %v15575_v38, %v15575_v38 }
0x2384   : > { %v7575_v40 = vpop.xlane.xlu0 %7574 }
0x2385   : > { %v7587_v31 = vmul.f32 0.0078125, %v7575_v40  ;;  %7610 = vadd.xlane.f32.xlu1 %v7601_v13  ;;  %v7602_v35 = vmul.f32 %v15580_v59, %v15580_v59 }
0x2387   : > { %v15587_v49 = vsub.f32 %v15528_v60, %v7587_v31  ;;  %7612 = vadd.xlane.f32.xlu0 %v7602_v35  ;;  %v16569_v31 = vld [vmem:[#allocation34_spill] sm:$0xff] }
0x2388   : > { %v7577_v28 = vpop.xlane.xlu0 %7576  ;;  %v16570_v35 = vsub.s32 4, %v16569_v31 }
0x2389   : > { %v7588_v18 = vmul.f32 0.0078125, %v7577_v28  ;;  %v7603_v27 = vmul.f32 %v15587_v49, %v15587_v49 }
0x238a   : > { %v7579_v34 = vpop.xlane.xlu1 %7578  ;;  %v5546_v28 = vrot.slane %v15509_v41, %v16570_v35 }
0x238b   : > { %v15592_v3 = vsub.f32 %v15532_v45, %v7588_v18  ;;  %v7589_v23 = vmul.f32 0.0078125, %v7579_v34  ;;  %7614 = vadd.xlane.f32.xlu1 %v7603_v27 }
0x238c   : > { %v7581_v20 = vpop.xlane.xlu0 %7580 }
0x238d   : > { %v15595_v10 = vsub.f32 %v15536_v61, %v7589_v23  ;;  %v7590_v32 = vmul.f32 0.0078125, %v7581_v20  ;;  %v7604_v56 = vmul.f32 %v15592_v3, %v15592_v3  ;;  %v16571_v20 = vld [vmem:[#allocation40_spill] sm:$0xff] }
0x238e   : > { %v7583_v11 = vpop.xlane.xlu1 %7582 }
0x238f   : > { %v15600_v52 = vsub.f32 %v15540_v43, %v7590_v32  ;;  %v7591_v50 = vmul.f32 0.0078125, %v7583_v11  ;;  %7616 = vadd.xlane.f32.xlu0 %v7604_v56  ;;  %v7605_v54 = vmul.f32 %v15595_v10, %v15595_v10  ;;  %v5674_v32 = vadd.f32 %v16571_v20, %v5546_v28 }
0x2391   : > { %v15605_v47 = vsub.f32 %v15544_v26, %v7591_v50  ;;  %7618 = vadd.xlane.f32.xlu1 %v7605_v54  ;;  %v7606_v53 = vmul.f32 %v15600_v52, %v15600_v52  ;;  %v16572_v50 = vld [vmem:[#allocation52_spill] sm:$0xff] }
0x2392   : > { %v5542_v54 = vrot.slane %v15509_v41, %v16572_v50 }
0x2393   : > { %7620 = vadd.xlane.f32.xlu0 %v7606_v53  ;;  %v7607_v33 = vmul.f32 %v15605_v47, %v15605_v47 }
0x2394   : > { %v5635_v36 = vadd.f32 %v16573_v51, %v5542_v54 }
0x2395   : > { %7622 = vadd.xlane.f32.xlu1 %v7607_v33  ;;  %v7656_v33 = vadd.f32 1.0, %v5674_v32 }
0x2396   : > { %v7672_v16 = vrot.slane %v5635_v36, %v16538_v5  ;;  %v11634_v36 = vld [vmem:[%s16521_s0 + $0x100] sm:$0xff]  }
0x2397   : > { %v7660_v22 = vrot.slane %v7656_v33, %v16538_v5 }
0x2410   : > { %v7609_v1 = vpop.xlane.xlu0 %7608 }
0x2411   : > { %v7624_v0 = vmul.f32 0.0078125, %v7609_v1 }
0x2412   : > { %v7611_v25 = vpop.xlane.xlu1 %7610 }
0x2413   : > { %v7632_v13 = vadd.f32 1e-05, %v7624_v0  ;;  %v7625_v40 = vmul.f32 0.0078125, %v7611_v25 }
0x2414   : > { %v7613_v18 = vpop.xlane.xlu0 %7612 }
0x2415   : > { %12080 = vrsqrt.f32 %v7632_v13  ;;  %v7633_v27 = vadd.f32 1e-05, %v7625_v40  ;;  %v7626_v34 = vmul.f32 0.0078125, %v7613_v18 }
0x2417   : > { %12082 = vrsqrt.f32 %v7633_v27  ;;  %v7634_v23 = vadd.f32 1e-05, %v7626_v34 }
0x2418   : > { %v7615_v56 = vpop.xlane.xlu1 %7614 }
0x2419   : > { %12084 = vrsqrt.f32 %v7634_v23  ;;  %v7627_v11 = vmul.f32 0.0078125, %v7615_v56 }
0x241b   : > { %v7635_v53 = vadd.f32 1e-05, %v7627_v11 }
0x241c   : > { %v7617_v12 = vpop.xlane.xlu0 %7616 }
0x241d   : > { %12086 = vrsqrt.f32 %v7635_v53  ;;  %v7628_v57 = vmul.f32 0.0078125, %v7617_v12 }
0x241e   : > { %v7619_v44 = vpop.xlane.xlu1 %7618 }
0x241f   : > { %v12081_v6 = vpop.eup %12080  ;;  %v7636_v29 = vadd.f32 1e-05, %v7628_v57  ;;  %v7629_v17 = vmul.f32 0.0078125, %v7619_v44  ;;  %v11635_v44 = vld [vmem:[%s16521_s0 + $0x180] sm:$0xff]  }
0x2420   : > { %v7648_v14 = vmul.f32 %v12081_v6, %v15572_v24  ;;  %v7621_v4 = vpop.xlane.xlu0 %7620  ;;  %v11636_v6 = vld [vmem:[%s16521_s0 + $0x148] sm:$0xff]  }
0x2421   : > { %v12083_v42 = vpop.eup %12082  ;;  %12088 = vrsqrt.f32 %v7636_v29  ;;  %v7637_v58 = vadd.f32 1e-05, %v7629_v17  ;;  %v7630_v41 = vmul.f32 0.0078125, %v7621_v4  ;;  %v11637_v29 = vld [vmem:[%s16521_s0 + $0x1c8] sm:$0xff]   ;;  %v11641_v4 = vld [vmem:[%s16521_s0 + $0x1d0] sm:$0xff]  }
0x2422   : > { %v7661_v39 = vmul.f32 %v7660_v22, %v7648_v14  ;;  %v7649_v48 = vmul.f32 %v12083_v42, %v15575_v38  ;;  %v7623_v9 = vpop.xlane.xlu1 %7622  ;;  %v11638_v17 = vld [vmem:[%s16521_s0 + $0x108] sm:$0xff]   ;;  %v11640_v14 = vld [vmem:[%s16521_s0 + $0x150] sm:$0xff]  }
0x2423   : > { %v12085_v2 = vpop.eup %12084  ;;  %12090 = vrsqrt.f32 %v7637_v58  ;;  %v7638_v8 = vadd.f32 1e-05, %v7630_v41  ;;  %v7631_v37 = vmul.f32 0.0078125, %v7623_v9  ;;  %v11642_v42 = vld [vmem:[%s16521_s0 + $0x110] sm:$0xff]   ;;  %v11644_v41 = vld [vmem:[%s16521_s0 + $0x158] sm:$0xff]   ;;  %v11648_v9 = vld [vmem:[%s16521_s0 + $0x160] sm:$0xff]  }
0x2424   : > { %v7662_v62 = vmul.f32 %v7660_v22, %v7649_v48  ;;  %v7673_v55 = vadd.f32 %v7672_v16, %v7661_v39  ;;  %v7650_v15 = vmul.f32 %v12085_v2, %v15580_v59  ;;  %v11643_v58 = vld [vmem:[%s16521_s0 + $0x190] sm:$0xff]   ;;  %v11646_v39 = vld [vmem:[%s16521_s0 + $0x118] sm:$0xff]   ;;  %v11649_v2 = vld [vmem:[%s16521_s0 + $0x1e0] sm:$0xff]  }
0x2425   : > { %12092 = vrsqrt.f32 %v7638_v8  ;;  %v7639_v24 = vadd.f32 1e-05, %v7631_v37  ;;  %v11647_v48 = vld [vmem:[%s16521_s0 + $0x198] sm:$0xff]   ;;  %v11650_v8 = vld [vmem:[%s16521_s0 + $0x120] sm:$0xff]  }
0x2426   : > { %v7674_v7 = vadd.f32 %v7672_v16, %v7662_v62  ;;  %v7663_v1 = vmul.f32 %v7660_v22, %v7650_v15  ;;  %v11651_v37 = vld [vmem:[%s16521_s0 + $0x1a0] sm:$0xff]   ;;  %v11652_v62 = vld [vmem:[%s16521_s0 + $0x168] sm:$0xff]  }
0x2427   : > { %v12087_v0 = vpop.eup %12086  ;;  %12094 = vrsqrt.f32 %v7639_v24  ;;  %v11654_v15 = vld [vmem:[%s16521_s0 + $0x128] sm:$0xff]  }
0x2428   : > { %v7716_v25 = vpack.c.bf16 %v7674_v7, %v7673_v55  ;;  %v7651_v13 = vmul.f32 %v12087_v0, %v15587_v49  ;;  %v7675_v40 = vadd.f32 %v7672_v16, %v7663_v1  ;;  %v11653_v55 = vld [vmem:[%s16521_s0 + $0x1e8] sm:$0xff]   ;;  %v11656_v7 = vld [vmem:[%s16521_s0 + $0x170] sm:$0xff]  }
0x2429   : > { %v11655_v24 = vld [vmem:[%s16521_s0 + $0x1a8] sm:$0xff]   ;;  %v11657_v1 = vld [vmem:[%s16521_s0 + $0x1f0] sm:$0xff]  }
0x242a   : > { %7934 = vmatmul.mubr.bf16.vlgmr.msra.gmra.mrb[156].mxu0 %v7716_v25  ;;  %8007 = vmatmul.mubr.bf16.vlgmr.msra.gmra.mrb[148].mxu1 %v7716_v25  ;;  %v7664_v38 = vmul.f32 %v7660_v22, %v7651_v13  ;;  %v11658_v0 = vld [vmem:[%s16521_s0 + $0x130] sm:$0xff]   ;;  %v11660_v13 = vld [vmem:[%s16521_s0 + $0x178] sm:$0xff]  }
0x242b   : > { %v12089_v35 = vpop.eup %12088  ;;  %7943 = vmatprep.mubr.bf16.mxu0 %v16535_v19  ;;  %8016 = vmatprep.mubr.bf16.mxu1 %v16535_v19  ;;  %v11659_v25 = vld [vmem:[%s16521_s0 + $0x1b0] sm:$0xff]  }
0x242c   : > { %v7676_v28 = vadd.f32 %v7672_v16, %v7664_v38  ;;  %v7652_v59 = vmul.f32 %v12089_v35, %v15592_v3  ;;  %v11662_v38 = vld [vmem:[%s16521_s0 + $0x138] sm:$0xff]  }
0x242d   : > { %v12091_v18 = vpop.eup %12090  ;;  %v11663_v35 = vld [vmem:[%s16521_s0 + $0x1b8] sm:$0xff]  }
0x242e   : > { %v7717_v27 = vpack.c.bf16 %v7676_v28, %v7675_v40  ;;  %v7653_v34 = vmul.f32 %v12091_v18, %v15595_v10  ;;  %v7665_v23 = vmul.f32 %v7660_v22, %v7652_v59  ;;  %v11661_v40 = vld [vmem:[%s16521_s0 + $0x1f8] sm:$0xff]   ;;  %v7715_v59 = vld [vmem:[#allocation18 + $0x4] sm:$0xf] }
0x242f   : > { %v12093_v20 = vpop.eup %12092  ;;  %v11666_v28 = vld [vmem:[#allocation21 + $0x4] ss:$8 sps:$4 sm:$0xff]   ;;  %v15803_v18 = vrot.slane %v7715_v59, %v16538_v5 }
0x2430   : > { %v7666_v32 = vmul.f32 %v7660_v22, %v7653_v34  ;;  %v7677_v49 = vadd.f32 %v7672_v16, %v7665_v23  ;;  %v7654_v56 = vmul.f32 %v12093_v20, %v15600_v52  ;;  %v11632_v52 = vld [vmem:[%s16521_s0 + $0x140] sm:$0xff]   ;;  %v15809_v34 = vrot.slane %v7715_v59, %v16572_v50  ;;  %v16574_v23 = vld [vmem:[#allocation35_spill] sm:$0xff] }
0x2431   : > { %v12095_v11 = vpop.eup %12094  ;;  %10384 = vmatprep.subr.bf16.mxu0 %v11632_v52  ;;  %v15812_v20 = vrot.slane %v7715_v59, %v16574_v23 }
0x2432   : > { %7944 = vmatmul.mubr.bf16.gmra.mrb[160].mxu0 %v7717_v27  ;;  %8017 = vmatmul.mubr.bf16.gmra.mrb[152].mxu1 %v7717_v27  ;;  %v7678_v54 = vadd.f32 %v7672_v16, %v7666_v32  ;;  %v7655_v53 = vmul.f32 %v12095_v11, %v15605_v47  ;;  %v7667_v33 = vmul.f32 %v7660_v22, %v7654_v56  ;;  %v11633_v47 = vld [vmem:[%s16521_s0 + $0x1c0] sm:$0xff]  }
0x2433   : > { %7953 = vmatprep.mubr.bf16.mxu0 %v16535_v19  ;;  %8026 = vmatprep.mubr.bf16.mxu1 %v16535_v19  ;;  %v15806_v27 = vrot.slane %v7715_v59, %v16551_v21 }
0x2434   : > { %v7718_v3 = vpack.c.bf16 %v7678_v54, %v7677_v49  ;;  %v7668_v12 = vmul.f32 %v7660_v22, %v7655_v53  ;;  %v7679_v10 = vadd.f32 %v7672_v16, %v7667_v33  ;;  %10424 = vmatprep.subr.bf16.mxu1 %v11633_v47  ;;  %10385 = vmatpush3.bf16.msra.mxu0 %v11634_v36  ;;  %v11639_v22 = vld [vmem:[%s16521_s0 + $0x188] sm:$0xff]  }
0x2435   : > { %10425 = vmatpush3.bf16.msra.mxu1 %v11635_v44  ;;  %10386 = vmatprep.subr.bf16.mxu0 %v11636_v6 }
0x2436   : > { %v7680_v57 = vadd.f32 %v7672_v16, %v7668_v12  ;;  %10426 = vmatprep.subr.bf16.mxu1 %v11637_v29  ;;  %v11645_v16 = vld [vmem:[%s16521_s0 + $0x1d8] sm:$0xff]  }
0x2438   : > { %v7719_v51 = vpack.c.bf16 %v7680_v57, %v7679_v10  ;;  %10387 = vmatpush3.bf16.msra.mxu0 %v11638_v17 }
0x2439   : > { %10427 = vmatpush3.bf16.msra.mxu1 %v11639_v22  ;;  %10388 = vmatprep.subr.bf16.mxu0 %v11640_v14 }
0x243a   : > { %7954 = vmatmul.mubr.bf16.gmra.mrb[164].mxu0 %v7718_v3  ;;  %8027 = vmatmul.mubr.bf16.gmra.mrb[156].mxu1 %v7718_v3 }
0x243b   : > { %7963 = vmatprep.mubr.bf16.mxu0 %v16535_v19  ;;  %8036 = vmatprep.mubr.bf16.mxu1 %v16535_v19 }
0x243c   : > { %10428 = vmatprep.subr.bf16.mxu1 %v11641_v4  ;;  %10389 = vmatpush3.bf16.msra.mxu0 %v11642_v42 }
0x243d   : > { %10429 = vmatpush3.bf16.msra.mxu1 %v11643_v58  ;;  %10390 = vmatprep.subr.bf16.mxu0 %v11644_v41 }
0x243e   : > { %10430 = vmatprep.subr.bf16.mxu1 %v11645_v16 }
0x2440   : > { %10391 = vmatpush3.bf16.msra.mxu0 %v11646_v39 }
0x2441   : > { %10431 = vmatpush3.bf16.msra.mxu1 %v11647_v48  ;;  %10392 = vmatprep.subr.bf16.mxu0 %v11648_v9 }
0x2442   : > { %7964 = vmatmul.mubr.bf16.gmra.mrb[168].mxu0 %v7719_v51  ;;  %8037 = vmatmul.mubr.bf16.gmra.mrb[160].mxu1 %v7719_v51 }
0x2443   : > { %10432 = vmatprep.subr.bf16.mxu1 %v11649_v2 }
0x2444   : > { %10393 = vmatpush3.bf16.msra.mxu0 %v11650_v8 }
0x2445   : > { %10433 = vmatpush3.bf16.msra.mxu1 %v11651_v37  ;;  %10394 = vmatprep.subr.bf16.mxu0 %v11652_v62 }
0x2446   : > { %10434 = vmatprep.subr.bf16.mxu1 %v11653_v55 }
0x2448   : > { %10395 = vmatpush3.bf16.msra.mxu0 %v11654_v15 }
0x2449   : > { %10435 = vmatpush3.bf16.msra.mxu1 %v11655_v24  ;;  %10396 = vmatprep.subr.bf16.mxu0 %v11656_v7 }
0x244a   : > { %10436 = vmatprep.subr.bf16.mxu1 %v11657_v1 }
0x244c   : > { %10397 = vmatpush3.bf16.msra.mxu0 %v11658_v0 }
0x244d   : > { %10437 = vmatpush3.bf16.msra.mxu1 %v11659_v25  ;;  %10398 = vmatprep.subr.bf16.mxu0 %v11660_v13 }
0x244e   : > { %10438 = vmatprep.subr.bf16.mxu1 %v11661_v40 }
0x2450   : > { %10399 = vmatpush3.bf16.msra.mxu0 %v11662_v38 }
0x2451   : > { %10439 = vmatpush3.bf16.msra.mxu1 %v11663_v35  ;;  %8874 = vmatprep.subr.bf16.mxu0 %v11666_v28 }
0x24fd   : > { %v7935_v32 = vpop.f32.mrb[156].mxu0  ;;  %v8008_v49 = vpop.f32.mrb[148].mxu1 }
0x24fe   : > { %v15815_v56 = vadd.f32 %v7935_v32, %v15803_v18  ;;  %v15818_v11 = vadd.f32 %v8008_v49, %v15806_v27  ;;  %v7937_v54 = vpop.f32.mrb[157].mxu0  ;;  %v8010_v53 = vpop.f32.mrb[149].mxu1 }
0x24ff   : > { %v15821_v33 = vadd.f32 %v7937_v54, %v15812_v20  ;;  %v15824_v21 = vadd.f32 %v8010_v53, %v15809_v34  ;;  %v7939_v50 = vpop.f32.mrb[158].mxu0  ;;  %v8012_v3 = vpop.f32.mrb[150].mxu1 }
0x2500   : > { %v8047_v12 = vmul.f32 %v15815_v56, %v15815_v56  ;;  %v8049_v10 = vmul.f32 %v15818_v11, %v15818_v11  ;;  %v15831_v57 = vadd.f32 %v7939_v50, %v15803_v18  ;;  %v15834_v51 = vadd.f32 %v8012_v3, %v15806_v27  ;;  %v7941_v52 = vpop.f32.mrb[159].mxu0  ;;  %v8014_v47 = vpop.f32.mrb[151].mxu1 }
0x2501   : > { %v8048_v36 = vmul.f32 %v15821_v33, %v15821_v33  ;;  %v8050_v44 = vmul.f32 %v15824_v21, %v15824_v21  ;;  %v15841_v6 = vadd.f32 %v7941_v52, %v15812_v20  ;;  %v15844_v29 = vadd.f32 %v8014_v47, %v15809_v34 }
0x2502   : > { %v8079_v17 = vmul.f32 %v8047_v12, %v15815_v56  ;;  %v8081_v22 = vmul.f32 %v8049_v10, %v15818_v11  ;;  %v8051_v14 = vmul.f32 %v15831_v57, %v15831_v57  ;;  %v8053_v4 = vmul.f32 %v15834_v51, %v15834_v51 }
0x2503   : > { %v8080_v42 = vmul.f32 %v8048_v36, %v15821_v33  ;;  %v8082_v58 = vmul.f32 %v8050_v44, %v15824_v21  ;;  %v8052_v41 = vmul.f32 %v15841_v6, %v15841_v6  ;;  %v8054_v16 = vmul.f32 %v15844_v29, %v15844_v29 }
0x2504   : > { %v8111_v39 = vmul.f32 0.044715, %v8079_v17  ;;  %v8113_v48 = vmul.f32 0.044715, %v8081_v22  ;;  %v8083_v9 = vmul.f32 %v8051_v14, %v15831_v57  ;;  %v8085_v2 = vmul.f32 %v8053_v4, %v15834_v51 }
0x2505   : > { %v8112_v8 = vmul.f32 0.044715, %v8080_v42  ;;  %v8114_v37 = vmul.f32 0.044715, %v8082_v58  ;;  %v8084_v62 = vmul.f32 %v8052_v41, %v15841_v6  ;;  %v8086_v55 = vmul.f32 %v8054_v16, %v15844_v29  ;;  %v7945_v15 = vpop.f32.mrb[160].mxu0  ;;  %v8018_v24 = vpop.f32.mrb[152].mxu1 }
0x2506   : > { %v8143_v7 = vadd.f32 %v8111_v39, %v15815_v56  ;;  %v8145_v1 = vadd.f32 %v8113_v48, %v15818_v11  ;;  %v8115_v0 = vmul.f32 0.044715, %v8083_v9  ;;  %v8117_v25 = vmul.f32 0.044715, %v8085_v2  ;;  %v7947_v13 = vpop.f32.mrb[161].mxu0  ;;  %v8020_v40 = vpop.f32.mrb[153].mxu1 }
0x2507   : > { %v8144_v38 = vadd.f32 %v8112_v8, %v15821_v33  ;;  %v8146_v35 = vadd.f32 %v8114_v37, %v15824_v21  ;;  %v8116_v28 = vmul.f32 0.044715, %v8084_v62  ;;  %v8118_v59 = vmul.f32 0.044715, %v8086_v55  ;;  %v7949_v32 = vpop.f32.mrb[162].mxu0  ;;  %v8022_v49 = vpop.f32.mrb[154].mxu1 }
0x2508   : > { %v8175_v54 = vmul.f32 0.7978846, %v8143_v7  ;;  %v8177_v53 = vmul.f32 0.7978846, %v8145_v1  ;;  %v8147_v50 = vadd.f32 %v8115_v0, %v15831_v57  ;;  %v8149_v3 = vadd.f32 %v8117_v25, %v15834_v51  ;;  %v7951_v12 = vpop.f32.mrb[163].mxu0  ;;  %v8024_v10 = vpop.f32.mrb[155].mxu1 }
0x2509   : > { %v8176_v52 = vmul.f32 0.7978846, %v8144_v38  ;;  %v8178_v47 = vmul.f32 0.7978846, %v8146_v35  ;;  %v8148_v36 = vadd.f32 %v8116_v28, %v15841_v6  ;;  %v8150_v44 = vadd.f32 %v8118_v59, %v15844_v29 }
0x250a   : > { %12096 = vtanh.f32 %v8175_v54  ;;  %v8179_v17 = vmul.f32 0.7978846, %v8147_v50  ;;  %v8181_v22 = vmul.f32 0.7978846, %v8149_v3  ;;  %v15871_v14 = vadd.f32 %v7945_v15, %v15803_v18 }
0x250b   : > { %12098 = vtanh.f32 %v8177_v53  ;;  %v8180_v4 = vmul.f32 0.7978846, %v8148_v36  ;;  %v8182_v42 = vmul.f32 0.7978846, %v8150_v44  ;;  %v15874_v58 = vadd.f32 %v8018_v24, %v15806_v27 }
0x250c   : > { %12100 = vtanh.f32 %v8176_v52  ;;  %v8055_v41 = vmul.f32 %v15871_v14, %v15871_v14  ;;  %v15879_v16 = vadd.f32 %v7947_v13, %v15812_v20  ;;  %v15882_v39 = vadd.f32 %v8020_v40, %v15809_v34 }
0x250d   : > { %12102 = vtanh.f32 %v8178_v47  ;;  %v8057_v48 = vmul.f32 %v15874_v58, %v15874_v58  ;;  %v15887_v9 = vadd.f32 %v7949_v32, %v15803_v18  ;;  %v15890_v2 = vadd.f32 %v8022_v49, %v15806_v27  ;;  %v15892_v8 = vpop.f32.mrb[164].mxu0  ;;  %v15894_v37 = vpop.f32.mrb[156].mxu1 }
0x250e   : > { %12104 = vtanh.f32 %v8179_v17  ;;  %v8087_v62 = vmul.f32 %v8055_v41, %v15871_v14  ;;  %v8056_v55 = vmul.f32 %v15879_v16, %v15879_v16  ;;  %v8058_v15 = vmul.f32 %v15882_v39, %v15882_v39  ;;  %v15901_v24 = vpop.f32.mrb[165].mxu0  ;;  %v15903_v7 = vpop.f32.mrb[157].mxu1 }
0x250f   : > { %12106 = vtanh.f32 %v8181_v22  ;;  %v8089_v1 = vmul.f32 %v8057_v48, %v15874_v58  ;;  %v8059_v0 = vmul.f32 %v15887_v9, %v15887_v9  ;;  %v8061_v25 = vmul.f32 %v15890_v2, %v15890_v2  ;;  %v15910_v13 = vpop.f32.mrb[166].mxu0  ;;  %v15912_v40 = vpop.f32.mrb[158].mxu1 }
0x2510   : > { %12108 = vtanh.f32 %v8180_v4  ;;  %v8119_v38 = vmul.f32 0.044715, %v8087_v62  ;;  %v8088_v35 = vmul.f32 %v8056_v55, %v15879_v16  ;;  %v8090_v28 = vmul.f32 %v8058_v15, %v15882_v39  ;;  %v15916_v59 = vpop.f32.mrb[167].mxu0  ;;  %v15918_v32 = vpop.f32.mrb[159].mxu1 }
0x2511   : > { %12110 = vtanh.f32 %v8182_v42  ;;  %v8121_v49 = vmul.f32 0.044715, %v8089_v1  ;;  %v8091_v54 = vmul.f32 %v8059_v0, %v15887_v9  ;;  %v8093_v53 = vmul.f32 %v8061_v25, %v15890_v2 }
0x2512   : > { %v8151_v50 = vadd.f32 %v8119_v38, %v15871_v14  ;;  %v8120_v3 = vmul.f32 0.044715, %v8088_v35  ;;  %v8122_v52 = vmul.f32 0.044715, %v8090_v28  ;;  %v15924_v47 = vadd.f32 %v7951_v12, %v15812_v20 }
0x2513   : > { %v8153_v36 = vadd.f32 %v8121_v49, %v15874_v58  ;;  %v8123_v44 = vmul.f32 0.044715, %v8091_v54  ;;  %v8125_v17 = vmul.f32 0.044715, %v8093_v53  ;;  %v15928_v22 = vadd.f32 %v8024_v10, %v15809_v34 }
0x2514   : > { %v12097_v4 = vpop.eup %12096  ;;  %v8183_v42 = vmul.f32 0.7978846, %v8151_v50  ;;  %v8152_v41 = vadd.f32 %v8120_v3, %v15879_v16  ;;  %v8154_v48 = vadd.f32 %v8122_v52, %v15882_v39  ;;  %v8060_v62 = vmul.f32 %v15924_v47, %v15924_v47 }
0x2515   : > { %v12099_v55 = vpop.eup %12098  ;;  %v8239_v15 = vadd.f32 1.0, %v12097_v4  ;;  %v8185_v12 = vmul.f32 0.7978846, %v8153_v36  ;;  %v8155_v1 = vadd.f32 %v8123_v44, %v15887_v9  ;;  %v8157_v0 = vadd.f32 %v8125_v17, %v15890_v2  ;;  %v15936_v25 = vpop.f32.mrb[168].mxu0 }
0x2516   : > { %v15938_v10 = vpop.f32.mrb[160].mxu1  ;;  %v15940_v38 = vpop.eup %12100  ;;  %v8241_v35 = vadd.f32 1.0, %v12099_v55  ;;  %12112 = vtanh.f32 %v8183_v42  ;;  %v8184_v28 = vmul.f32 0.7978846, %v8152_v41  ;;  %v8186_v49 = vmul.f32 0.7978846, %v8154_v48 }
0x2517   : > { %v15942_v54 = vpop.f32.mrb[169].mxu0  ;;  %v15944_v53 = vpop.eup %12102  ;;  %v8271_v50 = vmul.f32 0.5, %v8239_v15  ;;  %12114 = vtanh.f32 %v8185_v12  ;;  %v8187_v3 = vmul.f32 0.7978846, %v8155_v1  ;;  %v8189_v52 = vmul.f32 0.7978846, %v8157_v0 }
0x2518   : > { %v15946_v36 = vpop.f32.mrb[161].mxu1  ;;  %v12105_v44 = vpop.eup %12104  ;;  %v8273_v17 = vmul.f32 0.5, %v8241_v35  ;;  %12116 = vtanh.f32 %v8184_v28  ;;  %v8092_v4 = vmul.f32 %v8060_v62, %v15924_v47  ;;  %v8062_v42 = vmul.f32 %v15928_v22, %v15928_v22 }
0x2519   : > { %v15951_v41 = vpop.f32.mrb[170].mxu0  ;;  %v15953_v48 = vpop.f32.mrb[162].mxu1  ;;  %v15956_v15 = vmul.f32 %v8271_v50, %v15815_v56  ;;  %v8243_v12 = vadd.f32 1.0, %v12105_v44  ;;  %12118 = vtanh.f32 %v8186_v49  ;;  %v15960_v1 = vadd.f32 %v15892_v8, %v15803_v18 }
0x251a   : > { %v12107_v55 = vpop.eup %12106  ;;  %v15962_v0 = vpop.f32.mrb[171].mxu0  ;;  %v15969_v28 = vmul.f32 %v8273_v17, %v15818_v11  ;;  %12120 = vtanh.f32 %v8187_v3  ;;  %v8124_v26 = vmul.f32 0.044715, %v8092_v4  ;;  %v8094_v49 = vmul.f32 %v8062_v42, %v15928_v22 }
0x251b   : > { %v15964_v62 = vpop.f32.mrb[163].mxu1  ;;  %v15966_v35 = vpop.eup %12108  ;;  %v8245_v23 = vadd.f32 1.0, %v12107_v55  ;;  %v8275_v50 = vmul.f32 0.5, %v8243_v12  ;;  %12122 = vtanh.f32 %v8189_v52  ;;  %v8063_v8 = vmul.f32 %v15960_v1, %v15960_v1 }
0x251c   : > { %v15971_v56 = vpop.eup %12110  ;;  %v8156_v43 = vadd.f32 %v8124_v26, %v15924_v47  ;;  %v15979_v61 = vadd.f32 %v15894_v37, %v15806_v27  ;;  %v15983_v11 = vadd.f32 %v15901_v24, %v15812_v20  ;;  %v8126_v52 = vmul.f32 0.044715, %v8094_v49 }
0x251d   : > { %v8277_v44 = vmul.f32 0.5, %v8245_v23  ;;  %v15986_v3 = vmul.f32 %v8275_v50, %v15831_v57  ;;  %v8095_v17 = vmul.f32 %v8063_v8, %v15960_v1  ;;  %v15991_v4 = vadd.f32 %v15903_v7, %v15809_v34 }
0x251e   : > { %v8188_v23 = vmul.f32 0.7978846, %v8156_v43  ;;  %v8065_v37 = vmul.f32 %v15979_v61, %v15979_v61  ;;  %v8064_v24 = vmul.f32 %v15983_v11, %v15983_v11  ;;  %v8158_v42 = vadd.f32 %v8126_v52, %v15928_v22 }
0x251f   : > { %v15994_v26 = vmul.f32 %v8277_v44, %v15834_v51  ;;  %v8127_v55 = vmul.f32 0.044715, %v8095_v17  ;;  %v8066_v7 = vmul.f32 %v15991_v4, %v15991_v4  ;;  %v16017_v17 = vadd.f32 %v15910_v13, %v15803_v18 }
0x2520   : > { %v16005_v12 = vpop.eup %12112  ;;  %12124 = vtanh.f32 %v8188_v23  ;;  %v8097_v51 = vmul.f32 %v8065_v37, %v15979_v61  ;;  %v8096_v50 = vmul.f32 %v8064_v24, %v15983_v11  ;;  %v8190_v8 = vmul.f32 0.7978846, %v8158_v42 }
0x2521   : > { %v16011_v49 = vpop.eup %12114  ;;  %v8159_v44 = vadd.f32 %v8127_v55, %v15960_v1  ;;  %v8098_v52 = vmul.f32 %v8066_v7, %v15991_v4  ;;  %v16023_v23 = vadd.f32 %v15912_v40, %v15806_v27  ;;  %v16027_v37 = vadd.f32 %v15916_v59, %v15812_v20 }
0x2522   : > { %v16019_v57 = vpop.eup %12116  ;;  %v8129_v45 = vmul.f32 0.044715, %v8097_v51  ;;  %v8128_v43 = vmul.f32 0.044715, %v8096_v50  ;;  %12126 = vtanh.f32 %v8190_v8  ;;  %v8067_v13 = vmul.f32 %v16017_v17, %v16017_v17 }
0x2523   : > { %v16029_v24 = vpop.eup %12118  ;;  %v8191_v42 = vmul.f32 0.7978846, %v8159_v44  ;;  %v8130_v55 = vmul.f32 0.044715, %v8098_v52  ;;  %v8069_v40 = vmul.f32 %v16023_v23, %v16023_v23  ;;  %v8068_v59 = vmul.f32 %v16027_v37, %v16027_v37 }
0x2524   : > { %v16033_v7 = vpop.eup %12120  ;;  %v8161_v51 = vadd.f32 %v8129_v45, %v15979_v61  ;;  %v8160_v50 = vadd.f32 %v8128_v43, %v15983_v11  ;;  %v8099_v44 = vmul.f32 %v8067_v13, %v16017_v17  ;;  %v16047_v52 = vadd.f32 %v15918_v32, %v15809_v34 }
0x2525   : > { %v16041_v60 = vpop.eup %12122  ;;  %12128 = vtanh.f32 %v8191_v42  ;;  %v8162_v8 = vadd.f32 %v8130_v55, %v15991_v4  ;;  %v8101_v43 = vmul.f32 %v8069_v40, %v16023_v23  ;;  %v8100_v46 = vmul.f32 %v8068_v59, %v16027_v37 }
0x2526   : > { %v8193_v45 = vmul.f32 0.7978846, %v8161_v51  ;;  %v8192_v63 = vmul.f32 0.7978846, %v8160_v50  ;;  %v8131_v5 = vmul.f32 0.044715, %v8099_v44  ;;  %v8070_v31 = vmul.f32 %v16047_v52, %v16047_v52 }
0x2527   : > { %v8194_v30 = vmul.f32 0.7978846, %v8162_v8  ;;  %v16055_v42 = vadd.f32 %v15936_v25, %v15803_v18  ;;  %v8133_v55 = vmul.f32 0.044715, %v8101_v43  ;;  %v8132_v13 = vmul.f32 0.044715, %v8100_v46 }
0x2528   : > { %12130 = vtanh.f32 %v8193_v45  ;;  %v16059_v32 = vadd.f32 %v15938_v10, %v15806_v27  ;;  %v8163_v51 = vadd.f32 %v8131_v5, %v16017_v17  ;;  %v8102_v50 = vmul.f32 %v8070_v31, %v16047_v52 }
0x2529   : > { %16575 = vst [vmem:[#allocation49_spill] sm:$0xff] %v16055_v42  ;;  %12132 = vtanh.f32 %v8192_v63  ;;  %v8071_v40 = vmul.f32 %v16055_v42, %v16055_v42  ;;  %v8165_v25 = vadd.f32 %v8133_v55, %v16023_v23  ;;  %v8164_v8 = vadd.f32 %v8132_v13, %v16027_v37 }
0x252a   : > { %16576 = vst [vmem:[#allocation50_spill] sm:$0xff] %v16059_v32  ;;  %v16065_v59 = vpop.eup %12124  ;;  %12134 = vtanh.f32 %v8194_v30  ;;  %v8073_v46 = vmul.f32 %v16059_v32, %v16059_v32  ;;  %v8195_v10 = vmul.f32 0.7978846, %v8163_v51  ;;  %v8134_v44 = vmul.f32 0.044715, %v8102_v50 }
0x252b   : > { %v8103_v63 = vmul.f32 %v8071_v40, %v16055_v42  ;;  %v16074_v5 = vadd.f32 %v15942_v54, %v15812_v20  ;;  %v8197_v31 = vmul.f32 0.7978846, %v8165_v25  ;;  %v8196_v45 = vmul.f32 0.7978846, %v8164_v8 }
0x252c   : > { %v8105_v43 = vmul.f32 %v8073_v46, %v16059_v32  ;;  %v16079_v30 = vadd.f32 %v15946_v36, %v15809_v34  ;;  %v16081_v55 = vpop.eup %12126  ;;  %12136 = vtanh.f32 %v8195_v10  ;;  %v8166_v13 = vadd.f32 %v8134_v44, %v16047_v52 }
0x252d   : > { %v8135_v51 = vmul.f32 0.044715, %v8103_v63  ;;  %v8072_v50 = vmul.f32 %v16074_v5, %v16074_v5  ;;  %12138 = vtanh.f32 %v8197_v31  ;;  %v16090_v25 = vadd.f32 %v15951_v41, %v15803_v18 }
0x252e   : > { %v8137_v54 = vmul.f32 0.044715, %v8105_v43  ;;  %v8074_v40 = vmul.f32 %v16079_v30, %v16079_v30  ;;  %12140 = vtanh.f32 %v8196_v45  ;;  %v8198_v8 = vmul.f32 0.7978846, %v8166_v13 }
0x252f   : > { %v16092_v36 = vpop.eup %12128  ;;  %v8167_v46 = vadd.f32 %v8135_v51, %v16055_v42  ;;  %v8104_v10 = vmul.f32 %v8072_v50, %v16074_v5  ;;  %v8075_v31 = vmul.f32 %v16090_v25, %v16090_v25  ;;  %v16102_v43 = vadd.f32 %v15953_v48, %v15806_v27 }
0x2530   : > { %v8169_v44 = vadd.f32 %v8137_v54, %v16059_v32  ;;  %v8106_v63 = vmul.f32 %v8074_v40, %v16079_v30  ;;  %12142 = vtanh.f32 %v8198_v8  ;;  %v16106_v45 = vadd.f32 %v15962_v0, %v15812_v20 }
0x2531   : > { %16577 = vst [vmem:[#allocation51_spill] sm:$0xff] %v16102_v43  ;;  %v8199_v18 = vmul.f32 0.7978846, %v8167_v46  ;;  %v8136_v41 = vmul.f32 0.044715, %v8104_v10  ;;  %v8107_v54 = vmul.f32 %v8075_v31, %v16090_v25  ;;  %v8077_v40 = vmul.f32 %v16102_v43, %v16102_v43 }
0x2532   : > { %v16108_v13 = vpop.eup %12130  ;;  %v8201_v51 = vmul.f32 0.7978846, %v8169_v44  ;;  %v8138_v50 = vmul.f32 0.044715, %v8106_v63  ;;  %v8076_v48 = vmul.f32 %v16106_v45, %v16106_v45  ;;  %v16120_v20 = vadd.f32 %v15964_v62, %v15809_v34 }
0x2533   : > { %v16113_v19 = vpop.eup %12132  ;;  %12144 = vtanh.f32 %v8199_v18  ;;  %v8168_v27 = vadd.f32 %v8136_v41, %v16074_v5  ;;  %v8139_v46 = vmul.f32 0.044715, %v8107_v54  ;;  %v8109_v10 = vmul.f32 %v8077_v40, %v16102_v43 }
0x2534   : > { %v16122_v0 = vpop.eup %12134  ;;  %12146 = vtanh.f32 %v8201_v51  ;;  %v8170_v8 = vadd.f32 %v8138_v50, %v16079_v30  ;;  %v8108_v63 = vmul.f32 %v8076_v48, %v16106_v45  ;;  %v8078_v31 = vmul.f32 %v16120_v20, %v16120_v20 }
0x2535   : > { %v8200_v44 = vmul.f32 0.7978846, %v8168_v27  ;;  %v8240_v18 = vadd.f32 1.0, %v15940_v38  ;;  %v8171_v34 = vadd.f32 %v8139_v46, %v16090_v25  ;;  %v8141_v62 = vmul.f32 0.044715, %v8109_v10 }
0x2536   : > { %v8202_v41 = vmul.f32 0.7978846, %v8170_v8  ;;  %v8244_v32 = vadd.f32 1.0, %v15966_v35  ;;  %v16132_v51 = vpop.eup %12136  ;;  %v8140_v50 = vmul.f32 0.044715, %v8108_v63  ;;  %v8110_v54 = vmul.f32 %v8078_v31, %v16120_v20 }
0x2537   : > { %12148 = vtanh.f32 %v8200_v44  ;;  %v8272_v40 = vmul.f32 0.5, %v8240_v18  ;;  %v16135_v27 = vpop.eup %12138  ;;  %v8203_v48 = vmul.f32 0.7978846, %v8171_v34  ;;  %v8173_v42 = vadd.f32 %v8141_v62, %v16102_v43 }
0x2538   : > { %12150 = vtanh.f32 %v8202_v41  ;;  %v8276_v38 = vmul.f32 0.5, %v8244_v32  ;;  %v16138_v8 = vpop.eup %12140  ;;  %v8172_v46 = vadd.f32 %v8140_v50, %v16106_v45  ;;  %v8142_v10 = vmul.f32 0.044715, %v8110_v54 }
0x2539   : > { %v8304_v35 = vmul.f32 %v8272_v40, %v15821_v33  ;;  %v8242_v44 = vadd.f32 1.0, %v15944_v53  ;;  %12152 = vtanh.f32 %v8203_v48  ;;  %v8205_v63 = vmul.f32 0.7978846, %v8173_v42  ;;  %v11664_v33 = vld [vmem:[#allocation21] ss:$8 sps:$4 sm:$0xff]  }
0x253a   : > { %v8308_v31 = vmul.f32 %v8276_v38, %v15841_v6  ;;  %v8246_v18 = vadd.f32 1.0, %v15971_v56  ;;  %v16145_v41 = vpop.eup %12142  ;;  %v8204_v34 = vmul.f32 0.7978846, %v8172_v46  ;;  %v8174_v32 = vadd.f32 %v8142_v10, %v16120_v20  ;;  %v11669_v42 = vld [vmem:[#allocation21 + $0x14] ss:$8 sps:$4 sm:$0xff]  }
0x253b   : > { %v8274_v62 = vmul.f32 0.5, %v8242_v44  ;;  %v8248_v43 = vadd.f32 1.0, %v16019_v57  ;;  %12154 = vtanh.f32 %v8205_v63  ;;  %v8252_v53 = vadd.f32 1.0, %v16065_v59 }
0x253c   : > { %v8403_v50 = vpack.c.bf16 %v8308_v31, %v8304_v35  ;;  %v8278_v54 = vmul.f32 0.5, %v8246_v18  ;;  %12156 = vtanh.f32 %v8204_v34  ;;  %v8206_v6 = vmul.f32 0.7978846, %v8174_v32  ;;  %v11667_v31 = vld [vmem:[#allocation21 + $0x10] ss:$8 sps:$4 sm:$0xff]  }
0x253d   : > { %v16150_v40 = vpop.eup %12144  ;;  %v8306_v56 = vmul.f32 %v8274_v62, %v15824_v21  ;;  %v8280_v48 = vmul.f32 0.5, %v8248_v43  ;;  %v8284_v57 = vmul.f32 0.5, %v8252_v53  ;;  %v8250_v10 = vadd.f32 1.0, %v16029_v24 }
0x253e   : > { %v16153_v38 = vpop.eup %12146  ;;  %8648 = vmatprep.mubr.bf16.mxu0 %v8403_v50  ;;  %v8310_v46 = vmul.f32 %v8278_v54, %v15844_v29  ;;  %v8254_v35 = vadd.f32 1.0, %v16081_v55  ;;  %12158 = vtanh.f32 %v8206_v6  ;;  %v16578_v59 = vpack.c.bf16 %v15986_v3, %v15956_v15 }
0x253f   : > { %v8312_v44 = vmul.f32 %v8280_v48, %v15879_v16  ;;  %v8247_v21 = vadd.f32 1.0, %v16005_v12  ;;  %v8251_v43 = vadd.f32 1.0, %v16033_v7  ;;  %v8316_v29 = vmul.f32 %v8284_v57, %v15924_v47  ;;  %v11672_v16 = vld [vmem:[#allocation21 + $0x24] ss:$8 sps:$4 sm:$0xff]  }
0x2540   : > { %8649 = vmatmul.mubr.bf16.vlgmr.msra.gmra.mrb[172].mxu0 %v16578_v59  ;;  %v8405_v63 = vpack.c.bf16 %v8310_v46, %v8306_v56  ;;  %v8282_v18 = vmul.f32 0.5, %v8250_v10  ;;  %v8286_v24 = vmul.f32 0.5, %v8254_v35  ;;  %v8249_v15 = vadd.f32 1.0, %v16011_v49 }
0x2541   : > { %8875 = vmatpush1.bf16.msra.mxu0 %v11664_v33  ;;  %v12149_v34 = vpop.eup %12148  ;;  %v8279_v55 = vmul.f32 0.5, %v8247_v21  ;;  %v8283_v32 = vmul.f32 0.5, %v8251_v43  ;;  %v8253_v3 = vadd.f32 1.0, %v16041_v60  ;;  %v8407_v12 = vpack.c.bf16 %v8316_v29, %v8312_v44  ;;  %v11673_v21 = vld [vmem:[#allocation21 + $0x30] ss:$8 sps:$4 sm:$0xff]  }
0x2542   : > { %8876 = vmatprep.subr.bf16.mxu0 %v11669_v42  ;;  %v16167_v62 = vpop.eup %12150  ;;  %8713 = vmatprep.mubr.bf16.mxu1 %v8405_v63  ;;  %v8314_v7 = vmul.f32 %v8282_v18, %v15882_v39  ;;  %v8318_v50 = vmul.f32 %v8286_v24, %v15928_v22  ;;  %v8256_v47 = vadd.f32 1.0, %v16113_v19  ;;  %v16579_v54 = vpack.c.bf16 %v15994_v26, %v15969_v28  ;;  %v11670_v42 = vld [vmem:[#allocation21 + $0x20] ss:$8 sps:$4 sm:$0xff]   ;;  %v11678_v24 = vld [vmem:[#allocation21 + $0x44] ss:$8 sps:$4 sm:$0xff]  }
0x2543   : > { %v8311_v33 = vmul.f32 %v8279_v55, %v15871_v14  ;;  %v8315_v49 = vmul.f32 %v8283_v32, %v15887_v9  ;;  %v8281_v60 = vmul.f32 0.5, %v8249_v15  ;;  %v8285_v53 = vmul.f32 0.5, %v8253_v3  ;;  %v12153_v6 = vpop.eup %12152  ;;  %8656 = vmatprep.mubr.bf16.mxu0 %v8407_v12  ;;  %v11675_v14 = vld [vmem:[#allocation21 + $0x34] ss:$8 sps:$4 sm:$0xff]  }
0x2544   : > { %8714 = vmatmul.mubr.bf16.vlgmr.msra.gmra.mrb[164].mxu1 %v16579_v54  ;;  %v8409_v56 = vpack.c.bf16 %v8318_v50, %v8314_v7  ;;  %v8260_v39 = vadd.f32 1.0, %v16138_v8  ;;  %v8288_v22 = vmul.f32 0.5, %v8256_v47  ;;  %v8258_v19 = vadd.f32 1.0, %v16122_v0  ;;  %v11681_v50 = vld [vmem:[#allocation21 + $0x54] ss:$8 sps:$4 sm:$0xff]  }
0x2545   : > { %8877 = vmatpush1.bf16.msra.mxu0 %v11667_v31  ;;  %v8406_v48 = vpack.c.bf16 %v8315_v49, %v8311_v33  ;;  %v8313_v28 = vmul.f32 %v8281_v60, %v15874_v58  ;;  %v8317_v26 = vmul.f32 %v8285_v53, %v15890_v2  ;;  %v8262_v9 = vadd.f32 1.0, %v16145_v41  ;;  %v12155_v46 = vpop.eup %12154 }
0x2546   : > { %8878 = vmatprep.subr.bf16.mxu0 %v11672_v16  ;;  %8721 = vmatprep.mubr.bf16.mxu1 %v8409_v56  ;;  %v8292_v57 = vmul.f32 0.5, %v8260_v39  ;;  %v8320_v10 = vmul.f32 %v8288_v22, %v15983_v11  ;;  %v8290_v35 = vmul.f32 0.5, %v8258_v19  ;;  %v8255_v8 = vadd.f32 1.0, %v16092_v36  ;;  %v12157_v59 = vpop.eup %12156  ;;  %v11676_v16 = vld [vmem:[#allocation21 + $0x40] ss:$8 sps:$4 sm:$0xff]  }
0x2547   : > { %v8408_v0 = vpack.c.bf16 %v8317_v26, %v8313_v28  ;;  %v8294_v44 = vmul.f32 0.5, %v8262_v9  ;;  %v8259_v58 = vadd.f32 1.0, %v16132_v51  ;;  %v8257_v2 = vadd.f32 1.0, %v16108_v13  ;;  %v11684_v28 = vld [vmem:[#allocation21 + $0x64] ss:$8 sps:$4 sm:$0xff]  }
0x2548   : > { %8657 = vmatmul.mubr.bf16.gmra.mrb[176].mxu0 %v8406_v48  ;;  %v8324_v41 = vmul.f32 %v8292_v57, %v16027_v37  ;;  %v8322_v43 = vmul.f32 %v8290_v35, %v15991_v4  ;;  %v8287_v63 = vmul.f32 0.5, %v8255_v8  ;;  %v8261_v11 = vadd.f32 1.0, %v16135_v27  ;;  %v12159_v31 = vpop.eup %12158  ;;  %v16584_v8 = vld [vmem:[#allocation39_spill] sm:$0xff] }
0x2549   : > { %8879 = vmatpush1.bf16.msra.mxu0 %v11670_v42  ;;  %v8326_v36 = vmul.f32 %v8294_v44, %v16047_v52  ;;  %v8291_v29 = vmul.f32 0.5, %v8259_v58  ;;  %v8289_v18 = vmul.f32 0.5, %v8257_v2  ;;  %v8264_v55 = vadd.f32 1.0, %v12149_v34  ;;  %v11679_v42 = vld [vmem:[#allocation21 + $0x50] ss:$8 sps:$4 sm:$0xff]  }
0x254a   : > { %8880 = vmatprep.subr.bf16.mxu0 %v11675_v14  ;;  %v8411_v51 = vpack.c.bf16 %v8324_v41, %v8320_v10  ;;  %v8319_v13 = vmul.f32 %v8287_v63, %v15960_v1  ;;  %v8293_v32 = vmul.f32 0.5, %v8261_v11  ;;  %v8268_v15 = vadd.f32 1.0, %v12157_v59  ;;  %v16581_v14 = vld [vmem:[#allocation50_spill] sm:$0xff]  ;;  %v11687_v10 = vld [vmem:[#allocation21 + $0x74] ss:$8 sps:$4 sm:$0xff]  }
0x254b   : > { %v8413_v37 = vpack.c.bf16 %v8326_v36, %v8322_v43  ;;  %v8323_v4 = vmul.f32 %v8291_v29, %v16017_v17  ;;  %v8321_v3 = vmul.f32 %v8289_v18, %v15979_v61  ;;  %v8296_v27 = vmul.f32 0.5, %v8264_v55  ;;  %v12180_v59 = vld [vmem:[#allocation10 + $0x6] sm:$0x3f] }
0x254c   : > { %8722 = vmatmul.mubr.bf16.gmra.mrb[168].mxu1 %v8408_v0  ;;  %8664 = vmatprep.mubr.bf16.mxu0 %v8411_v51  ;;  %v8325_v52 = vmul.f32 %v8293_v32, %v16023_v23  ;;  %v8300_v12 = vmul.f32 0.5, %v8268_v15  ;;  %v8266_v34 = vadd.f32 1.0, %v16167_v62  ;;  %v8270_v7 = vadd.f32 1.0, %v12159_v31  ;;  %v16585_v0 = vld [vmem:[#allocation34_spill] sm:$0xff]  ;;  %v16587_v31 = vld [vmem:[#allocation53_spill] sm:$0xff] }
0x254d   : > { %8881 = vmatpush1.bf16.msra.mxu0 %v11673_v21  ;;  %8729 = vmatprep.mubr.bf16.mxu1 %v8413_v37  ;;  %v8410_v1 = vpack.c.bf16 %v8323_v4, %v8319_v13  ;;  %v8328_v47 = vmul.f32 %v8296_v27, %v16074_v5  ;;  %v8263_v17 = vadd.f32 1.0, %v16150_v40  ;;  %v8267_v54 = vadd.f32 1.0, %v12153_v6  ;;  %v16580_v40 = vld [vmem:[#allocation49_spill] sm:$0xff]  ;;  %v16588_v37 = vld [vmem:[#allocation36_spill] sm:$0xff] }
0x254e   : > { %8882 = vmatprep.subr.bf16.mxu0 %v11678_v24  ;;  %v8412_v61 = vpack.c.bf16 %v8325_v52, %v8321_v3  ;;  %v8332_v33 = vmul.f32 %v8300_v12, %v16106_v45  ;;  %v8298_v49 = vmul.f32 0.5, %v8266_v34  ;;  %v8302_v60 = vmul.f32 0.5, %v8270_v7  ;;  %v16209_v21 = vld [vmem:[#allocation19 + $0x1] ss:$0 sm:$0xff] }
0x254f   : > { %v8295_v23 = vmul.f32 0.5, %v8263_v17  ;;  %v8299_v53 = vmul.f32 0.5, %v8267_v54  ;;  %v8265_v62 = vadd.f32 1.0, %v16153_v38  ;;  %v8269_v56 = vadd.f32 1.0, %v12155_v46  ;;  %v16582_v46 = vld [vmem:[#allocation51_spill] sm:$0xff] }
0x2550   : > { %8665 = vmatmul.mubr.bf16.gmra.mrb[180].mxu0 %v8410_v1  ;;  %v8415_v39 = vpack.c.bf16 %v8332_v33, %v8328_v47  ;;  %v8330_v22 = vmul.f32 %v8298_v49, %v16079_v30  ;;  %v8334_v5 = vmul.f32 %v8302_v60, %v16120_v20  ;;  %v11682_v30 = vld [vmem:[#allocation21 + $0x60] ss:$8 sps:$4 sm:$0xff]   ;;  %v16583_v35 = vmov 0  }
0x2551   : > { %8883 = vmatpush1.bf16.msra.mxu0 %v11676_v16  ;;  %v8327_v6 = vmul.f32 %v8295_v23, %v16580_v40  ;;  %v8331_v45 = vmul.f32 %v8299_v53, %v16090_v25  ;;  %v8297_v19 = vmul.f32 0.5, %v8265_v62  ;;  %v8301_v48 = vmul.f32 0.5, %v8269_v56  ;;  %v11685_v25 = vld [vmem:[#allocation21 + $0x70] ss:$8 sps:$4 sm:$0xff]   ;;  %v16589_v33 = vld [vmem:[#allocation37_spill] sm:$0xff]  ;;  %v16590_v56 = vld [vmem:[#allocation38_spill] sm:$0xff] }
0x2552   : > { %8884 = vmatprep.subr.bf16.mxu0 %v11681_v50  ;;  %8672 = vmatprep.mubr.bf16.mxu0 %v8415_v39  ;;  %v8417_v26 = vpack.c.bf16 %v8334_v5, %v8330_v22  ;;  %v16586_v44 = vsub.s32 5, %v16585_v0 }
0x2553   : > { %v8414_v38 = vpack.c.bf16 %v8331_v45, %v8327_v6  ;;  %v8329_v9 = vmul.f32 %v8297_v19, %v16581_v14  ;;  %v8333_v57 = vmul.f32 %v8301_v48, %v16582_v46 }
0x2554   : > { %8730 = vmatmul.mubr.bf16.gmra.mrb[172].mxu1 %v8412_v61  ;;  %v5550_v58 = vrot.slane %v12180_v59, %v16586_v44 }
0x2555   : > { %8885 = vmatpush1.bf16.msra.mxu0 %v11679_v42  ;;  %8737 = vmatprep.mubr.bf16.mxu1 %v8417_v26  ;;  %v8416_v20 = vpack.c.bf16 %v8333_v57, %v8329_v9  ;;  %v16591_v57 = vld [vmem:[#allocation42_spill] sm:$0xff] }
0x2556   : > { %8886 = vmatprep.subr.bf16.mxu0 %v11684_v28  ;;  %v5676_v36 = vadd.f32 %v16587_v31, %v5550_v58 }
0x2558   : > { %8673 = vmatmul.mubr.bf16.gmra.mrb[184].mxu0 %v8414_v38  ;;  %v16215_v4 = vrot.slane %v5676_v36, %v16588_v37 }
0x2559   : > { %8887 = vmatpush1.bf16.msra.mxu0 %v11682_v30  ;;  %8906 = vmatprep.mubr.bf16.mxu0 %v16583_v35 }
0x255a   : > { %8888 = vmatprep.subr.bf16.mxu0 %v11687_v10 }
0x255c   : > { %8738 = vmatmul.mubr.bf16.gmra.mrb[176].mxu1 %v8416_v20 }
0x255d   : > { %8889 = vmatpush1.bf16.msra.mxu0 %v11685_v25 }
0x2560   : > { %8907 = vmatmul.mubr.bf16.vlgmr.msra.gmra.mrb[188].mxu0 %v16584_v8  ;;  %v16592_v8 = vld [vmem:[#allocation44_spill] sm:$0xff] }
0x2613   : > { %v10400_v2 = vpop.f32.mrb[172].mxu0 }
0x2614   : > { %v10401_v41 = vpop.f32.mrb[173].mxu0 }
0x2615   : > { %v10402_v43 = vadd.f32 %v10401_v41, %v10400_v2  ;;  %v10403_v63 = vpop.f32.mrb[174].mxu0 }
0x2616   : > { %v10404_v11 = vpop.f32.mrb[175].mxu0 }
0x2617   : > { %v10440_v29 = vpop.f32.mrb[164].mxu1  ;;  %v8651_v18 = vadd.f32 %v10402_v43, %v16209_v21  ;;  %v10405_v24 = vadd.f32 %v10404_v11, %v10403_v63 }
0x2618   : > { %v10441_v55 = vpop.f32.mrb[165].mxu1 }
0x2619   : > { %v10442_v51 = vadd.f32 %v10441_v55, %v10440_v29  ;;  %v10443_v13 = vpop.f32.mrb[166].mxu1  ;;  %v8654_v32 = vadd.f32 %v10405_v24, %v16209_v21 }
0x261a   : > { %v10444_v15 = vpop.f32.mrb[167].mxu1 }
0x261b   : > { %v8716_v3 = vadd.f32 %v10442_v51, %v8651_v18  ;;  %v10445_v27 = vadd.f32 %v10444_v15, %v10443_v13  ;;  %v10406_v52 = vpop.f32.mrb[176].mxu0  ;;  %v16593_v51 = vld [vmem:[#allocation45_spill] sm:$0xff] }
0x261c   : > { %v10407_v16 = vpop.f32.mrb[177].mxu0 }
0x261d   : > { %v8750_v12 = vmul.f32 %v16215_v4, %v8716_v3  ;;  %v8719_v34 = vadd.f32 %v10445_v27, %v8654_v32  ;;  %v10408_v7 = vadd.f32 %v10407_v16, %v10406_v52  ;;  %v10409_v1 = vpop.f32.mrb[178].mxu0  ;;  %v16594_v52 = vld [vmem:[#allocation46_spill] sm:$0xff] }
0x261e   : > { %v10410_v50 = vpop.f32.mrb[179].mxu0 }
0x261f   : > { %v8751_v47 = vmul.f32 %v16215_v4, %v8719_v34  ;;  %v10446_v17 = vpop.f32.mrb[168].mxu1  ;;  %v8659_v54 = vadd.f32 %v10408_v7, %v16209_v21  ;;  %v10411_v61 = vadd.f32 %v10410_v50, %v10409_v1  ;;  %v16221_v49 = vadd.f32 %v8750_v12, %v16589_v33 }
0x2620   : > { %v10447_v60 = vpop.f32.mrb[169].mxu1 }
0x2621   : > { %v10448_v23 = vadd.f32 %v10447_v60, %v10446_v17  ;;  %v10449_v53 = vpop.f32.mrb[170].mxu1  ;;  %v8662_v62 = vadd.f32 %v10411_v61, %v16209_v21  ;;  %8915 = vadd.xlane.f32.xlu0 %v16221_v49  ;;  %v16226_v42 = vadd.f32 %v8751_v47, %v16590_v56  ;;  %v16595_v60 = vld [vmem:[#allocation47_spill] sm:$0xff] }
0x2622   : > { %v10450_v39 = vpop.f32.mrb[171].mxu1 }
0x2623   : > { %v8724_v22 = vadd.f32 %v10448_v23, %v8659_v54  ;;  %v10451_v5 = vadd.f32 %v10450_v39, %v10449_v53  ;;  %8917 = vadd.xlane.f32.xlu1 %v16226_v42  ;;  %v10412_v40 = vpop.f32.mrb[180].mxu0  ;;  %v16596_v23 = vld [vmem:[#allocation48_spill] sm:$0xff] }
0x2624   : > { %v10413_v6 = vpop.f32.mrb[181].mxu0 }
0x2625   : > { %v8752_v45 = vmul.f32 %v16215_v4, %v8724_v22  ;;  %v8727_v19 = vadd.f32 %v10451_v5, %v8662_v62  ;;  %v10414_v48 = vadd.f32 %v10413_v6, %v10412_v40  ;;  %v10415_v28 = vpop.f32.mrb[182].mxu0 }
0x2626   : > { %v10416_v26 = vpop.f32.mrb[183].mxu0 }
0x2627   : > { %v8753_v38 = vmul.f32 %v16215_v4, %v8727_v19  ;;  %v10452_v14 = vpop.f32.mrb[172].mxu1  ;;  %v8667_v9 = vadd.f32 %v10414_v48, %v16209_v21  ;;  %v10417_v46 = vadd.f32 %v10416_v26, %v10415_v28  ;;  %v8760_v30 = vadd.f32 %v8752_v45, %v16591_v57 }
0x2628   : > { %v10453_v20 = vpop.f32.mrb[173].mxu1 }
0x2629   : > { %v10454_v10 = vadd.f32 %v10453_v20, %v10452_v14  ;;  %v10455_v25 = vpop.f32.mrb[174].mxu1  ;;  %v8670_v35 = vadd.f32 %v10417_v46, %v16209_v21  ;;  %8919 = vadd.xlane.f32.xlu0 %v8760_v30  ;;  %v8761_v59 = vadd.f32 %v8753_v38, %v16592_v8  ;;  %v11688_v8 = vld [vmem:[%s16597_s22] sm:$0xff]  }
0x262a   : > { %v10456_v0 = vpop.f32.mrb[175].mxu1  ;;  %10878 = vmatprep.subr.bf16.mxu1 %v11688_v8 }
0x262b   : > { %v8732_v44 = vadd.f32 %v10454_v10, %v8667_v9  ;;  %v10457_v58 = vadd.f32 %v10456_v0, %v10455_v25  ;;  %8921 = vadd.xlane.f32.xlu1 %v8761_v59  ;;  %v10418_v2 = vpop.f32.mrb[184].mxu0  ;;  %10879 = vmatpush3.bf16.msra.mxu1 %v11688_v8 }
0x262c   : > { %v10419_v41 = vpop.f32.mrb[185].mxu0 }
0x262d   : > { %v8754_v43 = vmul.f32 %v16215_v4, %v8732_v44  ;;  %v8735_v63 = vadd.f32 %v10457_v58, %v8670_v35  ;;  %v10420_v11 = vadd.f32 %v10419_v41, %v10418_v2  ;;  %v10421_v31 = vpop.f32.mrb[186].mxu0  ;;  %v11689_v2 = vld [vmem:[%s16597_s22 + $0x8] sm:$0xff]  }
0x262e   : > { %v10422_v36 = vpop.f32.mrb[187].mxu0  ;;  %10880 = vmatprep.subr.bf16.mxu1 %v11689_v2 }
0x262f   : > { %v8755_v29 = vmul.f32 %v16215_v4, %v8735_v63  ;;  %v10458_v18 = vpop.f32.mrb[176].mxu1  ;;  %v8675_v24 = vadd.f32 %v10420_v11, %v16209_v21  ;;  %v10423_v55 = vadd.f32 %v10422_v36, %v10421_v31  ;;  %v8762_v13 = vadd.f32 %v8754_v43, %v16593_v51  ;;  %10881 = vmatpush3.bf16.msra.mxu1 %v11689_v2  ;;  %v11690_v11 = vld [vmem:[%s16597_s22 + $0x10] sm:$0xff]   ;;  %v11691_v31 = vld [vmem:[%s16597_s22 + $0x18] sm:$0xff]   ;;  %v11692_v36 = vld [vmem:[%s16597_s22 + $0x20] sm:$0xff]  }
0x2630   : > { %v10459_v32 = vpop.f32.mrb[177].mxu1  ;;  %10882 = vmatprep.subr.bf16.mxu1 %v11690_v11  ;;  %v8782_v51 = vld [vmem:[#allocation22] sm:$0x3] }
0x2631   : > { %v10460_v15 = vadd.f32 %v10459_v32, %v10458_v18  ;;  %v10461_v3 = vpop.f32.mrb[178].mxu1  ;;  %v8678_v27 = vadd.f32 %v10423_v55, %v16209_v21  ;;  %8923 = vadd.xlane.f32.xlu0 %v8762_v13  ;;  %v8763_v16 = vadd.f32 %v8755_v29, %v16594_v52  ;;  %v11693_v29 = vld [vmem:[%s16597_s22 + $0x28] sm:$0xff]   ;;  %v11694_v18 = vld [vmem:[%s16597_s22 + $0x30] sm:$0xff]  }
0x2632   : > { %v10462_v12 = vpop.f32.mrb[179].mxu1 }
0x2633   : > { %v8740_v34 = vadd.f32 %v10460_v15, %v8675_v24  ;;  %v10463_v7 = vadd.f32 %v10462_v12, %v10461_v3  ;;  %8925 = vadd.xlane.f32.xlu1 %v8763_v16  ;;  %v16241_v1 = vpop.f32.mrb[188].mxu0  ;;  %10883 = vmatpush3.bf16.msra.mxu1 %v11690_v11  ;;  %v11695_v24 = vld [vmem:[%s16597_s22 + $0x38] sm:$0xff]  }
0x2634   : > { %v16243_v50 = vpop.f32.mrb[189].mxu0  ;;  %10884 = vmatprep.subr.bf16.mxu1 %v11691_v31 }
0x2635   : > { %v8756_v47 = vmul.f32 %v16215_v4, %v8740_v34  ;;  %v8743_v17 = vadd.f32 %v10463_v7, %v8678_v27  ;;  %v8912_v54 = vpop.f32.mrb[190].mxu0  ;;  %v16598_v27 = vld [vmem:[#allocation35_spill] sm:$0xff] }
0x2636   : > { %v8913_v61 = vpop.f32.mrb[191].mxu0  ;;  %v8871_v52 = vrot.slane %v8782_v51, %v16598_v27 }
0x2637   : > { %v8757_v33 = vmul.f32 %v16215_v4, %v8743_v17  ;;  %v8764_v21 = vadd.f32 %v8756_v47, %v16595_v60  ;;  %10885 = vmatpush3.bf16.msra.mxu1 %v11691_v31  ;;  %v8867_v47 = vrot.slane %v8782_v51, %v16588_v37 }
0x2638   : > { %10886 = vmatprep.subr.bf16.mxu1 %v11692_v36  ;;  %v8911_v12 = vadd.f32 %v16243_v50, %v8871_v52 }
0x2639   : > { %8927 = vadd.xlane.f32.xlu0 %v8764_v21  ;;  %v8765_v53 = vadd.f32 %v8757_v33, %v16596_v23 }
0x263a   : > { %v9003_v33 = vadd.f32 1.0, %v8911_v12 }
0x263b   : > { %8929 = vadd.xlane.f32.xlu1 %v8765_v53  ;;  %10887 = vmatpush3.bf16.msra.mxu1 %v11692_v36 }
0x263c   : > { %10888 = vmatprep.subr.bf16.mxu1 %v11693_v29 }
0x263f   : > { %10889 = vmatpush3.bf16.msra.mxu1 %v11693_v29 }
0x2640   : > { %10890 = vmatprep.subr.bf16.mxu1 %v11694_v18 }
0x2643   : > { %10891 = vmatpush3.bf16.msra.mxu1 %v11694_v18 }
0x2644   : > { %10892 = vmatprep.subr.bf16.mxu1 %v11695_v24 }
0x2647   : > { %10893 = vmatpush3.bf16.msra.mxu1 %v11695_v24 }
0x26ae   : > { %v8916_v62 = vpop.xlane.xlu0 %8915 }
0x26af   : > { %v8931_v56 = vmul.f32 0.0078125, %v8916_v62 }
0x26b0   : > { %v8918_v39 = vpop.xlane.xlu1 %8917 }
0x26b1   : > { %v16250_v22 = vsub.f32 %v16221_v49, %v8931_v56  ;;  %v8932_v5 = vmul.f32 0.0078125, %v8918_v39 }
0x26b3   : > { %v16253_v40 = vsub.f32 %v16226_v42, %v8932_v5  ;;  %v8947_v6 = vmul.f32 %v16250_v22, %v16250_v22 }
0x26b5   : > { %8955 = vadd.xlane.f32.xlu0 %v8947_v6  ;;  %v8948_v4 = vmul.f32 %v16253_v40, %v16253_v40 }
0x26b6   : > { %v8920_v45 = vpop.xlane.xlu0 %8919 }
0x26b7   : > { %v8933_v19 = vmul.f32 0.0078125, %v8920_v45  ;;  %8957 = vadd.xlane.f32.xlu1 %v8948_v4 }
0x26b8   : > { %v8922_v48 = vpop.xlane.xlu1 %8921 }
0x26b9   : > { %v16259_v28 = vsub.f32 %v8760_v30, %v8933_v19  ;;  %v8934_v26 = vmul.f32 0.0078125, %v8922_v48 }
0x26bb   : > { %v16261_v49 = vsub.f32 %v8761_v59, %v8934_v26  ;;  %v8949_v42 = vmul.f32 %v16259_v28, %v16259_v28 }
0x26bd   : > { %8959 = vadd.xlane.f32.xlu0 %v8949_v42  ;;  %v8950_v38 = vmul.f32 %v16261_v49, %v16261_v49 }
0x26be   : > { %v8924_v14 = vpop.xlane.xlu0 %8923 }
0x26bf   : > { %v8935_v9 = vmul.f32 0.0078125, %v8924_v14  ;;  %8961 = vadd.xlane.f32.xlu1 %v8950_v38 }
0x26c0   : > { %v8926_v46 = vpop.xlane.xlu1 %8925 }
0x26c1   : > { %v16267_v57 = vsub.f32 %v8762_v13, %v8935_v9  ;;  %v8936_v20 = vmul.f32 0.0078125, %v8926_v46 }
0x26c3   : > { %v16269_v10 = vsub.f32 %v8763_v16, %v8936_v20  ;;  %v8951_v30 = vmul.f32 %v16267_v57, %v16267_v57 }
0x26c5   : > { %8963 = vadd.xlane.f32.xlu0 %v8951_v30  ;;  %v8952_v25 = vmul.f32 %v16269_v10, %v16269_v10 }
0x26c6   : > { %v8928_v35 = vpop.xlane.xlu0 %8927 }
0x26c7   : > { %v8937_v59 = vmul.f32 0.0078125, %v8928_v35  ;;  %8965 = vadd.xlane.f32.xlu1 %v8952_v25 }
0x26c8   : > { %v8930_v0 = vpop.xlane.xlu1 %8929 }
0x26c9   : > { %v16278_v44 = vsub.f32 %v8764_v21, %v8937_v59  ;;  %v8938_v58 = vmul.f32 0.0078125, %v8930_v0  ;;  %v8909_v21 = vadd.f32 %v16241_v1, %v8867_v47 }
0x26cb   : > { %v16283_v41 = vsub.f32 %v8765_v53, %v8938_v58  ;;  %v8953_v43 = vmul.f32 %v16278_v44, %v16278_v44  ;;  %v9007_v53 = vrot.slane %v9003_v33, %v16588_v37  ;;  %v9019_v5 = vrot.slane %v8909_v21, %v16588_v37 }
0x26cd   : > { %8967 = vadd.xlane.f32.xlu0 %v8953_v43  ;;  %v8954_v63 = vmul.f32 %v16283_v41, %v16283_v41 }
0x26cf   : > { %8969 = vadd.xlane.f32.xlu1 %v8954_v63 }
0x2742   : > { %v8956_v55 = vpop.xlane.xlu0 %8955 }
0x2743   : > { %v8971_v13 = vmul.f32 0.0078125, %v8956_v55 }
0x2744   : > { %v8958_v32 = vpop.xlane.xlu1 %8957 }
0x2745   : > { %v8979_v15 = vadd.f32 1e-06, %v8971_v13  ;;  %v8972_v3 = vmul.f32 0.0078125, %v8958_v32 }
0x2747   : > { %12160 = vrsqrt.f32 %v8979_v15  ;;  %v8980_v16 = vadd.f32 1e-06, %v8972_v3 }
0x2749   : > { %12162 = vrsqrt.f32 %v8980_v16 }
0x274a   : > { %v8960_v34 = vpop.xlane.xlu0 %8959 }
0x274b   : > { %v8973_v7 = vmul.f32 0.0078125, %v8960_v34 }
0x274c   : > { %v8962_v17 = vpop.xlane.xlu1 %8961 }
0x274d   : > { %v8981_v54 = vadd.f32 1e-06, %v8973_v7  ;;  %v8974_v61 = vmul.f32 0.0078125, %v8962_v17 }
0x274f   : > { %12164 = vrsqrt.f32 %v8981_v54  ;;  %v8982_v60 = vadd.f32 1e-06, %v8974_v61 }
0x2751   : > { %v12161_v23 = vpop.eup %12160  ;;  %12166 = vrsqrt.f32 %v8982_v60 }
0x2752   : > { %v8964_v62 = vpop.xlane.xlu0 %8963  ;;  %v8995_v56 = vmul.f32 %v12161_v23, %v16250_v22 }
0x2753   : > { %v12163_v50 = vpop.eup %12162  ;;  %v8975_v39 = vmul.f32 0.0078125, %v8964_v62 }
0x2754   : > { %v8966_v6 = vpop.xlane.xlu1 %8965  ;;  %v8996_v4 = vmul.f32 %v12163_v50, %v16253_v40  ;;  %v9008_v45 = vmul.f32 %v9007_v53, %v8995_v56 }
0x2755   : > { %v8983_v19 = vadd.f32 1e-06, %v8975_v39  ;;  %v8976_v48 = vmul.f32 0.0078125, %v8966_v6 }
0x2756   : > { %v9009_v26 = vmul.f32 %v9007_v53, %v8996_v4  ;;  %v9020_v42 = vadd.f32 %v9019_v5, %v9008_v45 }
0x2757   : > { %12168 = vrsqrt.f32 %v8983_v19  ;;  %v8984_v1 = vadd.f32 1e-06, %v8976_v48 }
0x2758   : > { %v9021_v38 = vadd.f32 %v9019_v5, %v9009_v26 }
0x2759   : > { %v12165_v14 = vpop.eup %12164  ;;  %12170 = vrsqrt.f32 %v8984_v1 }
0x275a   : > { %v8997_v9 = vmul.f32 %v12165_v14, %v16259_v28  ;;  %v8968_v22 = vpop.xlane.xlu0 %8967  ;;  %v9045_v46 = vpack.c.bf16 %v9021_v38, %v9020_v42 }
0x275b   : > { %v12167_v20 = vpop.eup %12166  ;;  %v8977_v30 = vmul.f32 0.0078125, %v8968_v22 }
0x275c   : > { %v9010_v37 = vmul.f32 %v9007_v53, %v8997_v9  ;;  %v8998_v25 = vmul.f32 %v12167_v20, %v16261_v49  ;;  %v8970_v40 = vpop.xlane.xlu1 %8969  ;;  %10894 = vmatprep.mubr.bf16.mxu1 %v9045_v46 }
0x275d   : > { %v8985_v35 = vadd.f32 1e-06, %v8977_v30  ;;  %v8978_v8 = vmul.f32 0.0078125, %v8970_v40 }
0x275e   : > { %v9011_v59 = vmul.f32 %v9007_v53, %v8998_v25  ;;  %v9022_v0 = vadd.f32 %v9019_v5, %v9010_v37 }
0x275f   : > { %12172 = vrsqrt.f32 %v8985_v35  ;;  %v8986_v58 = vadd.f32 1e-06, %v8978_v8 }
0x2760   : > { %v9023_v2 = vadd.f32 %v9019_v5, %v9011_v59 }
0x2761   : > { %v12169_v43 = vpop.eup %12168  ;;  %12174 = vrsqrt.f32 %v8986_v58 }
0x2762   : > { %v9046_v63 = vpack.c.bf16 %v9023_v2, %v9022_v0  ;;  %v8999_v28 = vmul.f32 %v12169_v43, %v16267_v57 }
0x2763   : > { %v12171_v11 = vpop.eup %12170 }
0x2764   : > { %10895 = vmatmul.mubr.bf16.vlgmr.msra.gmra.mrb[180].mxu1 %v9046_v63  ;;  %v9000_v31 = vmul.f32 %v12171_v11, %v16269_v10  ;;  %v9012_v36 = vmul.f32 %v9007_v53, %v8999_v28  ;;  %v10048_v10 = vld [vmem:[#allocation24] ss:$0 sm:$0xff] }
0x2766   : > { %v9013_v49 = vmul.f32 %v9007_v53, %v9000_v31  ;;  %v9024_v29 = vadd.f32 %v9019_v5, %v9012_v36 }
0x2768   : > { %v9025_v18 = vadd.f32 %v9019_v5, %v9013_v49 }
0x2769   : > { %v12173_v24 = vpop.eup %12172 }
0x276a   : > { %v9047_v55 = vpack.c.bf16 %v9025_v18, %v9024_v29  ;;  %v9001_v51 = vmul.f32 %v12173_v24, %v16278_v44 }
0x276b   : > { %v12175_v13 = vpop.eup %12174 }
0x276c   : > { %10898 = vmatprep.mubr.bf16.mxu1 %v9047_v55  ;;  %v9002_v32 = vmul.f32 %v12175_v13, %v16283_v41  ;;  %v9014_v15 = vmul.f32 %v9007_v53, %v9001_v51 }
0x276e   : > { %v9015_v3 = vmul.f32 %v9007_v53, %v9002_v32  ;;  %v9026_v57 = vadd.f32 %v9019_v5, %v9014_v15 }
0x2770   : > { %v9027_v27 = vadd.f32 %v9019_v5, %v9015_v3 }
0x2772   : > { %v9048_v52 = vpack.c.bf16 %v9027_v27, %v9026_v57 }
0x2774   : > { %10899 = vmatmul.mubr.bf16.gmra.mrb[184].mxu1 %v9048_v52 }
0x2837   : > { %v10896_v16 = vpop.f32.mrb[180].mxu1 }
0x2838   : > { %v9146_v12 = vadd.f32 %v10896_v16, %v10048_v10  ;;  %v9137_v34 = vpop.f32.mrb[181].mxu1 }
0x2839   : > { %v9138_v44 = vadd.f32 %v10048_v10, %v9137_v34  ;;  %v10897_v7 = vpop.f32.mrb[182].mxu1 }
0x283a   : > { %9170 = vst.msk [vmem:[%s983_s5 + $0x10] sm:$0xff] %vm2296_vm2, %v9146_v12  ;;  %v9149_v41 = vadd.f32 %v10897_v7, %v10048_v10  ;;  %v9140_v47 = vpop.f32.mrb[183].mxu1 }
0x283b   : > { %9168 = vst.msk [vmem:[%s983_s5] sm:$0xff] %vm2296_vm2, %v9138_v44  ;;  %v9141_v17 = vadd.f32 %v10048_v10, %v9140_v47 }
0x283c   : > { %9171 = vst.msk [vmem:[%s983_s5 + $0x18] sm:$0xff] %vm2296_vm2, %v9149_v41 }
0x283d   : > { %9169 = vst.msk [vmem:[%s983_s5 + $0x8] sm:$0xff] %vm2296_vm2, %v9141_v17 }
0x2847   : > { %v10900_v54 = vpop.f32.mrb[184].mxu1 }
0x2848   : > { %v9162_v61 = vadd.f32 %v10900_v54, %v10048_v10  ;;  %v9153_v33 = vpop.f32.mrb[185].mxu1 }
0x2849   : > { %v9154_v60 = vadd.f32 %v10048_v10, %v9153_v33  ;;  %v10901_v21 = vpop.f32.mrb[186].mxu1 }
0x284a   : > { %9174 = vst.msk [vmem:[%s983_s5 + $0x30] sm:$0xff] %vm2296_vm2, %v9162_v61  ;;  %v9165_v23 = vadd.f32 %v10901_v21, %v10048_v10  ;;  %v9156_v53 = vpop.f32.mrb[187].mxu1 }
0x284b   : > { %9172 = vst.msk [vmem:[%s983_s5 + $0x20] sm:$0xff] %vm2296_vm2, %v9154_v60  ;;  %v9157_v62 = vadd.f32 %v10048_v10, %v9156_v53 }
0x284c   : > { %9175 = vst.msk [vmem:[%s983_s5 + $0x38] sm:$0xff] %vm2296_vm2, %v9165_v23 }
0x284d   : > { %9173 = vst.msk [vmem:[%s983_s5 + $0x28] sm:$0xff] %vm2296_vm2, %v9157_v62 }
0x284e PF: > { %s16601_s28 = sld [smem:[#allocation33_spill]] }
0x2854   : > { %s42_s5 = sadd.s32 1, %s16601_s28  }
0x2855   : > { %p39_p0 = scmp.ge.s32.totalorder %s42_s5, 4  }
0x2857   :  { %41 = sbr.rel (!%p39_p0) target bundleno = 26 (0x1a), region = 227 }
0x285e   :  { %9197 = vsyncpa [#allocation3], 1 }
0x285f   :  { %9199 = vsyncpa [#allocation3 + $0x1], 1 }
0x2860   :  { %9200 = vsyncpa [#allocation5], 1 }
0x2861   :  { %9201 = vsyncpa [#allocation8], 1 }
0x2862   :  { %9202 = vsyncpa [#allocation11], 1 }
0x2863   :  { %9203 = vsyncpa [#allocation14], 1 }
0x2864   :  { %9204 = vsyncpa [#allocation17], 1 }
0x2865   :  { %9205 = vsyncpa [#allocation20], 1 }
0x2866   :  { %9206 = vsyncpa [#allocation23], 1 }

</bundles_post_ra>
